<compile_context>
chip_gen: v7x
topology: tpu7x:2x2x1
jax: 0.10.0
libtpu: 0.0.40
codegen_flags: <defaults>
</compile_context>

<pallas_src>
import functools

import jax
import jax.numpy as jnp
from jax.experimental import pallas as pl
from jax.experimental.pallas import tpu as pltpu


# ----------------------------- Pallas kernels -----------------------------

def _linear_kernel(x_ref, w_ref, b_ref, o_ref, acc_ref, *, activation):
    # x: (tm, tk) bf16, w: (tk, tn) bf16 (pre-transposed to (in, out) at init),
    # b: (1, tn) f32, o: (tm, tn), acc: (tm, tn) f32 scratch.
    @pl.when(pl.program_id(2) == 0)
    def _():
        acc_ref[...] = jnp.zeros(acc_ref.shape, acc_ref.dtype)

    acc_ref[...] += jnp.dot(
        x_ref[...].astype(jnp.bfloat16), w_ref[...],
        preferred_element_type=jnp.float32)

    @pl.when(pl.program_id(2) == pl.num_programs(2) - 1)
    def _():
        y = acc_ref[...] + b_ref[...]
        if activation == "gelu_tanh":
            c = 0.7978845608028654  # sqrt(2/pi)
            y = 0.5 * y * (1.0 + jnp.tanh(c * (y + 0.044715 * (y * y * y))))
        o_ref[...] = y.astype(o_ref.dtype)


def _ln_kernel(x_ref, g_ref, b_ref, ln_ref, *, eps):
    # First-layer LayerNorm (residual is None): ln = LN(x); residual := x (no copy).
    x = x_ref[...]
    mean = jnp.mean(x, axis=-1, keepdims=True)
    var = jnp.mean(jnp.square(x - mean), axis=-1, keepdims=True)
    inv = jax.lax.rsqrt(var + eps)
    ln_ref[...] = ((x - mean) * inv * g_ref[...] + b_ref[...]).astype(ln_ref.dtype)


def _add_ln_kernel(x_ref, res_ref, g_ref, b_ref, ln_ref, resid_ref, *, eps):
    # FastLayerNorm semantics: x = hidden + residual; return (LN(x), x)
    x = x_ref[...] + res_ref[...]
    mean = jnp.mean(x, axis=-1, keepdims=True)
    var = jnp.mean(jnp.square(x - mean), axis=-1, keepdims=True)
    inv = jax.lax.rsqrt(var + eps)
    ln_ref[...] = ((x - mean) * inv * g_ref[...] + b_ref[...]).astype(ln_ref.dtype)
    resid_ref[...] = x


def _flash_mqa_kernel(q_ref, k_ref, v_ref, o_ref, m_ref, l_ref, acc_ref, *,
                      scale, tq, tk):
    # q: (tq, D) rows of head h (columns h*D:(h+1)*D of the (T, H*D) Q slab),
    # k, v: (tk, D) shared single KV head (MQA).
    # grid = (H, num_q_tiles, num_kv_tiles); kv axis last ("arbitrary"), online softmax.
    kj = pl.program_id(2)

    @pl.when(kj == 0)
    def _():
        m_ref[...] = jnp.full(m_ref.shape, -jnp.inf, m_ref.dtype)
        l_ref[...] = jnp.zeros(l_ref.shape, l_ref.dtype)
        acc_ref[...] = jnp.zeros(acc_ref.shape, acc_ref.dtype)

    q_start = pl.program_id(1) * tq
    kv_start = kj * tk

    # Causal tile skipping: nothing to do if every kv token is in the future.
    @pl.when(kv_start <= q_start + (tq - 1))
    def _():
        q = q_ref[...]                                   # bf16
        k = k_ref[...]                                   # bf16
        s = jax.lax.dot_general(q, k, (((1,), (1,)), ((), ())),
                                preferred_element_type=jnp.float32) * scale
        row = jax.lax.broadcasted_iota(jnp.int32, (tq, tk), 0) + q_start
        col = jax.lax.broadcasted_iota(jnp.int32, (tq, tk), 1) + kv_start
        s = jnp.where(col <= row, s, -1e30)

        m_prev = m_ref[...]
        m_new = jnp.maximum(m_prev, jnp.max(s, axis=-1, keepdims=True))
        alpha = jnp.exp(m_prev - m_new)                  # f32 softmax statistics
        p = jnp.exp(s - m_new)
        l_ref[...] = alpha * l_ref[...] + jnp.sum(p, axis=-1, keepdims=True)
        acc_ref[...] = alpha * acc_ref[...] + jnp.dot(
            p.astype(jnp.bfloat16), v_ref[...],
            preferred_element_type=jnp.float32)
        m_ref[...] = m_new

    @pl.when(kj == pl.num_programs(2) - 1)
    def _():
        o_ref[...] = (acc_ref[...] *
                      pl.reciprocal(l_ref[...], approx=True)).astype(o_ref.dtype)


# ----------------------------- wrappers -----------------------------

def linear(x, w, b, activation=None, out_dtype=jnp.bfloat16,
           tm=256, tn=256, tk=512):
    """y = x @ w + b  with w pre-transposed to (in, out), stored bf16."""
    t, kdim = x.shape
    ndim = w.shape[1]
    tm, tn, tk = min(tm, t), min(tn, ndim), min(tk, kdim)
    assert t % tm == 0 and ndim % tn == 0 and kdim % tk == 0
    kernel = functools.partial(_linear_kernel, activation=activation)
    return pl.pallas_call(
        kernel,
        out_shape=jax.ShapeDtypeStruct((t, ndim), out_dtype),
        grid_spec=pltpu.PrefetchScalarGridSpec(
            num_scalar_prefetch=0,
            grid=(t // tm, ndim // tn, kdim // tk),
            in_specs=[
                pl.BlockSpec((tm, tk), lambda i, j, k: (i, k)),
                pl.BlockSpec((tk, tn), lambda i, j, k: (k, j)),
                pl.BlockSpec((1, tn), lambda i, j, k: (0, j)),
            ],
            out_specs=pl.BlockSpec((tm, tn), lambda i, j, k: (i, j)),
            scratch_shapes=[pltpu.VMEM((tm, tn), jnp.float32)],
        ),
        compiler_params=pltpu.CompilerParams(
            dimension_semantics=("parallel", "parallel", "arbitrary")),
    )(x, w, b.reshape(1, -1))


def add_layernorm(x, residual, gamma, beta, eps, out_dtype=jnp.bfloat16, tm=256):
    """Returns (layernorm(x + residual), x + residual). residual=None -> (LN(x), x)."""
    t, h = x.shape
    tm = min(tm, t)
    assert t % tm == 0 and h % 128 == 0
    sem = pltpu.CompilerParams(dimension_semantics=("parallel",))
    g2, b2 = gamma.reshape(1, -1), beta.reshape(1, -1)
    if residual is None:
        ln = pl.pallas_call(
            functools.partial(_ln_kernel, eps=eps),
            out_shape=jax.ShapeDtypeStruct((t, h), out_dtype),
            grid=(t // tm,),
            in_specs=[
                pl.BlockSpec((tm, h), lambda i: (i, 0)),
                pl.BlockSpec((1, h), lambda i: (0, 0)),
                pl.BlockSpec((1, h), lambda i: (0, 0)),
            ],
            out_specs=pl.BlockSpec((tm, h), lambda i: (i, 0)),
            compiler_params=sem,
        )(x, g2, b2)
        return ln, x
    ln, new_res = pl.pallas_call(
        functools.partial(_add_ln_kernel, eps=eps),
        out_shape=(jax.ShapeDtypeStruct((t, h), out_dtype),
                   jax.ShapeDtypeStruct((t, h), jnp.float32)),
        grid=(t // tm,),
        in_specs=[
            pl.BlockSpec((tm, h), lambda i: (i, 0)),
            pl.BlockSpec((tm, h), lambda i: (i, 0)),
            pl.BlockSpec((1, h), lambda i: (0, 0)),
            pl.BlockSpec((1, h), lambda i: (0, 0)),
        ],
        out_specs=(pl.BlockSpec((tm, h), lambda i: (i, 0)),
                   pl.BlockSpec((tm, h), lambda i: (i, 0))),
        compiler_params=sem,
    )(x, residual, g2, b2)
    return ln, new_res


def mqa_attention(q2d, k, v, num_heads, head_size, scale, tq=128, tk=128):
    """q2d: (T, H*D) bf16 (head-major columns); k, v: (T, D) bf16 shared MQA KV head.
    Returns (T, H*D) bf16, causal. No transposes: heads are addressed via BlockSpec
    column indices on both the Q input and the output."""
    t = q2d.shape[0]
    h, d = num_heads, head_size
    tq, tk = min(tq, t), min(tk, t)
    assert t % tq == 0 and t % tk == 0 and d % 128 == 0
    kernel = functools.partial(_flash_mqa_kernel, scale=scale, tq=tq, tk=tk)
    return pl.pallas_call(
        kernel,
        out_shape=jax.ShapeDtypeStruct((t, h * d), jnp.bfloat16),
        grid_spec=pltpu.PrefetchScalarGridSpec(
            num_scalar_prefetch=0,
            grid=(h, t // tq, t // tk),
            in_specs=[
                pl.BlockSpec((tq, d), lambda hh, i, j: (i, hh)),   # head hh's Q cols
                pl.BlockSpec((tk, d), lambda hh, i, j: (j, 0)),
                pl.BlockSpec((tk, d), lambda hh, i, j: (j, 0)),
            ],
            out_specs=pl.BlockSpec((tq, d), lambda hh, i, j: (i, hh)),
            scratch_shapes=[
                pltpu.VMEM((tq, 1), jnp.float32),   # running max m
                pltpu.VMEM((tq, 1), jnp.float32),   # running sum l
                pltpu.VMEM((tq, d), jnp.float32),   # output accumulator
            ],
        ),
        compiler_params=pltpu.CompilerParams(
            dimension_semantics=("parallel", "parallel", "arbitrary")),
    )(q2d, k, v)


# ----------------------------- model -----------------------------

class Config:
    vocab_size = 256
    max_position_embeddings = 256
    hidden_size = 256
    num_attention_heads = 2
    num_hidden_layers = 2
    layer_norm_epsilon = 1e-5
    activation_function = "gelu_pytorch_tanh"

    @property
    def head_size(self):
        return self.hidden_size // self.num_attention_heads

    @property
    def intermediate_size(self):
        return 4 * self.hidden_size


def init_params(cfg: Config, key):
    ks = iter(jax.random.split(key, 64))
    scale = 0.02

    def nrm(shape):
        return scale * jax.random.normal(next(ks), shape, dtype=jnp.float32)

    def w_bf16(out_dim, in_dim):
        # Weights stored pre-transposed (in, out) in bf16: no per-call transpose,
        # bf16-native MXU inputs, half the HBM/VMEM bytes.
        return nrm((out_dim, in_dim)).T.astype(jnp.bfloat16)

    params = {
        "wte": nrm((cfg.vocab_size, cfg.hidden_size)),
        "wpe": nrm((cfg.max_position_embeddings, cfg.hidden_size)),
        "ln_f_g": jnp.ones((cfg.hidden_size,), jnp.float32),
        "ln_f_b": jnp.zeros((cfg.hidden_size,), jnp.float32),
        "layers": [],
    }
    H, D, E, I = (cfg.num_attention_heads, cfg.head_size,
                  cfg.hidden_size, cfg.intermediate_size)
    for _ in range(cfg.num_hidden_layers):
        layer = {
            "ln1_g": jnp.ones((E,), jnp.float32),
            "ln1_b": jnp.zeros((E,), jnp.float32),
            "ln2_g": jnp.ones((E,), jnp.float32),
            "ln2_b": jnp.zeros((E,), jnp.float32),
            # c_attn torch layout is [(H+2)*D, E]; stored here as (E, (H+2)*D) bf16.
            "c_attn_w": w_bf16((H + 2) * D, E),
            "c_attn_b": nrm(((H + 2) * D,)),
            "attn_c_proj_w": w_bf16(E, H * D),
            "attn_c_proj_b": nrm((E,)),
            "c_fc_w": w_bf16(I, E),
            "c_fc_b": nrm((I,)),
            "mlp_c_proj_w": w_bf16(E, I),
            "mlp_c_proj_b": nrm((E,)),
        }
        params["layers"].append(layer)
    return params


def santacoder_forward(params, cfg: Config, input_ids, position_ids,
                       past_present_indices, kv_cache):
    """Prefill forward pass (past_key_values=None path, process_group size 1).

    kv_cache: pre-allocated (pre_allocate_past_size, L, 2, 1, D) bf16 buffer, donated
    so the scatter is an in-place row update (no O(cache) zero-fill per step).
    """
    T = input_ids.shape[0]
    H, D = cfg.num_attention_heads, cfg.head_size
    eps = cfg.layer_norm_epsilon
    scale = D ** (-0.5)

    # embeddings (gather = glue); residual stream kept in f32
    hidden = params["wte"][input_ids] + params["wpe"][position_ids]
    residual = None  # first ln_1 call has no residual -> no wasted zero add

    # TODO(synk): packed multi-sequence prefill (start_seq/end_seq cu_seqlens) is not
    # handled; the causal mask assumes a single sequence of length T.
    presents = []
    for layer in params["layers"]:
        # ln_1 (bf16 output feeds the qkv matmul)
        ln1, residual = add_layernorm(hidden, residual,
                                      layer["ln1_g"], layer["ln1_b"], eps)
        # attention: fused qkv projection (bf16 output)
        qkv = linear(ln1, layer["c_attn_w"], layer["c_attn_b"])         # (T, (H+2)*D)
        q2d = qkv[:, : H * D]                                            # (T, H*D)
        kv = qkv[:, H * D:].reshape(T, 2, 1, D)                          # layer_past[...] = kv
        presents.append(kv)
        k = kv[:, 0, 0, :]
        v = kv[:, 1, 0, :]
        attn = mqa_attention(q2d, k, v, H, D, scale)                     # (T, H*D), causal
        attn_out = linear(attn, layer["attn_c_proj_w"], layer["attn_c_proj_b"],
                          out_dtype=jnp.float32)
        # ln_2
        ln2, residual = add_layernorm(attn_out, residual,
                                      layer["ln2_g"], layer["ln2_b"], eps)
        # mlp (gelu-tanh fused into c_fc epilogue)
        h_fc = linear(ln2, layer["c_fc_w"], layer["c_fc_b"], activation="gelu_tanh")
        hidden = linear(h_fc, layer["mlp_c_proj_w"], layer["mlp_c_proj_b"],
                        out_dtype=jnp.float32)

    # prefill: scatter presents into the donated pre-allocated cache (in-place)
    present = jnp.stack(presents, axis=1)                                # (T, L, 2, 1, D)
    past_key_values = kv_cache.at[past_present_indices].set(present)

    # final layernorm (f32 output)
    hidden, _ = add_layernorm(hidden, residual, params["ln_f_g"], params["ln_f_b"],
                              eps, out_dtype=jnp.float32)
    return hidden, past_key_values


# ----------------------------- main -----------------------------

if __name__ == "__main__":
    cfg = Config()
    T = 128
    pre_allocate_past_size = 256

    key = jax.random.PRNGKey(0)
    pkey, ikey = jax.random.split(key)
    params = init_params(cfg, pkey)

    input_ids = jax.random.randint(ikey, (T,), 0, cfg.vocab_size, dtype=jnp.int32)
    position_ids = jnp.arange(T, dtype=jnp.int32)
    past_present_indices = jnp.arange(T, dtype=jnp.int32)
    kv_cache = jnp.zeros(
        (pre_allocate_past_size, cfg.num_hidden_layers, 2, 1, cfg.head_size),
        jnp.bfloat16)

    fwd = jax.jit(functools.partial(santacoder_forward, params, cfg),
                  donate_argnums=(3,))
    hidden_states, past_key_values = fwd(input_ids, position_ids,
                                         past_present_indices, kv_cache)
    jax.block_until_ready((hidden_states, past_key_values))

    assert hidden_states.shape == (T, cfg.hidden_size)
    assert past_key_values.shape == (
        pre_allocate_past_size, cfg.num_hidden_layers, 2, 1, cfg.head_size)
    assert bool(jnp.isfinite(hidden_states).all())
    assert bool(jnp.isfinite(past_key_values.astype(jnp.float32)).all())
    print("KERNEL_OK")
</pallas_src>

<mosaic_0001>
module attributes {stable_mosaic.version = 11 : i64} {
  func.func @_ln_kernel(%arg0: i32, %arg1: memref<128x256xf32, #tpu.memory_space<vmem>>, %arg2: memref<1x256xf32, #tpu.memory_space<vmem>>, %arg3: memref<1x256xf32, #tpu.memory_space<vmem>>, %arg4: memref<128x256xbf16, #tpu.memory_space<vmem>>) attributes {dimension_semantics = [#tpu.dimension_semantics<parallel>], iteration_bounds = array<i64: 1>, scalar_prefetch = 0 : i64, scratch_operands = 0 : i64, tpu.core_type = #tpu.core_type<tc>, window_params = [{transform_indices = @transform_0, window_bounds = array<i64: 128, 256>}, {pipeline_mode = #tpu.pipeline_mode<synchronous>, transform_indices = @transform_1, window_bounds = array<i64: 1, 256>}, {pipeline_mode = #tpu.pipeline_mode<synchronous>, transform_indices = @transform_2, window_bounds = array<i64: 1, 256>}, {transform_indices = @transform_3, window_bounds = array<i64: 128, 256>}]} {
    %c0 = arith.constant 0 : index
    %c0_0 = arith.constant 0 : index
    %0 = vector.load %arg1[%c0, %c0_0] : memref<128x256xf32, #tpu.memory_space<vmem>>, vector<128x256xf32>
    %cst = arith.constant dense<0.000000e+00> : vector<128xf32>
    %1 = vector.multi_reduction <add>, %0, %cst [1] : vector<128x256xf32> to vector<128xf32>
    %2 = vector.shape_cast %1 : vector<128xf32> to vector<128x1xf32>
    %cst_1 = arith.constant 2.560000e+02 : f32
    %3 = vector.broadcast %cst_1 : f32 to vector<128x1xf32>
    %4 = arith.divf %2, %3 : vector<128x1xf32>
    %5 = vector.broadcast %4 : vector<128x1xf32> to vector<128x256xf32>
    %6 = arith.subf %0, %5 : vector<128x256xf32>
    %7 = arith.mulf %6, %6 : vector<128x256xf32>
    %cst_2 = arith.constant dense<0.000000e+00> : vector<128xf32>
    %8 = vector.multi_reduction <add>, %7, %cst_2 [1] : vector<128x256xf32> to vector<128xf32>
    %9 = vector.shape_cast %8 : vector<128xf32> to vector<128x1xf32>
    %cst_3 = arith.constant 2.560000e+02 : f32
    %10 = vector.broadcast %cst_3 : f32 to vector<128x1xf32>
    %11 = arith.divf %9, %10 : vector<128x1xf32>
    %cst_4 = arith.constant 9.99999974E-6 : f32
    %12 = vector.broadcast %cst_4 : f32 to vector<128x1xf32>
    %13 = arith.addf %11, %12 : vector<128x1xf32>
    %14 = math.rsqrt %13 : vector<128x1xf32>
    %15 = vector.broadcast %4 : vector<128x1xf32> to vector<128x256xf32>
    %16 = arith.subf %0, %15 : vector<128x256xf32>
    %17 = vector.broadcast %14 : vector<128x1xf32> to vector<128x256xf32>
    %18 = arith.mulf %16, %17 : vector<128x256xf32>
    %c0_5 = arith.constant 0 : index
    %c0_6 = arith.constant 0 : index
    %19 = vector.load %arg2[%c0_5, %c0_6] : memref<1x256xf32, #tpu.memory_space<vmem>>, vector<1x256xf32>
    %20 = vector.broadcast %19 : vector<1x256xf32> to vector<128x256xf32>
    %21 = arith.mulf %18, %20 : vector<128x256xf32>
    %c0_7 = arith.constant 0 : index
    %c0_8 = arith.constant 0 : index
    %22 = vector.load %arg3[%c0_7, %c0_8] : memref<1x256xf32, #tpu.memory_space<vmem>>, vector<1x256xf32>
    %23 = vector.broadcast %22 : vector<1x256xf32> to vector<128x256xf32>
    %24 = arith.addf %21, %23 : vector<128x256xf32>
    %25 = arith.truncf %24 : vector<128x256xf32> to vector<128x256xbf16>
    %c0_9 = arith.constant 0 : index
    %c0_10 = arith.constant 0 : index
    %26 = vector.load %arg4[%c0_9, %c0_10] : memref<128x256xbf16, #tpu.memory_space<vmem>>, vector<128x256xbf16>
    tpu.vector_store %arg4[%c0_9, %c0_10], %25 {strides = array<i32>} : memref<128x256xbf16, #tpu.memory_space<vmem>>, vector<128x256xbf16>,
    return
  }
  func.func @transform_0(%arg0: i32) -> (i32, i32) {
    %c0_i32 = arith.constant 0 : i32
    %c0_i32_0 = arith.constant 0 : i32
    return %arg0, %c0_i32 : i32, i32
  }
  func.func @transform_1(%arg0: i32) -> (i32, i32) {
    %c0_i32 = arith.constant 0 : i32
    %c0_i32_0 = arith.constant 0 : i32
    %c0_i32_1 = arith.constant 0 : i32
    return %c0_i32, %c0_i32_0 : i32, i32
  }
  func.func @transform_2(%arg0: i32) -> (i32, i32) {
    %c0_i32 = arith.constant 0 : i32
    %c0_i32_0 = arith.constant 0 : i32
    %c0_i32_1 = arith.constant 0 : i32
    return %c0_i32, %c0_i32_0 : i32, i32
  }
  func.func @transform_3(%arg0: i32) -> (i32, i32) {
    %c0_i32 = arith.constant 0 : i32
    %c0_i32_0 = arith.constant 0 : i32
    return %arg0, %c0_i32 : i32, i32
  }
}

module attributes {stable_mosaic.version = 11 : i64} {
  func.func @_linear_kernel(%arg0: i32, %arg1: i32, %arg2: i32, %arg3: memref<128x256xbf16, #tpu.memory_space<vmem>>, %arg4: memref<256x256xbf16, #tpu.memory_space<vmem>>, %arg5: memref<1x256xf32, #tpu.memory_space<vmem>>, %arg6: memref<128x256xbf16, #tpu.memory_space<vmem>>, %arg7: memref<128x256xf32, #tpu.memory_space<vmem>>) attributes {dimension_semantics = [#tpu.dimension_semantics<parallel>, #tpu.dimension_semantics<parallel>, #tpu.dimension_semantics<arbitrary>], iteration_bounds = array<i64: 1, 2, 1>, scalar_prefetch = 0 : i64, scratch_operands = 1 : i64, tpu.core_type = #tpu.core_type<tc>, window_params = [{transform_indices = @transform_0, window_bounds = array<i64: 128, 256>}, {transform_indices = @transform_1, window_bounds = array<i64: 256, 256>}, {transform_indices = @transform_2, window_bounds = array<i64: 1, 256>}, {transform_indices = @transform_3, window_bounds = array<i64: 128, 256>}]} {
    %c0_i32 = arith.constant 0 : i32
    %0 = arith.cmpi eq, %arg2, %c0_i32 : i32
    %1 = arith.extui %0 : i1 to i32
    %c0_i32_0 = arith.constant 0 : i32
    %2 = arith.cmpi ne, %1, %c0_i32_0 : i32
    scf.if %2 {
      %cst_10 = arith.constant 0.000000e+00 : f32
      %12 = vector.broadcast %cst_10 : f32 to vector<128x256xf32>
      %c0_11 = arith.constant 0 : index
      %c0_12 = arith.constant 0 : index
      %13 = vector.load %arg7[%c0_11, %c0_12] : memref<128x256xf32, #tpu.memory_space<vmem>>, vector<128x256xf32>
      tpu.vector_store %arg7[%c0_11, %c0_12], %12 {strides = array<i32>} : memref<128x256xf32, #tpu.memory_space<vmem>>, vector<128x256xf32>,
    } else {
    }
    %c0 = arith.constant 0 : index
    %c0_1 = arith.constant 0 : index
    %3 = vector.load %arg7[%c0, %c0_1] : memref<128x256xf32, #tpu.memory_space<vmem>>, vector<128x256xf32>
    %c0_2 = arith.constant 0 : index
    %c0_3 = arith.constant 0 : index
    %4 = vector.load %arg3[%c0_2, %c0_3] : memref<128x256xbf16, #tpu.memory_space<vmem>>, vector<128x256xbf16>
    %c0_4 = arith.constant 0 : index
    %c0_5 = arith.constant 0 : index
    %5 = vector.load %arg4[%c0_4, %c0_5] : memref<256x256xbf16, #tpu.memory_space<vmem>>, vector<256x256xbf16>
    %cst = arith.constant dense<0.000000e+00> : vector<128x256xf32>
    %6 = tpu.matmul %4, %5, %cst {dimension_numbers = #tpu.dot_dimension_numbers<[1], [0], [0], [1], [0, 0, 1, 1], [], []>} : vector<128x256xbf16>, vector<256x256xbf16>, vector<128x256xf32> -> vector<128x256xf32>
    %7 = arith.addf %3, %6 : vector<128x256xf32>
    %c0_6 = arith.constant 0 : index
    %c0_7 = arith.constant 0 : index
    %8 = vector.load %arg7[%c0_6, %c0_7] : memref<128x256xf32, #tpu.memory_space<vmem>>, vector<128x256xf32>
    tpu.vector_store %arg7[%c0_6, %c0_7], %7 {strides = array<i32>} : memref<128x256xf32, #tpu.memory_space<vmem>>, vector<128x256xf32>,
    %c0_i32_8 = arith.constant 0 : i32
    %9 = arith.cmpi eq, %arg2, %c0_i32_8 : i32
    %10 = arith.extui %9 : i1 to i32
    %c0_i32_9 = arith.constant 0 : i32
    %11 = arith.cmpi ne, %10, %c0_i32_9 : i32
    scf.if %11 {
      %c0_10 = arith.constant 0 : index
      %c0_11 = arith.constant 0 : index
      %12 = vector.load %arg7[%c0_10, %c0_11] : memref<128x256xf32, #tpu.memory_space<vmem>>, vector<128x256xf32>
      %c0_12 = arith.constant 0 : index
      %c0_13 = arith.constant 0 : index
      %13 = vector.load %arg5[%c0_12, %c0_13] : memref<1x256xf32, #tpu.memory_space<vmem>>, vector<1x256xf32>
      %14 = vector.broadcast %13 : vector<1x256xf32> to vector<128x256xf32>
      %15 = arith.addf %12, %14 : vector<128x256xf32>
      %16 = arith.truncf %15 : vector<128x256xf32> to vector<128x256xbf16>
      %c0_14 = arith.constant 0 : index
      %c0_15 = arith.constant 0 : index
      %17 = vector.load %arg6[%c0_14, %c0_15] : memref<128x256xbf16, #tpu.memory_space<vmem>>, vector<128x256xbf16>
      tpu.vector_store %arg6[%c0_14, %c0_15], %16 {strides = array<i32>} : memref<128x256xbf16, #tpu.memory_space<vmem>>, vector<128x256xbf16>,
    } else {
    }
    return
  }
  func.func @transform_0(%arg0: i32, %arg1: i32, %arg2: i32) -> (i32, i32) {
    %c0_i32 = arith.constant 0 : i32
    return %arg0, %arg2 : i32, i32
  }
  func.func @transform_1(%arg0: i32, %arg1: i32, %arg2: i32) -> (i32, i32) {
    %c0_i32 = arith.constant 0 : i32
    return %arg2, %arg1 : i32, i32
  }
  func.func @transform_2(%arg0: i32, %arg1: i32, %arg2: i32) -> (i32, i32) {
    %c0_i32 = arith.constant 0 : i32
    %c0_i32_0 = arith.constant 0 : i32
    return %c0_i32, %arg1 : i32, i32
  }
  func.func @transform_3(%arg0: i32, %arg1: i32, %arg2: i32) -> (i32, i32) {
    %c0_i32 = arith.constant 0 : i32
    return %arg0, %arg1 : i32, i32
  }
}

module attributes {stable_mosaic.version = 11 : i64} {
  func.func @_flash_mqa_kernel(%arg0: i32, %arg1: i32, %arg2: i32, %arg3: memref<128x128xbf16, #tpu.memory_space<vmem>>, %arg4: memref<128x128xbf16, #tpu.memory_space<vmem>>, %arg5: memref<128x128xbf16, #tpu.memory_space<vmem>>, %arg6: memref<128x128xbf16, #tpu.memory_space<vmem>>, %arg7: memref<128x1xf32, #tpu.memory_space<vmem>>, %arg8: memref<128x1xf32, #tpu.memory_space<vmem>>, %arg9: memref<128x128xf32, #tpu.memory_space<vmem>>) attributes {dimension_semantics = [#tpu.dimension_semantics<parallel>, #tpu.dimension_semantics<parallel>, #tpu.dimension_semantics<arbitrary>], iteration_bounds = array<i64: 2, 1, 1>, scalar_prefetch = 0 : i64, scratch_operands = 3 : i64, tpu.core_type = #tpu.core_type<tc>, window_params = [{transform_indices = @transform_0, window_bounds = array<i64: 128, 128>}, {transform_indices = @transform_1, window_bounds = array<i64: 128, 128>}, {transform_indices = @transform_2, window_bounds = array<i64: 128, 128>}, {transform_indices = @transform_3, window_bounds = array<i64: 128, 128>}]} {
    %c0_i32 = arith.constant 0 : i32
    %0 = arith.cmpi eq, %arg2, %c0_i32 : i32
    %1 = arith.extui %0 : i1 to i32
    %c0_i32_0 = arith.constant 0 : i32
    %2 = arith.cmpi ne, %1, %c0_i32_0 : i32
    scf.if %2 {
      %cst = arith.constant 0xFF800000 : f32
      %12 = vector.broadcast %cst : f32 to vector<128x1xf32>
      %c0 = arith.constant 0 : index
      %c0_5 = arith.constant 0 : index
      %13 = vector.load %arg7[%c0, %c0_5] : memref<128x1xf32, #tpu.memory_space<vmem>>, vector<128x1xf32>
      tpu.vector_store %arg7[%c0, %c0_5], %12 {strides = array<i32>} : memref<128x1xf32, #tpu.memory_space<vmem>>, vector<128x1xf32>,
      %cst_6 = arith.constant 0.000000e+00 : f32
      %14 = vector.broadcast %cst_6 : f32 to vector<128x1xf32>
      %c0_7 = arith.constant 0 : index
      %c0_8 = arith.constant 0 : index
      %15 = vector.load %arg8[%c0_7, %c0_8] : memref<128x1xf32, #tpu.memory_space<vmem>>, vector<128x1xf32>
      tpu.vector_store %arg8[%c0_7, %c0_8], %14 {strides = array<i32>} : memref<128x1xf32, #tpu.memory_space<vmem>>, vector<128x1xf32>,
      %cst_9 = arith.constant 0.000000e+00 : f32
      %16 = vector.broadcast %cst_9 : f32 to vector<128x128xf32>
      %c0_10 = arith.constant 0 : index
      %c0_11 = arith.constant 0 : index
      %17 = vector.load %arg9[%c0_10, %c0_11] : memref<128x128xf32, #tpu.memory_space<vmem>>, vector<128x128xf32>
      tpu.vector_store %arg9[%c0_10, %c0_11], %16 {strides = array<i32>} : memref<128x128xf32, #tpu.memory_space<vmem>>, vector<128x128xf32>,
    } else {
    }
    %c128_i32 = arith.constant 128 : i32
    %3 = arith.muli %arg1, %c128_i32 : i32
    %c128_i32_1 = arith.constant 128 : i32
    %4 = arith.muli %arg2, %c128_i32_1 : i32
    %c127_i32 = arith.constant 127 : i32
    %5 = arith.addi %3, %c127_i32 : i32
    %6 = arith.cmpi sle, %4, %5 : i32
    %7 = arith.extui %6 : i1 to i32
    %c0_i32_2 = arith.constant 0 : i32
    %8 = arith.cmpi ne, %7, %c0_i32_2 : i32
    scf.if %8 {
      %c0 = arith.constant 0 : index
      %c0_5 = arith.constant 0 : index
      %12 = vector.load %arg3[%c0, %c0_5] : memref<128x128xbf16, #tpu.memory_space<vmem>>, vector<128x128xbf16>
      %c0_6 = arith.constant 0 : index
      %c0_7 = arith.constant 0 : index
      %13 = vector.load %arg4[%c0_6, %c0_7] : memref<128x128xbf16, #tpu.memory_space<vmem>>, vector<128x128xbf16>
      %cst = arith.constant dense<0.000000e+00> : vector<128x128xf32>
      %14 = tpu.matmul %12, %13, %cst {dimension_numbers = #tpu.dot_dimension_numbers<[1], [1], [0], [0], [0, 0, 1, 0], [], []>} : vector<128x128xbf16>, vector<128x128xbf16>, vector<128x128xf32> -> vector<128x128xf32>
      %cst_8 = arith.constant 0.0883883461 : f32
      %15 = vector.broadcast %cst_8 : f32 to vector<128x128xf32>
      %16 = arith.mulf %14, %15 : vector<128x128xf32>
      %17 = tpu.iota {dimensions = array<i32: 0>} : vector<128x128xi32>
      %18 = vector.broadcast %3 : i32 to vector<128x128xi32>
      %19 = arith.addi %17, %18 : vector<128x128xi32>
      %20 = tpu.iota {dimensions = array<i32: 1>} : vector<128x128xi32>
      %21 = vector.broadcast %4 : i32 to vector<128x128xi32>
      %22 = arith.addi %20, %21 : vector<128x128xi32>
      %23 = arith.cmpi sle, %22, %19 : vector<128x128xi32>
      %cst_9 = arith.constant -1.000000e+30 : f32
      %24 = vector.broadcast %cst_9 : f32 to vector<128x128xf32>
      %25 = arith.select %23, %16, %24 : vector<128x128xi1>, vector<128x128xf32>
      %c0_10 = arith.constant 0 : index
      %c0_11 = arith.constant 0 : index
      %26 = vector.load %arg7[%c0_10, %c0_11] : memref<128x1xf32, #tpu.memory_space<vmem>>, vector<128x1xf32>
      %cst_12 = arith.constant dense<0xFF800000> : vector<128xf32>
      %27 = vector.multi_reduction <maximumf>, %25, %cst_12 [1] : vector<128x128xf32> to vector<128xf32>
      %28 = vector.shape_cast %27 : vector<128xf32> to vector<128x1xf32>
      %29 = arith.maximumf %26, %28 : vector<128x1xf32>
      %30 = arith.subf %26, %29 : vector<128x1xf32>
      %31 = math.exp %30 : vector<128x1xf32>
      %32 = vector.broadcast %29 : vector<128x1xf32> to vector<128x128xf32>
      %33 = arith.subf %25, %32 : vector<128x128xf32>
      %34 = math.exp %33 : vector<128x128xf32>
      %c0_13 = arith.constant 0 : index
      %c0_14 = arith.constant 0 : index
      %35 = vector.load %arg8[%c0_13, %c0_14] : memref<128x1xf32, #tpu.memory_space<vmem>>, vector<128x1xf32>
      %36 = arith.mulf %31, %35 : vector<128x1xf32>
      %cst_15 = arith.constant dense<0.000000e+00> : vector<128xf32>
      %37 = vector.multi_reduction <add>, %34, %cst_15 [1] : vector<128x128xf32> to vector<128xf32>
      %38 = vector.shape_cast %37 : vector<128xf32> to vector<128x1xf32>
      %39 = arith.addf %36, %38 : vector<128x1xf32>
      %c0_16 = arith.constant 0 : index
      %c0_17 = arith.constant 0 : index
      %40 = vector.load %arg8[%c0_16, %c0_17] : memref<128x1xf32, #tpu.memory_space<vmem>>, vector<128x1xf32>
      tpu.vector_store %arg8[%c0_16, %c0_17], %39 {strides = array<i32>} : memref<128x1xf32, #tpu.memory_space<vmem>>, vector<128x1xf32>,
      %c0_18 = arith.constant 0 : index
      %c0_19 = arith.constant 0 : index
      %41 = vector.load %arg9[%c0_18, %c0_19] : memref<128x128xf32, #tpu.memory_space<vmem>>, vector<128x128xf32>
      %42 = vector.broadcast %31 : vector<128x1xf32> to vector<128x128xf32>
      %43 = arith.mulf %42, %41 : vector<128x128xf32>
      %44 = arith.truncf %34 : vector<128x128xf32> to vector<128x128xbf16>
      %c0_20 = arith.constant 0 : index
      %c0_21 = arith.constant 0 : index
      %45 = vector.load %arg5[%c0_20, %c0_21] : memref<128x128xbf16, #tpu.memory_space<vmem>>, vector<128x128xbf16>
      %cst_22 = arith.constant dense<0.000000e+00> : vector<128x128xf32>
      %46 = tpu.matmul %44, %45, %cst_22 {dimension_numbers = #tpu.dot_dimension_numbers<[1], [0], [0], [1], [0, 0, 1, 1], [], []>} : vector<128x128xbf16>, vector<128x128xbf16>, vector<128x128xf32> -> vector<128x128xf32>
      %47 = arith.addf %43, %46 : vector<128x128xf32>
      %c0_23 = arith.constant 0 : index
      %c0_24 = arith.constant 0 : index
      %48 = vector.load %arg9[%c0_23, %c0_24] : memref<128x128xf32, #tpu.memory_space<vmem>>, vector<128x128xf32>
      tpu.vector_store %arg9[%c0_23, %c0_24], %47 {strides = array<i32>} : memref<128x128xf32, #tpu.memory_space<vmem>>, vector<128x128xf32>,
      %c0_25 = arith.constant 0 : index
      %c0_26 = arith.constant 0 : index
      %49 = vector.load %arg7[%c0_25, %c0_26] : memref<128x1xf32, #tpu.memory_space<vmem>>, vector<128x1xf32>
      tpu.vector_store %arg7[%c0_25, %c0_26], %29 {strides = array<i32>} : memref<128x1xf32, #tpu.memory_space<vmem>>, vector<128x1xf32>,
    } else {
    }
    %c0_i32_3 = arith.constant 0 : i32
    %9 = arith.cmpi eq, %arg2, %c0_i32_3 : i32
    %10 = arith.extui %9 : i1 to i32
    %c0_i32_4 = arith.constant 0 : i32
    %11 = arith.cmpi ne, %10, %c0_i32_4 : i32
    scf.if %11 {
      %c0 = arith.constant 0 : index
      %c0_5 = arith.constant 0 : index
      %12 = vector.load %arg9[%c0, %c0_5] : memref<128x128xf32, #tpu.memory_space<vmem>>, vector<128x128xf32>
      %c0_6 = arith.constant 0 : index
      %c0_7 = arith.constant 0 : index
      %13 = vector.load %arg8[%c0_6, %c0_7] : memref<128x1xf32, #tpu.memory_space<vmem>>, vector<128x1xf32>
      %14 = tpu.reciprocal %13 {approx = true} : vector<128x1xf32> -> vector<128x1xf32>
      %15 = vector.broadcast %14 : vector<128x1xf32> to vector<128x128xf32>
      %16 = arith.mulf %12, %15 : vector<128x128xf32>
      %17 = arith.truncf %16 : vector<128x128xf32> to vector<128x128xbf16>
      %c0_8 = arith.constant 0 : index
      %c0_9 = arith.constant 0 : index
      %18 = vector.load %arg6[%c0_8, %c0_9] : memref<128x128xbf16, #tpu.memory_space<vmem>>, vector<128x128xbf16>
      tpu.vector_store %arg6[%c0_8, %c0_9], %17 {strides = array<i32>} : memref<128x128xbf16, #tpu.memory_space<vmem>>, vector<128x128xbf16>,
    } else {
    }
    return
  }
  func.func @transform_0(%arg0: i32, %arg1: i32, %arg2: i32) -> (i32, i32) {
    %c0_i32 = arith.constant 0 : i32
    return %arg1, %arg0 : i32, i32
  }
  func.func @transform_1(%arg0: i32, %arg1: i32, %arg2: i32) -> (i32, i32) {
    %c0_i32 = arith.constant 0 : i32
    %c0_i32_0 = arith.constant 0 : i32
    return %arg2, %c0_i32 : i32, i32
  }
  func.func @transform_2(%arg0: i32, %arg1: i32, %arg2: i32) -> (i32, i32) {
    %c0_i32 = arith.constant 0 : i32
    %c0_i32_0 = arith.constant 0 : i32
    return %arg2, %c0_i32 : i32, i32
  }
  func.func @transform_3(%arg0: i32, %arg1: i32, %arg2: i32) -> (i32, i32) {
    %c0_i32 = arith.constant 0 : i32
    return %arg1, %arg0 : i32, i32
  }
}

module attributes {stable_mosaic.version = 11 : i64} {
  func.func @_linear_kernel(%arg0: i32, %arg1: i32, %arg2: i32, %arg3: memref<128x256xbf16, #tpu.memory_space<vmem>>, %arg4: memref<256x256xbf16, #tpu.memory_space<vmem>>, %arg5: memref<1x256xf32, #tpu.memory_space<vmem>>, %arg6: memref<128x256xf32, #tpu.memory_space<vmem>>, %arg7: memref<128x256xf32, #tpu.memory_space<vmem>>) attributes {dimension_semantics = [#tpu.dimension_semantics<parallel>, #tpu.dimension_semantics<parallel>, #tpu.dimension_semantics<arbitrary>], iteration_bounds = array<i64: 1, 1, 1>, scalar_prefetch = 0 : i64, scratch_operands = 1 : i64, tpu.core_type = #tpu.core_type<tc>, window_params = [{transform_indices = @transform_0, window_bounds = array<i64: 128, 256>}, {transform_indices = @transform_1, window_bounds = array<i64: 256, 256>}, {transform_indices = @transform_2, window_bounds = array<i64: 1, 256>}, {transform_indices = @transform_3, window_bounds = array<i64: 128, 256>}]} {
    %c0_i32 = arith.constant 0 : i32
    %0 = arith.cmpi eq, %arg2, %c0_i32 : i32
    %1 = arith.extui %0 : i1 to i32
    %c0_i32_0 = arith.constant 0 : i32
    %2 = arith.cmpi ne, %1, %c0_i32_0 : i32
    scf.if %2 {
      %cst_10 = arith.constant 0.000000e+00 : f32
      %12 = vector.broadcast %cst_10 : f32 to vector<128x256xf32>
      %c0_11 = arith.constant 0 : index
      %c0_12 = arith.constant 0 : index
      %13 = vector.load %arg7[%c0_11, %c0_12] : memref<128x256xf32, #tpu.memory_space<vmem>>, vector<128x256xf32>
      tpu.vector_store %arg7[%c0_11, %c0_12], %12 {strides = array<i32>} : memref<128x256xf32, #tpu.memory_space<vmem>>, vector<128x256xf32>,
    } else {
    }
    %c0 = arith.constant 0 : index
    %c0_1 = arith.constant 0 : index
    %3 = vector.load %arg7[%c0, %c0_1] : memref<128x256xf32, #tpu.memory_space<vmem>>, vector<128x256xf32>
    %c0_2 = arith.constant 0 : index
    %c0_3 = arith.constant 0 : index
    %4 = vector.load %arg3[%c0_2, %c0_3] : memref<128x256xbf16, #tpu.memory_space<vmem>>, vector<128x256xbf16>
    %c0_4 = arith.constant 0 : index
    %c0_5 = arith.constant 0 : index
    %5 = vector.load %arg4[%c0_4, %c0_5] : memref<256x256xbf16, #tpu.memory_space<vmem>>, vector<256x256xbf16>
    %cst = arith.constant dense<0.000000e+00> : vector<128x256xf32>
    %6 = tpu.matmul %4, %5, %cst {dimension_numbers = #tpu.dot_dimension_numbers<[1], [0], [0], [1], [0, 0, 1, 1], [], []>} : vector<128x256xbf16>, vector<256x256xbf16>, vector<128x256xf32> -> vector<128x256xf32>
    %7 = arith.addf %3, %6 : vector<128x256xf32>
    %c0_6 = arith.constant 0 : index
    %c0_7 = arith.constant 0 : index
    %8 = vector.load %arg7[%c0_6, %c0_7] : memref<128x256xf32, #tpu.memory_space<vmem>>, vector<128x256xf32>
    tpu.vector_store %arg7[%c0_6, %c0_7], %7 {strides = array<i32>} : memref<128x256xf32, #tpu.memory_space<vmem>>, vector<128x256xf32>,
    %c0_i32_8 = arith.constant 0 : i32
    %9 = arith.cmpi eq, %arg2, %c0_i32_8 : i32
    %10 = arith.extui %9 : i1 to i32
    %c0_i32_9 = arith.constant 0 : i32
    %11 = arith.cmpi ne, %10, %c0_i32_9 : i32
    scf.if %11 {
      %c0_10 = arith.constant 0 : index
      %c0_11 = arith.constant 0 : index
      %12 = vector.load %arg7[%c0_10, %c0_11] : memref<128x256xf32, #tpu.memory_space<vmem>>, vector<128x256xf32>
      %c0_12 = arith.constant 0 : index
      %c0_13 = arith.constant 0 : index
      %13 = vector.load %arg5[%c0_12, %c0_13] : memref<1x256xf32, #tpu.memory_space<vmem>>, vector<1x256xf32>
      %14 = vector.broadcast %13 : vector<1x256xf32> to vector<128x256xf32>
      %15 = arith.addf %12, %14 : vector<128x256xf32>
      %c0_14 = arith.constant 0 : index
      %c0_15 = arith.constant 0 : index
      %16 = vector.load %arg6[%c0_14, %c0_15] : memref<128x256xf32, #tpu.memory_space<vmem>>, vector<128x256xf32>
      tpu.vector_store %arg6[%c0_14, %c0_15], %15 {strides = array<i32>} : memref<128x256xf32, #tpu.memory_space<vmem>>, vector<128x256xf32>,
    } else {
    }
    return
  }
  func.func @transform_0(%arg0: i32, %arg1: i32, %arg2: i32) -> (i32, i32) {
    %c0_i32 = arith.constant 0 : i32
    return %arg0, %arg2 : i32, i32
  }
  func.func @transform_1(%arg0: i32, %arg1: i32, %arg2: i32) -> (i32, i32) {
    %c0_i32 = arith.constant 0 : i32
    return %arg2, %arg1 : i32, i32
  }
  func.func @transform_2(%arg0: i32, %arg1: i32, %arg2: i32) -> (i32, i32) {
    %c0_i32 = arith.constant 0 : i32
    %c0_i32_0 = arith.constant 0 : i32
    return %c0_i32, %arg1 : i32, i32
  }
  func.func @transform_3(%arg0: i32, %arg1: i32, %arg2: i32) -> (i32, i32) {
    %c0_i32 = arith.constant 0 : i32
    return %arg0, %arg1 : i32, i32
  }
}

module attributes {stable_mosaic.version = 11 : i64} {
  func.func @_add_ln_kernel(%arg0: i32, %arg1: memref<128x256xf32, #tpu.memory_space<vmem>>, %arg2: memref<128x256xf32, #tpu.memory_space<vmem>>, %arg3: memref<1x256xf32, #tpu.memory_space<vmem>>, %arg4: memref<1x256xf32, #tpu.memory_space<vmem>>, %arg5: memref<128x256xbf16, #tpu.memory_space<vmem>>, %arg6: memref<128x256xf32, #tpu.memory_space<vmem>>) attributes {dimension_semantics = [#tpu.dimension_semantics<parallel>], iteration_bounds = array<i64: 1>, scalar_prefetch = 0 : i64, scratch_operands = 0 : i64, tpu.core_type = #tpu.core_type<tc>, window_params = [{transform_indices = @transform_0, window_bounds = array<i64: 128, 256>}, {transform_indices = @transform_1, window_bounds = array<i64: 128, 256>}, {pipeline_mode = #tpu.pipeline_mode<synchronous>, transform_indices = @transform_2, window_bounds = array<i64: 1, 256>}, {pipeline_mode = #tpu.pipeline_mode<synchronous>, transform_indices = @transform_3, window_bounds = array<i64: 1, 256>}, {transform_indices = @transform_4, window_bounds = array<i64: 128, 256>}, {transform_indices = @transform_5, window_bounds = array<i64: 128, 256>}]} {
    %c0 = arith.constant 0 : index
    %c0_0 = arith.constant 0 : index
    %0 = vector.load %arg1[%c0, %c0_0] : memref<128x256xf32, #tpu.memory_space<vmem>>, vector<128x256xf32>
    %c0_1 = arith.constant 0 : index
    %c0_2 = arith.constant 0 : index
    %1 = vector.load %arg2[%c0_1, %c0_2] : memref<128x256xf32, #tpu.memory_space<vmem>>, vector<128x256xf32>
    %2 = arith.addf %0, %1 : vector<128x256xf32>
    %cst = arith.constant dense<0.000000e+00> : vector<128xf32>
    %3 = vector.multi_reduction <add>, %2, %cst [1] : vector<128x256xf32> to vector<128xf32>
    %4 = vector.shape_cast %3 : vector<128xf32> to vector<128x1xf32>
    %cst_3 = arith.constant 2.560000e+02 : f32
    %5 = vector.broadcast %cst_3 : f32 to vector<128x1xf32>
    %6 = arith.divf %4, %5 : vector<128x1xf32>
    %7 = vector.broadcast %6 : vector<128x1xf32> to vector<128x256xf32>
    %8 = arith.subf %2, %7 : vector<128x256xf32>
    %9 = arith.mulf %8, %8 : vector<128x256xf32>
    %cst_4 = arith.constant dense<0.000000e+00> : vector<128xf32>
    %10 = vector.multi_reduction <add>, %9, %cst_4 [1] : vector<128x256xf32> to vector<128xf32>
    %11 = vector.shape_cast %10 : vector<128xf32> to vector<128x1xf32>
    %cst_5 = arith.constant 2.560000e+02 : f32
    %12 = vector.broadcast %cst_5 : f32 to vector<128x1xf32>
    %13 = arith.divf %11, %12 : vector<128x1xf32>
    %cst_6 = arith.constant 9.99999974E-6 : f32
    %14 = vector.broadcast %cst_6 : f32 to vector<128x1xf32>
    %15 = arith.addf %13, %14 : vector<128x1xf32>
    %16 = math.rsqrt %15 : vector<128x1xf32>
    %17 = vector.broadcast %6 : vector<128x1xf32> to vector<128x256xf32>
    %18 = arith.subf %2, %17 : vector<128x256xf32>
    %19 = vector.broadcast %16 : vector<128x1xf32> to vector<128x256xf32>
    %20 = arith.mulf %18, %19 : vector<128x256xf32>
    %c0_7 = arith.constant 0 : index
    %c0_8 = arith.constant 0 : index
    %21 = vector.load %arg3[%c0_7, %c0_8] : memref<1x256xf32, #tpu.memory_space<vmem>>, vector<1x256xf32>
    %22 = vector.broadcast %21 : vector<1x256xf32> to vector<128x256xf32>
    %23 = arith.mulf %20, %22 : vector<128x256xf32>
    %c0_9 = arith.constant 0 : index
    %c0_10 = arith.constant 0 : index
    %24 = vector.load %arg4[%c0_9, %c0_10] : memref<1x256xf32, #tpu.memory_space<vmem>>, vector<1x256xf32>
    %25 = vector.broadcast %24 : vector<1x256xf32> to vector<128x256xf32>
    %26 = arith.addf %23, %25 : vector<128x256xf32>
    %27 = arith.truncf %26 : vector<128x256xf32> to vector<128x256xbf16>
    %c0_11 = arith.constant 0 : index
    %c0_12 = arith.constant 0 : index
    %28 = vector.load %arg5[%c0_11, %c0_12] : memref<128x256xbf16, #tpu.memory_space<vmem>>, vector<128x256xbf16>
    tpu.vector_store %arg5[%c0_11, %c0_12], %27 {strides = array<i32>} : memref<128x256xbf16, #tpu.memory_space<vmem>>, vector<128x256xbf16>,
    %c0_13 = arith.constant 0 : index
    %c0_14 = arith.constant 0 : index
    %29 = vector.load %arg6[%c0_13, %c0_14] : memref<128x256xf32, #tpu.memory_space<vmem>>, vector<128x256xf32>
    tpu.vector_store %arg6[%c0_13, %c0_14], %2 {strides = array<i32>} : memref<128x256xf32, #tpu.memory_space<vmem>>, vector<128x256xf32>,
    return
  }
  func.func @transform_0(%arg0: i32) -> (i32, i32) {
    %c0_i32 = arith.constant 0 : i32
    %c0_i32_0 = arith.constant 0 : i32
    return %arg0, %c0_i32 : i32, i32
  }
  func.func @transform_1(%arg0: i32) -> (i32, i32) {
    %c0_i32 = arith.constant 0 : i32
    %c0_i32_0 = arith.constant 0 : i32
    return %arg0, %c0_i32 : i32, i32
  }
  func.func @transform_2(%arg0: i32) -> (i32, i32) {
    %c0_i32 = arith.constant 0 : i32
    %c0_i32_0 = arith.constant 0 : i32
    %c0_i32_1 = arith.constant 0 : i32
    return %c0_i32, %c0_i32_0 : i32, i32
  }
  func.func @transform_3(%arg0: i32) -> (i32, i32) {
    %c0_i32 = arith.constant 0 : i32
    %c0_i32_0 = arith.constant 0 : i32
    %c0_i32_1 = arith.constant 0 : i32
    return %c0_i32, %c0_i32_0 : i32, i32
  }
  func.func @transform_4(%arg0: i32) -> (i32, i32) {
    %c0_i32 = arith.constant 0 : i32
    %c0_i32_0 = arith.constant 0 : i32
    return %arg0, %c0_i32 : i32, i32
  }
  func.func @transform_5(%arg0: i32) -> (i32, i32) {
    %c0_i32 = arith.constant 0 : i32
    %c0_i32_0 = arith.constant 0 : i32
    return %arg0, %c0_i32 : i32, i32
  }
}

module attributes {stable_mosaic.version = 11 : i64} {
  func.func @_linear_kernel(%arg0: i32, %arg1: i32, %arg2: i32, %arg3: memref<128x256xbf16, #tpu.memory_space<vmem>>, %arg4: memref<256x256xbf16, #tpu.memory_space<vmem>>, %arg5: memref<1x256xf32, #tpu.memory_space<vmem>>, %arg6: memref<128x256xbf16, #tpu.memory_space<vmem>>, %arg7: memref<128x256xf32, #tpu.memory_space<vmem>>) attributes {dimension_semantics = [#tpu.dimension_semantics<parallel>, #tpu.dimension_semantics<parallel>, #tpu.dimension_semantics<arbitrary>], iteration_bounds = array<i64: 1, 4, 1>, scalar_prefetch = 0 : i64, scratch_operands = 1 : i64, tpu.core_type = #tpu.core_type<tc>, window_params = [{transform_indices = @transform_0, window_bounds = array<i64: 128, 256>}, {transform_indices = @transform_1, window_bounds = array<i64: 256, 256>}, {transform_indices = @transform_2, window_bounds = array<i64: 1, 256>}, {transform_indices = @transform_3, window_bounds = array<i64: 128, 256>}]} {
    %c0_i32 = arith.constant 0 : i32
    %0 = arith.cmpi eq, %arg2, %c0_i32 : i32
    %1 = arith.extui %0 : i1 to i32
    %c0_i32_0 = arith.constant 0 : i32
    %2 = arith.cmpi ne, %1, %c0_i32_0 : i32
    scf.if %2 {
      %cst_10 = arith.constant 0.000000e+00 : f32
      %12 = vector.broadcast %cst_10 : f32 to vector<128x256xf32>
      %c0_11 = arith.constant 0 : index
      %c0_12 = arith.constant 0 : index
      %13 = vector.load %arg7[%c0_11, %c0_12] : memref<128x256xf32, #tpu.memory_space<vmem>>, vector<128x256xf32>
      tpu.vector_store %arg7[%c0_11, %c0_12], %12 {strides = array<i32>} : memref<128x256xf32, #tpu.memory_space<vmem>>, vector<128x256xf32>,
    } else {
    }
    %c0 = arith.constant 0 : index
    %c0_1 = arith.constant 0 : index
    %3 = vector.load %arg7[%c0, %c0_1] : memref<128x256xf32, #tpu.memory_space<vmem>>, vector<128x256xf32>
    %c0_2 = arith.constant 0 : index
    %c0_3 = arith.constant 0 : index
    %4 = vector.load %arg3[%c0_2, %c0_3] : memref<128x256xbf16, #tpu.memory_space<vmem>>, vector<128x256xbf16>
    %c0_4 = arith.constant 0 : index
    %c0_5 = arith.constant 0 : index
    %5 = vector.load %arg4[%c0_4, %c0_5] : memref<256x256xbf16, #tpu.memory_space<vmem>>, vector<256x256xbf16>
    %cst = arith.constant dense<0.000000e+00> : vector<128x256xf32>
    %6 = tpu.matmul %4, %5, %cst {dimension_numbers = #tpu.dot_dimension_numbers<[1], [0], [0], [1], [0, 0, 1, 1], [], []>} : vector<128x256xbf16>, vector<256x256xbf16>, vector<128x256xf32> -> vector<128x256xf32>
    %7 = arith.addf %3, %6 : vector<128x256xf32>
    %c0_6 = arith.constant 0 : index
    %c0_7 = arith.constant 0 : index
    %8 = vector.load %arg7[%c0_6, %c0_7] : memref<128x256xf32, #tpu.memory_space<vmem>>, vector<128x256xf32>
    tpu.vector_store %arg7[%c0_6, %c0_7], %7 {strides = array<i32>} : memref<128x256xf32, #tpu.memory_space<vmem>>, vector<128x256xf32>,
    %c0_i32_8 = arith.constant 0 : i32
    %9 = arith.cmpi eq, %arg2, %c0_i32_8 : i32
    %10 = arith.extui %9 : i1 to i32
    %c0_i32_9 = arith.constant 0 : i32
    %11 = arith.cmpi ne, %10, %c0_i32_9 : i32
    scf.if %11 {
      %c0_10 = arith.constant 0 : index
      %c0_11 = arith.constant 0 : index
      %12 = vector.load %arg7[%c0_10, %c0_11] : memref<128x256xf32, #tpu.memory_space<vmem>>, vector<128x256xf32>
      %c0_12 = arith.constant 0 : index
      %c0_13 = arith.constant 0 : index
      %13 = vector.load %arg5[%c0_12, %c0_13] : memref<1x256xf32, #tpu.memory_space<vmem>>, vector<1x256xf32>
      %14 = vector.broadcast %13 : vector<1x256xf32> to vector<128x256xf32>
      %15 = arith.addf %12, %14 : vector<128x256xf32>
      %cst_14 = arith.constant 5.000000e-01 : f32
      %16 = vector.broadcast %cst_14 : f32 to vector<128x256xf32>
      %17 = arith.mulf %16, %15 : vector<128x256xf32>
      %18 = arith.mulf %15, %15 : vector<128x256xf32>
      %19 = arith.mulf %18, %15 : vector<128x256xf32>
      %cst_15 = arith.constant 4.471500e-02 : f32
      %20 = vector.broadcast %cst_15 : f32 to vector<128x256xf32>
      %21 = arith.mulf %20, %19 : vector<128x256xf32>
      %22 = arith.addf %15, %21 : vector<128x256xf32>
      %cst_16 = arith.constant 0.797884583 : f32
      %23 = vector.broadcast %cst_16 : f32 to vector<128x256xf32>
      %24 = arith.mulf %23, %22 : vector<128x256xf32>
      %25 = math.tanh %24 : vector<128x256xf32>
      %cst_17 = arith.constant 1.000000e+00 : f32
      %26 = vector.broadcast %cst_17 : f32 to vector<128x256xf32>
      %27 = arith.addf %26, %25 : vector<128x256xf32>
      %28 = arith.mulf %17, %27 : vector<128x256xf32>
      %29 = arith.truncf %28 : vector<128x256xf32> to vector<128x256xbf16>
      %c0_18 = arith.constant 0 : index
      %c0_19 = arith.constant 0 : index
      %30 = vector.load %arg6[%c0_18, %c0_19] : memref<128x256xbf16, #tpu.memory_space<vmem>>, vector<128x256xbf16>
      tpu.vector_store %arg6[%c0_18, %c0_19], %29 {strides = array<i32>} : memref<128x256xbf16, #tpu.memory_space<vmem>>, vector<128x256xbf16>,
    } else {
    }
    return
  }
  func.func @transform_0(%arg0: i32, %arg1: i32, %arg2: i32) -> (i32, i32) {
    %c0_i32 = arith.constant 0 : i32
    return %arg0, %arg2 : i32, i32
  }
  func.func @transform_1(%arg0: i32, %arg1: i32, %arg2: i32) -> (i32, i32) {
    %c0_i32 = arith.constant 0 : i32
    return %arg2, %arg1 : i32, i32
  }
  func.func @transform_2(%arg0: i32, %arg1: i32, %arg2: i32) -> (i32, i32) {
    %c0_i32 = arith.constant 0 : i32
    %c0_i32_0 = arith.constant 0 : i32
    return %c0_i32, %arg1 : i32, i32
  }
  func.func @transform_3(%arg0: i32, %arg1: i32, %arg2: i32) -> (i32, i32) {
    %c0_i32 = arith.constant 0 : i32
    return %arg0, %arg1 : i32, i32
  }
}

module attributes {stable_mosaic.version = 11 : i64} {
  func.func @_linear_kernel(%arg0: i32, %arg1: i32, %arg2: i32, %arg3: memref<128x512xbf16, #tpu.memory_space<vmem>>, %arg4: memref<512x256xbf16, #tpu.memory_space<vmem>>, %arg5: memref<1x256xf32, #tpu.memory_space<vmem>>, %arg6: memref<128x256xf32, #tpu.memory_space<vmem>>, %arg7: memref<128x256xf32, #tpu.memory_space<vmem>>) attributes {dimension_semantics = [#tpu.dimension_semantics<parallel>, #tpu.dimension_semantics<parallel>, #tpu.dimension_semantics<arbitrary>], iteration_bounds = array<i64: 1, 1, 2>, scalar_prefetch = 0 : i64, scratch_operands = 1 : i64, tpu.core_type = #tpu.core_type<tc>, window_params = [{transform_indices = @transform_0, window_bounds = array<i64: 128, 512>}, {transform_indices = @transform_1, window_bounds = array<i64: 512, 256>}, {transform_indices = @transform_2, window_bounds = array<i64: 1, 256>}, {transform_indices = @transform_3, window_bounds = array<i64: 128, 256>}]} {
    %c0_i32 = arith.constant 0 : i32
    %0 = arith.cmpi eq, %arg2, %c0_i32 : i32
    %1 = arith.extui %0 : i1 to i32
    %c0_i32_0 = arith.constant 0 : i32
    %2 = arith.cmpi ne, %1, %c0_i32_0 : i32
    scf.if %2 {
      %cst_9 = arith.constant 0.000000e+00 : f32
      %12 = vector.broadcast %cst_9 : f32 to vector<128x256xf32>
      %c0_10 = arith.constant 0 : index
      %c0_11 = arith.constant 0 : index
      %13 = vector.load %arg7[%c0_10, %c0_11] : memref<128x256xf32, #tpu.memory_space<vmem>>, vector<128x256xf32>
      tpu.vector_store %arg7[%c0_10, %c0_11], %12 {strides = array<i32>} : memref<128x256xf32, #tpu.memory_space<vmem>>, vector<128x256xf32>,
    } else {
    }
    %c0 = arith.constant 0 : index
    %c0_1 = arith.constant 0 : index
    %3 = vector.load %arg7[%c0, %c0_1] : memref<128x256xf32, #tpu.memory_space<vmem>>, vector<128x256xf32>
    %c0_2 = arith.constant 0 : index
    %c0_3 = arith.constant 0 : index
    %4 = vector.load %arg3[%c0_2, %c0_3] : memref<128x512xbf16, #tpu.memory_space<vmem>>, vector<128x512xbf16>
    %c0_4 = arith.constant 0 : index
    %c0_5 = arith.constant 0 : index
    %5 = vector.load %arg4[%c0_4, %c0_5] : memref<512x256xbf16, #tpu.memory_space<vmem>>, vector<512x256xbf16>
    %cst = arith.constant dense<0.000000e+00> : vector<128x256xf32>
    %6 = tpu.matmul %4, %5, %cst {dimension_numbers = #tpu.dot_dimension_numbers<[1], [0], [0], [1], [0, 0, 1, 1], [], []>} : vector<128x512xbf16>, vector<512x256xbf16>, vector<128x256xf32> -> vector<128x256xf32>
    %7 = arith.addf %3, %6 : vector<128x256xf32>
    %c0_6 = arith.constant 0 : index
    %c0_7 = arith.constant 0 : index
    %8 = vector.load %arg7[%c0_6, %c0_7] : memref<128x256xf32, #tpu.memory_space<vmem>>, vector<128x256xf32>
    tpu.vector_store %arg7[%c0_6, %c0_7], %7 {strides = array<i32>} : memref<128x256xf32, #tpu.memory_space<vmem>>, vector<128x256xf32>,
    %c1_i32 = arith.constant 1 : i32
    %9 = arith.cmpi eq, %arg2, %c1_i32 : i32
    %10 = arith.extui %9 : i1 to i32
    %c0_i32_8 = arith.constant 0 : i32
    %11 = arith.cmpi ne, %10, %c0_i32_8 : i32
    scf.if %11 {
      %c0_9 = arith.constant 0 : index
      %c0_10 = arith.constant 0 : index
      %12 = vector.load %arg7[%c0_9, %c0_10] : memref<128x256xf32, #tpu.memory_space<vmem>>, vector<128x256xf32>
      %c0_11 = arith.constant 0 : index
      %c0_12 = arith.constant 0 : index
      %13 = vector.load %arg5[%c0_11, %c0_12] : memref<1x256xf32, #tpu.memory_space<vmem>>, vector<1x256xf32>
      %14 = vector.broadcast %13 : vector<1x256xf32> to vector<128x256xf32>
      %15 = arith.addf %12, %14 : vector<128x256xf32>
      %c0_13 = arith.constant 0 : index
      %c0_14 = arith.constant 0 : index
      %16 = vector.load %arg6[%c0_13, %c0_14] : memref<128x256xf32, #tpu.memory_space<vmem>>, vector<128x256xf32>
      tpu.vector_store %arg6[%c0_13, %c0_14], %15 {strides = array<i32>} : memref<128x256xf32, #tpu.memory_space<vmem>>, vector<128x256xf32>,
    } else {
    }
    return
  }
  func.func @transform_0(%arg0: i32, %arg1: i32, %arg2: i32) -> (i32, i32) {
    %c0_i32 = arith.constant 0 : i32
    return %arg0, %arg2 : i32, i32
  }
  func.func @transform_1(%arg0: i32, %arg1: i32, %arg2: i32) -> (i32, i32) {
    %c0_i32 = arith.constant 0 : i32
    return %arg2, %arg1 : i32, i32
  }
  func.func @transform_2(%arg0: i32, %arg1: i32, %arg2: i32) -> (i32, i32) {
    %c0_i32 = arith.constant 0 : i32
    %c0_i32_0 = arith.constant 0 : i32
    return %c0_i32, %arg1 : i32, i32
  }
  func.func @transform_3(%arg0: i32, %arg1: i32, %arg2: i32) -> (i32, i32) {
    %c0_i32 = arith.constant 0 : i32
    return %arg0, %arg1 : i32, i32
  }
}

module attributes {stable_mosaic.version = 11 : i64} {
  func.func @_add_ln_kernel(%arg0: i32, %arg1: memref<128x256xf32, #tpu.memory_space<vmem>>, %arg2: memref<128x256xf32, #tpu.memory_space<vmem>>, %arg3: memref<1x256xf32, #tpu.memory_space<vmem>>, %arg4: memref<1x256xf32, #tpu.memory_space<vmem>>, %arg5: memref<128x256xf32, #tpu.memory_space<vmem>>, %arg6: memref<128x256xf32, #tpu.memory_space<vmem>>) attributes {dimension_semantics = [#tpu.dimension_semantics<parallel>], iteration_bounds = array<i64: 1>, scalar_prefetch = 0 : i64, scratch_operands = 0 : i64, tpu.core_type = #tpu.core_type<tc>, window_params = [{transform_indices = @transform_0, window_bounds = array<i64: 128, 256>}, {transform_indices = @transform_1, window_bounds = array<i64: 128, 256>}, {pipeline_mode = #tpu.pipeline_mode<synchronous>, transform_indices = @transform_2, window_bounds = array<i64: 1, 256>}, {pipeline_mode = #tpu.pipeline_mode<synchronous>, transform_indices = @transform_3, window_bounds = array<i64: 1, 256>}, {transform_indices = @transform_4, window_bounds = array<i64: 128, 256>}, {transform_indices = @transform_5, window_bounds = array<i64: 128, 256>}]} {
    %c0 = arith.constant 0 : index
    %c0_0 = arith.constant 0 : index
    %0 = vector.load %arg1[%c0, %c0_0] : memref<128x256xf32, #tpu.memory_space<vmem>>, vector<128x256xf32>
    %c0_1 = arith.constant 0 : index
    %c0_2 = arith.constant 0 : index
    %1 = vector.load %arg2[%c0_1, %c0_2] : memref<128x256xf32, #tpu.memory_space<vmem>>, vector<128x256xf32>
    %2 = arith.addf %0, %1 : vector<128x256xf32>
    %cst = arith.constant dense<0.000000e+00> : vector<128xf32>
    %3 = vector.multi_reduction <add>, %2, %cst [1] : vector<128x256xf32> to vector<128xf32>
    %4 = vector.shape_cast %3 : vector<128xf32> to vector<128x1xf32>
    %cst_3 = arith.constant 2.560000e+02 : f32
    %5 = vector.broadcast %cst_3 : f32 to vector<128x1xf32>
    %6 = arith.divf %4, %5 : vector<128x1xf32>
    %7 = vector.broadcast %6 : vector<128x1xf32> to vector<128x256xf32>
    %8 = arith.subf %2, %7 : vector<128x256xf32>
    %9 = arith.mulf %8, %8 : vector<128x256xf32>
    %cst_4 = arith.constant dense<0.000000e+00> : vector<128xf32>
    %10 = vector.multi_reduction <add>, %9, %cst_4 [1] : vector<128x256xf32> to vector<128xf32>
    %11 = vector.shape_cast %10 : vector<128xf32> to vector<128x1xf32>
    %cst_5 = arith.constant 2.560000e+02 : f32
    %12 = vector.broadcast %cst_5 : f32 to vector<128x1xf32>
    %13 = arith.divf %11, %12 : vector<128x1xf32>
    %cst_6 = arith.constant 9.99999974E-6 : f32
    %14 = vector.broadcast %cst_6 : f32 to vector<128x1xf32>
    %15 = arith.addf %13, %14 : vector<128x1xf32>
    %16 = math.rsqrt %15 : vector<128x1xf32>
    %17 = vector.broadcast %6 : vector<128x1xf32> to vector<128x256xf32>
    %18 = arith.subf %2, %17 : vector<128x256xf32>
    %19 = vector.broadcast %16 : vector<128x1xf32> to vector<128x256xf32>
    %20 = arith.mulf %18, %19 : vector<128x256xf32>
    %c0_7 = arith.constant 0 : index
    %c0_8 = arith.constant 0 : index
    %21 = vector.load %arg3[%c0_7, %c0_8] : memref<1x256xf32, #tpu.memory_space<vmem>>, vector<1x256xf32>
    %22 = vector.broadcast %21 : vector<1x256xf32> to vector<128x256xf32>
    %23 = arith.mulf %20, %22 : vector<128x256xf32>
    %c0_9 = arith.constant 0 : index
    %c0_10 = arith.constant 0 : index
    %24 = vector.load %arg4[%c0_9, %c0_10] : memref<1x256xf32, #tpu.memory_space<vmem>>, vector<1x256xf32>
    %25 = vector.broadcast %24 : vector<1x256xf32> to vector<128x256xf32>
    %26 = arith.addf %23, %25 : vector<128x256xf32>
    %c0_11 = arith.constant 0 : index
    %c0_12 = arith.constant 0 : index
    %27 = vector.load %arg5[%c0_11, %c0_12] : memref<128x256xf32, #tpu.memory_space<vmem>>, vector<128x256xf32>
    tpu.vector_store %arg5[%c0_11, %c0_12], %26 {strides = array<i32>} : memref<128x256xf32, #tpu.memory_space<vmem>>, vector<128x256xf32>,
    %c0_13 = arith.constant 0 : index
    %c0_14 = arith.constant 0 : index
    %28 = vector.load %arg6[%c0_13, %c0_14] : memref<128x256xf32, #tpu.memory_space<vmem>>, vector<128x256xf32>
    tpu.vector_store %arg6[%c0_13, %c0_14], %2 {strides = array<i32>} : memref<128x256xf32, #tpu.memory_space<vmem>>, vector<128x256xf32>,
    return
  }
  func.func @transform_0(%arg0: i32) -> (i32, i32) {
    %c0_i32 = arith.constant 0 : i32
    %c0_i32_0 = arith.constant 0 : i32
    return %arg0, %c0_i32 : i32, i32
  }
  func.func @transform_1(%arg0: i32) -> (i32, i32) {
    %c0_i32 = arith.constant 0 : i32
    %c0_i32_0 = arith.constant 0 : i32
    return %arg0, %c0_i32 : i32, i32
  }
  func.func @transform_2(%arg0: i32) -> (i32, i32) {
    %c0_i32 = arith.constant 0 : i32
    %c0_i32_0 = arith.constant 0 : i32
    %c0_i32_1 = arith.constant 0 : i32
    return %c0_i32, %c0_i32_0 : i32, i32
  }
  func.func @transform_3(%arg0: i32) -> (i32, i32) {
    %c0_i32 = arith.constant 0 : i32
    %c0_i32_0 = arith.constant 0 : i32
    %c0_i32_1 = arith.constant 0 : i32
    return %c0_i32, %c0_i32_0 : i32, i32
  }
  func.func @transform_4(%arg0: i32) -> (i32, i32) {
    %c0_i32 = arith.constant 0 : i32
    %c0_i32_0 = arith.constant 0 : i32
    return %arg0, %c0_i32 : i32, i32
  }
  func.func @transform_5(%arg0: i32) -> (i32, i32) {
    %c0_i32 = arith.constant 0 : i32
    %c0_i32_0 = arith.constant 0 : i32
    return %arg0, %c0_i32 : i32, i32
  }
}

</mosaic_0001>

<bundles_post_ra>
// kernel: santacoder_forward.15
= control target key start
LH: loop header
LB: loop body
LE: loop exit
PB: predicated region body
PF: predicated region fallthrough
CT: control target
= control target key end

     0   :  { %s1101_s0 = inlined_call_operand.vmem [shape: f32[128,256], index: 0, kind: input, shape index: {}]   ;;  %s1102_s1 = inlined_call_operand.vmem [shape: f32[1,256], index: 1, kind: input, shape index: {}]   ;;  %s1103_s2 = inlined_call_operand.vmem [shape: f32[1,256], index: 2, kind: input, shape index: {}]   ;;  %s1104_s3 = inlined_call_operand.vmem [shape: bf16[128,256], index: 3, kind: output, shape index: {}]  }
   0x1   :  { %v594_v0 = vld [vmem:[%s1101_s0] sm:$0xff]  ;;  %v599_v1 = vld [vmem:[%s1101_s0 + $0x8] sm:$0xff]  ;;  %v616_v5 = vld [vmem:[%s1101_s0 + $0x10] sm:$0xff] }
   0x2   :  { %v604_v2 = vld [vmem:[%s1101_s0 + $0x20] sm:$0xff]  ;;  %v46_v3 = vadd.f32 %v599_v1, %v594_v0  ;;  %v611_v4 = vld [vmem:[%s1101_s0 + $0x28] sm:$0xff]  ;;  %v621_v6 = vld [vmem:[%s1101_s0 + $0x18] sm:$0xff] }
   0x3   :  { %v52_v7 = vadd.f32 %v611_v4, %v604_v2  ;;  %v628_v8 = vld [vmem:[%s1101_s0 + $0x30] sm:$0xff]  ;;  %v633_v9 = vld [vmem:[%s1101_s0 + $0x38] sm:$0xff]  ;;  %v49_v10 = vadd.f32 %v621_v6, %v616_v5  ;;  %v642_v12 = vld [vmem:[%s1101_s0 + $0x40] sm:$0xff] }
   0x4   :  { %47 = vadd.xlane.f32.xlu0 %v46_v3  ;;  %v55_v11 = vadd.f32 %v633_v9, %v628_v8  ;;  %v647_v13 = vld [vmem:[%s1101_s0 + $0x48] sm:$0xff]  ;;  %v652_v14 = vld [vmem:[%s1101_s0 + $0x50] sm:$0xff]  ;;  %v657_v15 = vld [vmem:[%s1101_s0 + $0x58] sm:$0xff] }
   0x5   :  { %53 = vadd.xlane.f32.xlu1 %v52_v7  ;;  %v58_v16 = vadd.f32 %v647_v13, %v642_v12  ;;  %v61_v17 = vadd.f32 %v657_v15, %v652_v14  ;;  %v666_v18 = vld [vmem:[%s1101_s0 + $0x60] sm:$0xff]  ;;  %v671_v19 = vld [vmem:[%s1101_s0 + $0x68] sm:$0xff]  ;;  %v676_v20 = vld [vmem:[%s1101_s0 + $0x70] sm:$0xff] }
   0x6   :  { %v681_v21 = vld [vmem:[%s1101_s0 + $0x78] sm:$0xff]  ;;  %v64_v22 = vadd.f32 %v671_v19, %v666_v18  ;;  %v690_v24 = vld [vmem:[%s1101_s0 + $0x80] sm:$0xff]  ;;  %v695_v25 = vld [vmem:[%s1101_s0 + $0x88] sm:$0xff] }
   0x7   :  { %v67_v23 = vadd.f32 %v681_v21, %v676_v20  ;;  %v700_v26 = vld [vmem:[%s1101_s0 + $0x90] sm:$0xff]  ;;  %v705_v27 = vld [vmem:[%s1101_s0 + $0x98] sm:$0xff]  ;;  %v70_v28 = vadd.f32 %v695_v25, %v690_v24  ;;  %v714_v30 = vld [vmem:[%s1101_s0 + $0xa0] sm:$0xff] }
   0x8   :  { %50 = vadd.xlane.f32.xlu0 %v49_v10  ;;  %v73_v29 = vadd.f32 %v705_v27, %v700_v26  ;;  %v719_v31 = vld [vmem:[%s1101_s0 + $0xa8] sm:$0xff]  ;;  %v724_v32 = vld [vmem:[%s1101_s0 + $0xb0] sm:$0xff]  ;;  %v729_v33 = vld [vmem:[%s1101_s0 + $0xb8] sm:$0xff] }
   0x9   :  { %56 = vadd.xlane.f32.xlu1 %v55_v11  ;;  %v76_v34 = vadd.f32 %v719_v31, %v714_v30  ;;  %v79_v35 = vadd.f32 %v729_v33, %v724_v32  ;;  %v738_v36 = vld [vmem:[%s1101_s0 + $0xc0] sm:$0xff]  ;;  %v743_v37 = vld [vmem:[%s1101_s0 + $0xc8] sm:$0xff]  ;;  %v748_v38 = vld [vmem:[%s1101_s0 + $0xd0] sm:$0xff] }
   0xa   :  { %v753_v39 = vld [vmem:[%s1101_s0 + $0xd8] sm:$0xff]  ;;  %v82_v40 = vadd.f32 %v743_v37, %v738_v36  ;;  %v762_v42 = vld [vmem:[%s1101_s0 + $0xe0] sm:$0xff]  ;;  %v767_v43 = vld [vmem:[%s1101_s0 + $0xe8] sm:$0xff] }
   0xb   :  { %v85_v41 = vadd.f32 %v753_v39, %v748_v38  ;;  %v772_v44 = vld [vmem:[%s1101_s0 + $0xf0] sm:$0xff]  ;;  %v777_v45 = vld [vmem:[%s1101_s0 + $0xf8] sm:$0xff]  ;;  %v88_v46 = vadd.f32 %v767_v43, %v762_v42 }
   0xc   :  { %59 = vadd.xlane.f32.xlu0 %v58_v16  ;;  %v91_v47 = vadd.f32 %v777_v45, %v772_v44 }
   0xd   :  { %62 = vadd.xlane.f32.xlu1 %v61_v17 }
  0x10   :  { %65 = vadd.xlane.f32.xlu0 %v64_v22 }
  0x11   :  { %68 = vadd.xlane.f32.xlu1 %v67_v23 }
  0x14   :  { %71 = vadd.xlane.f32.xlu0 %v70_v28 }
  0x15   :  { %74 = vadd.xlane.f32.xlu1 %v73_v29 }
  0x18   :  { %77 = vadd.xlane.f32.xlu0 %v76_v34 }
  0x19   :  { %80 = vadd.xlane.f32.xlu1 %v79_v35 }
  0x1c   :  { %83 = vadd.xlane.f32.xlu0 %v82_v40 }
  0x1d   :  { %86 = vadd.xlane.f32.xlu1 %v85_v41 }
  0x20   :  { %89 = vadd.xlane.f32.xlu0 %v88_v46 }
  0x21   :  { %92 = vadd.xlane.f32.xlu1 %v91_v47 }
  0x91   :  { %v48_v48 = vpop.xlane.xlu0 %47 }
  0x92   :  { %v95_v49 = vmul.f32 0.00390625, %v48_v48  ;;  %v54_v50 = vpop.xlane.xlu1 %53 }
  0x93   :  { %v97_v51 = vmul.f32 0.00390625, %v54_v50 }
  0x94   :  { %v784_v52 = vsub.f32 %v594_v0, %v95_v49  ;;  %v787_v53 = vsub.f32 %v599_v1, %v95_v49 }
  0x95   :  { %v790_v54 = vsub.f32 %v604_v2, %v97_v51  ;;  %v793_v55 = vsub.f32 %v611_v4, %v97_v51  ;;  %v51_v56 = vpop.xlane.xlu0 %50 }
  0x96   :  { %v96_v57 = vmul.f32 0.00390625, %v51_v56  ;;  %v57_v58 = vpop.xlane.xlu1 %56  ;;  %v143_v59 = vmul.f32 %v784_v52, %v784_v52  ;;  %v144_v60 = vmul.f32 %v787_v53, %v787_v53 }
  0x97   :  { %v98_v61 = vmul.f32 0.00390625, %v57_v58  ;;  %v147_v62 = vmul.f32 %v790_v54, %v790_v54  ;;  %v148_v63 = vmul.f32 %v793_v55, %v793_v55 }
  0x98   :  { %v804_v0 = vsub.f32 %v616_v5, %v96_v57  ;;  %v807_v1 = vsub.f32 %v621_v6, %v96_v57  ;;  %v175_v2 = vadd.f32 %v144_v60, %v143_v59 }
  0x99   :  { %v810_v3 = vsub.f32 %v628_v8, %v98_v61  ;;  %v813_v4 = vsub.f32 %v633_v9, %v98_v61  ;;  %v60_v7 = vpop.xlane.xlu0 %59  ;;  %v181_v16 = vadd.f32 %v148_v63, %v147_v62 }
  0x9a   :  { %v99_v10 = vmul.f32 0.00390625, %v60_v7  ;;  %176 = vadd.xlane.f32.xlu0 %v175_v2  ;;  %v63_v11 = vpop.xlane.xlu1 %62  ;;  %v145_v17 = vmul.f32 %v804_v0, %v804_v0  ;;  %v146_v5 = vmul.f32 %v807_v1, %v807_v1 }
  0x9b   :  { %v100_v6 = vmul.f32 0.00390625, %v63_v11  ;;  %v149_v22 = vmul.f32 %v810_v3, %v810_v3  ;;  %v150_v8 = vmul.f32 %v813_v4, %v813_v4 }
  0x9c   :  { %v824_v9 = vsub.f32 %v642_v12, %v99_v10  ;;  %v827_v23 = vsub.f32 %v647_v13, %v99_v10  ;;  %v178_v28 = vadd.f32 %v146_v5, %v145_v17 }
  0x9d   :  { %v830_v29 = vsub.f32 %v652_v14, %v100_v6  ;;  %v833_v34 = vsub.f32 %v657_v15, %v100_v6  ;;  %v66_v35 = vpop.xlane.xlu0 %65  ;;  %v184_v46 = vadd.f32 %v150_v8, %v149_v22 }
  0x9e   :  { %v101_v40 = vmul.f32 0.00390625, %v66_v35  ;;  %182 = vadd.xlane.f32.xlu0 %v181_v16  ;;  %179 = vadd.xlane.f32.xlu1 %v178_v28  ;;  %v69_v41 = vpop.xlane.xlu1 %68  ;;  %v151_v12 = vmul.f32 %v824_v9, %v824_v9  ;;  %v152_v13 = vmul.f32 %v827_v23, %v827_v23 }
  0x9f   :  { %v102_v47 = vmul.f32 0.00390625, %v69_v41  ;;  %v153_v14 = vmul.f32 %v830_v29, %v830_v29  ;;  %v154_v15 = vmul.f32 %v833_v34, %v833_v34 }
  0xa0   :  { %v844_v48 = vsub.f32 %v666_v18, %v101_v40  ;;  %v847_v49 = vsub.f32 %v671_v19, %v101_v40  ;;  %v187_v50 = vadd.f32 %v152_v13, %v151_v12 }
  0xa1   :  { %v850_v51 = vsub.f32 %v676_v20, %v102_v47  ;;  %v853_v56 = vsub.f32 %v681_v21, %v102_v47  ;;  %v72_v57 = vpop.xlane.xlu0 %71  ;;  %v190_v60 = vadd.f32 %v154_v15, %v153_v14 }
  0xa2   :  { %v103_v58 = vmul.f32 0.00390625, %v72_v57  ;;  %185 = vadd.xlane.f32.xlu1 %v184_v46  ;;  %188 = vadd.xlane.f32.xlu0 %v187_v50  ;;  %v75_v59 = vpop.xlane.xlu1 %74  ;;  %v155_v18 = vmul.f32 %v844_v48, %v844_v48  ;;  %v156_v19 = vmul.f32 %v847_v49, %v847_v49 }
  0xa3   :  { %v104_v61 = vmul.f32 0.00390625, %v75_v59  ;;  %v157_v20 = vmul.f32 %v850_v51, %v850_v51  ;;  %v158_v21 = vmul.f32 %v853_v56, %v853_v56 }
  0xa4   :  { %v864_v62 = vsub.f32 %v690_v24, %v103_v58  ;;  %v867_v63 = vsub.f32 %v695_v25, %v103_v58  ;;  %v193_v2 = vadd.f32 %v156_v19, %v155_v18 }
  0xa5   :  { %v870_v7 = vsub.f32 %v700_v26, %v104_v61  ;;  %v873_v10 = vsub.f32 %v705_v27, %v104_v61  ;;  %v78_v11 = vpop.xlane.xlu0 %77  ;;  %v196_v5 = vadd.f32 %v158_v21, %v157_v20 }
  0xa6   :  { %v105_v16 = vmul.f32 0.00390625, %v78_v11  ;;  %191 = vadd.xlane.f32.xlu1 %v190_v60  ;;  %194 = vadd.xlane.f32.xlu0 %v193_v2  ;;  %v81_v17 = vpop.xlane.xlu1 %80  ;;  %v159_v24 = vmul.f32 %v864_v62, %v864_v62  ;;  %v160_v25 = vmul.f32 %v867_v63, %v867_v63 }
  0xa7   :  { %v106_v6 = vmul.f32 0.00390625, %v81_v17  ;;  %v161_v26 = vmul.f32 %v870_v7, %v870_v7  ;;  %v162_v27 = vmul.f32 %v873_v10, %v873_v10 }
  0xa8   :  { %v884_v22 = vsub.f32 %v714_v30, %v105_v16  ;;  %v887_v8 = vsub.f32 %v719_v31, %v105_v16  ;;  %v199_v28 = vadd.f32 %v160_v25, %v159_v24 }
  0xa9   :  { %v890_v35 = vsub.f32 %v724_v32, %v106_v6  ;;  %v893_v40 = vsub.f32 %v729_v33, %v106_v6  ;;  %v84_v41 = vpop.xlane.xlu0 %83  ;;  %v202_v13 = vadd.f32 %v162_v27, %v161_v26  ;;  %v305_v26 = vlaneseq }
  0xaa   :  { %v107_v46 = vmul.f32 0.00390625, %v84_v41  ;;  %197 = vadd.xlane.f32.xlu1 %v196_v5  ;;  %200 = vadd.xlane.f32.xlu0 %v199_v28  ;;  %v87_v12 = vpop.xlane.xlu1 %86  ;;  %v163_v30 = vmul.f32 %v884_v22, %v884_v22  ;;  %v164_v31 = vmul.f32 %v887_v8, %v887_v8 }
  0xab   :  { %v108_v47 = vmul.f32 0.00390625, %v87_v12  ;;  %v165_v32 = vmul.f32 %v890_v35, %v890_v35  ;;  %v166_v33 = vmul.f32 %v893_v40, %v893_v40 }
  0xac   :  { %v904_v14 = vsub.f32 %v738_v36, %v107_v46  ;;  %v907_v15 = vsub.f32 %v743_v37, %v107_v46  ;;  %v205_v50 = vadd.f32 %v164_v31, %v163_v30 }
  0xad   :  { %v910_v57 = vsub.f32 %v748_v38, %v108_v47  ;;  %v913_v58 = vsub.f32 %v753_v39, %v108_v47  ;;  %v90_v59 = vpop.xlane.xlu0 %89  ;;  %v208_v19 = vadd.f32 %v166_v33, %v165_v32 }
  0xae   :  { %v109_v60 = vmul.f32 0.00390625, %v90_v59  ;;  %203 = vadd.xlane.f32.xlu1 %v202_v13  ;;  %206 = vadd.xlane.f32.xlu0 %v205_v50  ;;  %v93_v18 = vpop.xlane.xlu1 %92  ;;  %v167_v36 = vmul.f32 %v904_v14, %v904_v14  ;;  %v168_v37 = vmul.f32 %v907_v15, %v907_v15  ;;  %v306_v13 = vshrl.u32 %v305_v26, 7 }
  0xaf   :  { %v110_v61 = vmul.f32 0.00390625, %v93_v18  ;;  %v169_v38 = vmul.f32 %v910_v57, %v910_v57  ;;  %v170_v39 = vmul.f32 %v913_v58, %v913_v58  ;;  %v303_v18 = vld [vmem:[%s1102_s1] sm:$0x3] }
  0xb0   :  { %v924_v20 = vsub.f32 %v762_v42, %v109_v60  ;;  %v927_v21 = vsub.f32 %v767_v43, %v109_v60  ;;  %v211_v2 = vadd.f32 %v168_v37, %v167_v36  ;;  %v307_v59 = vsub.s32 0, %v306_v13 }
  0xb1   :  { %v930_v11 = vsub.f32 %v772_v44, %v110_v61  ;;  %v933_v16 = vsub.f32 %v777_v45, %v110_v61  ;;  %v214_v17 = vadd.f32 %v170_v39, %v169_v38  ;;  %v311_v60 = vsub.s32 1, %v306_v13  ;;  %v347_v38 = vld [vmem:[%s1103_s2] sm:$0x3] }
  0xb2   :  { %209 = vadd.xlane.f32.xlu1 %v208_v19  ;;  %212 = vadd.xlane.f32.xlu0 %v211_v2  ;;  %v171_v5 = vmul.f32 %v924_v20, %v924_v20  ;;  %v172_v42 = vmul.f32 %v927_v21, %v927_v21 }
  0xb3   :  { %v173_v43 = vmul.f32 %v930_v11, %v930_v11  ;;  %v174_v24 = vmul.f32 %v933_v16, %v933_v16 }
  0xb4   :  { %v217_v44 = vadd.f32 %v172_v42, %v171_v5  ;;  %v951_v5 = vrot.slane %v303_v18, %v311_v60 }
  0xb5   :  { %v220_v45 = vadd.f32 %v174_v24, %v173_v43 }
  0xb6   :  { %215 = vadd.xlane.f32.xlu1 %v214_v17  ;;  %218 = vadd.xlane.f32.xlu0 %v217_v44  ;;  %v949_v17 = vrot.slane %v303_v18, %v307_v59  ;;  %v953_v44 = vrot.slane %v347_v38, %v307_v59 }
  0xba   :  { %221 = vadd.xlane.f32.xlu1 %v220_v45  ;;  %v955_v45 = vrot.slane %v347_v38, %v311_v60 }
 0x127   :  { %v177_v25 = vpop.xlane.xlu0 %176 }
 0x128   :  { %v223_v6 = vmul.f32 0.00390625, %v177_v25 }
 0x12a   :  { %v239_v27 = vadd.f32 1e-05, %v223_v6 }
 0x12b   :  { %v180_v28 = vpop.xlane.xlu1 %179  ;;  %v183_v41 = vpop.xlane.xlu0 %182 }
 0x12c   :  { %539 = vrsqrt.f32 %v239_v27  ;;  %v224_v46 = vmul.f32 0.00390625, %v180_v28  ;;  %v225_v12 = vmul.f32 0.00390625, %v183_v41 }
 0x12e   :  { %v240_v30 = vadd.f32 1e-05, %v224_v46  ;;  %v241_v31 = vadd.f32 1e-05, %v225_v12 }
 0x12f   :  { %v186_v47 = vpop.xlane.xlu1 %185  ;;  %v189_v32 = vpop.xlane.xlu0 %188 }
 0x130   :  { %541 = vrsqrt.f32 %v240_v30  ;;  %v226_v33 = vmul.f32 0.00390625, %v186_v47  ;;  %v227_v50 = vmul.f32 0.00390625, %v189_v32 }
 0x131   :  { %543 = vrsqrt.f32 %v241_v31 }
 0x132   :  { %v242_v19 = vadd.f32 1e-05, %v226_v33  ;;  %v243_v36 = vadd.f32 1e-05, %v227_v50 }
 0x133   :  { %v192_v37 = vpop.xlane.xlu1 %191  ;;  %v195_v61 = vpop.xlane.xlu0 %194 }
 0x134   :  { %545 = vrsqrt.f32 %v242_v19  ;;  %v228_v39 = vmul.f32 0.00390625, %v192_v37  ;;  %v229_v2 = vmul.f32 0.00390625, %v195_v61 }
 0x135   :  { %547 = vrsqrt.f32 %v243_v36 }
 0x136   :  { %v540_v42 = vpop.eup %539  ;;  %v244_v43 = vadd.f32 1e-05, %v228_v39  ;;  %v245_v24 = vadd.f32 1e-05, %v229_v2 }
 0x137   :  { %v271_v25 = vmul.f32 %v540_v42, %v784_v52  ;;  %v272_v6 = vmul.f32 %v540_v42, %v787_v53  ;;  %v198_v26 = vpop.xlane.xlu1 %197  ;;  %v201_v27 = vpop.xlane.xlu0 %200 }
 0x138   :  { %549 = vrsqrt.f32 %v244_v43  ;;  %v230_v28 = vmul.f32 0.00390625, %v198_v26  ;;  %v231_v41 = vmul.f32 0.00390625, %v201_v27 }
 0x139   :  { %v315_v46 = vmul.f32 %v949_v17, %v271_v25  ;;  %v316_v12 = vmul.f32 %v951_v5, %v272_v6  ;;  %551 = vrsqrt.f32 %v245_v24 }
 0x13a   :  { %v542_v13 = vpop.eup %541  ;;  %v246_v30 = vadd.f32 1e-05, %v230_v28  ;;  %v247_v31 = vadd.f32 1e-05, %v231_v41 }
 0x13b   :  { %v544_v47 = vpop.eup %543  ;;  %v359_v32 = vadd.f32 %v953_v44, %v315_v46  ;;  %v360_v52 = vadd.f32 %v955_v45, %v316_v12  ;;  %v273_v53 = vmul.f32 %v542_v13, %v804_v0  ;;  %v274_v33 = vmul.f32 %v542_v13, %v807_v1  ;;  %v204_v50 = vpop.xlane.xlu1 %203 }
 0x13c   :  { %v207_v59 = vpop.xlane.xlu0 %206  ;;  %v275_v60 = vmul.f32 %v544_v47, %v790_v54  ;;  %v276_v18 = vmul.f32 %v544_v47, %v793_v55  ;;  %553 = vrsqrt.f32 %v246_v30  ;;  %v232_v19 = vmul.f32 0.00390625, %v204_v50 }
 0x13d   :  { %v523_v36 = vpack.c.bf16 %v360_v52, %v359_v32  ;;  %v317_v37 = vmul.f32 %v949_v17, %v273_v53  ;;  %v318_v61 = vmul.f32 %v951_v5, %v274_v33  ;;  %555 = vrsqrt.f32 %v247_v31 }
 0x13e   :  { %v546_v38 = vpop.eup %545  ;;  %v319_v39 = vmul.f32 %v949_v17, %v275_v60  ;;  %v320_v0 = vmul.f32 %v951_v5, %v276_v18  ;;  %v248_v1 = vadd.f32 1e-05, %v232_v19  ;;  %v233_v2 = vmul.f32 0.00390625, %v207_v59 }
 0x13f   :  { %v548_v42 = vpop.eup %547  ;;  %487 = vst [vmem:[%s1104_s3] sm:$0xff] %v523_v36  ;;  %v361_v54 = vadd.f32 %v953_v44, %v317_v37  ;;  %v362_v55 = vadd.f32 %v955_v45, %v318_v61  ;;  %v277_v43 = vmul.f32 %v546_v38, %v810_v3  ;;  %v278_v24 = vmul.f32 %v546_v38, %v813_v4  ;;  %v210_v25 = vpop.xlane.xlu1 %209 }
 0x140   :  { %v363_v6 = vadd.f32 %v953_v44, %v319_v39  ;;  %v364_v26 = vadd.f32 %v955_v45, %v320_v0  ;;  %v279_v27 = vmul.f32 %v548_v42, %v824_v9  ;;  %v280_v28 = vmul.f32 %v548_v42, %v827_v23  ;;  %v213_v60 = vpop.xlane.xlu0 %212 }
 0x141   :  { %v524_v41 = vpack.c.bf16 %v362_v55, %v361_v54  ;;  %v321_v46 = vmul.f32 %v949_v17, %v277_v43  ;;  %v322_v12 = vmul.f32 %v951_v5, %v278_v24  ;;  %557 = vrsqrt.f32 %v248_v1 }
 0x142   :  { %v550_v13 = vpop.eup %549  ;;  %v525_v30 = vpack.c.bf16 %v364_v26, %v363_v6  ;;  %v323_v3 = vmul.f32 %v949_v17, %v279_v27  ;;  %v324_v4 = vmul.f32 %v951_v5, %v280_v28  ;;  %v249_v31 = vadd.f32 1e-05, %v233_v2 }
 0x143   :  { %v552_v47 = vpop.eup %551  ;;  %488 = vst [vmem:[%s1104_s3 + $0x8] sm:$0xff] %v524_v41  ;;  %v365_v9 = vadd.f32 %v953_v44, %v321_v46  ;;  %v366_v23 = vadd.f32 %v955_v45, %v322_v12  ;;  %v281_v32 = vmul.f32 %v550_v13, %v830_v29  ;;  %v282_v52 = vmul.f32 %v550_v13, %v833_v34  ;;  %v216_v34 = vpop.xlane.xlu1 %215 }
 0x144   :  { %489 = vst [vmem:[%s1104_s3 + $0x10] sm:$0xff] %v525_v30  ;;  %v367_v53 = vadd.f32 %v953_v44, %v323_v3  ;;  %v368_v33 = vadd.f32 %v955_v45, %v324_v4  ;;  %v283_v50 = vmul.f32 %v552_v47, %v844_v48  ;;  %v284_v59 = vmul.f32 %v552_v47, %v847_v49  ;;  %v219_v41 = vpop.xlane.xlu0 %218 }
 0x145   :  { %v526_v18 = vpack.c.bf16 %v366_v23, %v365_v9  ;;  %v325_v19 = vmul.f32 %v949_v17, %v281_v32  ;;  %v326_v29 = vmul.f32 %v951_v5, %v282_v52  ;;  %559 = vrsqrt.f32 %v249_v31 }
 0x146   :  { %v554_v36 = vpop.eup %553  ;;  %v527_v37 = vpack.c.bf16 %v368_v33, %v367_v53  ;;  %v327_v61 = vmul.f32 %v949_v17, %v283_v50  ;;  %v328_v38 = vmul.f32 %v951_v5, %v284_v59  ;;  %v234_v39 = vmul.f32 0.00390625, %v210_v25 }
 0x147   :  { %v556_v0 = vpop.eup %555  ;;  %490 = vst [vmem:[%s1104_s3 + $0x18] sm:$0xff] %v526_v18  ;;  %v369_v48 = vadd.f32 %v953_v44, %v325_v19  ;;  %v370_v49 = vadd.f32 %v955_v45, %v326_v29  ;;  %v285_v1 = vmul.f32 %v554_v36, %v850_v51  ;;  %v286_v2 = vmul.f32 %v554_v36, %v853_v56  ;;  %v222_v13 = vpop.xlane.xlu1 %221 }
 0x148   :  { %491 = vst [vmem:[%s1104_s3 + $0x20] sm:$0xff] %v527_v37  ;;  %v371_v42 = vadd.f32 %v953_v44, %v327_v61  ;;  %v372_v54 = vadd.f32 %v955_v45, %v328_v38  ;;  %v287_v55 = vmul.f32 %v556_v0, %v864_v62  ;;  %v288_v43 = vmul.f32 %v556_v0, %v867_v63 }
 0x149   :  { %v528_v24 = vpack.c.bf16 %v370_v49, %v369_v48  ;;  %v329_v25 = vmul.f32 %v949_v17, %v285_v1  ;;  %v330_v6 = vmul.f32 %v951_v5, %v286_v2  ;;  %v250_v51 = vadd.f32 1e-05, %v234_v39 }
 0x14a   :  { %v529_v26 = vpack.c.bf16 %v372_v54, %v371_v42  ;;  %v331_v56 = vmul.f32 %v949_v17, %v287_v55  ;;  %v332_v27 = vmul.f32 %v951_v5, %v288_v43  ;;  %v235_v28 = vmul.f32 0.00390625, %v213_v60 }
 0x14b   :  { %v558_v46 = vpop.eup %557  ;;  %492 = vst [vmem:[%s1104_s3 + $0x28] sm:$0xff] %v528_v24  ;;  %v373_v62 = vadd.f32 %v953_v44, %v329_v25  ;;  %v374_v63 = vadd.f32 %v955_v45, %v330_v6  ;;  %561 = vrsqrt.f32 %v250_v51  ;;  %v236_v12 = vmul.f32 0.00390625, %v216_v34 }
 0x14c   :  { %493 = vst [vmem:[%s1104_s3 + $0x30] sm:$0xff] %v529_v26  ;;  %v375_v30 = vadd.f32 %v953_v44, %v331_v56  ;;  %v376_v3 = vadd.f32 %v955_v45, %v332_v27  ;;  %v289_v4 = vmul.f32 %v558_v46, %v870_v7  ;;  %v290_v31 = vmul.f32 %v558_v46, %v873_v10 }
 0x14d   :  { %v530_v47 = vpack.c.bf16 %v374_v63, %v373_v62  ;;  %v251_v9 = vadd.f32 1e-05, %v235_v28  ;;  %v252_v23 = vadd.f32 1e-05, %v236_v12  ;;  %v237_v32 = vmul.f32 0.00390625, %v219_v41 }
 0x14e   :  { %v531_v52 = vpack.c.bf16 %v376_v3, %v375_v30  ;;  %v333_v53 = vmul.f32 %v949_v17, %v289_v4  ;;  %v334_v33 = vmul.f32 %v951_v5, %v290_v31  ;;  %v238_v50 = vmul.f32 0.00390625, %v222_v13 }
 0x14f   :  { %v560_v59 = vpop.eup %559  ;;  %494 = vst [vmem:[%s1104_s3 + $0x38] sm:$0xff] %v530_v47  ;;  %563 = vrsqrt.f32 %v251_v9  ;;  %v253_v60 = vadd.f32 1e-05, %v237_v32 }
 0x150   :  { %495 = vst [vmem:[%s1104_s3 + $0x40] sm:$0xff] %v531_v52  ;;  %v377_v7 = vadd.f32 %v953_v44, %v333_v53  ;;  %v378_v10 = vadd.f32 %v955_v45, %v334_v33  ;;  %v291_v18 = vmul.f32 %v560_v59, %v884_v22  ;;  %v292_v19 = vmul.f32 %v560_v59, %v887_v8 }
 0x151   :  { %565 = vrsqrt.f32 %v252_v23  ;;  %v254_v29 = vadd.f32 1e-05, %v238_v50 }
 0x152   :  { %v532_v34 = vpack.c.bf16 %v378_v10, %v377_v7  ;;  %v335_v36 = vmul.f32 %v949_v17, %v291_v18  ;;  %v336_v37 = vmul.f32 %v951_v5, %v292_v19  ;;  %567 = vrsqrt.f32 %v253_v60 }
 0x153   :  { %569 = vrsqrt.f32 %v254_v29 }
 0x154   :  { %496 = vst [vmem:[%s1104_s3 + $0x48] sm:$0xff] %v532_v34  ;;  %v379_v61 = vadd.f32 %v953_v44, %v335_v36  ;;  %v380_v38 = vadd.f32 %v955_v45, %v336_v37 }
 0x155   :  { %v562_v22 = vpop.eup %561 }
 0x156   :  { %v533_v39 = vpack.c.bf16 %v380_v38, %v379_v61  ;;  %v293_v8 = vmul.f32 %v562_v22, %v890_v35  ;;  %v294_v0 = vmul.f32 %v562_v22, %v893_v40 }
 0x158   :  { %497 = vst [vmem:[%s1104_s3 + $0x50] sm:$0xff] %v533_v39  ;;  %v337_v48 = vmul.f32 %v949_v17, %v293_v8  ;;  %v338_v49 = vmul.f32 %v951_v5, %v294_v0 }
 0x159   :  { %v564_v1 = vpop.eup %563 }
 0x15a   :  { %v381_v2 = vadd.f32 %v953_v44, %v337_v48  ;;  %v382_v42 = vadd.f32 %v955_v45, %v338_v49  ;;  %v295_v54 = vmul.f32 %v564_v1, %v904_v14  ;;  %v296_v55 = vmul.f32 %v564_v1, %v907_v15 }
 0x15b   :  { %v566_v35 = vpop.eup %565 }
 0x15c   :  { %v568_v43 = vpop.eup %567  ;;  %v534_v40 = vpack.c.bf16 %v382_v42, %v381_v2  ;;  %v339_v24 = vmul.f32 %v949_v17, %v295_v54  ;;  %v340_v25 = vmul.f32 %v951_v5, %v296_v55  ;;  %v297_v6 = vmul.f32 %v566_v35, %v910_v57 }
 0x15d   :  { %v570_v51 = vpop.eup %569  ;;  %v298_v26 = vmul.f32 %v566_v35, %v913_v58  ;;  %v299_v56 = vmul.f32 %v568_v43, %v924_v20  ;;  %v300_v27 = vmul.f32 %v568_v43, %v927_v21 }
 0x15e   :  { %498 = vst [vmem:[%s1104_s3 + $0x58] sm:$0xff] %v534_v40  ;;  %v383_v14 = vadd.f32 %v953_v44, %v339_v24  ;;  %v384_v15 = vadd.f32 %v955_v45, %v340_v25  ;;  %v341_v28 = vmul.f32 %v949_v17, %v297_v6  ;;  %v301_v41 = vmul.f32 %v570_v51, %v930_v11 }
 0x15f   :  { %v342_v57 = vmul.f32 %v951_v5, %v298_v26  ;;  %v343_v58 = vmul.f32 %v949_v17, %v299_v56  ;;  %v344_v20 = vmul.f32 %v951_v5, %v300_v27  ;;  %v302_v21 = vmul.f32 %v570_v51, %v933_v16 }
 0x160   :  { %v535_v46 = vpack.c.bf16 %v384_v15, %v383_v14  ;;  %v385_v62 = vadd.f32 %v953_v44, %v341_v28  ;;  %v345_v63 = vmul.f32 %v949_v17, %v301_v41 }
 0x161   :  { %v386_v12 = vadd.f32 %v955_v45, %v342_v57  ;;  %v387_v13 = vadd.f32 %v953_v44, %v343_v58  ;;  %v388_v30 = vadd.f32 %v955_v45, %v344_v20  ;;  %v346_v11 = vmul.f32 %v951_v5, %v302_v21 }
 0x162   :  { %499 = vst [vmem:[%s1104_s3 + $0x60] sm:$0xff] %v535_v46  ;;  %v389_v3 = vadd.f32 %v953_v44, %v345_v63 }
 0x163   :  { %v536_v16 = vpack.c.bf16 %v386_v12, %v385_v62  ;;  %v537_v4 = vpack.c.bf16 %v388_v30, %v387_v13  ;;  %v390_v31 = vadd.f32 %v955_v45, %v346_v11 }
 0x165   :  { %500 = vst [vmem:[%s1104_s3 + $0x68] sm:$0xff] %v536_v16  ;;  %501 = vst [vmem:[%s1104_s3 + $0x70] sm:$0xff] %v537_v4  ;;  %v538_v17 = vpack.c.bf16 %v390_v31, %v389_v3 }
 0x167   :  { %502 = vst [vmem:[%s1104_s3 + $0x78] sm:$0xff] %v538_v17 }

// kernel: santacoder_forward.16
= control target key start
LH: loop header
LB: loop body
LE: loop exit
PB: predicated region body
PF: predicated region fallthrough
CT: control target
= control target key end

     0   :  { %s1650_s12 = smov 0   ;;  %s1652_s13 = smov 0   ;;  %s1950_s0 = inlined_call_operand.vmem [shape: bf16[128,256], index: 0, kind: input, shape index: {}]   ;;  %s1951_s1 = inlined_call_operand.vmem [shape: bf16[256,512], index: 1, kind: input, shape index: {}]   ;;  %s1952_s2 = inlined_call_operand.vmem [shape: f32[1,512], index: 2, kind: input, shape index: {}]   ;;  %s1953_s3 = inlined_call_operand.vmem [shape: bf16[128,512], index: 3, kind: output, shape index: {}]  }
   0x1   :  { %s1654_s14 = smov 0   ;;  %s1656_s15 = smov 0  }
   0x2   :  { %s1658_s16 = smov 0  }
   0x3 LB: > { %s28_s17 = sadd.s32 1, %s1624_s15  ;;  %s1347_s18 = sadd.s32 4294967295, %s1628_s16   ;;  %s1628_s16 = sphi %s1658_s16, %s13_s16   ;;  %s1624_s15 = sphi %s1656_s15, %s1958_s15   ;;  %s1620_s14 = sphi %s1654_s14, %s1957_s14   ;;  %s1616_s13 = sphi %s1652_s13, %s1956_s13   ;;  %s1612_s12 = sphi %s1650_s12, %s1955_s12  }
   0x4   : > { %p30_p0 = scmp.ge.s32.totalorder %s28_s17, 2  ;;  %p76_p1 = scmp.ne.s32.totalorder %s1616_s13, %s1612_s12 }
   0x5   : > { %p77_p2 = scmp.eq.s32.totalorder %s1628_s16, 0  ;;  %p134_p4 = scmp.eq.s32.totalorder %s1347_s18, 1 }
   0x6   : > { %s1960_s17 = smov (%p30_p0, %s28_s17), 0  ;;  %s69_s20 = sadd.s32 1, %s1616_s13 }
   0x7   : > { %p78_p3 = por %p77_p2, %p76_p1  ;;  %s65_s19 = ssub.s32 %s1624_s15, %s1960_s17 }
   0x8   : > { %p67_p5 = scmp.eq.s32.totalorder %s65_s19, 0  ;;  %p1685_p6 = por %p134_p4, %p76_p1 }
   0x9   : > { %p1351_p7 = scmp.ge.s32.totalorder %s1628_s16, 2 }
   0xa   : > { %s1690_s22 = scalar_select %p67_p5, %s1616_s13, %s69_s20  }
   0xb   : > { %171 = sbr.rel (%p1351_p7) target bundleno = 38 (0x26), region = 20 }
  0x12   : > { %174 = sbr.rel (!%p78_p3) target bundleno = 38 (0x26), region = 24  ;;  %s176_s23 = sand.u32 (%p78_p3), 1, %s1616_s13  }
  0x13   : > { %s1428_s24 = sshll.u32 (%p78_p3), %s1624_s15, 3  ;;  %s1352_s25 = sshll.u32 (%p78_p3), %s176_s23, 8 }
  0x14   : > { %s1698_s28 = scalar_lea.vmem (%p78_p3), %s1951_s1, %s1428_s24  ;;  %s1703_s29 = scalar_lea.vmem (%p78_p3), [#allocation3], %s1352_s25 }
  0x15   : > { %v274_v0 = vld [vmem:[%s1698_s28] sm:$0xff] (%p78_p3)  ;;  %v276_v1 = vld [vmem:[%s1698_s28 + $0x10] sm:$0xff] (%p78_p3) }
  0x16   : > { %v278_v2 = vld [vmem:[%s1698_s28 + $0x20] sm:$0xff] (%p78_p3)  ;;  %275 = vst [vmem:[%s1703_s29] sm:$0xff] (%p78_p3), %v274_v0  ;;  %277 = vst [vmem:[%s1703_s29 + $0x8] sm:$0xff] (%p78_p3), %v276_v1  ;;  %v280_v3 = vld [vmem:[%s1698_s28 + $0x30] sm:$0xff] (%p78_p3) }
  0x17   : > { %279 = vst [vmem:[%s1703_s29 + $0x10] sm:$0xff] (%p78_p3), %v278_v2  ;;  %v282_v4 = vld [vmem:[%s1698_s28 + $0x40] sm:$0xff] (%p78_p3)  ;;  %v284_v5 = vld [vmem:[%s1698_s28 + $0x50] sm:$0xff] (%p78_p3)  ;;  %281 = vst [vmem:[%s1703_s29 + $0x18] sm:$0xff] (%p78_p3), %v280_v3 }
  0x18   : > { %283 = vst [vmem:[%s1703_s29 + $0x20] sm:$0xff] (%p78_p3), %v282_v4  ;;  %285 = vst [vmem:[%s1703_s29 + $0x28] sm:$0xff] (%p78_p3), %v284_v5  ;;  %v286_v6 = vld [vmem:[%s1698_s28 + $0x60] sm:$0xff] (%p78_p3)  ;;  %v288_v7 = vld [vmem:[%s1698_s28 + $0x70] sm:$0xff] (%p78_p3) }
  0x19   : > { %v290_v8 = vld [vmem:[%s1698_s28 + $0x80] sm:$0xff]  ;;  %287 = vst [vmem:[%s1703_s29 + $0x30] sm:$0xff] %v286_v6  ;;  %289 = vst [vmem:[%s1703_s29 + $0x38] sm:$0xff] %v288_v7  ;;  %v292_v9 = vld [vmem:[%s1698_s28 + $0x90] sm:$0xff] }
  0x1a   : > { %291 = vst [vmem:[%s1703_s29 + $0x40] sm:$0xff] %v290_v8  ;;  %v294_v10 = vld [vmem:[%s1698_s28 + $0xa0] sm:$0xff]  ;;  %v296_v11 = vld [vmem:[%s1698_s28 + $0xb0] sm:$0xff]  ;;  %293 = vst [vmem:[%s1703_s29 + $0x48] sm:$0xff] %v292_v9 }
  0x1b   : > { %295 = vst [vmem:[%s1703_s29 + $0x50] sm:$0xff] %v294_v10  ;;  %297 = vst [vmem:[%s1703_s29 + $0x58] sm:$0xff] %v296_v11  ;;  %v298_v12 = vld [vmem:[%s1698_s28 + $0xc0] sm:$0xff]  ;;  %v300_v13 = vld [vmem:[%s1698_s28 + $0xd0] sm:$0xff] }
  0x1c   : > { %v302_v14 = vld [vmem:[%s1698_s28 + $0xe0] sm:$0xff]  ;;  %299 = vst [vmem:[%s1703_s29 + $0x60] sm:$0xff] %v298_v12  ;;  %301 = vst [vmem:[%s1703_s29 + $0x68] sm:$0xff] %v300_v13  ;;  %v304_v15 = vld [vmem:[%s1698_s28 + $0xf0] sm:$0xff] }
  0x1d   : > { %303 = vst [vmem:[%s1703_s29 + $0x70] sm:$0xff] %v302_v14  ;;  %v306_v16 = vld [vmem:[%s1698_s28 + $0x100] sm:$0xff]  ;;  %v308_v17 = vld [vmem:[%s1698_s28 + $0x110] sm:$0xff]  ;;  %305 = vst [vmem:[%s1703_s29 + $0x78] sm:$0xff] %v304_v15 }
  0x1e   : > { %307 = vst [vmem:[%s1703_s29 + $0x80] sm:$0xff] %v306_v16  ;;  %309 = vst [vmem:[%s1703_s29 + $0x88] sm:$0xff] %v308_v17  ;;  %v310_v18 = vld [vmem:[%s1698_s28 + $0x120] sm:$0xff]  ;;  %v312_v19 = vld [vmem:[%s1698_s28 + $0x130] sm:$0xff] }
  0x1f   : > { %v314_v20 = vld [vmem:[%s1698_s28 + $0x140] sm:$0xff]  ;;  %311 = vst [vmem:[%s1703_s29 + $0x90] sm:$0xff] %v310_v18  ;;  %313 = vst [vmem:[%s1703_s29 + $0x98] sm:$0xff] %v312_v19  ;;  %v316_v21 = vld [vmem:[%s1698_s28 + $0x150] sm:$0xff] }
  0x20   : > { %315 = vst [vmem:[%s1703_s29 + $0xa0] sm:$0xff] %v314_v20  ;;  %v318_v22 = vld [vmem:[%s1698_s28 + $0x160] sm:$0xff]  ;;  %v320_v23 = vld [vmem:[%s1698_s28 + $0x170] sm:$0xff]  ;;  %317 = vst [vmem:[%s1703_s29 + $0xa8] sm:$0xff] %v316_v21 }
  0x21   : > { %319 = vst [vmem:[%s1703_s29 + $0xb0] sm:$0xff] %v318_v22  ;;  %321 = vst [vmem:[%s1703_s29 + $0xb8] sm:$0xff] %v320_v23  ;;  %v322_v24 = vld [vmem:[%s1698_s28 + $0x180] sm:$0xff]  ;;  %v324_v25 = vld [vmem:[%s1698_s28 + $0x190] sm:$0xff] }
  0x22   : > { %v326_v26 = vld [vmem:[%s1698_s28 + $0x1a0] sm:$0xff]  ;;  %323 = vst [vmem:[%s1703_s29 + $0xc0] sm:$0xff] %v322_v24  ;;  %325 = vst [vmem:[%s1703_s29 + $0xc8] sm:$0xff] %v324_v25  ;;  %v328_v27 = vld [vmem:[%s1698_s28 + $0x1b0] sm:$0xff] }
  0x23   : > { %327 = vst [vmem:[%s1703_s29 + $0xd0] sm:$0xff] %v326_v26  ;;  %v330_v28 = vld [vmem:[%s1698_s28 + $0x1c0] sm:$0xff]  ;;  %v332_v29 = vld [vmem:[%s1698_s28 + $0x1d0] sm:$0xff]  ;;  %329 = vst [vmem:[%s1703_s29 + $0xd8] sm:$0xff] %v328_v27 }
  0x24   : > { %331 = vst [vmem:[%s1703_s29 + $0xe0] sm:$0xff] %v330_v28  ;;  %333 = vst [vmem:[%s1703_s29 + $0xe8] sm:$0xff] %v332_v29  ;;  %v334_v30 = vld [vmem:[%s1698_s28 + $0x1e0] sm:$0xff]  ;;  %v336_v31 = vld [vmem:[%s1698_s28 + $0x1f0] sm:$0xff] }
  0x25   : > { %335 = vst [vmem:[%s1703_s29 + $0xf0] sm:$0xff] %v334_v30  ;;  %337 = vst [vmem:[%s1703_s29 + $0xf8] sm:$0xff] %v336_v31 }
  0x26 PF: > { %p1355_p8 = scmp.ge.s32.totalorder %s1628_s16, 1  ;;  %p350_p9 = scmp.lt.s32.totalorder %s1628_s16, 3 }
  0x28   : > { %p351_p10 = pnand %p1355_p8, %p350_p9 }
  0x29   : > { %s357_s30 = sand.u32 (!%p351_p10), 1, %s1612_s12   ;;  %v1568_v32 = vld [vmem:[%s1950_s0 + $0x4] ss:$8 sps:$4 sm:$0xff] (!%p351_p10)   ;;  %v1566_v2 = vld [vmem:[%s1950_s0] ss:$8 sps:$4 sm:$0xff] (!%p351_p10)   ;;  %s1358_s28 = sshll.u32 (!%p351_p10), %s1620_s14, 1  ;;  %v984_v16 = vlaneseq (!%p351_p10) }
  0x2a   : > { %354 = sbr.rel (%p351_p10) target bundleno = 362 (0x16a), region = 66  ;;  %s1356_s4 = sshll.u32 (!%p351_p10), %s357_s30, 8  ;;  %v1571_v33 = vld [vmem:[%s1950_s0 + $0x44] ss:$8 sps:$4 sm:$0xff] (!%p351_p10)   ;;  %802 = vmatprep.mubr.bf16.mxu0 (!%p351_p10), %v1568_v32  ;;  %v1569_v3 = vld [vmem:[%s1950_s0 + $0x40] ss:$8 sps:$4 sm:$0xff] (!%p351_p10)  }
  0x2b   : > { %s1777_s9 = scalar_lea.vmem (!%p351_p10), [#allocation3], %s1356_s4  ;;  %842 = vmatprep.mubr.bf16.mxu1 (!%p351_p10), %v1571_v33  ;;  %v1572_v4 = vld [vmem:[%s1950_s0 + $0x14] ss:$8 sps:$4 sm:$0xff] (!%p351_p10)   ;;  %v1576_v6 = vld [vmem:[%s1950_s0 + $0x10] ss:$8 sps:$4 sm:$0xff] (!%p351_p10)   ;;  %p408_p11 = scmp.lt.s32.totalorder (!%p351_p10), %s1358_s28, 3 }
  0x2c   : > { %v1518_v34 = vld [vmem:[%s1777_s9 + $0x4] ss:$8 sps:$4 sm:$0xff] (!%p351_p10)   ;;  %v1520_v35 = vld [vmem:[%s1777_s9] ss:$8 sps:$4 sm:$0xff] (!%p351_p10)   ;;  %v1521_v36 = vld [vmem:[%s1777_s9 + $0x14] ss:$8 sps:$4 sm:$0xff] (!%p351_p10)  }
  0x2d   : > { %770 = vmatprep.subr.bf16.mxu0 (!%p351_p10), %v1518_v34  ;;  %1446 = vmatprep.subr.bf16.mxu1 (!%p351_p10), %v1518_v34  ;;  %v1523_v37 = vld [vmem:[%s1777_s9 + $0x10] ss:$8 sps:$4 sm:$0xff] (!%p351_p10)   ;;  %v1524_v38 = vld [vmem:[%s1777_s9 + $0x24] ss:$8 sps:$4 sm:$0xff] (!%p351_p10)   ;;  %v1526_v39 = vld [vmem:[%s1777_s9 + $0x20] ss:$8 sps:$4 sm:$0xff] (!%p351_p10)  }
  0x2e   : > { %771 = vmatpush1.bf16.msra.mxu0 (!%p351_p10), %v1520_v35  ;;  %1462 = vmatpush1.bf16.msra.mxu1 (!%p351_p10), %v1520_v35  ;;  %v1527_v40 = vld [vmem:[%s1777_s9 + $0x34] ss:$8 sps:$4 sm:$0xff] (!%p351_p10)   ;;  %v1529_v41 = vld [vmem:[%s1777_s9 + $0x30] ss:$8 sps:$4 sm:$0xff] (!%p351_p10)   ;;  %v1530_v42 = vld [vmem:[%s1777_s9 + $0x44] ss:$8 sps:$4 sm:$0xff] (!%p351_p10)  }
  0x2f   : > { %772 = vmatprep.subr.bf16.mxu0 (!%p351_p10), %v1521_v36  ;;  %1447 = vmatprep.subr.bf16.mxu1 (!%p351_p10), %v1521_v36  ;;  %v1532_v43 = vld [vmem:[%s1777_s9 + $0x40] ss:$8 sps:$4 sm:$0xff] (!%p351_p10)   ;;  %v1533_v44 = vld [vmem:[%s1777_s9 + $0x54] ss:$8 sps:$4 sm:$0xff] (!%p351_p10)   ;;  %v1535_v45 = vld [vmem:[%s1777_s9 + $0x50] ss:$8 sps:$4 sm:$0xff] (!%p351_p10)  }
  0x30   : > { %v1536_v46 = vld [vmem:[%s1777_s9 + $0x64] ss:$8 sps:$4 sm:$0xff] (!%p351_p10)   ;;  %v1538_v47 = vld [vmem:[%s1777_s9 + $0x60] ss:$8 sps:$4 sm:$0xff] (!%p351_p10)   ;;  %v1539_v48 = vld [vmem:[%s1777_s9 + $0x74] ss:$8 sps:$4 sm:$0xff] (!%p351_p10)  }
  0x31   : > { %v1541_v49 = vld [vmem:[%s1777_s9 + $0x70] ss:$8 sps:$4 sm:$0xff]   ;;  %v1542_v50 = vld [vmem:[%s1777_s9 + $0x84] ss:$8 sps:$4 sm:$0xff]   ;;  %v1544_v51 = vld [vmem:[%s1777_s9 + $0x80] ss:$8 sps:$4 sm:$0xff]  }
  0x32   : > { %773 = vmatpush1.bf16.msra.mxu0 %v1523_v37  ;;  %1463 = vmatpush1.bf16.msra.mxu1 %v1523_v37  ;;  %v1545_v52 = vld [vmem:[%s1777_s9 + $0x94] ss:$8 sps:$4 sm:$0xff]   ;;  %v1547_v53 = vld [vmem:[%s1777_s9 + $0x90] ss:$8 sps:$4 sm:$0xff]   ;;  %v1548_v54 = vld [vmem:[%s1777_s9 + $0xa4] ss:$8 sps:$4 sm:$0xff]  }
  0x33   : > { %774 = vmatprep.subr.bf16.mxu0 %v1524_v38  ;;  %1448 = vmatprep.subr.bf16.mxu1 %v1524_v38  ;;  %v1550_v55 = vld [vmem:[%s1777_s9 + $0xa0] ss:$8 sps:$4 sm:$0xff]   ;;  %v1551_v56 = vld [vmem:[%s1777_s9 + $0xb4] ss:$8 sps:$4 sm:$0xff]   ;;  %v1553_v57 = vld [vmem:[%s1777_s9 + $0xb0] ss:$8 sps:$4 sm:$0xff]  }
  0x34   : > { %v1554_v58 = vld [vmem:[%s1777_s9 + $0xc4] ss:$8 sps:$4 sm:$0xff]   ;;  %v1556_v59 = vld [vmem:[%s1777_s9 + $0xc0] ss:$8 sps:$4 sm:$0xff]   ;;  %v1557_v60 = vld [vmem:[%s1777_s9 + $0xd4] ss:$8 sps:$4 sm:$0xff]  }
  0x35   : > { %v1559_v61 = vld [vmem:[%s1777_s9 + $0xd0] ss:$8 sps:$4 sm:$0xff]   ;;  %v1560_v62 = vld [vmem:[%s1777_s9 + $0xe4] ss:$8 sps:$4 sm:$0xff]   ;;  %v1562_v63 = vld [vmem:[%s1777_s9 + $0xe0] ss:$8 sps:$4 sm:$0xff]  }
  0x36   : > { %775 = vmatpush1.bf16.msra.mxu0 %v1526_v39  ;;  %1464 = vmatpush1.bf16.msra.mxu1 %v1526_v39  ;;  %v1563_v0 = vld [vmem:[%s1777_s9 + $0xf4] ss:$8 sps:$4 sm:$0xff]   ;;  %v1565_v1 = vld [vmem:[%s1777_s9 + $0xf0] ss:$8 sps:$4 sm:$0xff]   ;;  %v1578_v8 = vld [vmem:[%s1950_s0 + $0x24] ss:$8 sps:$4 sm:$0xff]  }
  0x37   : > { %776 = vmatprep.subr.bf16.mxu0 %v1527_v40  ;;  %1449 = vmatprep.subr.bf16.mxu1 %v1527_v40  ;;  %v1574_v5 = vld [vmem:[%s1950_s0 + $0x54] ss:$8 sps:$4 sm:$0xff]   ;;  %v1577_v7 = vld [vmem:[%s1950_s0 + $0x50] ss:$8 sps:$4 sm:$0xff]   ;;  %v1580_v9 = vld [vmem:[%s1950_s0 + $0x64] ss:$8 sps:$4 sm:$0xff]  }
  0x38   : > { %v1582_v10 = vld [vmem:[%s1950_s0 + $0x20] ss:$8 sps:$4 sm:$0xff]   ;;  %v1584_v12 = vld [vmem:[%s1950_s0 + $0x34] ss:$8 sps:$4 sm:$0xff]   ;;  %v1588_v14 = vld [vmem:[%s1950_s0 + $0x30] ss:$8 sps:$4 sm:$0xff]  }
  0x39   : > { %v1583_v11 = vld [vmem:[%s1950_s0 + $0x60] ss:$8 sps:$4 sm:$0xff]   ;;  %v1586_v13 = vld [vmem:[%s1950_s0 + $0x74] ss:$8 sps:$4 sm:$0xff]   ;;  %v1589_v15 = vld [vmem:[%s1950_s0 + $0x70] ss:$8 sps:$4 sm:$0xff]  }
  0x3a   : > { %777 = vmatpush1.bf16.msra.mxu0 %v1529_v41  ;;  %1465 = vmatpush1.bf16.msra.mxu1 %v1529_v41  ;;  %s1962_s28 = smov (!%p408_p11, %s1358_s28), 3  ;;  %v985_v17 = vshrl.u32 %v984_v16, 7  ;;  %s1357_s6 = sshll.u32 %s357_s30, 7 }
  0x3b   : > { %778 = vmatprep.subr.bf16.mxu0 %v1530_v42  ;;  %1450 = vmatprep.subr.bf16.mxu1 %v1530_v42  ;;  %s410_s5 = scalar_lea.vmem %s1952_s2, %s1962_s28  ;;  %s1871_s12 = scalar_lea.vmem [#allocation4], %s1357_s6 }
  0x3c   : > { %v986_v18 = vsub.s32 0, %v985_v17  ;;  %v982_v19 = vld [vmem:[%s410_s5] sm:$0x3]  ;;  %v990_v20 = vsub.s32 1, %v985_v17  ;;  %s1445_s30 = sshll.u32 (%p1685_p6), %s1620_s14, 3 }
  0x3d   : > { %s1150_s9 = scalar_lea.vmem (%p1685_p6), %s1953_s3, %s1445_s30 }
  0x3e   : > { %779 = vmatpush1.bf16.msra.mxu0 %v1532_v43  ;;  %1466 = vmatpush1.bf16.msra.mxu1 %v1532_v43  ;;  %v1857_v21 = vrot.slane %v982_v19, %v986_v18  ;;  %v1859_v22 = vrot.slane %v982_v19, %v990_v20 }
  0x3f   : > { %780 = vmatprep.subr.bf16.mxu0 %v1533_v44  ;;  %1451 = vmatprep.subr.bf16.mxu1 %v1533_v44 }
  0x42   : > { %781 = vmatpush1.bf16.msra.mxu0 %v1535_v45  ;;  %1467 = vmatpush1.bf16.msra.mxu1 %v1535_v45 }
  0x43   : > { %782 = vmatprep.subr.bf16.mxu0 %v1536_v46  ;;  %1452 = vmatprep.subr.bf16.mxu1 %v1536_v46 }
  0x46   : > { %783 = vmatpush1.bf16.msra.mxu0 %v1538_v47  ;;  %1468 = vmatpush1.bf16.msra.mxu1 %v1538_v47 }
  0x47   : > { %784 = vmatprep.subr.bf16.mxu0 %v1539_v48  ;;  %1453 = vmatprep.subr.bf16.mxu1 %v1539_v48 }
  0x4a   : > { %785 = vmatpush1.bf16.msra.mxu0 %v1541_v49  ;;  %1469 = vmatpush1.bf16.msra.mxu1 %v1541_v49 }
  0x4b   : > { %786 = vmatprep.subr.bf16.mxu0 %v1542_v50  ;;  %1454 = vmatprep.subr.bf16.mxu1 %v1542_v50 }
  0x4e   : > { %787 = vmatpush1.bf16.msra.mxu0 %v1544_v51  ;;  %1470 = vmatpush1.bf16.msra.mxu1 %v1544_v51 }
  0x4f   : > { %788 = vmatprep.subr.bf16.mxu0 %v1545_v52  ;;  %1455 = vmatprep.subr.bf16.mxu1 %v1545_v52 }
  0x52   : > { %789 = vmatpush1.bf16.msra.mxu0 %v1547_v53  ;;  %1471 = vmatpush1.bf16.msra.mxu1 %v1547_v53 }
  0x53   : > { %790 = vmatprep.subr.bf16.mxu0 %v1548_v54  ;;  %1456 = vmatprep.subr.bf16.mxu1 %v1548_v54 }
  0x56   : > { %791 = vmatpush1.bf16.msra.mxu0 %v1550_v55  ;;  %1472 = vmatpush1.bf16.msra.mxu1 %v1550_v55 }
  0x57   : > { %792 = vmatprep.subr.bf16.mxu0 %v1551_v56  ;;  %1457 = vmatprep.subr.bf16.mxu1 %v1551_v56 }
  0x5a   : > { %793 = vmatpush1.bf16.msra.mxu0 %v1553_v57  ;;  %1473 = vmatpush1.bf16.msra.mxu1 %v1553_v57 }
  0x5b   : > { %794 = vmatprep.subr.bf16.mxu0 %v1554_v58  ;;  %1458 = vmatprep.subr.bf16.mxu1 %v1554_v58 }
  0x5e   : > { %795 = vmatpush1.bf16.msra.mxu0 %v1556_v59  ;;  %1474 = vmatpush1.bf16.msra.mxu1 %v1556_v59 }
  0x5f   : > { %796 = vmatprep.subr.bf16.mxu0 %v1557_v60  ;;  %1459 = vmatprep.subr.bf16.mxu1 %v1557_v60 }
  0x62   : > { %797 = vmatpush1.bf16.msra.mxu0 %v1559_v61  ;;  %1475 = vmatpush1.bf16.msra.mxu1 %v1559_v61 }
  0x63   : > { %798 = vmatprep.subr.bf16.mxu0 %v1560_v62  ;;  %1460 = vmatprep.subr.bf16.mxu1 %v1560_v62 }
  0x66   : > { %799 = vmatpush1.bf16.msra.mxu0 %v1562_v63  ;;  %1476 = vmatpush1.bf16.msra.mxu1 %v1562_v63 }
  0x67   : > { %800 = vmatprep.subr.bf16.mxu0 %v1563_v0  ;;  %1461 = vmatprep.subr.bf16.mxu1 %v1563_v0 }
  0x6a   : > { %801 = vmatpush1.bf16.msra.mxu0 %v1565_v1  ;;  %1477 = vmatpush1.bf16.msra.mxu1 %v1565_v1 }
  0x6d   : > { %803 = vmatmul.mubr.bf16.vlgmr.msra.gmra.mrb[0].mxu0 %v1566_v2  ;;  %843 = vmatmul.mubr.bf16.vlgmr.msra.gmra.mrb[0].mxu1 %v1569_v3 }
  0x6e   : > { %812 = vmatprep.mubr.bf16.mxu0 %v1572_v4  ;;  %852 = vmatprep.mubr.bf16.mxu1 %v1574_v5 }
  0x75   : > { %813 = vmatmul.mubr.bf16.gmra.mrb[4].mxu0 %v1576_v6  ;;  %853 = vmatmul.mubr.bf16.gmra.mrb[4].mxu1 %v1577_v7 }
  0x76   : > { %822 = vmatprep.mubr.bf16.mxu0 %v1578_v8  ;;  %862 = vmatprep.mubr.bf16.mxu1 %v1580_v9 }
  0x7d   : > { %823 = vmatmul.mubr.bf16.gmra.mrb[8].mxu0 %v1582_v10  ;;  %863 = vmatmul.mubr.bf16.gmra.mrb[8].mxu1 %v1583_v11 }
  0x7e   : > { %832 = vmatprep.mubr.bf16.mxu0 %v1584_v12  ;;  %872 = vmatprep.mubr.bf16.mxu1 %v1586_v13 }
  0x85   : > { %833 = vmatmul.mubr.bf16.gmra.mrb[12].mxu0 %v1588_v14  ;;  %873 = vmatmul.mubr.bf16.gmra.mrb[12].mxu1 %v1589_v15 }
 0x140   : > { %v804_v23 = vpop.f32.mrb[0].mxu0  ;;  %v844_v24 = vpop.f32.mrb[0].mxu1 }
 0x141   : > { %v994_v25 = vadd.f32 %v1857_v21, %v804_v23  ;;  %v1010_v26 = vadd.f32 %v1857_v21, %v844_v24  ;;  %v806_v27 = vpop.f32.mrb[1].mxu0  ;;  %v846_v28 = vpop.f32.mrb[1].mxu1 }
 0x142   : > { %v995_v29 = vadd.f32 %v1859_v22, %v806_v27  ;;  %v1011_v30 = vadd.f32 %v1859_v22, %v846_v28  ;;  %v808_v31 = vpop.f32.mrb[2].mxu0  ;;  %v848_v32 = vpop.f32.mrb[2].mxu1 }
 0x143   : > { %v996_v33 = vadd.f32 %v1857_v21, %v808_v31  ;;  %v1012_v34 = vadd.f32 %v1857_v21, %v848_v32  ;;  %v810_v35 = vpop.f32.mrb[3].mxu0  ;;  %v850_v36 = vpop.f32.mrb[3].mxu1 }
 0x144   : > { %v1429_v37 = vpack.c.bf16 %v995_v29, %v994_v25  ;;  %v1437_v38 = vpack.c.bf16 %v1011_v30, %v1010_v26  ;;  %v997_v39 = vadd.f32 %v1859_v22, %v810_v35  ;;  %v1013_v40 = vadd.f32 %v1859_v22, %v850_v36 }
 0x146   : > { %1122 = vst [vmem:[%s1871_s12] sm:$0xff] %v1429_v37  ;;  %1130 = vst [vmem:[%s1871_s12 + $0x40] sm:$0xff] %v1437_v38  ;;  %v1430_v41 = vpack.c.bf16 %v997_v39, %v996_v33  ;;  %v1438_v42 = vpack.c.bf16 %v1013_v40, %v1012_v34 }
 0x148   : > { %1123 = vst [vmem:[%s1871_s12 + $0x8] sm:$0xff] %v1430_v41  ;;  %1131 = vst [vmem:[%s1871_s12 + $0x48] sm:$0xff] %v1438_v42  ;;  %v814_v43 = vpop.f32.mrb[4].mxu0  ;;  %v854_v44 = vpop.f32.mrb[4].mxu1 }
 0x149   : > { %v998_v45 = vadd.f32 %v1857_v21, %v814_v43  ;;  %v1014_v46 = vadd.f32 %v1857_v21, %v854_v44  ;;  %v816_v47 = vpop.f32.mrb[5].mxu0  ;;  %v856_v48 = vpop.f32.mrb[5].mxu1 }
 0x14a   : > { %v999_v49 = vadd.f32 %v1859_v22, %v816_v47  ;;  %v1015_v50 = vadd.f32 %v1859_v22, %v856_v48  ;;  %v818_v51 = vpop.f32.mrb[6].mxu0  ;;  %v858_v52 = vpop.f32.mrb[6].mxu1 }
 0x14b   : > { %v1000_v53 = vadd.f32 %v1857_v21, %v818_v51  ;;  %v1016_v54 = vadd.f32 %v1857_v21, %v858_v52  ;;  %v820_v55 = vpop.f32.mrb[7].mxu0  ;;  %v860_v56 = vpop.f32.mrb[7].mxu1 }
 0x14c   : > { %v1431_v57 = vpack.c.bf16 %v999_v49, %v998_v45  ;;  %v1439_v58 = vpack.c.bf16 %v1015_v50, %v1014_v46  ;;  %v1001_v59 = vadd.f32 %v1859_v22, %v820_v55  ;;  %v1017_v60 = vadd.f32 %v1859_v22, %v860_v56 }
 0x14d   : > { %v1224_v47 = vld [vmem:[%s1871_s12 + $0x40] sm:$0xff] (%p1685_p6) }
 0x14e   : > { %1124 = vst [vmem:[%s1871_s12 + $0x10] sm:$0xff] %v1431_v57  ;;  %1132 = vst [vmem:[%s1871_s12 + $0x50] sm:$0xff] %v1439_v58  ;;  %v1432_v61 = vpack.c.bf16 %v1001_v59, %v1000_v53  ;;  %v1440_v62 = vpack.c.bf16 %v1017_v60, %v1016_v54 }
 0x14f   : > { %1225 = vst [vmem:[%s1150_s9 + $0x80] sm:$0xff] (%p1685_p6), %v1224_v47  ;;  %v1226_v48 = vld [vmem:[%s1871_s12 + $0x48] sm:$0xff] (%p1685_p6) }
 0x150   : > { %1125 = vst [vmem:[%s1871_s12 + $0x18] sm:$0xff] %v1432_v61  ;;  %1133 = vst [vmem:[%s1871_s12 + $0x58] sm:$0xff] %v1440_v62  ;;  %v824_v63 = vpop.f32.mrb[8].mxu0  ;;  %v864_v0 = vpop.f32.mrb[8].mxu1 }
 0x151   : > { %v1002_v1 = vadd.f32 %v1857_v21, %v824_v63  ;;  %v1018_v2 = vadd.f32 %v1857_v21, %v864_v0  ;;  %v826_v3 = vpop.f32.mrb[9].mxu0  ;;  %v866_v4 = vpop.f32.mrb[9].mxu1  ;;  %1227 = vst [vmem:[%s1150_s9 + $0x90] sm:$0xff] (%p1685_p6), %v1226_v48 }
 0x152   : > { %v1003_v5 = vadd.f32 %v1859_v22, %v826_v3  ;;  %v1019_v6 = vadd.f32 %v1859_v22, %v866_v4  ;;  %v828_v7 = vpop.f32.mrb[10].mxu0  ;;  %v868_v8 = vpop.f32.mrb[10].mxu1 }
 0x153   : > { %v1004_v9 = vadd.f32 %v1857_v21, %v828_v7  ;;  %v1020_v10 = vadd.f32 %v1857_v21, %v868_v8  ;;  %v830_v11 = vpop.f32.mrb[11].mxu0  ;;  %v870_v12 = vpop.f32.mrb[11].mxu1 }
 0x154   : > { %v1433_v13 = vpack.c.bf16 %v1003_v5, %v1002_v1  ;;  %v1441_v14 = vpack.c.bf16 %v1019_v6, %v1018_v2  ;;  %v1005_v15 = vadd.f32 %v1859_v22, %v830_v11  ;;  %v1021_v16 = vadd.f32 %v1859_v22, %v870_v12 }
 0x155   : > { %v1212_v41 = vld [vmem:[%s1871_s12 + $0x10] sm:$0xff] (%p1685_p6) }
 0x156   : > { %1126 = vst [vmem:[%s1871_s12 + $0x20] sm:$0xff] %v1433_v13  ;;  %1134 = vst [vmem:[%s1871_s12 + $0x60] sm:$0xff] %v1441_v14  ;;  %v1434_v17 = vpack.c.bf16 %v1005_v15, %v1004_v9  ;;  %v1442_v18 = vpack.c.bf16 %v1021_v16, %v1020_v10  ;;  %v1228_v49 = vld [vmem:[%s1871_s12 + $0x50] sm:$0xff] (%p1685_p6) }
 0x157   : > { %v1214_v42 = vld [vmem:[%s1871_s12 + $0x18] sm:$0xff] (%p1685_p6)  ;;  %1213 = vst [vmem:[%s1150_s9 + $0x20] sm:$0xff] (%p1685_p6), %v1212_v41  ;;  %1229 = vst [vmem:[%s1150_s9 + $0xa0] sm:$0xff] (%p1685_p6), %v1228_v49 }
 0x158   : > { %1127 = vst [vmem:[%s1871_s12 + $0x28] sm:$0xff] %v1434_v17  ;;  %1135 = vst [vmem:[%s1871_s12 + $0x68] sm:$0xff] %v1442_v18  ;;  %v834_v19 = vpop.f32.mrb[12].mxu0  ;;  %v874_v20 = vpop.f32.mrb[12].mxu1  ;;  %v1230_v50 = vld [vmem:[%s1871_s12 + $0x58] sm:$0xff] (%p1685_p6) }
 0x159   : > { %v1006_v23 = vadd.f32 %v1857_v21, %v834_v19  ;;  %v1022_v24 = vadd.f32 %v1857_v21, %v874_v20  ;;  %v836_v25 = vpop.f32.mrb[13].mxu0  ;;  %v876_v26 = vpop.f32.mrb[13].mxu1  ;;  %1215 = vst [vmem:[%s1150_s9 + $0x30] sm:$0xff] (%p1685_p6), %v1214_v42  ;;  %1231 = vst [vmem:[%s1150_s9 + $0xb0] sm:$0xff] (%p1685_p6), %v1230_v50 }
 0x15a   : > { %v1007_v27 = vadd.f32 %v1859_v22, %v836_v25  ;;  %v1023_v28 = vadd.f32 %v1859_v22, %v876_v26  ;;  %v838_v29 = vpop.f32.mrb[14].mxu0  ;;  %v878_v30 = vpop.f32.mrb[14].mxu1  ;;  %1144 = sbr.rel (!%p1685_p6) target bundleno = 362 (0x16a), region = 82 }
 0x15b   : > { %v1008_v31 = vadd.f32 %v1857_v21, %v838_v29  ;;  %v1024_v32 = vadd.f32 %v1857_v21, %v878_v30  ;;  %v840_v33 = vpop.f32.mrb[15].mxu0  ;;  %v880_v34 = vpop.f32.mrb[15].mxu1  ;;  %v1208_v21 = vld [vmem:[%s1871_s12] sm:$0xff] (%p1685_p6) }
 0x15c   : > { %v1435_v35 = vpack.c.bf16 %v1007_v27, %v1006_v23  ;;  %v1443_v36 = vpack.c.bf16 %v1023_v28, %v1022_v24  ;;  %v1009_v37 = vadd.f32 %v1859_v22, %v840_v33  ;;  %v1025_v38 = vadd.f32 %v1859_v22, %v880_v34  ;;  %v1210_v22 = vld [vmem:[%s1871_s12 + $0x8] sm:$0xff] (%p1685_p6)  ;;  %1209 = vst [vmem:[%s1150_s9] sm:$0xff] (%p1685_p6), %v1208_v21 }
 0x15d   : > { %v1216_v43 = vld [vmem:[%s1871_s12 + $0x20] sm:$0xff] (%p1685_p6)  ;;  %1211 = vst [vmem:[%s1150_s9 + $0x10] sm:$0xff] (%p1685_p6), %v1210_v22 }
 0x15e   : > { %1128 = vst [vmem:[%s1871_s12 + $0x30] sm:$0xff] %v1435_v35  ;;  %1136 = vst [vmem:[%s1871_s12 + $0x70] sm:$0xff] %v1443_v36  ;;  %v1436_v39 = vpack.c.bf16 %v1009_v37, %v1008_v31  ;;  %v1444_v40 = vpack.c.bf16 %v1025_v38, %v1024_v32  ;;  %v1232_v51 = vld [vmem:[%s1871_s12 + $0x60] sm:$0xff] (%p1685_p6) }
 0x15f   : > { %v1218_v44 = vld [vmem:[%s1871_s12 + $0x28] sm:$0xff] (%p1685_p6)  ;;  %1217 = vst [vmem:[%s1150_s9 + $0x40] sm:$0xff] (%p1685_p6), %v1216_v43  ;;  %1233 = vst [vmem:[%s1150_s9 + $0xc0] sm:$0xff] (%p1685_p6), %v1232_v51 }
 0x160   : > { %1129 = vst [vmem:[%s1871_s12 + $0x38] sm:$0xff] %v1436_v39  ;;  %1137 = vst [vmem:[%s1871_s12 + $0x78] sm:$0xff] %v1444_v40  ;;  %v1234_v52 = vld [vmem:[%s1871_s12 + $0x68] sm:$0xff] (%p1685_p6) }
 0x161   : > { %1219 = vst [vmem:[%s1150_s9 + $0x50] sm:$0xff] %v1218_v44  ;;  %1235 = vst [vmem:[%s1150_s9 + $0xd0] sm:$0xff] %v1234_v52 }
 0x165   : > { %v1220_v45 = vld [vmem:[%s1871_s12 + $0x30] sm:$0xff] }
 0x166   : > { %1221 = vst [vmem:[%s1150_s9 + $0x60] sm:$0xff] %v1220_v45  ;;  %v1236_v53 = vld [vmem:[%s1871_s12 + $0x70] sm:$0xff] }
 0x167   : > { %v1222_v46 = vld [vmem:[%s1871_s12 + $0x38] sm:$0xff]  ;;  %1237 = vst [vmem:[%s1150_s9 + $0xe0] sm:$0xff] %v1236_v53 }
 0x168   : > { %1223 = vst [vmem:[%s1150_s9 + $0x70] sm:$0xff] %v1222_v46  ;;  %v1238_v54 = vld [vmem:[%s1871_s12 + $0x78] sm:$0xff] }
 0x169   : > { %1239 = vst [vmem:[%s1150_s9 + $0xf0] sm:$0xff] %v1238_v54 }
 0x16a PF: > { %s13_s16 = sadd.s32 1, %s1628_s16   ;;  %s1955_s12 = smov %s1616_s13 }
 0x16b   : > { %p10_p12 = scmp.ge.s32.totalorder %s13_s16, 4   ;;  %s1956_s13 = smov %s1690_s22 }
 0x16c   : > { %s1957_s14 = smov %s1624_s15  ;;  %s1958_s15 = smov %s1960_s17 }
 0x16d   :  { %12 = sbr.rel (!%p10_p12) target bundleno = 3 (0x3), region = 157 }

// kernel: santacoder_forward.18
= control target key start
LH: loop header
LB: loop body
LE: loop exit
PB: predicated region body
PF: predicated region fallthrough
CT: control target
= control target key end

     0   :  { %v584_v48 = vlaneseq  ;;  %s1113_s1 = inlined_call_operand.vmem [shape: bf16[256,256], index: 1, kind: input, shape index: {}]   ;;  %s1114_s0 = inlined_call_operand.vmem [shape: bf16[128,256], index: 0, kind: input, shape index: {}]   ;;  %s1115_s2 = inlined_call_operand.vmem [shape: f32[1,256], index: 2, kind: input, shape index: {}]   ;;  %s1116_s3 = inlined_call_operand.vmem [shape: f32[128,256], index: 3, kind: output, shape index: {}]  }
   0x1   :  { %v742_v0 = vld [vmem:[%s1113_s1 + $0x4] ss:$8 sps:$4 sm:$0xff]   ;;  %v744_v1 = vld [vmem:[%s1113_s1] ss:$8 sps:$4 sm:$0xff]   ;;  %v745_v2 = vld [vmem:[%s1113_s1 + $0x14] ss:$8 sps:$4 sm:$0xff]  }
   0x2   :  { %370 = vmatprep.subr.bf16.mxu0 %v742_v0  ;;  %710 = vmatprep.subr.bf16.mxu1 %v742_v0  ;;  %v747_v3 = vld [vmem:[%s1113_s1 + $0x10] ss:$8 sps:$4 sm:$0xff]   ;;  %v748_v4 = vld [vmem:[%s1113_s1 + $0x24] ss:$8 sps:$4 sm:$0xff]   ;;  %v750_v5 = vld [vmem:[%s1113_s1 + $0x20] ss:$8 sps:$4 sm:$0xff]  }
   0x3   :  { %371 = vmatpush1.bf16.msra.mxu0 %v744_v1  ;;  %726 = vmatpush1.bf16.msra.mxu1 %v744_v1  ;;  %v751_v6 = vld [vmem:[%s1113_s1 + $0x34] ss:$8 sps:$4 sm:$0xff]   ;;  %v753_v7 = vld [vmem:[%s1113_s1 + $0x30] ss:$8 sps:$4 sm:$0xff]   ;;  %v754_v8 = vld [vmem:[%s1113_s1 + $0x44] ss:$8 sps:$4 sm:$0xff]  }
   0x4   :  { %372 = vmatprep.subr.bf16.mxu0 %v745_v2  ;;  %711 = vmatprep.subr.bf16.mxu1 %v745_v2  ;;  %v756_v9 = vld [vmem:[%s1113_s1 + $0x40] ss:$8 sps:$4 sm:$0xff]   ;;  %v757_v10 = vld [vmem:[%s1113_s1 + $0x54] ss:$8 sps:$4 sm:$0xff]   ;;  %v759_v11 = vld [vmem:[%s1113_s1 + $0x50] ss:$8 sps:$4 sm:$0xff]  }
   0x5   :  { %v760_v12 = vld [vmem:[%s1113_s1 + $0x64] ss:$8 sps:$4 sm:$0xff]   ;;  %v762_v14 = vld [vmem:[%s1113_s1 + $0x60] ss:$8 sps:$4 sm:$0xff]   ;;  %v763_v16 = vld [vmem:[%s1113_s1 + $0x74] ss:$8 sps:$4 sm:$0xff]  }
   0x6   :  { %v792_v13 = vld [vmem:[%s1114_s0 + $0x4] ss:$8 sps:$4 sm:$0xff]   ;;  %v765_v17 = vld [vmem:[%s1113_s1 + $0x70] ss:$8 sps:$4 sm:$0xff]   ;;  %v768_v19 = vld [vmem:[%s1113_s1 + $0x80] ss:$8 sps:$4 sm:$0xff]  }
   0x7   :  { %373 = vmatpush1.bf16.msra.mxu0 %v747_v3  ;;  %727 = vmatpush1.bf16.msra.mxu1 %v747_v3  ;;  %v795_v15 = vld [vmem:[%s1114_s0 + $0x44] ss:$8 sps:$4 sm:$0xff]   ;;  %v769_v20 = vld [vmem:[%s1113_s1 + $0x94] ss:$8 sps:$4 sm:$0xff]   ;;  %v771_v21 = vld [vmem:[%s1113_s1 + $0x90] ss:$8 sps:$4 sm:$0xff]  }
   0x8   :  { %374 = vmatprep.subr.bf16.mxu0 %v748_v4  ;;  %712 = vmatprep.subr.bf16.mxu1 %v748_v4  ;;  %v766_v18 = vld [vmem:[%s1113_s1 + $0x84] ss:$8 sps:$4 sm:$0xff]   ;;  %v774_v23 = vld [vmem:[%s1113_s1 + $0xa0] ss:$8 sps:$4 sm:$0xff]   ;;  %v775_v24 = vld [vmem:[%s1113_s1 + $0xb4] ss:$8 sps:$4 sm:$0xff]  }
   0x9   :  { %402 = vmatprep.mubr.bf16.mxu0 %v792_v13  ;;  %442 = vmatprep.mubr.bf16.mxu1 %v795_v15  ;;  %v772_v22 = vld [vmem:[%s1113_s1 + $0xa4] ss:$8 sps:$4 sm:$0xff]   ;;  %v777_v25 = vld [vmem:[%s1113_s1 + $0xb0] ss:$8 sps:$4 sm:$0xff]   ;;  %v780_v27 = vld [vmem:[%s1113_s1 + $0xc0] ss:$8 sps:$4 sm:$0xff]  }
   0xa   :  { %v778_v26 = vld [vmem:[%s1113_s1 + $0xc4] ss:$8 sps:$4 sm:$0xff]   ;;  %v781_v28 = vld [vmem:[%s1113_s1 + $0xd4] ss:$8 sps:$4 sm:$0xff]   ;;  %v783_v29 = vld [vmem:[%s1113_s1 + $0xd0] ss:$8 sps:$4 sm:$0xff]  }
   0xb   :  { %375 = vmatpush1.bf16.msra.mxu0 %v750_v5  ;;  %728 = vmatpush1.bf16.msra.mxu1 %v750_v5  ;;  %v784_v30 = vld [vmem:[%s1113_s1 + $0xe4] ss:$8 sps:$4 sm:$0xff]   ;;  %v786_v31 = vld [vmem:[%s1113_s1 + $0xe0] ss:$8 sps:$4 sm:$0xff]   ;;  %v787_v32 = vld [vmem:[%s1113_s1 + $0xf4] ss:$8 sps:$4 sm:$0xff]  }
   0xc   :  { %376 = vmatprep.subr.bf16.mxu0 %v751_v6  ;;  %713 = vmatprep.subr.bf16.mxu1 %v751_v6  ;;  %v789_v33 = vld [vmem:[%s1113_s1 + $0xf0] ss:$8 sps:$4 sm:$0xff]   ;;  %v790_v34 = vld [vmem:[%s1114_s0] ss:$8 sps:$4 sm:$0xff]   ;;  %v796_v36 = vld [vmem:[%s1114_s0 + $0x14] ss:$8 sps:$4 sm:$0xff]  }
   0xd   :  { %v793_v35 = vld [vmem:[%s1114_s0 + $0x40] ss:$8 sps:$4 sm:$0xff]   ;;  %v798_v37 = vld [vmem:[%s1114_s0 + $0x54] ss:$8 sps:$4 sm:$0xff]   ;;  %v800_v38 = vld [vmem:[%s1114_s0 + $0x10] ss:$8 sps:$4 sm:$0xff]  }
   0xe   :  { %v801_v39 = vld [vmem:[%s1114_s0 + $0x50] ss:$8 sps:$4 sm:$0xff]   ;;  %v802_v40 = vld [vmem:[%s1114_s0 + $0x24] ss:$8 sps:$4 sm:$0xff]   ;;  %v806_v42 = vld [vmem:[%s1114_s0 + $0x20] ss:$8 sps:$4 sm:$0xff]  }
   0xf   :  { %377 = vmatpush1.bf16.msra.mxu0 %v753_v7  ;;  %729 = vmatpush1.bf16.msra.mxu1 %v753_v7  ;;  %v804_v41 = vld [vmem:[%s1114_s0 + $0x64] ss:$8 sps:$4 sm:$0xff]   ;;  %v807_v43 = vld [vmem:[%s1114_s0 + $0x60] ss:$8 sps:$4 sm:$0xff]   ;;  %v808_v44 = vld [vmem:[%s1114_s0 + $0x34] ss:$8 sps:$4 sm:$0xff]  }
  0x10   :  { %378 = vmatprep.subr.bf16.mxu0 %v754_v8  ;;  %714 = vmatprep.subr.bf16.mxu1 %v754_v8  ;;  %v810_v45 = vld [vmem:[%s1114_s0 + $0x74] ss:$8 sps:$4 sm:$0xff]   ;;  %v812_v46 = vld [vmem:[%s1114_s0 + $0x30] ss:$8 sps:$4 sm:$0xff]   ;;  %v585_v49 = vshrl.u32 %v584_v48, 7 }
  0x11   :  { %v813_v47 = vld [vmem:[%s1114_s0 + $0x70] ss:$8 sps:$4 sm:$0xff]   ;;  %v582_v51 = vld [vmem:[%s1115_s2] sm:$0x3] }
  0x12   :  { %v586_v50 = vsub.s32 0, %v585_v49  ;;  %v590_v52 = vsub.s32 1, %v585_v49 }
  0x13   :  { %379 = vmatpush1.bf16.msra.mxu0 %v756_v9  ;;  %730 = vmatpush1.bf16.msra.mxu1 %v756_v9 }
  0x14   :  { %380 = vmatprep.subr.bf16.mxu0 %v757_v10  ;;  %715 = vmatprep.subr.bf16.mxu1 %v757_v10  ;;  %v981_v53 = vrot.slane %v582_v51, %v586_v50  ;;  %v983_v54 = vrot.slane %v582_v51, %v590_v52 }
  0x17   :  { %381 = vmatpush1.bf16.msra.mxu0 %v759_v11  ;;  %731 = vmatpush1.bf16.msra.mxu1 %v759_v11 }
  0x18   :  { %382 = vmatprep.subr.bf16.mxu0 %v760_v12  ;;  %716 = vmatprep.subr.bf16.mxu1 %v760_v12 }
  0x1b   :  { %383 = vmatpush1.bf16.msra.mxu0 %v762_v14  ;;  %732 = vmatpush1.bf16.msra.mxu1 %v762_v14 }
  0x1c   :  { %384 = vmatprep.subr.bf16.mxu0 %v763_v16  ;;  %717 = vmatprep.subr.bf16.mxu1 %v763_v16 }
  0x1f   :  { %385 = vmatpush1.bf16.msra.mxu0 %v765_v17  ;;  %733 = vmatpush1.bf16.msra.mxu1 %v765_v17 }
  0x20   :  { %386 = vmatprep.subr.bf16.mxu0 %v766_v18  ;;  %718 = vmatprep.subr.bf16.mxu1 %v766_v18 }
  0x23   :  { %387 = vmatpush1.bf16.msra.mxu0 %v768_v19  ;;  %734 = vmatpush1.bf16.msra.mxu1 %v768_v19 }
  0x24   :  { %388 = vmatprep.subr.bf16.mxu0 %v769_v20  ;;  %719 = vmatprep.subr.bf16.mxu1 %v769_v20 }
  0x27   :  { %389 = vmatpush1.bf16.msra.mxu0 %v771_v21  ;;  %735 = vmatpush1.bf16.msra.mxu1 %v771_v21 }
  0x28   :  { %390 = vmatprep.subr.bf16.mxu0 %v772_v22  ;;  %720 = vmatprep.subr.bf16.mxu1 %v772_v22 }
  0x2b   :  { %391 = vmatpush1.bf16.msra.mxu0 %v774_v23  ;;  %736 = vmatpush1.bf16.msra.mxu1 %v774_v23 }
  0x2c   :  { %392 = vmatprep.subr.bf16.mxu0 %v775_v24  ;;  %721 = vmatprep.subr.bf16.mxu1 %v775_v24 }
  0x2f   :  { %393 = vmatpush1.bf16.msra.mxu0 %v777_v25  ;;  %737 = vmatpush1.bf16.msra.mxu1 %v777_v25 }
  0x30   :  { %394 = vmatprep.subr.bf16.mxu0 %v778_v26  ;;  %722 = vmatprep.subr.bf16.mxu1 %v778_v26 }
  0x33   :  { %395 = vmatpush1.bf16.msra.mxu0 %v780_v27  ;;  %738 = vmatpush1.bf16.msra.mxu1 %v780_v27 }
  0x34   :  { %396 = vmatprep.subr.bf16.mxu0 %v781_v28  ;;  %723 = vmatprep.subr.bf16.mxu1 %v781_v28 }
  0x37   :  { %397 = vmatpush1.bf16.msra.mxu0 %v783_v29  ;;  %739 = vmatpush1.bf16.msra.mxu1 %v783_v29 }
  0x38   :  { %398 = vmatprep.subr.bf16.mxu0 %v784_v30  ;;  %724 = vmatprep.subr.bf16.mxu1 %v784_v30 }
  0x3b   :  { %399 = vmatpush1.bf16.msra.mxu0 %v786_v31  ;;  %740 = vmatpush1.bf16.msra.mxu1 %v786_v31 }
  0x3c   :  { %400 = vmatprep.subr.bf16.mxu0 %v787_v32  ;;  %725 = vmatprep.subr.bf16.mxu1 %v787_v32 }
  0x3f   :  { %401 = vmatpush1.bf16.msra.mxu0 %v789_v33  ;;  %741 = vmatpush1.bf16.msra.mxu1 %v789_v33 }
  0x42   :  { %403 = vmatmul.mubr.bf16.vlgmr.msra.gmra.mrb[0].mxu0 %v790_v34  ;;  %443 = vmatmul.mubr.bf16.vlgmr.msra.gmra.mrb[0].mxu1 %v793_v35 }
  0x43   :  { %412 = vmatprep.mubr.bf16.mxu0 %v796_v36  ;;  %452 = vmatprep.mubr.bf16.mxu1 %v798_v37 }
  0x4a   :  { %413 = vmatmul.mubr.bf16.gmra.mrb[4].mxu0 %v800_v38  ;;  %453 = vmatmul.mubr.bf16.gmra.mrb[4].mxu1 %v801_v39 }
  0x4b   :  { %422 = vmatprep.mubr.bf16.mxu0 %v802_v40  ;;  %462 = vmatprep.mubr.bf16.mxu1 %v804_v41 }
  0x52   :  { %423 = vmatmul.mubr.bf16.gmra.mrb[8].mxu0 %v806_v42  ;;  %463 = vmatmul.mubr.bf16.gmra.mrb[8].mxu1 %v807_v43 }
  0x53   :  { %432 = vmatprep.mubr.bf16.mxu0 %v808_v44  ;;  %472 = vmatprep.mubr.bf16.mxu1 %v810_v45 }
  0x5a   :  { %433 = vmatmul.mubr.bf16.gmra.mrb[12].mxu0 %v812_v46  ;;  %473 = vmatmul.mubr.bf16.gmra.mrb[12].mxu1 %v813_v47 }
 0x115   :  { %v404_v55 = vpop.f32.mrb[0].mxu0  ;;  %v444_v56 = vpop.f32.mrb[0].mxu1 }
 0x116   :  { %v594_v57 = vadd.f32 %v981_v53, %v404_v55  ;;  %v610_v58 = vadd.f32 %v981_v53, %v444_v56  ;;  %v406_v59 = vpop.f32.mrb[1].mxu0  ;;  %v446_v60 = vpop.f32.mrb[1].mxu1 }
 0x117   :  { %v595_v61 = vadd.f32 %v983_v54, %v406_v59  ;;  %v611_v62 = vadd.f32 %v983_v54, %v446_v60  ;;  %v408_v63 = vpop.f32.mrb[2].mxu0  ;;  %v448_v0 = vpop.f32.mrb[2].mxu1 }
 0x118   :  { %626 = vst [vmem:[%s1116_s3] sm:$0xff] %v594_v57  ;;  %642 = vst [vmem:[%s1116_s3 + $0x80] sm:$0xff] %v610_v58  ;;  %v596_v1 = vadd.f32 %v981_v53, %v408_v63  ;;  %v612_v2 = vadd.f32 %v981_v53, %v448_v0  ;;  %v410_v3 = vpop.f32.mrb[3].mxu0  ;;  %v450_v4 = vpop.f32.mrb[3].mxu1 }
 0x119   :  { %627 = vst [vmem:[%s1116_s3 + $0x8] sm:$0xff] %v595_v61  ;;  %643 = vst [vmem:[%s1116_s3 + $0x88] sm:$0xff] %v611_v62  ;;  %v597_v5 = vadd.f32 %v983_v54, %v410_v3  ;;  %v613_v6 = vadd.f32 %v983_v54, %v450_v4 }
 0x11a   :  { %628 = vst [vmem:[%s1116_s3 + $0x10] sm:$0xff] %v596_v1  ;;  %644 = vst [vmem:[%s1116_s3 + $0x90] sm:$0xff] %v612_v2 }
 0x11b   :  { %629 = vst [vmem:[%s1116_s3 + $0x18] sm:$0xff] %v597_v5  ;;  %645 = vst [vmem:[%s1116_s3 + $0x98] sm:$0xff] %v613_v6 }
 0x11d   :  { %v414_v7 = vpop.f32.mrb[4].mxu0  ;;  %v454_v8 = vpop.f32.mrb[4].mxu1 }
 0x11e   :  { %v598_v9 = vadd.f32 %v981_v53, %v414_v7  ;;  %v614_v10 = vadd.f32 %v981_v53, %v454_v8  ;;  %v416_v11 = vpop.f32.mrb[5].mxu0  ;;  %v456_v12 = vpop.f32.mrb[5].mxu1 }
 0x11f   :  { %v599_v13 = vadd.f32 %v983_v54, %v416_v11  ;;  %v615_v14 = vadd.f32 %v983_v54, %v456_v12  ;;  %v418_v15 = vpop.f32.mrb[6].mxu0  ;;  %v458_v16 = vpop.f32.mrb[6].mxu1 }
 0x120   :  { %630 = vst [vmem:[%s1116_s3 + $0x20] sm:$0xff] %v598_v9  ;;  %646 = vst [vmem:[%s1116_s3 + $0xa0] sm:$0xff] %v614_v10  ;;  %v600_v17 = vadd.f32 %v981_v53, %v418_v15  ;;  %v616_v18 = vadd.f32 %v981_v53, %v458_v16  ;;  %v420_v19 = vpop.f32.mrb[7].mxu0  ;;  %v460_v20 = vpop.f32.mrb[7].mxu1 }
 0x121   :  { %631 = vst [vmem:[%s1116_s3 + $0x28] sm:$0xff] %v599_v13  ;;  %647 = vst [vmem:[%s1116_s3 + $0xa8] sm:$0xff] %v615_v14  ;;  %v601_v21 = vadd.f32 %v983_v54, %v420_v19  ;;  %v617_v22 = vadd.f32 %v983_v54, %v460_v20 }
 0x122   :  { %632 = vst [vmem:[%s1116_s3 + $0x30] sm:$0xff] %v600_v17  ;;  %648 = vst [vmem:[%s1116_s3 + $0xb0] sm:$0xff] %v616_v18 }
 0x123   :  { %633 = vst [vmem:[%s1116_s3 + $0x38] sm:$0xff] %v601_v21  ;;  %649 = vst [vmem:[%s1116_s3 + $0xb8] sm:$0xff] %v617_v22 }
 0x125   :  { %v424_v23 = vpop.f32.mrb[8].mxu0  ;;  %v464_v24 = vpop.f32.mrb[8].mxu1 }
 0x126   :  { %v602_v25 = vadd.f32 %v981_v53, %v424_v23  ;;  %v618_v26 = vadd.f32 %v981_v53, %v464_v24  ;;  %v426_v27 = vpop.f32.mrb[9].mxu0  ;;  %v466_v28 = vpop.f32.mrb[9].mxu1 }
 0x127   :  { %v603_v29 = vadd.f32 %v983_v54, %v426_v27  ;;  %v619_v30 = vadd.f32 %v983_v54, %v466_v28  ;;  %v428_v31 = vpop.f32.mrb[10].mxu0  ;;  %v468_v32 = vpop.f32.mrb[10].mxu1 }
 0x128   :  { %634 = vst [vmem:[%s1116_s3 + $0x40] sm:$0xff] %v602_v25  ;;  %650 = vst [vmem:[%s1116_s3 + $0xc0] sm:$0xff] %v618_v26  ;;  %v604_v33 = vadd.f32 %v981_v53, %v428_v31  ;;  %v620_v34 = vadd.f32 %v981_v53, %v468_v32  ;;  %v430_v35 = vpop.f32.mrb[11].mxu0  ;;  %v470_v36 = vpop.f32.mrb[11].mxu1 }
 0x129   :  { %635 = vst [vmem:[%s1116_s3 + $0x48] sm:$0xff] %v603_v29  ;;  %651 = vst [vmem:[%s1116_s3 + $0xc8] sm:$0xff] %v619_v30  ;;  %v605_v37 = vadd.f32 %v983_v54, %v430_v35  ;;  %v621_v38 = vadd.f32 %v983_v54, %v470_v36 }
 0x12a   :  { %636 = vst [vmem:[%s1116_s3 + $0x50] sm:$0xff] %v604_v33  ;;  %652 = vst [vmem:[%s1116_s3 + $0xd0] sm:$0xff] %v620_v34 }
 0x12b   :  { %637 = vst [vmem:[%s1116_s3 + $0x58] sm:$0xff] %v605_v37  ;;  %653 = vst [vmem:[%s1116_s3 + $0xd8] sm:$0xff] %v621_v38 }
 0x12d   :  { %v434_v39 = vpop.f32.mrb[12].mxu0  ;;  %v474_v40 = vpop.f32.mrb[12].mxu1 }
 0x12e   :  { %v606_v41 = vadd.f32 %v981_v53, %v434_v39  ;;  %v622_v42 = vadd.f32 %v981_v53, %v474_v40  ;;  %v436_v43 = vpop.f32.mrb[13].mxu0  ;;  %v476_v44 = vpop.f32.mrb[13].mxu1 }
 0x12f   :  { %v607_v45 = vadd.f32 %v983_v54, %v436_v43  ;;  %v623_v46 = vadd.f32 %v983_v54, %v476_v44  ;;  %v438_v47 = vpop.f32.mrb[14].mxu0  ;;  %v478_v48 = vpop.f32.mrb[14].mxu1 }
 0x130   :  { %638 = vst [vmem:[%s1116_s3 + $0x60] sm:$0xff] %v606_v41  ;;  %654 = vst [vmem:[%s1116_s3 + $0xe0] sm:$0xff] %v622_v42  ;;  %v608_v49 = vadd.f32 %v981_v53, %v438_v47  ;;  %v624_v50 = vadd.f32 %v981_v53, %v478_v48  ;;  %v440_v51 = vpop.f32.mrb[15].mxu0  ;;  %v480_v52 = vpop.f32.mrb[15].mxu1 }
 0x131   :  { %639 = vst [vmem:[%s1116_s3 + $0x68] sm:$0xff] %v607_v45  ;;  %655 = vst [vmem:[%s1116_s3 + $0xe8] sm:$0xff] %v623_v46  ;;  %v609_v55 = vadd.f32 %v983_v54, %v440_v51  ;;  %v625_v56 = vadd.f32 %v983_v54, %v480_v52 }
 0x132   :  { %640 = vst [vmem:[%s1116_s3 + $0x70] sm:$0xff] %v608_v49  ;;  %656 = vst [vmem:[%s1116_s3 + $0xf0] sm:$0xff] %v624_v50 }
 0x133   :  { %641 = vst [vmem:[%s1116_s3 + $0x78] sm:$0xff] %v609_v55  ;;  %657 = vst [vmem:[%s1116_s3 + $0xf8] sm:$0xff] %v625_v56 }

// kernel: santacoder_forward.17
= control target key start
LH: loop header
LB: loop body
LE: loop exit
PB: predicated region body
PF: predicated region fallthrough
CT: control target
= control target key end

     0   :  { %s2258_s12 = smov 0   ;;  %s2260_s13 = smov 0   ;;  %s2882_s0 = inlined_call_operand.vmem [shape: bf16[128,256], index: 0, kind: input, shape index: {}]   ;;  %s2883_s1 = inlined_call_operand.vmem [shape: bf16[128,128], index: 1, kind: input, shape index: {}]   ;;  %s2884_s2 = inlined_call_operand.vmem [shape: bf16[128,128], index: 2, kind: input, shape index: {}]   ;;  %s2885_s3 = inlined_call_operand.vmem [shape: bf16[128,256], index: 3, kind: output, shape index: {}]  }
   0x1   :  { %s2262_s14 = smov 0   ;;  %s2264_s15 = smov 0  }
   0x2   :  { %s2266_s16 = smov 0  }
   0x3 LB: > { %s32_s17 = sadd.s32 1, %s2229_s15  ;;  %s1816_s18 = sadd.s32 4294967295, %s2233_s16   ;;  %s2233_s16 = sphi %s2266_s16, %s13_s16   ;;  %s2229_s15 = sphi %s2264_s15, %s2904_s15   ;;  %s2225_s14 = sphi %s2262_s14, %s2903_s14   ;;  %s2221_s13 = sphi %s2260_s13, %s2902_s13   ;;  %s2217_s12 = sphi %s2258_s12, %s2901_s12  }
   0x4   : > { %p34_p0 = scmp.ge.s32.totalorder %s32_s17, 2  ;;  %p48_p1 = scmp.ne.s32.totalorder %s2221_s13, %s2217_s12 }
   0x5   : > { %p49_p2 = scmp.eq.s32.totalorder %s2233_s16, 0  ;;  %p132_p4 = scmp.eq.s32.totalorder %s1816_s18, 1 }
   0x6   : > { %s2906_s17 = smov (%p34_p0, %s32_s17), 0  ;;  %s41_s20 = sadd.s32 1, %s2221_s13 }
   0x7   : > { %p50_p3 = por %p49_p2, %p48_p1  ;;  %s37_s19 = ssub.s32 %s2229_s15, %s2906_s17 }
   0x8   : > { %p39_p5 = scmp.eq.s32.totalorder %s37_s19, 0  ;;  %p2293_p6 = por %p132_p4, %p48_p1 }
   0x9   : > { %p1821_p7 = scmp.ge.s32.totalorder %s2233_s16, 2 }
   0xa   : > { %s2298_s22 = scalar_select %p39_p5, %s2221_s13, %s41_s20  }
   0xb   : > { %172 = sbr.rel (%p1821_p7) target bundleno = 32 (0x20), region = 24 }
  0x12   : > { %175 = sbr.rel (!%p50_p3) target bundleno = 32 (0x20), region = 28  ;;  %s177_s23 = sand.u32 (%p50_p3), 1, %s2221_s13  }
  0x13   : > { %s1823_s24 = sshll.u32 (%p50_p3), %s2229_s15, 2  ;;  %s1822_s25 = sshll.u32 (%p50_p3), %s177_s23, 6 }
  0x14   : > { %s2306_s28 = scalar_lea.vmem (%p50_p3), %s2882_s0, %s1823_s24  ;;  %s179_s29 = scalar_lea.vmem (%p50_p3), [#allocation5], %s1822_s25 }
  0x15   : > { %v200_v0 = vld [vmem:[%s2306_s28] sm:$0xf] (%p50_p3)  ;;  %v202_v1 = vld [vmem:[%s2306_s28 + $0x8] sm:$0xf] (%p50_p3)  ;;  %v204_v2 = vld [vmem:[%s2306_s28 + $0x10] sm:$0xf] (%p50_p3) }
  0x16   : > { %201 = vst [vmem:[%s179_s29] sm:$0xf] (%p50_p3), %v200_v0  ;;  %203 = vst [vmem:[%s179_s29 + $0x4] sm:$0xf] (%p50_p3), %v202_v1  ;;  %v206_v3 = vld [vmem:[%s2306_s28 + $0x18] sm:$0xf] (%p50_p3) }
  0x17   : > { %v208_v4 = vld [vmem:[%s2306_s28 + $0x20] sm:$0xf] (%p50_p3)  ;;  %205 = vst [vmem:[%s179_s29 + $0x8] sm:$0xf] (%p50_p3), %v204_v2  ;;  %207 = vst [vmem:[%s179_s29 + $0xc] sm:$0xf] (%p50_p3), %v206_v3 }
  0x18   : > { %209 = vst [vmem:[%s179_s29 + $0x10] sm:$0xf] (%p50_p3), %v208_v4  ;;  %v210_v5 = vld [vmem:[%s2306_s28 + $0x28] sm:$0xf] (%p50_p3)  ;;  %v212_v6 = vld [vmem:[%s2306_s28 + $0x30] sm:$0xf] (%p50_p3) }
  0x19   : > { %v214_v7 = vld [vmem:[%s2306_s28 + $0x38] sm:$0xf]  ;;  %211 = vst [vmem:[%s179_s29 + $0x14] sm:$0xf] %v210_v5  ;;  %213 = vst [vmem:[%s179_s29 + $0x18] sm:$0xf] %v212_v6 }
  0x1a   : > { %215 = vst [vmem:[%s179_s29 + $0x1c] sm:$0xf] %v214_v7  ;;  %v216_v8 = vld [vmem:[%s2306_s28 + $0x40] sm:$0xf]  ;;  %v218_v9 = vld [vmem:[%s2306_s28 + $0x48] sm:$0xf] }
  0x1b   : > { %v220_v10 = vld [vmem:[%s2306_s28 + $0x50] sm:$0xf]  ;;  %217 = vst [vmem:[%s179_s29 + $0x20] sm:$0xf] %v216_v8  ;;  %219 = vst [vmem:[%s179_s29 + $0x24] sm:$0xf] %v218_v9 }
  0x1c   : > { %221 = vst [vmem:[%s179_s29 + $0x28] sm:$0xf] %v220_v10  ;;  %v222_v11 = vld [vmem:[%s2306_s28 + $0x58] sm:$0xf]  ;;  %v224_v12 = vld [vmem:[%s2306_s28 + $0x60] sm:$0xf] }
  0x1d   : > { %v226_v13 = vld [vmem:[%s2306_s28 + $0x68] sm:$0xf]  ;;  %223 = vst [vmem:[%s179_s29 + $0x2c] sm:$0xf] %v222_v11  ;;  %225 = vst [vmem:[%s179_s29 + $0x30] sm:$0xf] %v224_v12 }
  0x1e   : > { %227 = vst [vmem:[%s179_s29 + $0x34] sm:$0xf] %v226_v13  ;;  %v228_v14 = vld [vmem:[%s2306_s28 + $0x70] sm:$0xf]  ;;  %v230_v15 = vld [vmem:[%s2306_s28 + $0x78] sm:$0xf] }
  0x1f   : > { %229 = vst [vmem:[%s179_s29 + $0x38] sm:$0xf] %v228_v14  ;;  %231 = vst [vmem:[%s179_s29 + $0x3c] sm:$0xf] %v230_v15 }
  0x20 PF: > { %p1824_p8 = scmp.ge.s32.totalorder %s2233_s16, 1  ;;  %p285_p9 = scmp.lt.s32.totalorder %s2233_s16, 3 }
  0x22   : > { %p286_p10 = pnand %p1824_p8, %p285_p9 }
  0x23   : > { %v2075_v16 = vld [vmem:[%s2883_s1] sm:$0xff] (!%p286_p10)   ;;  %s292_s5 = sand.u32 (!%p286_p10), 1, %s2217_s12   ;;  %v2076_v17 = vld [vmem:[%s2883_s1 + $0x8] sm:$0xff] (!%p286_p10)   ;;  %v2077_v18 = vld [vmem:[%s2883_s1 + $0x10] sm:$0xff] (!%p286_p10)   ;;  %vm343_vm0 = vcmask (!%p286_p10), 7168   ;;  %v2235_v32 = vmov (!%p286_p10), -inf   ;;  %v640_v33 = vlaneseq (!%p286_p10) }
  0x24   : > { %289 = sbr.rel (%p286_p10) target bundleno = 956 (0x3bc), region = 69  ;;  %1966 = vmatprep.subr.bf16.mxu0 (!%p286_p10), %v2075_v16  ;;  %s2333_s8 = sshll.u32 (!%p286_p10), %s292_s5, 6  ;;  %v2078_v20 = vld [vmem:[%s2883_s1 + $0x18] sm:$0xff] (!%p286_p10)   ;;  %v2079_v21 = vld [vmem:[%s2883_s1 + $0x20] sm:$0xff] (!%p286_p10)   ;;  %v2080_v22 = vld [vmem:[%s2883_s1 + $0x28] sm:$0xff] (!%p286_p10)   ;;  %346 = vst.msk [vmem:[#allocation2 + $0x10] sm:$0xff] (!%p286_p10), %vm343_vm0, %v2235_v32 }
  0x25   : > { %1967 = vmatpush3.bf16.xpose.msra.mxu0 (!%p286_p10), %v2075_v16  ;;  %s2339_s11 = scalar_lea.vmem (!%p286_p10), [#allocation5], %s2333_s8  ;;  %v2081_v23 = vld [vmem:[%s2883_s1 + $0x30] sm:$0xff] (!%p286_p10)   ;;  %v2082_v24 = vld [vmem:[%s2883_s1 + $0x38] sm:$0xff] (!%p286_p10)   ;;  %344 = vst.msk [vmem:[#allocation2] sm:$0xff] (!%p286_p10), %vm343_vm0, %v2235_v32  ;;  %345 = vst.msk [vmem:[#allocation2 + $0x8] sm:$0xff] (!%p286_p10), %vm343_vm0, %v2235_v32  ;;  %v2380_v34 = vshrl.u32 (!%p286_p10), %v640_v33, 7 }
  0x26   : > { %1968 = vmatprep.subr.bf16.mxu0 (!%p286_p10), %v2076_v17  ;;  %v2083_v19 = vld [vmem:[%s2339_s11] sm:$0xff] (!%p286_p10)   ;;  %v2084_v25 = vld [vmem:[%s2339_s11 + $0x8] sm:$0xff] (!%p286_p10)   ;;  %v2085_v26 = vld [vmem:[%s2339_s11 + $0x10] sm:$0xff] (!%p286_p10)   ;;  %347 = vst.msk [vmem:[#allocation2 + $0x18] sm:$0xff] (!%p286_p10), %vm343_vm0, %v2235_v32  ;;  %v2383_v36 = vand.u32 (!%p286_p10), 127, %v640_v33  ;;  %v2236_v14 = vmov (!%p286_p10), 0  }
  0x27   : > { %1982 = vmatprep.mubr.bf16.mxu0 (!%p286_p10), %v2083_v19  ;;  %v2086_v27 = vld [vmem:[%s2339_s11 + $0x18] sm:$0xff] (!%p286_p10)   ;;  %v2087_v28 = vld [vmem:[%s2339_s11 + $0x20] sm:$0xff] (!%p286_p10)   ;;  %v2088_v29 = vld [vmem:[%s2339_s11 + $0x28] sm:$0xff] (!%p286_p10)   ;;  %348 = vst.msk [vmem:[#allocation2 + $0x20] sm:$0xff] (!%p286_p10), %vm343_vm0, %v2235_v32  ;;  %v643_v35 = vadd.s32 (!%p286_p10), 16, %v2380_v34  ;;  %v644_v38 = vadd.s32 (!%p286_p10), 24, %v2380_v34  ;;  %2074 = vset.pattern.permute.xlu1 (!%p286_p10), %v2236_v14 }
  0x28   : > { %v2089_v30 = vld [vmem:[%s2339_s11 + $0x30] sm:$0xff] (!%p286_p10)   ;;  %v2090_v31 = vld [vmem:[%s2339_s11 + $0x38] sm:$0xff] (!%p286_p10)   ;;  %349 = vst.msk [vmem:[#allocation2 + $0x28] sm:$0xff] (!%p286_p10), %vm343_vm0, %v2235_v32  ;;  %350 = vst.msk [vmem:[#allocation2 + $0x30] sm:$0xff] (!%p286_p10), %vm343_vm0, %v2235_v32  ;;  %vm678_vm2 = vcmp.le.s32.totalorder (!%p286_p10), %v2383_v36, %v2380_v34  ;;  %v642_v41 = vadd.s32 (!%p286_p10), 8, %v2380_v34  ;;  %v645_v49 = vadd.s32 (!%p286_p10), 32, %v2380_v34  ;;  %2073 = vset.pattern.permute.xlu0 (!%p286_p10), %v2236_v14 }
  0x29   : > { %351 = vst.msk [vmem:[#allocation2 + $0x38] sm:$0xff] (!%p286_p10), %vm343_vm0, %v2235_v32  ;;  %352 = vst.msk [vmem:[#allocation2 + $0x40] sm:$0xff] (!%p286_p10), %vm343_vm0, %v2235_v32  ;;  %vm680_vm1 = vcmp.le.s32.totalorder (!%p286_p10), %v2383_v36, %v643_v35  ;;  %vm681_vm3 = vcmp.le.s32.totalorder (!%p286_p10), %v2383_v36, %v644_v38  ;;  %v648_v50 = vadd.s32 (!%p286_p10), 56, %v2380_v34  ;;  %v647_v55 = vadd.s32 (!%p286_p10), 48, %v2380_v34  ;;  %v2091_v38 = vld [vmem:[%s2884_s2] sm:$0xff] (!%p286_p10)   ;;  %s2823_s26 = scalar_lea.vmem (!%p286_p10), [#allocation6], %s2333_s8 }
  0x2a   : > { %353 = vst.msk [vmem:[#allocation2 + $0x48] sm:$0xff] (!%p286_p10), %vm343_vm0, %v2235_v32  ;;  %354 = vst.msk [vmem:[#allocation2 + $0x50] sm:$0xff] (!%p286_p10), %vm343_vm0, %v2235_v32  ;;  %vm679_vm4 = vcmp.le.s32.totalorder (!%p286_p10), %v2383_v36, %v642_v41  ;;  %vm682_vm5 = vcmp.le.s32.totalorder (!%p286_p10), %v2383_v36, %v645_v49  ;;  %v646_v58 = vadd.s32 (!%p286_p10), 40, %v2380_v34  ;;  %v649_v1 = vadd.s32 (!%p286_p10), 64, %v2380_v34  ;;  %1998 = vmatprep.subr.bf16.mxu1 (!%p286_p10), %v2091_v38 }
  0x2b   : > { %355 = vst.msk [vmem:[#allocation2 + $0x58] sm:$0xff] %vm343_vm0, %v2235_v32  ;;  %356 = vst.msk [vmem:[#allocation2 + $0x60] sm:$0xff] %vm343_vm0, %v2235_v32  ;;  %vm685_vm6 = vcmp.le.s32.totalorder %v2383_v36, %v648_v50  ;;  %vm684_vm7 = vcmp.le.s32.totalorder %v2383_v36, %v647_v55  ;;  %v652_v2 = vadd.s32 88, %v2380_v34  ;;  %v651_v3 = vadd.s32 80, %v2380_v34  ;;  %1999 = vmatpush3.bf16.msra.mxu1 %v2091_v38  ;;  %v2093_v50 = vld [vmem:[%s2884_s2 + $0x10] sm:$0xff]   ;;  %s1868_s8 = sshll.u32 (%p2293_p6), %s2225_s14, 2 }
  0x2c   : > { %357 = vst.msk [vmem:[#allocation2 + $0x68] sm:$0xff] %vm343_vm0, %v2235_v32  ;;  %358 = vst.msk [vmem:[#allocation2 + $0x70] sm:$0xff] %vm343_vm0, %v2235_v32  ;;  %vm683_vm8 = vcmp.le.s32.totalorder %v2383_v36, %v646_v58  ;;  %v650_v6 = vadd.s32 72, %v2380_v34  ;;  %vm686_vm9 = vcmp.le.s32.totalorder %v2383_v36, %v649_v1  ;;  %v2509_v49 = vld [vmem:[#allocation2 + $0x8] sm:$0xff]  ;;  %s1614_s29 = scalar_lea.vmem (%p2293_p6), %s2885_s3, %s1868_s8 }
  0x2d   : > { %1969 = vmatpush3.bf16.xpose.msra.mxu0 %v2076_v17  ;;  %359 = vst.msk [vmem:[#allocation2 + $0x78] sm:$0xff] %vm343_vm0, %v2235_v32  ;;  %vm689_vm10 = vcmp.le.s32.totalorder %v2383_v36, %v652_v2  ;;  %vm688_vm11 = vcmp.le.s32.totalorder %v2383_v36, %v651_v3 }
  0x2e   : > { %1970 = vmatprep.subr.bf16.mxu0 %v2077_v18  ;;  %vm687_vm12 = vcmp.le.s32.totalorder %v2383_v36, %v650_v6 }
  0x2f   : > { %v2548_v6 = vld [vmem:[#allocation2 + $0x30] sm:$0xff] }
  0x35   : > { %1971 = vmatpush3.bf16.xpose.msra.mxu0 %v2077_v18  ;;  %v653_v18 = vadd.s32 96, %v2380_v34 }
  0x36   : > { %1972 = vmatprep.subr.bf16.mxu0 %v2078_v20 }
  0x37   : > { %vm690_vm13 = vcmp.le.s32.totalorder %v2383_v36, %v653_v18  ;;  %v2569_v18 = vld [vmem:[#allocation2 + $0x40] sm:$0xff] }
  0x3d   : > { %1973 = vmatpush3.bf16.xpose.msra.mxu0 %v2078_v20  ;;  %v656_v20 = vadd.s32 120, %v2380_v34 }
  0x3e   : > { %1974 = vmatprep.subr.bf16.mxu0 %v2079_v21 }
  0x3f   : > { %vm693_vm14 = vcmp.le.s32.totalorder %v2383_v36, %v656_v20  ;;  %v2096_v20 = vld [vmem:[%s2884_s2 + $0x28] sm:$0xff]  }
  0x45   : > { %1975 = vmatpush3.bf16.xpose.msra.mxu0 %v2079_v21 }
  0x46   : > { %1976 = vmatprep.subr.bf16.mxu0 %v2080_v22 }
  0x4d   : > { %1977 = vmatpush3.bf16.xpose.msra.mxu0 %v2080_v22  ;;  %v655_v22 = vadd.s32 112, %v2380_v34 }
  0x4e   : > { %1978 = vmatprep.subr.bf16.mxu0 %v2081_v23 }
  0x4f   : > { %vm692_vm15 = vcmp.le.s32.totalorder %v2383_v36, %v655_v22 }
  0x55   : > { %1979 = vmatpush3.bf16.xpose.msra.mxu0 %v2081_v23 }
  0x56   : > { %1980 = vmatprep.subr.bf16.mxu0 %v2082_v24 }
  0x5d   : > { %1981 = vmatpush3.bf16.xpose.msra.mxu0 %v2082_v24  ;;  %v654_v24 = vadd.s32 104, %v2380_v34 }
  0x64   : > { %1983 = vmatmul.mubr.bf16.vlgmr.msra.gmra.mrb[0].mxu0 %v2084_v25 }
  0x65   : > { %1986 = vmatprep.mubr.bf16.mxu0 %v2085_v26 }
  0x6c   : > { %1987 = vmatmul.mubr.bf16.gmra.mrb[4].mxu0 %v2086_v27 }
  0x6d   : > { %1990 = vmatprep.mubr.bf16.mxu0 %v2087_v28 }
  0x74   : > { %1991 = vmatmul.mubr.bf16.gmra.mrb[8].mxu0 %v2088_v29 }
  0x75   : > { %1994 = vmatprep.mubr.bf16.mxu0 %v2089_v30 }
  0x7c   : > { %1995 = vmatmul.mubr.bf16.gmra.mrb[12].mxu0 %v2090_v31  ;;  %v2237_v31 = vmov 0.0  }
  0x7d   : > { %362 = vst.msk [vmem:[#allocation3 + $0x10] sm:$0xff] %vm343_vm0, %v2237_v31  ;;  %360 = vst.msk [vmem:[#allocation3] sm:$0xff] %vm343_vm0, %v2237_v31 }
  0x7e   : > { %361 = vst.msk [vmem:[#allocation3 + $0x8] sm:$0xff] %vm343_vm0, %v2237_v31  ;;  %363 = vst.msk [vmem:[#allocation3 + $0x18] sm:$0xff] %vm343_vm0, %v2237_v31 }
  0x7f   : > { %364 = vst.msk [vmem:[#allocation3 + $0x20] sm:$0xff] %vm343_vm0, %v2237_v31  ;;  %365 = vst.msk [vmem:[#allocation3 + $0x28] sm:$0xff] %vm343_vm0, %v2237_v31 }
  0x80   : > { %366 = vst.msk [vmem:[#allocation3 + $0x30] sm:$0xff] %vm343_vm0, %v2237_v31  ;;  %367 = vst.msk [vmem:[#allocation3 + $0x38] sm:$0xff] %vm343_vm0, %v2237_v31 }
  0x81   : > { %368 = vst.msk [vmem:[#allocation3 + $0x40] sm:$0xff] %vm343_vm0, %v2237_v31  ;;  %369 = vst.msk [vmem:[#allocation3 + $0x48] sm:$0xff] %vm343_vm0, %v2237_v31 }
  0x82   : > { %370 = vst.msk [vmem:[#allocation3 + $0x50] sm:$0xff] %vm343_vm0, %v2237_v31  ;;  %371 = vst.msk [vmem:[#allocation3 + $0x58] sm:$0xff] %vm343_vm0, %v2237_v31 }
  0x83   : > { %372 = vst.msk [vmem:[#allocation3 + $0x60] sm:$0xff] %vm343_vm0, %v2237_v31  ;;  %373 = vst.msk [vmem:[#allocation3 + $0x68] sm:$0xff] %vm343_vm0, %v2237_v31 }
  0x84   : > { %374 = vst.msk [vmem:[#allocation3 + $0x70] sm:$0xff] %vm343_vm0, %v2237_v31  ;;  %375 = vst.msk [vmem:[#allocation3 + $0x78] sm:$0xff] %vm343_vm0, %v2237_v31 }
 0x137   : > { %v1984_v37 = vpop.f32.mrb[0].mxu0 }
 0x138   : > { %v626_v39 = vmul.f32 0.088388346, %v1984_v37  ;;  %v561_v40 = vpop.f32.mrb[1].mxu0 }
 0x139   : > { %v624_v42 = vmul.f32 0.088388346, %v561_v40  ;;  %v1985_v43 = vpop.f32.mrb[2].mxu0  ;;  %v2494_v40 = vld [vmem:[#allocation2] sm:$0xff] }
 0x13a   : > { %v627_v44 = vmul.f32 0.088388346, %v1985_v43  ;;  %v564_v45 = vpop.f32.mrb[3].mxu0  ;;  %v2390_v46 = vsel %vm680_vm1, %v626_v39, -1e+30  ;;  %vm691_vm1 = vcmp.le.s32.totalorder %v2383_v36, %v654_v24  ;;  %v2092_v39 = vld [vmem:[%s2884_s2 + $0x8] sm:$0xff]  }
 0x13b   : > { %v625_v47 = vmul.f32 0.088388346, %v564_v45  ;;  %730 = vmax.xlane.f32.xlu1 %v2390_v46  ;;  %v2393_v48 = vsel %vm678_vm2, %v624_v42, -1e+30  ;;  %2000 = vmatprep.subr.bf16.mxu1 %v2092_v39  ;;  %v2492_v36 = vld [vmem:[#allocation2 + $0x10] sm:$0xff]  ;;  %v2502_v45 = vld [vmem:[#allocation2 + $0x18] sm:$0xff] }
 0x13c   : > { %726 = vmax.xlane.f32.xlu0 %v2393_v48  ;;  %v2400_v51 = vsel %vm681_vm3, %v627_v44, -1e+30  ;;  %2001 = vmatpush3.bf16.msra.mxu1 %v2092_v39 }
 0x13d   : > { %v2403_v53 = vsel %vm679_vm4, %v625_v47, -1e+30  ;;  %2002 = vmatprep.subr.bf16.mxu1 %v2093_v50 }
 0x13f   : > { %732 = vmax.xlane.f32.xlu1 %v2400_v51  ;;  %v1988_v52 = vpop.f32.mrb[4].mxu0 }
 0x140   : > { %728 = vmax.xlane.f32.xlu0 %v2403_v53  ;;  %v577_v54 = vpop.f32.mrb[5].mxu0  ;;  %v630_v61 = vmul.f32 0.088388346, %v1988_v52  ;;  %2003 = vmatpush3.bf16.msra.mxu1 %v2093_v50 }
 0x141   : > { %v628_v56 = vmul.f32 0.088388346, %v577_v54  ;;  %v1989_v57 = vpop.f32.mrb[6].mxu0 }
 0x142   : > { %v631_v59 = vmul.f32 0.088388346, %v1989_v57  ;;  %v580_v60 = vpop.f32.mrb[7].mxu0  ;;  %v2421_v5 = vsel %vm684_vm7, %v630_v61, -1e+30 }
 0x143   : > { %v2410_v62 = vsel %vm682_vm5, %v628_v56, -1e+30  ;;  %v629_v63 = vmul.f32 0.088388346, %v580_v60  ;;  %v2094_v60 = vld [vmem:[%s2884_s2 + $0x18] sm:$0xff]  }
 0x144   : > { %734 = vmax.xlane.f32.xlu0 %v2410_v62  ;;  %v2413_v0 = vsel %vm685_vm6, %v631_v59, -1e+30  ;;  %v2530_v59 = vld [vmem:[#allocation2 + $0x20] sm:$0xff]  ;;  %2004 = vmatprep.subr.bf16.mxu1 %v2094_v60 }
 0x145   : > { %740 = vmax.xlane.f32.xlu1 %v2413_v0  ;;  %v2425_v8 = vsel %vm683_vm8, %v629_v63, -1e+30  ;;  %v2539_v63 = vld [vmem:[#allocation2 + $0x38] sm:$0xff]  ;;  %2005 = vmatpush3.bf16.msra.mxu1 %v2094_v60 }
 0x147   : > { %v1992_v4 = vpop.f32.mrb[8].mxu0 }
 0x148   : > { %738 = vmax.xlane.f32.xlu0 %v2421_v5  ;;  %v593_v7 = vpop.f32.mrb[9].mxu0  ;;  %v634_v9 = vmul.f32 0.088388346, %v1992_v4 }
 0x149   : > { %v632_v10 = vmul.f32 0.088388346, %v593_v7  ;;  %736 = vmax.xlane.f32.xlu1 %v2425_v8  ;;  %v1993_v11 = vpop.f32.mrb[10].mxu0  ;;  %v2095_v7 = vld [vmem:[%s2884_s2 + $0x20] sm:$0xff]  }
 0x14a   : > { %v635_v12 = vmul.f32 0.088388346, %v1993_v11  ;;  %v596_v13 = vpop.f32.mrb[11].mxu0  ;;  %v2439_v19 = vsel %vm688_vm11, %v634_v9, -1e+30  ;;  %2006 = vmatprep.subr.bf16.mxu1 %v2095_v7 }
 0x14b   : > { %v633_v15 = vmul.f32 0.088388346, %v596_v13  ;;  %v2431_v16 = vsel %vm686_vm9, %v632_v10, -1e+30  ;;  %v2557_v10 = vld [vmem:[#allocation2 + $0x28] sm:$0xff]  ;;  %2007 = vmatpush3.bf16.msra.mxu1 %v2095_v7 }
 0x14c   : > { %v2434_v17 = vsel %vm689_vm10, %v635_v12, -1e+30  ;;  %742 = vmax.xlane.f32.xlu0 %v2431_v16  ;;  %2008 = vmatprep.subr.bf16.mxu1 %v2096_v20 }
 0x14d   : > { %748 = vmax.xlane.f32.xlu1 %v2434_v17  ;;  %v2442_v21 = vsel %vm687_vm12, %v633_v15, -1e+30 }
 0x14f   : > { %v1996_v23 = vpop.f32.mrb[12].mxu0  ;;  %2009 = vmatpush3.bf16.msra.mxu1 %v2096_v20 }
 0x150   : > { %v609_v25 = vpop.f32.mrb[13].mxu0  ;;  %746 = vmax.xlane.f32.xlu0 %v2439_v19  ;;  %v638_v26 = vmul.f32 0.088388346, %v1996_v23  ;;  %v2579_v23 = vld [vmem:[#allocation2 + $0x58] sm:$0xff] }
 0x151   : > { %v636_v27 = vmul.f32 0.088388346, %v609_v25  ;;  %744 = vmax.xlane.f32.xlu1 %v2442_v21  ;;  %v1997_v28 = vpop.f32.mrb[14].mxu0 }
 0x152   : > { %v639_v29 = vmul.f32 0.088388346, %v1997_v28  ;;  %v612_v30 = vpop.f32.mrb[15].mxu0  ;;  %v2480_v35 = vsel %vm692_vm15, %v638_v26, -1e+30 }
 0x153   : > { %v637_v32 = vmul.f32 0.088388346, %v612_v30  ;;  %v2469_v33 = vsel %vm690_vm13, %v636_v27, -1e+30  ;;  %v2097_v30 = vld [vmem:[%s2884_s2 + $0x30] sm:$0xff]  }
 0x154   : > { %v2474_v34 = vsel %vm693_vm14, %v639_v29, -1e+30  ;;  %750 = vmax.xlane.f32.xlu0 %v2469_v33  ;;  %v2591_v29 = vld [vmem:[#allocation2 + $0x50] sm:$0xff]  ;;  %2010 = vmatprep.subr.bf16.mxu1 %v2097_v30 }
 0x155   : > { %756 = vmax.xlane.f32.xlu1 %v2474_v34  ;;  %v2482_v37 = vsel %vm691_vm1, %v637_v32, -1e+30  ;;  %v2601_v32 = vld [vmem:[#allocation2 + $0x48] sm:$0xff]  ;;  %2011 = vmatpush3.bf16.msra.mxu1 %v2097_v30 }
 0x156   : > { %v2643_v30 = vld [vmem:[#allocation2 + $0x68] sm:$0xff] }
 0x158   : > { %754 = vmax.xlane.f32.xlu0 %v2480_v35 }
 0x159   : > { %752 = vmax.xlane.f32.xlu1 %v2482_v37 }
 0x1c8   : > { %v731_v41 = vpop.xlane.xlu1 %730 }
 0x1c9   : > { %v2497_v42 = vmax.f32 %v2492_v36, %v731_v41  ;;  %v727_v43 = vpop.xlane.xlu0 %726 }
 0x1ca   : > { %v2500_v44 = vmax.f32 %v2494_v40, %v727_v43 }
 0x1cb   : > { %v776_v47 = vsub.f32 %v2492_v36, %v2497_v42  ;;  %1362 = vst.msk [vmem:[#allocation2 + $0x10] sm:$0xff] %vm343_vm0, %v2497_v42  ;;  %834 = vperm.xlu1 %2074, %v2497_v42  }
 0x1cc   : > { %1360 = vst.msk [vmem:[#allocation2] sm:$0xff] %vm343_vm0, %v2500_v44  ;;  %v733_v54 = vpop.xlane.xlu1 %732  ;;  %824 = vperm.xlu0 %2073, %v2500_v44  }
 0x1cd   : > { %v2520_v55 = vmax.f32 %v2502_v45, %v733_v54  ;;  %v729_v56 = vpop.xlane.xlu0 %728  ;;  %v2613_v54 = vld [vmem:[#allocation2 + $0x60] sm:$0xff] }
 0x1ce   : > { %v2523_v57 = vmax.f32 %v2509_v49, %v729_v56  ;;  %v2098_v56 = vld [vmem:[%s2884_s2 + $0x38] sm:$0xff]  }
 0x1cf   : > { %1363 = vst.msk [vmem:[#allocation2 + $0x18] sm:$0xff] %vm343_vm0, %v2520_v55  ;;  %839 = vperm.xlu1 %2074, %v2520_v55   ;;  %2012 = vmatprep.subr.bf16.mxu1 %v2098_v56 }
 0x1d0   : > { %v775_v61 = vsub.f32 %v2509_v49, %v2523_v57  ;;  %1361 = vst.msk [vmem:[#allocation2 + $0x8] sm:$0xff] %vm343_vm0, %v2523_v57  ;;  %2013 = vmatpush3.bf16.msra.mxu1 %v2098_v56 }
 0x1d1   : > { %v735_v1 = vpop.xlane.xlu0 %734 }
 0x1d2   : > { %v2542_v2 = vmax.f32 %v2530_v59, %v735_v1  ;;  %v741_v3 = vpop.xlane.xlu1 %740  ;;  %v2623_v1 = vld [vmem:[#allocation2 + $0x78] sm:$0xff] }
 0x1d3   : > { %v2545_v4 = vmax.f32 %v2539_v63, %v741_v3  ;;  %829 = vperm.xlu1 %2074, %v2523_v57  }
 0x1d4   : > { %1364 = vst.msk [vmem:[#allocation2 + $0x20] sm:$0xff] %vm343_vm0, %v2542_v2 }
 0x1d5   : > { %1367 = vst.msk [vmem:[#allocation2 + $0x38] sm:$0xff] %vm343_vm0, %v2545_v4  ;;  %v739_v12 = vpop.xlane.xlu0 %738 }
 0x1d6   : > { %v2564_v13 = vmax.f32 %v2548_v6, %v739_v12  ;;  %v737_v14 = vpop.xlane.xlu1 %736 }
 0x1d7   : > { %v2567_v15 = vmax.f32 %v2557_v10, %v737_v14 }
 0x1d8   : > { %1366 = vst.msk [vmem:[#allocation2 + $0x30] sm:$0xff] %vm343_vm0, %v2564_v13  ;;  %854 = vperm.xlu1 %2074, %v2564_v13   ;;  %v2890_v36 = vsub.f32 %v2548_v6, %v2564_v13 }
 0x1d9   : > { %1365 = vst.msk [vmem:[#allocation2 + $0x28] sm:$0xff] %vm343_vm0, %v2567_v15  ;;  %v743_v25 = vpop.xlane.xlu0 %742 }
 0x1da   : > { %v749_v26 = vpop.xlane.xlu1 %748  ;;  %v2586_v27 = vmax.f32 %v2569_v18, %v743_v25  ;;  %v2636_v25 = vld [vmem:[#allocation2 + $0x70] sm:$0xff]  ;;  %v802_v42 = vmul.f32 1.442695, %v2890_v36 }
 0x1db   : > { %v2589_v28 = vmax.f32 %v2579_v23, %v749_v26 }
 0x1dc   : > { %1368 = vst.msk [vmem:[#allocation2 + $0x40] sm:$0xff] %vm343_vm0, %v2586_v27  ;;  %844 = vperm.xlu1 %2074, %v2542_v2   ;;  %v2892_v57 = vsub.f32 %v2569_v18, %v2586_v27 }
 0x1dd   : > { %1371 = vst.msk [vmem:[#allocation2 + $0x58] sm:$0xff] %vm343_vm0, %v2589_v28  ;;  %v747_v39 = vpop.xlane.xlu0 %746 }
 0x1de   : > { %v745_v41 = vpop.xlane.xlu1 %744  ;;  %v2608_v43 = vmax.f32 %v2591_v29, %v747_v39 }
 0x1df   : > { %v2611_v50 = vmax.f32 %v2601_v32, %v745_v41 }
 0x1e0   : > { %1370 = vst.msk [vmem:[#allocation2 + $0x50] sm:$0xff] %vm343_vm0, %v2608_v43  ;;  %849 = vperm.xlu1 %2074, %v2567_v15   ;;  %v2894_v6 = vsub.f32 %v2591_v29, %v2608_v43  ;;  %v2897_v29 = vsub.f32 %v2579_v23, %v2589_v28 }
 0x1e1   : > { %1369 = vst.msk [vmem:[#allocation2 + $0x48] sm:$0xff] %vm343_vm0, %v2611_v50  ;;  %869 = vperm.xlu0 %2073, %v2611_v50   ;;  %v751_v7 = vpop.xlane.xlu0 %750  ;;  %v2895_v13 = vsub.f32 %v2601_v32, %v2611_v50 }
 0x1e2   : > { %v757_v12 = vpop.xlane.xlu1 %756  ;;  %v2631_v14 = vmax.f32 %v2613_v54, %v751_v7 }
 0x1e3   : > { %v2634_v20 = vmax.f32 %v2623_v1, %v757_v12 }
 0x1e4   : > { %1372 = vst.msk [vmem:[#allocation2 + $0x60] sm:$0xff] %vm343_vm0, %v2631_v14  ;;  %859 = vperm.xlu1 %2074, %v2545_v4  }
 0x1e5   : > { %1375 = vst.msk [vmem:[#allocation2 + $0x78] sm:$0xff] %vm343_vm0, %v2634_v20  ;;  %879 = vperm.xlu0 %2073, %v2589_v28   ;;  %v755_v41 = vpop.xlane.xlu0 %754  ;;  %v2900_v28 = vsub.f32 %v2623_v1, %v2634_v20 }
 0x1e6   : > { %v753_v56 = vpop.xlane.xlu1 %752  ;;  %v2651_v7 = vmax.f32 %v2636_v25, %v755_v41 }
 0x1e7   : > { %v2654_v12 = vmax.f32 %v2643_v30, %v753_v56 }
 0x1e8   : > { %1374 = vst.msk [vmem:[#allocation2 + $0x70] sm:$0xff] %vm343_vm0, %v2651_v7  ;;  %864 = vperm.xlu1 %2074, %v2586_v27   ;;  %v2898_v32 = vsub.f32 %v2636_v25, %v2651_v7  ;;  %v820_v25 = vmul.f32 1.442695, %v2900_v28 }
 0x1e9   : > { %1373 = vst.msk [vmem:[#allocation2 + $0x68] sm:$0xff] %vm343_vm0, %v2654_v12  ;;  %889 = vperm.xlu0 %2073, %v2654_v12  }
 0x1ea   : > { %v818_v50 = vmul.f32 1.442695, %v2898_v32  ;;  %v958_v32 = vld [vmem:[#allocation3 + $0x40] sm:$0xff] }
 0x1ec   : > { %874 = vperm.xlu1 %2074, %v2608_v43   ;;  %v812_v43 = vmul.f32 1.442695, %v2897_v29 }
 0x1ed   : > { %899 = vperm.xlu0 %2073, %v2634_v20  }
 0x1f0   : > { %884 = vperm.xlu1 %2074, %v2631_v14  }
 0x1f4   : > { %894 = vperm.xlu1 %2074, %v2651_v7  }
 0x24a   : > { %v835_v41 = vpop.permute.xlu1 %834 }
 0x24b   : > { %v904_v56 = vsub.f32 %v2390_v46, %v835_v41  ;;  %v825_v38 = vpop.permute.xlu0 %824 }
 0x24c   : > { %v902_v26 = vsub.f32 %v2393_v48, %v825_v38 }
 0x24d   : > { %v922_v39 = vmul.f32 1.442695, %v904_v56 }
 0x24e   : > { %v918_v3 = vmul.f32 1.442695, %v902_v26  ;;  %v840_v60 = vpop.permute.xlu1 %839 }
 0x24f   : > { %2099 = vpow2.f32 %v922_v39  ;;  %v905_v11 = vsub.f32 %v2400_v51, %v840_v60 }
 0x250   : > { %2101 = vpow2.f32 %v918_v3 }
 0x251   : > { %v924_v31 = vmul.f32 1.442695, %v905_v11 }
 0x252   : > { %v830_v24 = vpop.permute.xlu1 %829 }
 0x253   : > { %2103 = vpow2.f32 %v924_v31  ;;  %v903_v22 = vsub.f32 %v2403_v53, %v830_v24 }
 0x255   : > { %v920_v58 = vmul.f32 1.442695, %v903_v22 }
 0x257   : > { %2105 = vpow2.f32 %v920_v58  ;;  %v855_v9 = vpop.permute.xlu1 %854 }
 0x258   : > { %v908_v46 = vsub.f32 %v2421_v5, %v855_v9 }
 0x259   : > { %v2100_v41 = vpop.eup %2099 }
 0x25a   : > { %v2102_v52 = vpop.eup %2101  ;;  %v930_v48 = vmul.f32 1.442695, %v908_v46  ;;  %986 = vadd.xlane.f32.xlu0 %v2100_v41 }
 0x25b   : > { %982 = vadd.xlane.f32.xlu1 %v2102_v52  ;;  %v845_v38 = vpop.permute.xlu1 %844 }
 0x25c   : > { %2107 = vpow2.f32 %v930_v48  ;;  %v906_v51 = vsub.f32 %v2410_v62, %v845_v38 }
 0x25d   : > { %v2104_v60 = vpop.eup %2103 }
 0x25e   : > { %v926_v11 = vmul.f32 1.442695, %v906_v51  ;;  %v1160_v26 = vpack.c.bf16 %v2104_v60, %v2100_v41 }
 0x25f   : > { %988 = vadd.xlane.f32.xlu1 %v2104_v60  ;;  %v850_v31 = vpop.permute.xlu1 %849 }
 0x260   : > { %2109 = vpow2.f32 %v926_v11  ;;  %v907_v53 = vsub.f32 %v2425_v8, %v850_v31  ;;  %v870_v58 = vpop.permute.xlu0 %869 }
 0x261   : > { %v2106_v22 = vpop.eup %2105  ;;  %v911_v9 = vsub.f32 %v2442_v21, %v870_v58 }
 0x262   : > { %v928_v24 = vmul.f32 1.442695, %v907_v53  ;;  %984 = vadd.xlane.f32.xlu0 %v2106_v22  ;;  %v1159_v5 = vpack.c.bf16 %v2106_v22, %v2102_v52 }
 0x263   : > { %v860_v3 = vpop.permute.xlu1 %859  ;;  %v936_v48 = vmul.f32 1.442695, %v911_v9 }
 0x264   : > { %2111 = vpow2.f32 %v928_v24  ;;  %v909_v39 = vsub.f32 %v2413_v0, %v860_v3  ;;  %v880_v62 = vpop.permute.xlu0 %879  ;;  %2014 = vmatprep.mubr.bf16.mxu1 %v1159_v5 }
 0x265   : > { %2015 = vmatmul.mubr.bf16.vlgmr.msra.gmra.mrb[0].mxu1 %v1160_v26  ;;  %v913_v8 = vsub.f32 %v2434_v17, %v880_v62 }
 0x266   : > { %v2108_v56 = vpop.eup %2107  ;;  %v932_v46 = vmul.f32 1.442695, %v909_v39 }
 0x267   : > { %994 = vadd.xlane.f32.xlu0 %v2108_v56  ;;  %v865_v38 = vpop.permute.xlu1 %864  ;;  %v940_v41 = vmul.f32 1.442695, %v913_v8 }
 0x268   : > { %2113 = vpow2.f32 %v932_v46  ;;  %v910_v52 = vsub.f32 %v2431_v16, %v865_v38  ;;  %v890_v51 = vpop.permute.xlu0 %889 }
 0x269   : > { %2115 = vpow2.f32 %v936_v48  ;;  %v915_v0 = vsub.f32 %v2482_v37, %v890_v51 }
 0x26a   : > { %v2110_v21 = vpop.eup %2109  ;;  %v934_v11 = vmul.f32 1.442695, %v910_v52 }
 0x26b   : > { %990 = vadd.xlane.f32.xlu0 %v2110_v21  ;;  %v875_v60 = vpop.permute.xlu1 %874  ;;  %v944_v22 = vmul.f32 1.442695, %v915_v0  ;;  %v792_v0 = vmul.f32 1.442695, %v775_v61 }
 0x26c   : > { %2117 = vpow2.f32 %v934_v11  ;;  %v912_v31 = vsub.f32 %v2439_v19, %v875_v60  ;;  %v900_v53 = vpop.permute.xlu0 %899  ;;  %v794_v60 = vmul.f32 1.442695, %v776_v47 }
 0x26d   : > { %2119 = vpow2.f32 %v940_v41  ;;  %v917_v24 = vsub.f32 %v2474_v34, %v900_v53 }
 0x26e   : > { %v2112_v58 = vpop.eup %2111  ;;  %v938_v17 = vmul.f32 1.442695, %v912_v31  ;;  %v2887_v31 = vsub.f32 %v2494_v40, %v2500_v44  ;;  %v2891_v40 = vsub.f32 %v2557_v10, %v2567_v15  ;;  %v810_v10 = vmul.f32 1.442695, %v2894_v6 }
 0x26f   : > { %v885_v16 = vpop.permute.xlu1 %884  ;;  %v1161_v5 = vpack.c.bf16 %v2112_v58, %v2110_v21  ;;  %v948_v26 = vmul.f32 1.442695, %v917_v24  ;;  %v808_v15 = vmul.f32 1.442695, %v2895_v13 }
 0x270   : > { %2121 = vpow2.f32 %v938_v17  ;;  %v914_v9 = vsub.f32 %v2469_v33, %v885_v16  ;;  %v790_v53 = vmul.f32 1.442695, %v2887_v31  ;;  %v800_v44 = vmul.f32 1.442695, %v2891_v40 }
 0x271   : > { %2018 = vmatprep.mubr.bf16.mxu1 %v1161_v5  ;;  %2123 = vpow2.f32 %v944_v22  ;;  %v2889_v22 = vsub.f32 %v2502_v45, %v2520_v55  ;;  %v806_v45 = vmul.f32 1.442695, %v2892_v57  ;;  %v2893_v55 = vsub.f32 %v2539_v63, %v2545_v4 }
 0x272   : > { %v2114_v3 = vpop.eup %2113  ;;  %v942_v37 = vmul.f32 1.442695, %v914_v9  ;;  %v2896_v63 = vsub.f32 %v2613_v54, %v2631_v14  ;;  %v2899_v54 = vsub.f32 %v2643_v30, %v2654_v12 }
 0x273   : > { %996 = vadd.xlane.f32.xlu1 %v2114_v3  ;;  %v895_v39 = vpop.permute.xlu1 %894  ;;  %v1162_v19 = vpack.c.bf16 %v2114_v3, %v2108_v56  ;;  %v2116_v46 = vpop.eup %2115  ;;  %v796_v49 = vmul.f32 1.442695, %v2889_v22 }
 0x274   : > { %2125 = vpow2.f32 %v942_v37  ;;  %v916_v62 = vsub.f32 %v2480_v35, %v895_v39  ;;  %v814_v4 = vmul.f32 1.442695, %v2896_v63  ;;  %v816_v14 = vmul.f32 1.442695, %v2899_v54  ;;  %v952_v37 = vld [vmem:[#allocation3 + $0x10] sm:$0xff] }
 0x275   : > { %2019 = vmatmul.mubr.bf16.gmra.mrb[4].mxu1 %v1162_v19  ;;  %2127 = vpow2.f32 %v948_v26  ;;  %v950_v26 = vld [vmem:[#allocation3] sm:$0xff] }
 0x276   : > { %v2118_v48 = vpop.eup %2117  ;;  %v946_v34 = vmul.f32 1.442695, %v916_v62 }
 0x277   : > { %992 = vadd.xlane.f32.xlu1 %v2112_v58  ;;  %v1163_v8 = vpack.c.bf16 %v2116_v46, %v2118_v48  ;;  %v2120_v33 = vpop.eup %2119  ;;  %v2888_v58 = vsub.f32 %v2530_v59, %v2542_v2  ;;  %v804_v59 = vmul.f32 1.442695, %v2893_v55 }
 0x278   : > { %2129 = vpow2.f32 %v946_v34  ;;  %v953_v34 = vld [vmem:[#allocation3 + $0x18] sm:$0xff] }
 0x279   : > { %2022 = vmatprep.mubr.bf16.mxu1 %v1163_v8  ;;  %2131 = vpow2.f32 %v792_v0  ;;  %v798_v17 = vmul.f32 1.442695, %v2888_v58 }
 0x27a   : > { %v2122_v38 = vpop.eup %2121  ;;  %2133 = vpow2.f32 %v794_v60 }
 0x27b   : > { %1004 = vadd.xlane.f32.xlu1 %v2120_v33  ;;  %1002 = vadd.xlane.f32.xlu0 %v2122_v38  ;;  %v1164_v52 = vpack.c.bf16 %v2120_v33, %v2122_v38  ;;  %v2124_v51 = vpop.eup %2123  ;;  %2135 = vpow2.f32 %v790_v53  ;;  %v951_v38 = vld [vmem:[#allocation3 + $0x8] sm:$0xff]  ;;  %v954_v53 = vld [vmem:[#allocation3 + $0x20] sm:$0xff] }
 0x27c   : > { %2137 = vpow2.f32 %v798_v17 }
 0x27d   : > { %2023 = vmatmul.mubr.bf16.gmra.mrb[8].mxu1 %v1164_v52  ;;  %2139 = vpow2.f32 %v796_v49 }
 0x27e   : > { %v2126_v56 = vpop.eup %2125  ;;  %2141 = vpow2.f32 %v802_v42 }
 0x27f   : > { %1000 = vadd.xlane.f32.xlu1 %v2116_v46  ;;  %998 = vadd.xlane.f32.xlu0 %v2118_v48  ;;  %v1165_v35 = vpack.c.bf16 %v2124_v51, %v2126_v56  ;;  %v2128_v21 = vpop.eup %2127  ;;  %2143 = vpow2.f32 %v800_v44  ;;  %v957_v44 = vld [vmem:[#allocation3 + $0x38] sm:$0xff] }
 0x280   : > { %2145 = vpow2.f32 %v806_v45 }
 0x281   : > { %2026 = vmatprep.mubr.bf16.mxu1 %v1165_v35  ;;  %2147 = vpow2.f32 %v804_v59  ;;  %v955_v59 = vld [vmem:[#allocation3 + $0x28] sm:$0xff] }
 0x282   : > { %v2130_v11 = vpop.eup %2129  ;;  %2149 = vpow2.f32 %v810_v10 }
 0x283   : > { %1012 = vadd.xlane.f32.xlu1 %v2128_v21  ;;  %1006 = vadd.xlane.f32.xlu0 %v2126_v56  ;;  %v1166_v41 = vpack.c.bf16 %v2128_v21, %v2130_v11  ;;  %v2707_v47 = vpop.eup %2131  ;;  %2151 = vpow2.f32 %v808_v15 }
 0x284   : > { %v2134_v61 = vpop.eup %2133  ;;  %2153 = vpow2.f32 %v814_v4  ;;  %v967_v56 = vmul.f32 %v2707_v47, %v951_v38 }
 0x285   : > { %2027 = vmatmul.mubr.bf16.gmra.mrb[12].mxu1 %v1166_v41  ;;  %v2136_v2 = vpop.eup %2135  ;;  %2155 = vpow2.f32 %v812_v43  ;;  %v968_v39 = vmul.f32 %v2134_v61, %v952_v37  ;;  %v962_v37 = vld [vmem:[#allocation3 + $0x60] sm:$0xff] }
 0x286   : > { %v2722_v18 = vpop.eup %2137  ;;  %2157 = vpow2.f32 %v818_v50  ;;  %v966_v62 = vmul.f32 %v2136_v2, %v950_v26  ;;  %v959_v50 = vld [vmem:[#allocation3 + $0x48] sm:$0xff]  ;;  %v965_v26 = vld [vmem:[#allocation3 + $0x78] sm:$0xff] }
 0x287   : > { %1008 = vadd.xlane.f32.xlu1 %v2124_v51  ;;  %1010 = vadd.xlane.f32.xlu0 %v2130_v11  ;;  %v2140_v27 = vpop.eup %2139  ;;  %2159 = vpow2.f32 %v816_v14  ;;  %v956_v11 = vld [vmem:[#allocation3 + $0x30] sm:$0xff]  ;;  %v970_v22 = vmul.f32 %v2722_v18, %v954_v53 }
 0x288   : > { %v2142_v24 = vpop.eup %2141  ;;  %2161 = vpow2.f32 %v820_v25  ;;  %v969_v33 = vmul.f32 %v2140_v27, %v953_v34 }
 0x289   : > { %v2731_v16 = vpop.eup %2143  ;;  %v972_v0 = vmul.f32 %v2142_v24, %v956_v11 }
 0x28a   : > { %v2740_v5 = vpop.eup %2145  ;;  %v971_v10 = vmul.f32 %v2731_v16, %v955_v59 }
 0x28b   : > { %v2742_v23 = vpop.eup %2147  ;;  %v974_v28 = vmul.f32 %v2740_v5, %v958_v32 }
 0x28c   : > { %v2749_v7 = vpop.eup %2149  ;;  %v973_v57 = vmul.f32 %v2742_v23, %v957_v44 }
 0x28d   : > { %v2751_v9 = vpop.eup %2151 }
 0x28e   : > { %v2755_v30 = vpop.eup %2153  ;;  %v975_v25 = vmul.f32 %v2751_v9, %v959_v50 }
 0x28f   : > { %v2757_v12 = vpop.eup %2155 }
 0x290   : > { %v2761_v1 = vpop.eup %2157 }
 0x291   : > { %v2763_v20 = vpop.eup %2159 }
 0x292   : > { %v2767_v3 = vpop.eup %2161 }
 0x298   : > { %1070 = vperm.xlu1 %2074, %v2707_v47  }
 0x29c   : > { %1075 = vperm.xlu1 %2074, %v2134_v61  }
 0x29d   : > { %1065 = vperm.xlu0 %2073, %v2136_v2  }
 0x2a0   : > { %1085 = vperm.xlu1 %2074, %v2722_v18   ;;  %v960_v18 = vld [vmem:[#allocation3 + $0x50] sm:$0xff] }
 0x2a1   : > { %1080 = vperm.xlu0 %2073, %v2140_v27   ;;  %v961_v27 = vld [vmem:[#allocation3 + $0x58] sm:$0xff]  ;;  %v976_v4 = vmul.f32 %v2749_v7, %v960_v18 }
 0x2a2   : > { %v977_v29 = vmul.f32 %v2757_v12, %v961_v27 }
 0x2a4   : > { %1095 = vperm.xlu1 %2074, %v2142_v24  }
 0x2a5   : > { %1090 = vperm.xlu0 %2073, %v2731_v16  }
 0x2a8   : > { %1105 = vperm.xlu1 %2074, %v2740_v5   ;;  %v981_v5 = vmul.f32 %v2767_v3, %v965_v26 }
 0x2a9   : > { %1100 = vperm.xlu0 %2073, %v2742_v23  }
 0x2ac   : > { %1115 = vperm.xlu1 %2074, %v2749_v7  }
 0x2ad   : > { %1110 = vperm.xlu0 %2073, %v2751_v9  }
 0x2b0   : > { %1125 = vperm.xlu1 %2074, %v2755_v30  }
 0x2b1   : > { %1120 = vperm.xlu0 %2073, %v2757_v12  }
 0x2b4   : > { %1135 = vperm.xlu1 %2074, %v2761_v1  }
 0x2b5   : > { %1130 = vperm.xlu0 %2073, %v2763_v20  }
 0x2b9   : > { %1140 = vperm.xlu0 %2073, %v2767_v3  }
 0x2e7   : > { %v987_v19 = vpop.xlane.xlu0 %986 }
 0x2e8   : > { %v1016_v46 = vadd.f32 %v987_v19, %v968_v39  ;;  %v983_v48 = vpop.xlane.xlu1 %982 }
 0x2e9   : > { %v1014_v8 = vadd.f32 %v983_v48, %v966_v62  ;;  %v978_v48 = vmul.f32 %v2755_v30, %v962_v37 }
 0x2ea   : > { %1033 = vst.msk [vmem:[#allocation3 + $0x10] sm:$0xff] %vm343_vm0, %v1016_v46 }
 0x2eb   : > { %1031 = vst.msk [vmem:[#allocation3] sm:$0xff] %vm343_vm0, %v1014_v8  ;;  %v964_v8 = vld [vmem:[#allocation3 + $0x70] sm:$0xff] }
 0x2ec   : > { %v989_v52 = vpop.xlane.xlu1 %988 }
 0x2ed   : > { %v1017_v51 = vadd.f32 %v989_v52, %v969_v33  ;;  %v963_v33 = vld [vmem:[#allocation3 + $0x68] sm:$0xff] }
 0x2ef   : > { %1034 = vst.msk [vmem:[#allocation3 + $0x18] sm:$0xff] %vm343_vm0, %v1017_v51  ;;  %v985_v35 = vpop.xlane.xlu0 %984 }
 0x2f0   : > { %v1015_v21 = vadd.f32 %v985_v35, %v967_v56  ;;  %v980_v35 = vmul.f32 %v2761_v1, %v964_v8 }
 0x2f1   : > { %v1397_v41 = vld [vmem:[#allocation3 + $0x10] sm:$0xff] }
 0x2f2   : > { %1032 = vst.msk [vmem:[#allocation3 + $0x8] sm:$0xff] %vm343_vm0, %v1015_v21  ;;  %2163 = vrcp.f32 %v1397_v41  ;;  %v1395_v60 = vld [vmem:[#allocation3] sm:$0xff]  ;;  %v979_v21 = vmul.f32 %v2763_v20, %v963_v33 }
 0x2f3   : > { %2165 = vrcp.f32 %v1395_v60 }
 0x2f4   : > { %v995_v31 = vpop.xlane.xlu0 %994 }
 0x2f5   : > { %v1020_v58 = vadd.f32 %v995_v31, %v972_v0 }
 0x2f6   : > { %v1398_v17 = vld [vmem:[#allocation3 + $0x18] sm:$0xff] }
 0x2f7   : > { %1037 = vst.msk [vmem:[#allocation3 + $0x30] sm:$0xff] %vm343_vm0, %v1020_v58  ;;  %2167 = vrcp.f32 %v1398_v17 }
 0x2f8   : > { %v991_v49 = vpop.xlane.xlu0 %990 }
 0x2f9   : > { %v1018_v36 = vadd.f32 %v991_v49, %v970_v22  ;;  %v1396_v42 = vld [vmem:[#allocation3 + $0x8] sm:$0xff] }
 0x2fa   : > { %2169 = vrcp.f32 %v1396_v42 }
 0x2fb   : > { %1035 = vst.msk [vmem:[#allocation3 + $0x20] sm:$0xff] %vm343_vm0, %v1018_v36 }
 0x2fc   : > { %v2164_v40 = vpop.eup %2163 }
 0x2fd   : > { %1439 = vperm.xlu1 %2074, %v2164_v40   ;;  %v2166_v45 = vpop.eup %2165 }
 0x2fe   : > { %v1401_v47 = vld [vmem:[#allocation3 + $0x30] sm:$0xff] }
 0x2ff   : > { %2171 = vrcp.f32 %v1401_v47 }
 0x300   : > { %v997_v55 = vpop.xlane.xlu1 %996 }
 0x301   : > { %v2168_v61 = vpop.eup %2167  ;;  %v1021_v2 = vadd.f32 %v997_v55, %v973_v57  ;;  %1429 = vperm.xlu1 %2074, %v2166_v45  }
 0x302   : > { %1444 = vperm.xlu0 %2073, %v2168_v61   ;;  %v1399_v6 = vld [vmem:[#allocation3 + $0x20] sm:$0xff] }
 0x303   : > { %1038 = vst.msk [vmem:[#allocation3 + $0x38] sm:$0xff] %vm343_vm0, %v1021_v2  ;;  %2173 = vrcp.f32 %v1399_v6 }
 0x304   : > { %v2170_v13 = vpop.eup %2169  ;;  %v993_v15 = vpop.xlane.xlu1 %992 }
 0x305   : > { %v1019_v63 = vadd.f32 %v993_v15, %v971_v10 }
 0x306   : > { %1434 = vperm.xlu0 %2073, %v2170_v13  }
 0x307   : > { %1036 = vst.msk [vmem:[#allocation3 + $0x28] sm:$0xff] %vm343_vm0, %v1019_v63 }
 0x308   : > { %v1003_v43 = vpop.xlane.xlu0 %1002  ;;  %v1005_v24 = vpop.xlane.xlu1 %1004 }
 0x309   : > { %v2172_v54 = vpop.eup %2171  ;;  %v1024_v14 = vadd.f32 %v1003_v43, %v976_v4  ;;  %v1025_v16 = vadd.f32 %v1005_v24, %v977_v29 }
 0x30a   : > { %1459 = vperm.xlu1 %2074, %v2172_v54   ;;  %v1402_v23 = vld [vmem:[#allocation3 + $0x38] sm:$0xff] }
 0x30b   : > { %1041 = vst.msk [vmem:[#allocation3 + $0x50] sm:$0xff] %vm343_vm0, %v1024_v14  ;;  %1042 = vst.msk [vmem:[#allocation3 + $0x58] sm:$0xff] %vm343_vm0, %v1025_v16  ;;  %2175 = vrcp.f32 %v1402_v23 }
 0x30c   : > { %v999_v7 = vpop.xlane.xlu0 %998  ;;  %v1001_v12 = vpop.xlane.xlu1 %1000 }
 0x30d   : > { %v2174_v39 = vpop.eup %2173  ;;  %v1022_v19 = vadd.f32 %v999_v7, %v974_v28  ;;  %v1023_v62 = vadd.f32 %v1001_v12, %v975_v25 }
 0x30e   : > { %1449 = vperm.xlu1 %2074, %v2174_v39   ;;  %v1400_v46 = vld [vmem:[#allocation3 + $0x28] sm:$0xff] }
 0x30f   : > { %1039 = vst.msk [vmem:[#allocation3 + $0x40] sm:$0xff] %vm343_vm0, %v1022_v19  ;;  %1040 = vst.msk [vmem:[#allocation3 + $0x48] sm:$0xff] %vm343_vm0, %v1023_v62  ;;  %2177 = vrcp.f32 %v1400_v46 }
 0x310   : > { %v1007_v9 = vpop.xlane.xlu0 %1006  ;;  %v1013_v34 = vpop.xlane.xlu1 %1012 }
 0x311   : > { %v1026_v38 = vadd.f32 %v1007_v9, %v978_v48  ;;  %v1029_v52 = vadd.f32 %v1013_v34, %v981_v5 }
 0x312   : > { %v1405_v51 = vld [vmem:[#allocation3 + $0x50] sm:$0xff]  ;;  %v1406_v56 = vld [vmem:[#allocation3 + $0x58] sm:$0xff] }
 0x313   : > { %1043 = vst.msk [vmem:[#allocation3 + $0x60] sm:$0xff] %vm343_vm0, %v1026_v38  ;;  %1046 = vst.msk [vmem:[#allocation3 + $0x78] sm:$0xff] %vm343_vm0, %v1029_v52  ;;  %2179 = vrcp.f32 %v1405_v51 }
 0x314   : > { %v1011_v30 = vpop.xlane.xlu0 %1010  ;;  %v1009_v3 = vpop.xlane.xlu1 %1008  ;;  %2181 = vrcp.f32 %v1406_v56 }
 0x315   : > { %v2176_v11 = vpop.eup %2175  ;;  %v1028_v41 = vadd.f32 %v1011_v30, %v980_v35  ;;  %v1027_v0 = vadd.f32 %v1009_v3, %v979_v21 }
 0x316   : > { %1464 = vperm.xlu0 %2073, %v2176_v11   ;;  %v1403_v60 = vld [vmem:[#allocation3 + $0x40] sm:$0xff]  ;;  %v1404_v31 = vld [vmem:[#allocation3 + $0x48] sm:$0xff] }
 0x317   : > { %1045 = vst.msk [vmem:[#allocation3 + $0x70] sm:$0xff] %vm343_vm0, %v1028_v41  ;;  %1044 = vst.msk [vmem:[#allocation3 + $0x68] sm:$0xff] %vm343_vm0, %v1027_v0  ;;  %2183 = vrcp.f32 %v1403_v60 }
 0x318   : > { %2185 = vrcp.f32 %v1404_v31  ;;  %v1071_v15 = vpop.permute.xlu1 %1070 }
 0x319   : > { %v2178_v53 = vpop.eup %2177  ;;  %v1144_v38 = vmul.f32 0.0, %v1071_v15 }
 0x31a   : > { %1454 = vperm.xlu0 %2073, %v2178_v53   ;;  %v1407_v1 = vld [vmem:[#allocation3 + $0x60] sm:$0xff]  ;;  %v1410_v36 = vld [vmem:[#allocation3 + $0x78] sm:$0xff] }
 0x31b   : > { %2187 = vrcp.f32 %v1407_v1 }
 0x31c   : > { %v1066_v4 = vpop.permute.xlu0 %1065  ;;  %v1076_v43 = vpop.permute.xlu1 %1075 }
 0x31d   : > { %v2180_v20 = vpop.eup %2179  ;;  %v1145_v5 = vmul.f32 0.0, %v1076_v43  ;;  %v1143_v52 = vmul.f32 0.0, %v1066_v4 }
 0x31e   : > { %v2182_v58 = vpop.eup %2181  ;;  %1479 = vperm.xlu1 %2074, %v2180_v20   ;;  %v1409_v17 = vld [vmem:[#allocation3 + $0x70] sm:$0xff]  ;;  %v1408_v22 = vld [vmem:[#allocation3 + $0x68] sm:$0xff] }
 0x31f   : > { %1484 = vperm.xlu0 %2073, %v2182_v58   ;;  %2189 = vrcp.f32 %v1409_v17 }
 0x320   : > { %2191 = vrcp.f32 %v1408_v22  ;;  %v1081_v32 = vpop.permute.xlu0 %1080  ;;  %v1086_v14 = vpop.permute.xlu1 %1085 }
 0x321   : > { %v2184_v49 = vpop.eup %2183  ;;  %2193 = vrcp.f32 %v1410_v36  ;;  %v1146_v9 = vmul.f32 0.0, %v1081_v32  ;;  %v1147_v22 = vmul.f32 0.0, %v1086_v14 }
 0x322   : > { %v2186_v42 = vpop.eup %2185  ;;  %1469 = vperm.xlu1 %2074, %v2184_v49  }
 0x323   : > { %1474 = vperm.xlu0 %2073, %v2186_v42  }
 0x324   : > { %v1091_v23 = vpop.permute.xlu0 %1090  ;;  %v1096_v28 = vpop.permute.xlu1 %1095 }
 0x325   : > { %v2188_v40 = vpop.eup %2187  ;;  %v1149_v53 = vmul.f32 0.0, %v1096_v28  ;;  %v1148_v49 = vmul.f32 0.0, %v1091_v23 }
 0x326   : > { %1489 = vperm.xlu1 %2074, %v2188_v40  }
 0x328   : > { %v1101_v25 = vpop.permute.xlu0 %1100  ;;  %v1106_v7 = vpop.permute.xlu1 %1105 }
 0x329   : > { %v2190_v44 = vpop.eup %2189  ;;  %v1150_v1 = vmul.f32 0.0, %v1101_v25  ;;  %v1151_v32 = vmul.f32 0.0, %v1106_v7 }
 0x32a   : > { %v2192_v47 = vpop.eup %2191  ;;  %1499 = vperm.xlu1 %2074, %v2190_v44  }
 0x32b   : > { %1494 = vperm.xlu0 %2073, %v2192_v47   ;;  %v2194_v57 = vpop.eup %2193 }
 0x32c   : > { %v1111_v12 = vpop.permute.xlu0 %1110  ;;  %v1116_v37 = vpop.permute.xlu1 %1115 }
 0x32f   : > { %1504 = vperm.xlu0 %2073, %v2194_v57  }
 0x330   : > { %v1121_v26 = vpop.permute.xlu0 %1120  ;;  %v2814_v39 = vpop.permute.xlu1 %1125 }
 0x331   : > { %v1154_v15 = vmul.f32 0.0, %v1121_v26  ;;  %v1155_v7 = vmul.f32 0.0, %v2814_v39 }
 0x334   : > { %v2816_v19 = vpop.permute.xlu0 %1130  ;;  %v2818_v62 = vpop.permute.xlu1 %1135 }
 0x338   : > { %v2016_v45 = vpop.f32.mrb[0].mxu1  ;;  %v2820_v46 = vpop.permute.xlu0 %1140 }
 0x339   : > { %v1265_v55 = vpop.f32.mrb[1].mxu1  ;;  %v1330_v34 = vadd.f32 %v2016_v45, %v1145_v5 }
 0x33a   : > { %v2017_v59 = vpop.f32.mrb[2].mxu1  ;;  %v1328_v21 = vadd.f32 %v1265_v55, %v1143_v52  ;;  %v1153_v55 = vmul.f32 0.0, %v1116_v37 }
 0x33b   : > { %v1268_v61 = vpop.f32.mrb[3].mxu1  ;;  %v1331_v8 = vadd.f32 %v2017_v59, %v1146_v9 }
 0x33c   : > { %v1329_v30 = vadd.f32 %v1268_v61, %v1144_v38 }
 0x348   : > { %v2020_v2 = vpop.f32.mrb[4].mxu1 }
 0x349   : > { %v1281_v6 = vpop.f32.mrb[5].mxu1  ;;  %v1334_v20 = vadd.f32 %v2020_v2, %v1149_v53 }
 0x34a   : > { %v2021_v10 = vpop.f32.mrb[6].mxu1  ;;  %v1332_v44 = vadd.f32 %v1281_v6, %v1147_v22 }
 0x34b   : > { %v1284_v13 = vpop.f32.mrb[7].mxu1  ;;  %v1335_v58 = vadd.f32 %v2021_v10, %v1150_v1 }
 0x34c   : > { %v1333_v47 = vadd.f32 %v1284_v13, %v1148_v49  ;;  %v1152_v13 = vmul.f32 0.0, %v1111_v12 }
 0x350   : > { %v2798_v18 = vpop.f32.mrb[8].mxu1 }
 0x351   : > { %v2800_v27 = vpop.f32.mrb[9].mxu1  ;;  %v1338_v4 = vadd.f32 %v2798_v18, %v1153_v55 }
 0x352   : > { %v2802_v63 = vpop.f32.mrb[10].mxu1  ;;  %v1336_v28 = vadd.f32 %v2800_v27, %v1151_v32 }
 0x353   : > { %v2804_v29 = vpop.f32.mrb[11].mxu1  ;;  %v1339_v10 = vadd.f32 %v2802_v63, %v1154_v15 }
 0x354   : > { %v1337_v25 = vadd.f32 %v2804_v29, %v1152_v13 }
 0x358   : > { %v2806_v24 = vpop.f32.mrb[12].mxu1 }
 0x359   : > { %v2808_v50 = vpop.f32.mrb[13].mxu1 }
 0x35a   : > { %v2810_v54 = vpop.f32.mrb[14].mxu1  ;;  %v1340_v12 = vadd.f32 %v2808_v50, %v1155_v7 }
 0x35b   : > { %v2812_v16 = vpop.f32.mrb[15].mxu1 }
 0x37c   : > { %v1440_v48 = vpop.permute.xlu1 %1439 }
 0x37d   : > { %v1509_v51 = vmul.f32 %v1440_v48, %v1330_v34  ;;  %v1156_v34 = vmul.f32 0.0, %v2816_v19 }
 0x37f   : > { %v1341_v27 = vadd.f32 %v2812_v16, %v1156_v34 }
 0x380   : > { %v1430_v35 = vpop.permute.xlu1 %1429 }
 0x381   : > { %v1445_v33 = vpop.permute.xlu0 %1444  ;;  %v1507_v41 = vmul.f32 %v1430_v35, %v1328_v21 }
 0x382   : > { %v1510_v56 = vmul.f32 %v1445_v33, %v1331_v8  ;;  %v1157_v8 = vmul.f32 0.0, %v2818_v62  ;;  %v1158_v33 = vmul.f32 0.0, %v2820_v46 }
 0x384   : > { %v1895_v3 = vpack.c.bf16 %v1510_v56, %v1509_v51  ;;  %v1342_v56 = vadd.f32 %v2806_v24, %v1157_v8  ;;  %v1343_v39 = vadd.f32 %v2810_v54, %v1158_v33 }
 0x385   : > { %v1435_v11 = vpop.permute.xlu0 %1434 }
 0x386   : > { %1927 = vst [vmem:[%s2823_s26 + $0x8] sm:$0xff] %v1895_v3   ;;  %v1508_v0 = vmul.f32 %v1435_v11, %v1329_v30 }
 0x388   : > { %v1890_v60 = vpack.c.bf16 %v1508_v0, %v1507_v41 }
 0x389   : > { %v1460_v31 = vpop.permute.xlu1 %1459 }
 0x38a   : > { %1891 = vst [vmem:[%s2823_s26] sm:$0xff] %v1890_v60   ;;  %v1513_v36 = vmul.f32 %v1460_v31, %v1334_v20 }
 0x38d   : > { %v1450_v40 = vpop.permute.xlu1 %1449  ;;  %v1634_v16 = vld [vmem:[%s2823_s26 + $0x8] sm:$0xf] (%p2293_p6)  ;;  %v1636_v62 = vld [vmem:[%s2823_s26 + $0xc] sm:$0xf] (%p2293_p6) }
 0x38e   : > { %v1511_v59 = vmul.f32 %v1450_v40, %v1332_v44  ;;  %1635 = vst [vmem:[%s1614_s29 + $0x10] sm:$0xf] (%p2293_p6), %v1634_v16  ;;  %1637 = vst [vmem:[%s1614_s29 + $0x18] sm:$0xf] (%p2293_p6), %v1636_v62 }
 0x391   : > { %v1630_v24 = vld [vmem:[%s2823_s26] sm:$0xf] (%p2293_p6)  ;;  %v1632_v54 = vld [vmem:[%s2823_s26 + $0x4] sm:$0xf] (%p2293_p6) }
 0x392   : > { %1631 = vst [vmem:[%s1614_s29] sm:$0xf] (%p2293_p6), %v1630_v24  ;;  %1633 = vst [vmem:[%s1614_s29 + $0x8] sm:$0xf] (%p2293_p6), %v1632_v54 }
 0x395   : > { %v1465_v17 = vpop.permute.xlu0 %1464 }
 0x396   : > { %v1514_v42 = vmul.f32 %v1465_v17, %v1335_v58 }
 0x398   : > { %v1905_v57 = vpack.c.bf16 %v1514_v42, %v1513_v36 }
 0x399   : > { %v1455_v45 = vpop.permute.xlu0 %1454 }
 0x39a   : > { %1929 = vst [vmem:[%s2823_s26 + $0x18] sm:$0xff] %v1905_v57   ;;  %v1512_v61 = vmul.f32 %v1455_v45, %v1333_v47 }
 0x39c   : > { %v1900_v2 = vpack.c.bf16 %v1512_v61, %v1511_v59 }
 0x39d   : > { %v1480_v43 = vpop.permute.xlu1 %1479 }
 0x39e   : > { %1928 = vst [vmem:[%s2823_s26 + $0x10] sm:$0xff] %v1900_v2   ;;  %v1485_v14 = vpop.permute.xlu0 %1484  ;;  %v1517_v6 = vmul.f32 %v1480_v43, %v1338_v4 }
 0x39f   : > { %v1518_v23 = vmul.f32 %v1485_v14, %v1339_v10 }
 0x3a1   : > { %v1915_v37 = vpack.c.bf16 %v1518_v23, %v1517_v6  ;;  %v1470_v26 = vpop.permute.xlu1 %1469  ;;  %v1642_v11 = vld [vmem:[%s2823_s26 + $0x18] sm:$0xf] (%p2293_p6)  ;;  %v1644_v41 = vld [vmem:[%s2823_s26 + $0x1c] sm:$0xf] (%p2293_p6) }
 0x3a2   : > { %v1475_v48 = vpop.permute.xlu0 %1474  ;;  %v1515_v18 = vmul.f32 %v1470_v26, %v1336_v28  ;;  %1643 = vst [vmem:[%s1614_s29 + $0x30] sm:$0xf] (%p2293_p6), %v1642_v11  ;;  %1645 = vst [vmem:[%s1614_s29 + $0x38] sm:$0xf] (%p2293_p6), %v1644_v41 }
 0x3a3   : > { %1931 = vst [vmem:[%s2823_s26 + $0x28] sm:$0xff] %v1915_v37   ;;  %v1516_v5 = vmul.f32 %v1475_v48, %v1337_v25 }
 0x3a5   : > { %v1910_v9 = vpack.c.bf16 %v1516_v5, %v1515_v18  ;;  %v1490_v63 = vpop.permute.xlu1 %1489  ;;  %v1638_v46 = vld [vmem:[%s2823_s26 + $0x10] sm:$0xf] (%p2293_p6)  ;;  %v1640_v3 = vld [vmem:[%s2823_s26 + $0x14] sm:$0xf] (%p2293_p6) }
 0x3a6   : > { %v1519_v38 = vmul.f32 %v1490_v63, %v1340_v12  ;;  %1639 = vst [vmem:[%s1614_s29 + $0x20] sm:$0xf] (%p2293_p6), %v1638_v46  ;;  %1641 = vst [vmem:[%s1614_s29 + $0x28] sm:$0xf] (%p2293_p6), %v1640_v3 }
 0x3a7   : > { %1930 = vst [vmem:[%s2823_s26 + $0x20] sm:$0xff] %v1910_v9  }
 0x3a9   : > { %v1500_v51 = vpop.permute.xlu1 %1499 }
 0x3aa   : > { %v1495_v29 = vpop.permute.xlu0 %1494  ;;  %v1521_v21 = vmul.f32 %v1500_v51, %v1342_v56  ;;  %v1650_v31 = vld [vmem:[%s2823_s26 + $0x28] sm:$0xf] (%p2293_p6)  ;;  %v1652_v53 = vld [vmem:[%s2823_s26 + $0x2c] sm:$0xf] (%p2293_p6) }
 0x3ab   : > { %v1520_v52 = vmul.f32 %v1495_v29, %v1341_v27  ;;  %1651 = vst [vmem:[%s1614_s29 + $0x50] sm:$0xf] (%p2293_p6), %v1650_v31  ;;  %1653 = vst [vmem:[%s1614_s29 + $0x58] sm:$0xf] (%p2293_p6), %v1652_v53 }
 0x3ad   : > { %v1920_v35 = vpack.c.bf16 %v1520_v52, %v1519_v38  ;;  %1609 = sbr.rel (!%p2293_p6) target bundleno = 956 (0x3bc), region = 89 }
 0x3ae   : > { %v1505_v19 = vpop.permute.xlu0 %1504  ;;  %v1646_v0 = vld [vmem:[%s2823_s26 + $0x20] sm:$0xf] (%p2293_p6)  ;;  %v1648_v60 = vld [vmem:[%s2823_s26 + $0x24] sm:$0xf] (%p2293_p6) }
 0x3af   : > { %1932 = vst [vmem:[%s2823_s26 + $0x30] sm:$0xff] %v1920_v35   ;;  %v1522_v50 = vmul.f32 %v1505_v19, %v1343_v39  ;;  %1647 = vst [vmem:[%s1614_s29 + $0x40] sm:$0xf] (%p2293_p6), %v1646_v0 }
 0x3b0   : > { %1649 = vst [vmem:[%s1614_s29 + $0x48] sm:$0xf] (%p2293_p6), %v1648_v60 }
 0x3b1   : > { %v1925_v30 = vpack.c.bf16 %v1522_v50, %v1521_v21 }
 0x3b3   : > { %1933 = vst [vmem:[%s2823_s26 + $0x38] sm:$0xff] %v1925_v30  }
 0x3b6   : > { %v1654_v1 = vld [vmem:[%s2823_s26 + $0x30] sm:$0xf]  ;;  %v1656_v20 = vld [vmem:[%s2823_s26 + $0x34] sm:$0xf] }
 0x3b7   : > { %1655 = vst [vmem:[%s1614_s29 + $0x60] sm:$0xf] %v1654_v1  ;;  %1657 = vst [vmem:[%s1614_s29 + $0x68] sm:$0xf] %v1656_v20 }
 0x3ba   : > { %v1658_v58 = vld [vmem:[%s2823_s26 + $0x38] sm:$0xf]  ;;  %v1660_v17 = vld [vmem:[%s2823_s26 + $0x3c] sm:$0xf] }
 0x3bb   : > { %1659 = vst [vmem:[%s1614_s29 + $0x70] sm:$0xf] %v1658_v58  ;;  %1661 = vst [vmem:[%s1614_s29 + $0x78] sm:$0xf] %v1660_v17 }
 0x3bc PF: > { %s13_s16 = sadd.s32 1, %s2233_s16   ;;  %s2901_s12 = smov %s2221_s13 }
 0x3bd   : > { %p10_p11 = scmp.ge.s32.totalorder %s13_s16, 4   ;;  %s2902_s13 = smov %s2298_s22 }
 0x3be   : > { %s2903_s14 = smov %s2229_s15  ;;  %s2904_s15 = smov %s2906_s17 }
 0x3bf   :  { %12 = sbr.rel (!%p10_p11) target bundleno = 3 (0x3), region = 167 }

// kernel: santacoder_forward.19
= control target key start
LH: loop header
LB: loop body
LE: loop exit
PB: predicated region body
PF: predicated region fallthrough
CT: control target
= control target key end

     0   :  { %s1440_s0 = inlined_call_operand.vmem [shape: f32[128,256], index: 0, kind: input, shape index: {}]   ;;  %s1441_s1 = inlined_call_operand.vmem [shape: f32[128,256], index: 1, kind: input, shape index: {}]   ;;  %s1442_s5 = inlined_call_operand.vmem [shape: f32[128,256], index: 5, kind: output, shape index: {1}]   ;;  %s1443_s2 = inlined_call_operand.vmem [shape: f32[1,256], index: 2, kind: input, shape index: {}]   ;;  %s1444_s3 = inlined_call_operand.vmem [shape: f32[1,256], index: 3, kind: input, shape index: {}]   ;;  %s1445_s4 = inlined_call_operand.vmem [shape: bf16[128,256], index: 4, kind: output, shape index: {0}]  }
   0x1   :  { %v19_v0 = vld [vmem:[%s1440_s0] sm:$0xff]  ;;  %v20_v1 = vld [vmem:[%s1440_s0 + $0x8] sm:$0xff]  ;;  %v21_v10 = vld [vmem:[%s1440_s0 + $0x10] sm:$0xff] }
   0x2   :  { %v51_v2 = vld [vmem:[%s1441_s1] sm:$0xff]  ;;  %v52_v3 = vld [vmem:[%s1441_s1 + $0x8] sm:$0xff]  ;;  %v22_v13 = vld [vmem:[%s1440_s0 + $0x18] sm:$0xff] }
   0x3   :  { %v718_v4 = vadd.f32 %v51_v2, %v19_v0  ;;  %v23_v5 = vld [vmem:[%s1440_s0 + $0x20] sm:$0xff]  ;;  %v24_v6 = vld [vmem:[%s1440_s0 + $0x28] sm:$0xff]  ;;  %v726_v7 = vadd.f32 %v52_v3, %v20_v1  ;;  %v53_v14 = vld [vmem:[%s1441_s1 + $0x10] sm:$0xff] }
   0x4   :  { %v55_v8 = vld [vmem:[%s1441_s1 + $0x20] sm:$0xff]  ;;  %v56_v9 = vld [vmem:[%s1441_s1 + $0x28] sm:$0xff]  ;;  %v54_v15 = vld [vmem:[%s1441_s1 + $0x18] sm:$0xff]  ;;  %v760_v17 = vadd.f32 %v53_v14, %v21_v10 }
   0x5   :  { %572 = vst [vmem:[%s1442_s5] sm:$0xff] %v718_v4  ;;  %v741_v11 = vadd.f32 %v55_v8, %v23_v5  ;;  %v743_v12 = vadd.f32 %v56_v9, %v24_v6  ;;  %v115_v16 = vadd.f32 %v726_v7, %v718_v4  ;;  %573 = vst [vmem:[%s1442_s5 + $0x8] sm:$0xff] %v726_v7  ;;  %v25_v19 = vld [vmem:[%s1440_s0 + $0x30] sm:$0xff]  ;;  %v26_v20 = vld [vmem:[%s1440_s0 + $0x38] sm:$0xff] }
   0x6   :  { %v762_v18 = vadd.f32 %v54_v15, %v22_v13  ;;  %v57_v21 = vld [vmem:[%s1441_s1 + $0x30] sm:$0xff]  ;;  %v58_v23 = vld [vmem:[%s1441_s1 + $0x38] sm:$0xff]  ;;  %v27_v25 = vld [vmem:[%s1440_s0 + $0x40] sm:$0xff]  ;;  %574 = vst [vmem:[%s1442_s5 + $0x10] sm:$0xff] %v760_v17 }
   0x7   :  { %v121_v22 = vadd.f32 %v743_v12, %v741_v11  ;;  %576 = vst [vmem:[%s1442_s5 + $0x20] sm:$0xff] %v741_v11  ;;  %577 = vst [vmem:[%s1442_s5 + $0x28] sm:$0xff] %v743_v12  ;;  %v786_v24 = vadd.f32 %v57_v21, %v25_v19  ;;  %v28_v26 = vld [vmem:[%s1440_s0 + $0x48] sm:$0xff]  ;;  %116 = vadd.xlane.f32.xlu0 %v115_v16  ;;  %v804_v28 = vadd.f32 %v58_v23, %v26_v20  ;;  %v59_v29 = vld [vmem:[%s1441_s1 + $0x40] sm:$0xff] }
   0x8   :  { %v118_v27 = vadd.f32 %v762_v18, %v760_v17  ;;  %575 = vst [vmem:[%s1442_s5 + $0x18] sm:$0xff] %v762_v18  ;;  %v60_v30 = vld [vmem:[%s1441_s1 + $0x48] sm:$0xff]  ;;  %v29_v31 = vld [vmem:[%s1440_s0 + $0x50] sm:$0xff]  ;;  %v819_v32 = vadd.f32 %v59_v29, %v27_v25  ;;  %v30_v34 = vld [vmem:[%s1440_s0 + $0x58] sm:$0xff] }
   0x9   :  { %122 = vadd.xlane.f32.xlu1 %v121_v22  ;;  %578 = vst [vmem:[%s1442_s5 + $0x30] sm:$0xff] %v786_v24  ;;  %v821_v33 = vadd.f32 %v60_v30, %v28_v26  ;;  %v61_v35 = vld [vmem:[%s1441_s1 + $0x50] sm:$0xff]  ;;  %v62_v36 = vld [vmem:[%s1441_s1 + $0x58] sm:$0xff]  ;;  %v124_v37 = vadd.f32 %v804_v28, %v786_v24  ;;  %579 = vst [vmem:[%s1442_s5 + $0x38] sm:$0xff] %v804_v28 }
   0xa   :  { %v838_v38 = vadd.f32 %v61_v35, %v29_v31  ;;  %v840_v39 = vadd.f32 %v62_v36, %v30_v34  ;;  %v31_v40 = vld [vmem:[%s1440_s0 + $0x60] sm:$0xff]  ;;  %v32_v41 = vld [vmem:[%s1440_s0 + $0x68] sm:$0xff]  ;;  %580 = vst [vmem:[%s1442_s5 + $0x40] sm:$0xff] %v819_v32  ;;  %v33_v45 = vld [vmem:[%s1440_s0 + $0x70] sm:$0xff] }
   0xb   :  { %v63_v42 = vld [vmem:[%s1441_s1 + $0x60] sm:$0xff]  ;;  %581 = vst [vmem:[%s1442_s5 + $0x48] sm:$0xff] %v821_v33  ;;  %v64_v43 = vld [vmem:[%s1441_s1 + $0x68] sm:$0xff]  ;;  %v34_v46 = vld [vmem:[%s1440_s0 + $0x78] sm:$0xff]  ;;  %119 = vadd.xlane.f32.xlu0 %v118_v27  ;;  %v127_v47 = vadd.f32 %v821_v33, %v819_v32 }
   0xc   :  { %v862_v44 = vadd.f32 %v63_v42, %v31_v40  ;;  %582 = vst [vmem:[%s1442_s5 + $0x50] sm:$0xff] %v838_v38  ;;  %583 = vst [vmem:[%s1442_s5 + $0x58] sm:$0xff] %v840_v39  ;;  %v880_v48 = vadd.f32 %v64_v43, %v32_v41  ;;  %v65_v49 = vld [vmem:[%s1441_s1 + $0x70] sm:$0xff]  ;;  %v66_v50 = vld [vmem:[%s1441_s1 + $0x78] sm:$0xff]  ;;  %v130_v52 = vadd.f32 %v840_v39, %v838_v38 }
   0xd   :  { %v35_v51 = vld [vmem:[%s1440_s0 + $0x80] sm:$0xff]  ;;  %125 = vadd.xlane.f32.xlu1 %v124_v37  ;;  %v897_v53 = vadd.f32 %v65_v49, %v33_v45  ;;  %v899_v54 = vadd.f32 %v66_v50, %v34_v46  ;;  %v36_v55 = vld [vmem:[%s1440_s0 + $0x88] sm:$0xff]  ;;  %v37_v60 = vld [vmem:[%s1440_s0 + $0x90] sm:$0xff] }
   0xe   :  { %584 = vst [vmem:[%s1442_s5 + $0x60] sm:$0xff] %v862_v44  ;;  %v67_v56 = vld [vmem:[%s1441_s1 + $0x80] sm:$0xff]  ;;  %v68_v57 = vld [vmem:[%s1441_s1 + $0x88] sm:$0xff]  ;;  %585 = vst [vmem:[%s1442_s5 + $0x68] sm:$0xff] %v880_v48  ;;  %v133_v3 = vadd.f32 %v880_v48, %v862_v44 }
   0xf   :  { %v914_v58 = vadd.f32 %v67_v56, %v35_v51  ;;  %v916_v59 = vadd.f32 %v68_v57, %v36_v55  ;;  %v38_v61 = vld [vmem:[%s1440_s0 + $0x98] sm:$0xff]  ;;  %v69_v62 = vld [vmem:[%s1441_s1 + $0x90] sm:$0xff]  ;;  %586 = vst [vmem:[%s1442_s5 + $0x70] sm:$0xff] %v897_v53  ;;  %587 = vst [vmem:[%s1442_s5 + $0x78] sm:$0xff] %v899_v54  ;;  %128 = vadd.xlane.f32.xlu0 %v127_v47  ;;  %v136_v10 = vadd.f32 %v899_v54, %v897_v53 }
  0x10   :  { %v70_v63 = vld [vmem:[%s1441_s1 + $0x98] sm:$0xff]  ;;  %v938_v0 = vadd.f32 %v69_v62, %v37_v60  ;;  %v39_v1 = vld [vmem:[%s1440_s0 + $0xa0] sm:$0xff]  ;;  %v40_v2 = vld [vmem:[%s1440_s0 + $0xa8] sm:$0xff] }
  0x11   :  { %588 = vst [vmem:[%s1442_s5 + $0x80] sm:$0xff] %v914_v58  ;;  %589 = vst [vmem:[%s1442_s5 + $0x88] sm:$0xff] %v916_v59  ;;  %v956_v5 = vadd.f32 %v70_v63, %v38_v61  ;;  %v71_v6 = vld [vmem:[%s1441_s1 + $0xa0] sm:$0xff]  ;;  %v72_v8 = vld [vmem:[%s1441_s1 + $0xa8] sm:$0xff]  ;;  %131 = vadd.xlane.f32.xlu1 %v130_v52  ;;  %v139_v31 = vadd.f32 %v916_v59, %v914_v58 }
  0x12   :  { %v41_v9 = vld [vmem:[%s1440_s0 + $0xb0] sm:$0xff]  ;;  %590 = vst [vmem:[%s1442_s5 + $0x90] sm:$0xff] %v938_v0  ;;  %v973_v13 = vadd.f32 %v71_v6, %v39_v1  ;;  %v975_v14 = vadd.f32 %v72_v8, %v40_v2  ;;  %v42_v15 = vld [vmem:[%s1440_s0 + $0xb8] sm:$0xff]  ;;  %v43_v22 = vld [vmem:[%s1440_s0 + $0xc0] sm:$0xff] }
  0x13   :  { %v73_v16 = vld [vmem:[%s1441_s1 + $0xb0] sm:$0xff]  ;;  %v74_v19 = vld [vmem:[%s1441_s1 + $0xb8] sm:$0xff]  ;;  %591 = vst [vmem:[%s1442_s5 + $0x98] sm:$0xff] %v956_v5  ;;  %v44_v23 = vld [vmem:[%s1440_s0 + $0xc8] sm:$0xff]  ;;  %134 = vadd.xlane.f32.xlu0 %v133_v3  ;;  %v142_v40 = vadd.f32 %v956_v5, %v938_v0 }
  0x14   :  { %v990_v20 = vadd.f32 %v73_v16, %v41_v9  ;;  %v992_v21 = vadd.f32 %v74_v19, %v42_v15  ;;  %v75_v25 = vld [vmem:[%s1441_s1 + $0xc0] sm:$0xff]  ;;  %592 = vst [vmem:[%s1442_s5 + $0xa0] sm:$0xff] %v973_v13  ;;  %593 = vst [vmem:[%s1442_s5 + $0xa8] sm:$0xff] %v975_v14  ;;  %v76_v26 = vld [vmem:[%s1441_s1 + $0xc8] sm:$0xff]  ;;  %v145_v57 = vadd.f32 %v975_v14, %v973_v13 }
  0x15   :  { %v1014_v27 = vadd.f32 %v75_v25, %v43_v22  ;;  %v45_v29 = vld [vmem:[%s1440_s0 + $0xd0] sm:$0xff]  ;;  %v46_v30 = vld [vmem:[%s1440_s0 + $0xd8] sm:$0xff]  ;;  %v1032_v34 = vadd.f32 %v76_v26, %v44_v23  ;;  %v47_v37 = vld [vmem:[%s1440_s0 + $0xe0] sm:$0xff]  ;;  %137 = vadd.xlane.f32.xlu1 %v136_v10 }
  0x16   :  { %594 = vst [vmem:[%s1442_s5 + $0xb0] sm:$0xff] %v990_v20  ;;  %595 = vst [vmem:[%s1442_s5 + $0xb8] sm:$0xff] %v992_v21  ;;  %v77_v35 = vld [vmem:[%s1441_s1 + $0xd0] sm:$0xff]  ;;  %v78_v36 = vld [vmem:[%s1441_s1 + $0xd8] sm:$0xff]  ;;  %v148_v61 = vadd.f32 %v992_v21, %v990_v20 }
  0x17   :  { %596 = vst [vmem:[%s1442_s5 + $0xc0] sm:$0xff] %v1014_v27  ;;  %v1049_v41 = vadd.f32 %v77_v35, %v45_v29  ;;  %v1051_v42 = vadd.f32 %v78_v36, %v46_v30  ;;  %v48_v43 = vld [vmem:[%s1440_s0 + $0xe8] sm:$0xff]  ;;  %v79_v45 = vld [vmem:[%s1441_s1 + $0xe0] sm:$0xff]  ;;  %597 = vst [vmem:[%s1442_s5 + $0xc8] sm:$0xff] %v1032_v34  ;;  %140 = vadd.xlane.f32.xlu0 %v139_v31  ;;  %v151_v62 = vadd.f32 %v1032_v34, %v1014_v27 }
  0x18   :  { %v80_v46 = vld [vmem:[%s1441_s1 + $0xe8] sm:$0xff]  ;;  %v1066_v47 = vadd.f32 %v79_v45, %v47_v37  ;;  %v49_v50 = vld [vmem:[%s1440_s0 + $0xf0] sm:$0xff]  ;;  %v50_v51 = vld [vmem:[%s1440_s0 + $0xf8] sm:$0xff] }
  0x19   :  { %v1068_v49 = vadd.f32 %v80_v46, %v48_v43  ;;  %v81_v52 = vld [vmem:[%s1441_s1 + $0xf0] sm:$0xff]  ;;  %598 = vst [vmem:[%s1442_s5 + $0xd0] sm:$0xff] %v1049_v41  ;;  %599 = vst [vmem:[%s1442_s5 + $0xd8] sm:$0xff] %v1051_v42  ;;  %v82_v55 = vld [vmem:[%s1441_s1 + $0xf8] sm:$0xff]  ;;  %143 = vadd.xlane.f32.xlu1 %v142_v40  ;;  %v154_v63 = vadd.f32 %v1051_v42, %v1049_v41 }
  0x1a   :  { %v1090_v56 = vadd.f32 %v81_v52, %v49_v50  ;;  %600 = vst [vmem:[%s1442_s5 + $0xe0] sm:$0xff] %v1066_v47  ;;  %v1102_v60 = vadd.f32 %v82_v55, %v50_v51 }
  0x1b   :  { %601 = vst [vmem:[%s1442_s5 + $0xe8] sm:$0xff] %v1068_v49  ;;  %146 = vadd.xlane.f32.xlu0 %v145_v57  ;;  %v157_v1 = vadd.f32 %v1068_v49, %v1066_v47 }
  0x1c   :  { %602 = vst [vmem:[%s1442_s5 + $0xf0] sm:$0xff] %v1090_v56  ;;  %603 = vst [vmem:[%s1442_s5 + $0xf8] sm:$0xff] %v1102_v60  ;;  %v160_v2 = vadd.f32 %v1102_v60, %v1090_v56 }
  0x1d   :  { %149 = vadd.xlane.f32.xlu1 %v148_v61 }
  0x1f   :  { %152 = vadd.xlane.f32.xlu0 %v151_v62 }
  0x21   :  { %155 = vadd.xlane.f32.xlu1 %v154_v63 }
  0x23   :  { %158 = vadd.xlane.f32.xlu0 %v157_v1 }
  0x25   :  { %161 = vadd.xlane.f32.xlu1 %v160_v2 }
  0x94   :  { %v117_v3 = vpop.xlane.xlu0 %116 }
  0x95   :  { %v164_v6 = vmul.f32 0.00390625, %v117_v3 }
  0x96   :  { %v123_v8 = vpop.xlane.xlu1 %122 }
  0x97   :  { %v166_v9 = vmul.f32 0.00390625, %v123_v8  ;;  %v1123_v10 = vsub.f32 %v718_v4, %v164_v6  ;;  %v1126_v15 = vsub.f32 %v726_v7, %v164_v6 }
  0x98   :  { %v120_v22 = vpop.xlane.xlu0 %119 }
  0x99   :  { %v1129_v16 = vsub.f32 %v741_v11, %v166_v9  ;;  %v1132_v19 = vsub.f32 %v743_v12, %v166_v9  ;;  %v165_v23 = vmul.f32 0.00390625, %v120_v22  ;;  %v212_v26 = vmul.f32 %v1123_v10, %v1123_v10 }
  0x9a   :  { %v126_v25 = vpop.xlane.xlu1 %125  ;;  %v213_v29 = vmul.f32 %v1126_v15, %v1126_v15 }
  0x9b   :  { %v167_v4 = vmul.f32 0.00390625, %v126_v25  ;;  %v216_v7 = vmul.f32 %v1129_v16, %v1129_v16  ;;  %v217_v11 = vmul.f32 %v1132_v19, %v1132_v19  ;;  %v1143_v30 = vsub.f32 %v760_v17, %v165_v23 }
  0x9c   :  { %v1146_v12 = vsub.f32 %v762_v18, %v165_v23  ;;  %v244_v31 = vadd.f32 %v213_v29, %v212_v26  ;;  %v129_v37 = vpop.xlane.xlu0 %128 }
  0x9d   :  { %v1149_v35 = vsub.f32 %v786_v24, %v167_v4  ;;  %v1152_v36 = vsub.f32 %v804_v28, %v167_v4  ;;  %v168_v40 = vmul.f32 0.00390625, %v129_v37  ;;  %v250_v45 = vadd.f32 %v217_v11, %v216_v7 }
  0x9e   :  { %245 = vadd.xlane.f32.xlu0 %v244_v31  ;;  %v132_v43 = vpop.xlane.xlu1 %131  ;;  %v214_v46 = vmul.f32 %v1143_v30, %v1143_v30  ;;  %v215_v17 = vmul.f32 %v1146_v12, %v1146_v12 }
  0x9f   :  { %v169_v18 = vmul.f32 0.00390625, %v132_v43  ;;  %v218_v50 = vmul.f32 %v1149_v35, %v1149_v35  ;;  %v219_v24 = vmul.f32 %v1152_v36, %v1152_v36  ;;  %v1163_v28 = vsub.f32 %v819_v32, %v168_v40 }
  0xa0   :  { %v1166_v51 = vsub.f32 %v821_v33, %v168_v40  ;;  %v247_v52 = vadd.f32 %v215_v17, %v214_v46  ;;  %v135_v61 = vpop.xlane.xlu0 %134 }
  0xa1   :  { %v1169_v55 = vsub.f32 %v838_v38, %v169_v18  ;;  %v1172_v57 = vsub.f32 %v840_v39, %v169_v18  ;;  %v170_v62 = vmul.f32 0.00390625, %v135_v61  ;;  %v253_v1 = vadd.f32 %v219_v24, %v218_v50 }
  0xa2   :  { %251 = vadd.xlane.f32.xlu0 %v250_v45  ;;  %248 = vadd.xlane.f32.xlu1 %v247_v52  ;;  %v138_v63 = vpop.xlane.xlu1 %137  ;;  %v220_v32 = vmul.f32 %v1163_v28, %v1163_v28  ;;  %v221_v33 = vmul.f32 %v1166_v51, %v1166_v51 }
  0xa3   :  { %v171_v2 = vmul.f32 0.00390625, %v138_v63  ;;  %v222_v38 = vmul.f32 %v1169_v55, %v1169_v55  ;;  %v223_v39 = vmul.f32 %v1172_v57, %v1172_v57  ;;  %v1183_v3 = vsub.f32 %v862_v44, %v170_v62 }
  0xa4   :  { %v1186_v6 = vsub.f32 %v880_v48, %v170_v62  ;;  %v256_v8 = vadd.f32 %v221_v33, %v220_v32  ;;  %v141_v23 = vpop.xlane.xlu0 %140 }
  0xa5   :  { %v1189_v9 = vsub.f32 %v897_v53, %v171_v2  ;;  %v1192_v22 = vsub.f32 %v899_v54, %v171_v2  ;;  %v172_v25 = vmul.f32 0.00390625, %v141_v23  ;;  %v259_v29 = vadd.f32 %v223_v39, %v222_v38 }
  0xa6   :  { %254 = vadd.xlane.f32.xlu1 %v253_v1  ;;  %257 = vadd.xlane.f32.xlu0 %v256_v8  ;;  %v144_v26 = vpop.xlane.xlu1 %143  ;;  %v224_v44 = vmul.f32 %v1183_v3, %v1183_v3  ;;  %v225_v48 = vmul.f32 %v1186_v6, %v1186_v6 }
  0xa7   :  { %v173_v4 = vmul.f32 0.00390625, %v144_v26  ;;  %v226_v53 = vmul.f32 %v1189_v9, %v1189_v9  ;;  %v227_v54 = vmul.f32 %v1192_v22, %v1192_v22  ;;  %v1203_v7 = vsub.f32 %v914_v58, %v172_v25 }
  0xa8   :  { %v1206_v11 = vsub.f32 %v916_v59, %v172_v25  ;;  %v262_v31 = vadd.f32 %v225_v48, %v224_v44  ;;  %v147_v43 = vpop.xlane.xlu0 %146 }
  0xa9   :  { %v1209_v37 = vsub.f32 %v938_v0, %v173_v4  ;;  %v1212_v40 = vsub.f32 %v956_v5, %v173_v4  ;;  %v174_v45 = vmul.f32 0.00390625, %v147_v43  ;;  %v265_v17 = vadd.f32 %v227_v54, %v226_v53 }
  0xaa   :  { %260 = vadd.xlane.f32.xlu1 %v259_v29  ;;  %263 = vadd.xlane.f32.xlu0 %v262_v31  ;;  %v150_v46 = vpop.xlane.xlu1 %149  ;;  %v228_v58 = vmul.f32 %v1203_v7, %v1203_v7  ;;  %v229_v59 = vmul.f32 %v1206_v11, %v1206_v11 }
  0xab   :  { %v175_v18 = vmul.f32 0.00390625, %v150_v46  ;;  %v230_v0 = vmul.f32 %v1209_v37, %v1209_v37  ;;  %v231_v5 = vmul.f32 %v1212_v40, %v1212_v40  ;;  %v1223_v50 = vsub.f32 %v973_v13, %v174_v45 }
  0xac   :  { %v1226_v24 = vsub.f32 %v975_v14, %v174_v45  ;;  %v268_v52 = vadd.f32 %v229_v59, %v228_v58  ;;  %v153_v63 = vpop.xlane.xlu0 %152 }
  0xad   :  { %v1229_v61 = vsub.f32 %v990_v20, %v175_v18  ;;  %v1232_v62 = vsub.f32 %v992_v21, %v175_v18  ;;  %v176_v1 = vmul.f32 0.00390625, %v153_v63  ;;  %v271_v33 = vadd.f32 %v231_v5, %v230_v0 }
  0xae   :  { %266 = vadd.xlane.f32.xlu1 %v265_v17  ;;  %269 = vadd.xlane.f32.xlu0 %v268_v52  ;;  %v156_v32 = vpop.xlane.xlu1 %155  ;;  %v232_v13 = vmul.f32 %v1223_v50, %v1223_v50  ;;  %v233_v14 = vmul.f32 %v1226_v24, %v1226_v24  ;;  %v374_v0 = vlaneseq }
  0xaf   :  { %v177_v2 = vmul.f32 0.00390625, %v156_v32  ;;  %v234_v20 = vmul.f32 %v1229_v61, %v1229_v61  ;;  %v235_v21 = vmul.f32 %v1232_v62, %v1232_v62  ;;  %v1243_v38 = vsub.f32 %v1014_v27, %v176_v1 }
  0xb0   :  { %v1246_v39 = vsub.f32 %v1032_v34, %v176_v1  ;;  %v274_v8 = vadd.f32 %v233_v14, %v232_v13  ;;  %v159_v26 = vpop.xlane.xlu0 %158 }
  0xb1   :  { %v1249_v23 = vsub.f32 %v1049_v41, %v177_v2  ;;  %v1252_v25 = vsub.f32 %v1051_v42, %v177_v2  ;;  %v178_v29 = vmul.f32 0.00390625, %v159_v26  ;;  %v277_v48 = vadd.f32 %v235_v21, %v234_v20 }
  0xb2   :  { %272 = vadd.xlane.f32.xlu1 %v271_v33  ;;  %275 = vadd.xlane.f32.xlu0 %v274_v8  ;;  %v162_v44 = vpop.xlane.xlu1 %161  ;;  %v236_v27 = vmul.f32 %v1243_v38, %v1243_v38  ;;  %v237_v34 = vmul.f32 %v1246_v39, %v1246_v39  ;;  %v375_v33 = vshrl.u32 %v374_v0, 7 }
  0xb3   :  { %v179_v4 = vmul.f32 0.00390625, %v162_v44  ;;  %v238_v41 = vmul.f32 %v1249_v23, %v1249_v23  ;;  %v239_v42 = vmul.f32 %v1252_v25, %v1252_v25  ;;  %v1263_v53 = vsub.f32 %v1066_v47, %v178_v29  ;;  %v372_v44 = vld [vmem:[%s1443_s2] sm:$0x3] }
  0xb4   :  { %v1266_v54 = vsub.f32 %v1068_v49, %v178_v29  ;;  %v280_v31 = vadd.f32 %v237_v34, %v236_v27  ;;  %v376_v26 = vsub.s32 0, %v375_v33  ;;  %v380_v29 = vsub.s32 1, %v375_v33 }
  0xb5   :  { %v1269_v43 = vsub.f32 %v1090_v56, %v179_v4  ;;  %v1272_v45 = vsub.f32 %v1102_v60, %v179_v4  ;;  %v283_v46 = vadd.f32 %v239_v42, %v238_v41  ;;  %v240_v17 = vmul.f32 %v1263_v53, %v1263_v53  ;;  %v416_v41 = vld [vmem:[%s1444_s3] sm:$0x3] }
  0xb6   :  { %278 = vadd.xlane.f32.xlu1 %v277_v48  ;;  %281 = vadd.xlane.f32.xlu0 %v280_v31  ;;  %v241_v47 = vmul.f32 %v1266_v54, %v1266_v54 }
  0xb7   :  { %v242_v49 = vmul.f32 %v1269_v43, %v1269_v43  ;;  %v243_v58 = vmul.f32 %v1272_v45, %v1272_v45 }
  0xb8   :  { %v286_v56 = vadd.f32 %v241_v47, %v240_v17  ;;  %v1290_v17 = vrot.slane %v372_v44, %v380_v29 }
  0xb9   :  { %v289_v60 = vadd.f32 %v243_v58, %v242_v49 }
  0xba   :  { %284 = vadd.xlane.f32.xlu1 %v283_v46  ;;  %287 = vadd.xlane.f32.xlu0 %v286_v56  ;;  %v1288_v46 = vrot.slane %v372_v44, %v376_v26  ;;  %v1292_v56 = vrot.slane %v416_v41, %v376_v26 }
  0xbe   :  { %290 = vadd.xlane.f32.xlu1 %v289_v60  ;;  %v1294_v60 = vrot.slane %v416_v41, %v380_v29 }
 0x12b   :  { %v246_v59 = vpop.xlane.xlu0 %245 }
 0x12c   :  { %v292_v18 = vmul.f32 0.00390625, %v246_v59 }
 0x12e   :  { %v308_v5 = vadd.f32 1e-05, %v292_v18 }
 0x12f   :  { %v249_v52 = vpop.xlane.xlu1 %248  ;;  %v252_v63 = vpop.xlane.xlu0 %251 }
 0x130   :  { %644 = vrsqrt.f32 %v308_v5  ;;  %v293_v1 = vmul.f32 0.00390625, %v249_v52  ;;  %v294_v32 = vmul.f32 0.00390625, %v252_v63 }
 0x132   :  { %v309_v13 = vadd.f32 1e-05, %v293_v1  ;;  %v310_v14 = vadd.f32 1e-05, %v294_v32 }
 0x133   :  { %v255_v2 = vpop.xlane.xlu1 %254  ;;  %v258_v20 = vpop.xlane.xlu0 %257 }
 0x134   :  { %646 = vrsqrt.f32 %v309_v13  ;;  %v295_v21 = vmul.f32 0.00390625, %v255_v2  ;;  %v296_v8 = vmul.f32 0.00390625, %v258_v20 }
 0x135   :  { %648 = vrsqrt.f32 %v310_v14 }
 0x136   :  { %v311_v48 = vadd.f32 1e-05, %v295_v21  ;;  %v312_v27 = vadd.f32 1e-05, %v296_v8 }
 0x137   :  { %v261_v34 = vpop.xlane.xlu1 %260  ;;  %v264_v4 = vpop.xlane.xlu0 %263 }
 0x138   :  { %650 = vrsqrt.f32 %v311_v48  ;;  %v297_v42 = vmul.f32 0.00390625, %v261_v34  ;;  %v298_v31 = vmul.f32 0.00390625, %v264_v4 }
 0x139   :  { %652 = vrsqrt.f32 %v312_v27 }
 0x13a   :  { %v645_v47 = vpop.eup %644  ;;  %v313_v49 = vadd.f32 1e-05, %v297_v42  ;;  %v314_v58 = vadd.f32 1e-05, %v298_v31 }
 0x13b   :  { %v340_v59 = vmul.f32 %v645_v47, %v1123_v10  ;;  %v341_v18 = vmul.f32 %v645_v47, %v1126_v15  ;;  %v267_v0 = vpop.xlane.xlu1 %266  ;;  %v270_v5 = vpop.xlane.xlu0 %269 }
 0x13c   :  { %654 = vrsqrt.f32 %v313_v49  ;;  %v299_v52 = vmul.f32 0.00390625, %v267_v0  ;;  %v300_v63 = vmul.f32 0.00390625, %v270_v5 }
 0x13d   :  { %v384_v1 = vmul.f32 %v1288_v46, %v340_v59  ;;  %v385_v32 = vmul.f32 %v1290_v17, %v341_v18  ;;  %656 = vrsqrt.f32 %v314_v58 }
 0x13e   :  { %v647_v33 = vpop.eup %646  ;;  %v315_v13 = vadd.f32 1e-05, %v299_v52  ;;  %v316_v14 = vadd.f32 1e-05, %v300_v63 }
 0x13f   :  { %v649_v2 = vpop.eup %648  ;;  %v428_v20 = vadd.f32 %v1292_v56, %v384_v1  ;;  %v429_v10 = vadd.f32 %v1294_v60, %v385_v32  ;;  %v342_v15 = vmul.f32 %v647_v33, %v1143_v30  ;;  %v343_v21 = vmul.f32 %v647_v33, %v1146_v12  ;;  %v273_v8 = vpop.xlane.xlu1 %272 }
 0x140   :  { %v276_v26 = vpop.xlane.xlu0 %275  ;;  %v344_v29 = vmul.f32 %v649_v2, %v1129_v16  ;;  %v345_v44 = vmul.f32 %v649_v2, %v1132_v19  ;;  %658 = vrsqrt.f32 %v315_v13  ;;  %v301_v48 = vmul.f32 0.00390625, %v273_v8 }
 0x141   :  { %v628_v27 = vpack.c.bf16 %v429_v10, %v428_v20  ;;  %v386_v34 = vmul.f32 %v1288_v46, %v342_v15  ;;  %v387_v4 = vmul.f32 %v1290_v17, %v343_v21  ;;  %660 = vrsqrt.f32 %v316_v14 }
 0x142   :  { %v651_v41 = vpop.eup %650  ;;  %v388_v42 = vmul.f32 %v1288_v46, %v344_v29  ;;  %v389_v30 = vmul.f32 %v1290_v17, %v345_v44  ;;  %v317_v12 = vadd.f32 1e-05, %v301_v48  ;;  %v302_v31 = vmul.f32 0.00390625, %v276_v26 }
 0x143   :  { %v653_v47 = vpop.eup %652  ;;  %556 = vst [vmem:[%s1445_s4] sm:$0xff] %v628_v27  ;;  %v430_v16 = vadd.f32 %v1292_v56, %v386_v34  ;;  %v431_v19 = vadd.f32 %v1294_v60, %v387_v4  ;;  %v346_v49 = vmul.f32 %v651_v41, %v1149_v35  ;;  %v347_v58 = vmul.f32 %v651_v41, %v1152_v36  ;;  %v279_v59 = vpop.xlane.xlu1 %278 }
 0x144   :  { %v432_v18 = vadd.f32 %v1292_v56, %v388_v42  ;;  %v433_v0 = vadd.f32 %v1294_v60, %v389_v30  ;;  %v348_v5 = vmul.f32 %v653_v47, %v1163_v28  ;;  %v349_v52 = vmul.f32 %v653_v47, %v1166_v51  ;;  %v282_v29 = vpop.xlane.xlu0 %281 }
 0x145   :  { %v629_v63 = vpack.c.bf16 %v431_v19, %v430_v16  ;;  %v390_v1 = vmul.f32 %v1288_v46, %v346_v49  ;;  %v391_v32 = vmul.f32 %v1290_v17, %v347_v58  ;;  %662 = vrsqrt.f32 %v317_v12 }
 0x146   :  { %v655_v33 = vpop.eup %654  ;;  %v630_v13 = vpack.c.bf16 %v433_v0, %v432_v18  ;;  %v392_v35 = vmul.f32 %v1288_v46, %v348_v5  ;;  %v393_v36 = vmul.f32 %v1290_v17, %v349_v52  ;;  %v318_v14 = vadd.f32 1e-05, %v302_v31 }
 0x147   :  { %v657_v2 = vpop.eup %656  ;;  %557 = vst [vmem:[%s1445_s4 + $0x8] sm:$0xff] %v629_v63  ;;  %v434_v28 = vadd.f32 %v1292_v56, %v390_v1  ;;  %v435_v51 = vadd.f32 %v1294_v60, %v391_v32  ;;  %v350_v20 = vmul.f32 %v655_v33, %v1169_v55  ;;  %v351_v10 = vmul.f32 %v655_v33, %v1172_v57  ;;  %v285_v57 = vpop.xlane.xlu1 %284 }
 0x148   :  { %558 = vst [vmem:[%s1445_s4 + $0x10] sm:$0xff] %v630_v13  ;;  %v436_v15 = vadd.f32 %v1292_v56, %v392_v35  ;;  %v437_v21 = vadd.f32 %v1294_v60, %v393_v36  ;;  %v352_v8 = vmul.f32 %v657_v2, %v1183_v3  ;;  %v353_v26 = vmul.f32 %v657_v2, %v1186_v6  ;;  %v288_v63 = vpop.xlane.xlu0 %287 }
 0x149   :  { %v631_v44 = vpack.c.bf16 %v435_v51, %v434_v28  ;;  %v394_v48 = vmul.f32 %v1288_v46, %v350_v20  ;;  %v395_v55 = vmul.f32 %v1290_v17, %v351_v10  ;;  %664 = vrsqrt.f32 %v318_v14 }
 0x14a   :  { %v659_v27 = vpop.eup %658  ;;  %v632_v34 = vpack.c.bf16 %v437_v21, %v436_v15  ;;  %v396_v4 = vmul.f32 %v1288_v46, %v352_v8  ;;  %v397_v41 = vmul.f32 %v1290_v17, %v353_v26  ;;  %v303_v42 = vmul.f32 0.00390625, %v279_v59 }
 0x14b   :  { %v661_v30 = vpop.eup %660  ;;  %559 = vst [vmem:[%s1445_s4 + $0x18] sm:$0xff] %v631_v44  ;;  %v438_v3 = vadd.f32 %v1292_v56, %v394_v48  ;;  %v439_v6 = vadd.f32 %v1294_v60, %v395_v55  ;;  %v354_v12 = vmul.f32 %v659_v27, %v1189_v9  ;;  %v355_v31 = vmul.f32 %v659_v27, %v1192_v22  ;;  %v291_v33 = vpop.xlane.xlu1 %290 }
 0x14c   :  { %560 = vst [vmem:[%s1445_s4 + $0x20] sm:$0xff] %v632_v34  ;;  %v440_v47 = vadd.f32 %v1292_v56, %v396_v4  ;;  %v441_v16 = vadd.f32 %v1294_v60, %v397_v41  ;;  %v356_v19 = vmul.f32 %v661_v30, %v1203_v7  ;;  %v357_v49 = vmul.f32 %v661_v30, %v1206_v11 }
 0x14d   :  { %v633_v58 = vpack.c.bf16 %v439_v6, %v438_v3  ;;  %v398_v59 = vmul.f32 %v1288_v46, %v354_v12  ;;  %v399_v18 = vmul.f32 %v1290_v17, %v355_v31  ;;  %v319_v9 = vadd.f32 1e-05, %v303_v42 }
 0x14e   :  { %v634_v0 = vpack.c.bf16 %v441_v16, %v440_v47  ;;  %v400_v22 = vmul.f32 %v1288_v46, %v356_v19  ;;  %v401_v5 = vmul.f32 %v1290_v17, %v357_v49  ;;  %v304_v52 = vmul.f32 0.00390625, %v282_v29 }
 0x14f   :  { %v663_v1 = vpop.eup %662  ;;  %561 = vst [vmem:[%s1445_s4 + $0x28] sm:$0xff] %v633_v58  ;;  %v442_v7 = vadd.f32 %v1292_v56, %v398_v59  ;;  %v443_v11 = vadd.f32 %v1294_v60, %v399_v18  ;;  %666 = vrsqrt.f32 %v319_v9  ;;  %v305_v32 = vmul.f32 0.00390625, %v285_v57 }
 0x150   :  { %562 = vst [vmem:[%s1445_s4 + $0x30] sm:$0xff] %v634_v0  ;;  %v444_v13 = vadd.f32 %v1292_v56, %v400_v22  ;;  %v445_v35 = vadd.f32 %v1294_v60, %v401_v5  ;;  %v358_v36 = vmul.f32 %v663_v1, %v1209_v37  ;;  %v359_v14 = vmul.f32 %v663_v1, %v1212_v40 }
 0x151   :  { %v635_v2 = vpack.c.bf16 %v443_v11, %v442_v7  ;;  %v320_v28 = vadd.f32 1e-05, %v304_v52  ;;  %v321_v51 = vadd.f32 1e-05, %v305_v32  ;;  %v306_v20 = vmul.f32 0.00390625, %v288_v63 }
 0x152   :  { %v636_v10 = vpack.c.bf16 %v445_v35, %v444_v13  ;;  %v402_v15 = vmul.f32 %v1288_v46, %v358_v36  ;;  %v403_v21 = vmul.f32 %v1290_v17, %v359_v14  ;;  %v307_v8 = vmul.f32 0.00390625, %v291_v33 }
 0x153   :  { %v665_v26 = vpop.eup %664  ;;  %563 = vst [vmem:[%s1445_s4 + $0x38] sm:$0xff] %v635_v2  ;;  %668 = vrsqrt.f32 %v320_v28  ;;  %v322_v29 = vadd.f32 1e-05, %v306_v20 }
 0x154   :  { %564 = vst [vmem:[%s1445_s4 + $0x40] sm:$0xff] %v636_v10  ;;  %v446_v37 = vadd.f32 %v1292_v56, %v402_v15  ;;  %v447_v40 = vadd.f32 %v1294_v60, %v403_v21  ;;  %v360_v44 = vmul.f32 %v665_v26, %v1223_v50  ;;  %v361_v48 = vmul.f32 %v665_v26, %v1226_v24 }
 0x155   :  { %670 = vrsqrt.f32 %v321_v51  ;;  %v323_v55 = vadd.f32 1e-05, %v307_v8 }
 0x156   :  { %v637_v57 = vpack.c.bf16 %v447_v40, %v446_v37  ;;  %v404_v27 = vmul.f32 %v1288_v46, %v360_v44  ;;  %v405_v34 = vmul.f32 %v1290_v17, %v361_v48  ;;  %672 = vrsqrt.f32 %v322_v29 }
 0x157   :  { %674 = vrsqrt.f32 %v323_v55 }
 0x158   :  { %565 = vst [vmem:[%s1445_s4 + $0x48] sm:$0xff] %v637_v57  ;;  %v448_v4 = vadd.f32 %v1292_v56, %v404_v27  ;;  %v449_v41 = vadd.f32 %v1294_v60, %v405_v34 }
 0x159   :  { %v667_v50 = vpop.eup %666 }
 0x15a   :  { %v638_v42 = vpack.c.bf16 %v449_v41, %v448_v4  ;;  %v362_v24 = vmul.f32 %v667_v50, %v1229_v61  ;;  %v363_v30 = vmul.f32 %v667_v50, %v1232_v62 }
 0x15c   :  { %566 = vst [vmem:[%s1445_s4 + $0x50] sm:$0xff] %v638_v42  ;;  %v406_v3 = vmul.f32 %v1288_v46, %v362_v24  ;;  %v407_v6 = vmul.f32 %v1290_v17, %v363_v30 }
 0x15d   :  { %v669_v12 = vpop.eup %668 }
 0x15e   :  { %v450_v31 = vadd.f32 %v1292_v56, %v406_v3  ;;  %v451_v47 = vadd.f32 %v1294_v60, %v407_v6  ;;  %v364_v16 = vmul.f32 %v669_v12, %v1243_v38  ;;  %v365_v19 = vmul.f32 %v669_v12, %v1246_v39 }
 0x15f   :  { %v671_v61 = vpop.eup %670 }
 0x160   :  { %v673_v49 = vpop.eup %672  ;;  %v639_v62 = vpack.c.bf16 %v451_v47, %v450_v31  ;;  %v408_v58 = vmul.f32 %v1288_v46, %v364_v16  ;;  %v409_v59 = vmul.f32 %v1290_v17, %v365_v19  ;;  %v366_v18 = vmul.f32 %v671_v61, %v1249_v23 }
 0x161   :  { %v675_v9 = vpop.eup %674  ;;  %v367_v0 = vmul.f32 %v671_v61, %v1252_v25  ;;  %v368_v22 = vmul.f32 %v673_v49, %v1263_v53  ;;  %v369_v5 = vmul.f32 %v673_v49, %v1266_v54 }
 0x162   :  { %567 = vst [vmem:[%s1445_s4 + $0x58] sm:$0xff] %v639_v62  ;;  %v452_v38 = vadd.f32 %v1292_v56, %v408_v58  ;;  %v453_v39 = vadd.f32 %v1294_v60, %v409_v59  ;;  %v410_v52 = vmul.f32 %v1288_v46, %v366_v18  ;;  %v370_v63 = vmul.f32 %v675_v9, %v1269_v43 }
 0x163   :  { %v411_v23 = vmul.f32 %v1290_v17, %v367_v0  ;;  %v412_v25 = vmul.f32 %v1288_v46, %v368_v22  ;;  %v413_v53 = vmul.f32 %v1290_v17, %v369_v5  ;;  %v371_v54 = vmul.f32 %v675_v9, %v1272_v45 }
 0x164   :  { %v640_v1 = vpack.c.bf16 %v453_v39, %v452_v38  ;;  %v454_v7 = vadd.f32 %v1292_v56, %v410_v52  ;;  %v414_v11 = vmul.f32 %v1288_v46, %v370_v63 }
 0x165   :  { %v455_v32 = vadd.f32 %v1294_v60, %v411_v23  ;;  %v456_v33 = vadd.f32 %v1292_v56, %v412_v25  ;;  %v457_v13 = vadd.f32 %v1294_v60, %v413_v53  ;;  %v415_v43 = vmul.f32 %v1290_v17, %v371_v54 }
 0x166   :  { %568 = vst [vmem:[%s1445_s4 + $0x60] sm:$0xff] %v640_v1  ;;  %v458_v35 = vadd.f32 %v1292_v56, %v414_v11 }
 0x167   :  { %v641_v45 = vpack.c.bf16 %v455_v32, %v454_v7  ;;  %v642_v36 = vpack.c.bf16 %v457_v13, %v456_v33  ;;  %v459_v14 = vadd.f32 %v1294_v60, %v415_v43 }
 0x169   :  { %569 = vst [vmem:[%s1445_s4 + $0x68] sm:$0xff] %v641_v45  ;;  %570 = vst [vmem:[%s1445_s4 + $0x70] sm:$0xff] %v642_v36  ;;  %v643_v46 = vpack.c.bf16 %v459_v14, %v458_v35 }
 0x16b   :  { %571 = vst [vmem:[%s1445_s4 + $0x78] sm:$0xff] %v643_v46 }

// kernel: santacoder_forward.20
= control target key start
LH: loop header
LB: loop body
LE: loop exit
PB: predicated region body
PF: predicated region fallthrough
CT: control target
= control target key end

     0   :  { %s2002_s12 = smov 0   ;;  %s2004_s13 = smov 0   ;;  %s2575_s0 = inlined_call_operand.vmem [shape: bf16[128,256], index: 0, kind: input, shape index: {}]   ;;  %s2576_s1 = inlined_call_operand.vmem [shape: bf16[256,1024], index: 1, kind: input, shape index: {}]   ;;  %s2577_s2 = inlined_call_operand.vmem [shape: f32[1,1024], index: 2, kind: input, shape index: {}]   ;;  %s2578_s3 = inlined_call_operand.vmem [shape: bf16[128,1024], index: 3, kind: output, shape index: {}]  }
   0x1   :  { %s2006_s14 = smov 0   ;;  %s2008_s15 = smov 0  }
   0x2   :  { %s2010_s16 = smov 0  }
   0x3 LB: > { %s28_s17 = sadd.s32 1, %s1976_s15  ;;  %s1635_s18 = sadd.s32 4294967295, %s1980_s16   ;;  %s1980_s16 = sphi %s2010_s16, %s13_s16   ;;  %s1976_s15 = sphi %s2008_s15, %s2583_s15   ;;  %s1972_s14 = sphi %s2006_s14, %s2582_s14   ;;  %s1968_s13 = sphi %s2004_s13, %s2581_s13   ;;  %s1964_s12 = sphi %s2002_s12, %s2580_s12  }
   0x4   : > { %p30_p0 = scmp.ge.s32.totalorder %s28_s17, 4  ;;  %p76_p1 = scmp.ne.s32.totalorder %s1968_s13, %s1964_s12 }
   0x5   : > { %p77_p2 = scmp.eq.s32.totalorder %s1980_s16, 0  ;;  %p134_p4 = scmp.eq.s32.totalorder %s1635_s18, 3 }
   0x6   : > { %s2585_s17 = smov (%p30_p0, %s28_s17), 0  ;;  %s69_s20 = sadd.s32 1, %s1968_s13 }
   0x7   : > { %p78_p3 = por %p77_p2, %p76_p1  ;;  %s65_s19 = ssub.s32 %s1976_s15, %s2585_s17 }
   0x8   : > { %p67_p5 = scmp.eq.s32.totalorder %s65_s19, 0  ;;  %p2037_p6 = por %p134_p4, %p76_p1 }
   0x9   : > { %p1639_p7 = scmp.ge.s32.totalorder %s1980_s16, 4 }
   0xa   : > { %s2042_s22 = scalar_select %p67_p5, %s1968_s13, %s69_s20  }
   0xb   : > { %171 = sbr.rel (%p1639_p7) target bundleno = 54 (0x36), region = 20 }
  0x12   : > { %174 = sbr.rel (!%p78_p3) target bundleno = 54 (0x36), region = 24  ;;  %s176_s23 = sand.u32 (%p78_p3), 1, %s1968_s13  }
  0x13   : > { %s1716_s24 = sshll.u32 (%p78_p3), %s1976_s15, 3  ;;  %s1640_s25 = sshll.u32 (%p78_p3), %s176_s23, 8 }
  0x14   : > { %s2050_s28 = scalar_lea.vmem (%p78_p3), %s2576_s1, %s1716_s24  ;;  %s2055_s29 = scalar_lea.vmem (%p78_p3), [#allocation3], %s1640_s25 }
  0x15   : > { %v274_v0 = vld [vmem:[%s2050_s28] sm:$0xff] (%p78_p3) }
  0x16   : > { %v276_v1 = vld [vmem:[%s2050_s28 + $0x20] sm:$0xff] (%p78_p3)  ;;  %275 = vst [vmem:[%s2055_s29] sm:$0xff] (%p78_p3), %v274_v0 }
  0x17   : > { %v278_v2 = vld [vmem:[%s2050_s28 + $0x40] sm:$0xff] (%p78_p3)  ;;  %277 = vst [vmem:[%s2055_s29 + $0x8] sm:$0xff] (%p78_p3), %v276_v1 }
  0x18   : > { %279 = vst [vmem:[%s2055_s29 + $0x10] sm:$0xff] (%p78_p3), %v278_v2  ;;  %v280_v3 = vld [vmem:[%s2050_s28 + $0x60] sm:$0xff] (%p78_p3) }
  0x19   : > { %v282_v4 = vld [vmem:[%s2050_s28 + $0x80] sm:$0xff]  ;;  %281 = vst [vmem:[%s2055_s29 + $0x18] sm:$0xff] %v280_v3 }
  0x1a   : > { %v284_v5 = vld [vmem:[%s2050_s28 + $0xa0] sm:$0xff]  ;;  %283 = vst [vmem:[%s2055_s29 + $0x20] sm:$0xff] %v282_v4 }
  0x1b   : > { %285 = vst [vmem:[%s2055_s29 + $0x28] sm:$0xff] %v284_v5  ;;  %v286_v6 = vld [vmem:[%s2050_s28 + $0xc0] sm:$0xff] }
  0x1c   : > { %v288_v7 = vld [vmem:[%s2050_s28 + $0xe0] sm:$0xff]  ;;  %287 = vst [vmem:[%s2055_s29 + $0x30] sm:$0xff] %v286_v6 }
  0x1d   : > { %v290_v8 = vld [vmem:[%s2050_s28 + $0x100] sm:$0xff]  ;;  %289 = vst [vmem:[%s2055_s29 + $0x38] sm:$0xff] %v288_v7 }
  0x1e   : > { %291 = vst [vmem:[%s2055_s29 + $0x40] sm:$0xff] %v290_v8  ;;  %v292_v9 = vld [vmem:[%s2050_s28 + $0x120] sm:$0xff] }
  0x1f   : > { %v294_v10 = vld [vmem:[%s2050_s28 + $0x140] sm:$0xff]  ;;  %293 = vst [vmem:[%s2055_s29 + $0x48] sm:$0xff] %v292_v9 }
  0x20   : > { %v296_v11 = vld [vmem:[%s2050_s28 + $0x160] sm:$0xff]  ;;  %295 = vst [vmem:[%s2055_s29 + $0x50] sm:$0xff] %v294_v10 }
  0x21   : > { %297 = vst [vmem:[%s2055_s29 + $0x58] sm:$0xff] %v296_v11  ;;  %v298_v12 = vld [vmem:[%s2050_s28 + $0x180] sm:$0xff] }
  0x22   : > { %v300_v13 = vld [vmem:[%s2050_s28 + $0x1a0] sm:$0xff]  ;;  %299 = vst [vmem:[%s2055_s29 + $0x60] sm:$0xff] %v298_v12 }
  0x23   : > { %v302_v14 = vld [vmem:[%s2050_s28 + $0x1c0] sm:$0xff]  ;;  %301 = vst [vmem:[%s2055_s29 + $0x68] sm:$0xff] %v300_v13 }
  0x24   : > { %303 = vst [vmem:[%s2055_s29 + $0x70] sm:$0xff] %v302_v14  ;;  %v304_v15 = vld [vmem:[%s2050_s28 + $0x1e0] sm:$0xff] }
  0x25   : > { %v306_v16 = vld [vmem:[%s2050_s28 + $0x200] sm:$0xff]  ;;  %305 = vst [vmem:[%s2055_s29 + $0x78] sm:$0xff] %v304_v15 }
  0x26   : > { %v308_v17 = vld [vmem:[%s2050_s28 + $0x220] sm:$0xff]  ;;  %307 = vst [vmem:[%s2055_s29 + $0x80] sm:$0xff] %v306_v16 }
  0x27   : > { %309 = vst [vmem:[%s2055_s29 + $0x88] sm:$0xff] %v308_v17  ;;  %v310_v18 = vld [vmem:[%s2050_s28 + $0x240] sm:$0xff] }
  0x28   : > { %v312_v19 = vld [vmem:[%s2050_s28 + $0x260] sm:$0xff]  ;;  %311 = vst [vmem:[%s2055_s29 + $0x90] sm:$0xff] %v310_v18 }
  0x29   : > { %v314_v20 = vld [vmem:[%s2050_s28 + $0x280] sm:$0xff]  ;;  %313 = vst [vmem:[%s2055_s29 + $0x98] sm:$0xff] %v312_v19 }
  0x2a   : > { %315 = vst [vmem:[%s2055_s29 + $0xa0] sm:$0xff] %v314_v20  ;;  %v316_v21 = vld [vmem:[%s2050_s28 + $0x2a0] sm:$0xff] }
  0x2b   : > { %v318_v22 = vld [vmem:[%s2050_s28 + $0x2c0] sm:$0xff]  ;;  %317 = vst [vmem:[%s2055_s29 + $0xa8] sm:$0xff] %v316_v21 }
  0x2c   : > { %v320_v23 = vld [vmem:[%s2050_s28 + $0x2e0] sm:$0xff]  ;;  %319 = vst [vmem:[%s2055_s29 + $0xb0] sm:$0xff] %v318_v22 }
  0x2d   : > { %321 = vst [vmem:[%s2055_s29 + $0xb8] sm:$0xff] %v320_v23  ;;  %v322_v24 = vld [vmem:[%s2050_s28 + $0x300] sm:$0xff] }
  0x2e   : > { %v324_v25 = vld [vmem:[%s2050_s28 + $0x320] sm:$0xff]  ;;  %323 = vst [vmem:[%s2055_s29 + $0xc0] sm:$0xff] %v322_v24 }
  0x2f   : > { %v326_v26 = vld [vmem:[%s2050_s28 + $0x340] sm:$0xff]  ;;  %325 = vst [vmem:[%s2055_s29 + $0xc8] sm:$0xff] %v324_v25 }
  0x30   : > { %327 = vst [vmem:[%s2055_s29 + $0xd0] sm:$0xff] %v326_v26  ;;  %v328_v27 = vld [vmem:[%s2050_s28 + $0x360] sm:$0xff] }
  0x31   : > { %v330_v28 = vld [vmem:[%s2050_s28 + $0x380] sm:$0xff]  ;;  %329 = vst [vmem:[%s2055_s29 + $0xd8] sm:$0xff] %v328_v27 }
  0x32   : > { %v332_v29 = vld [vmem:[%s2050_s28 + $0x3a0] sm:$0xff]  ;;  %331 = vst [vmem:[%s2055_s29 + $0xe0] sm:$0xff] %v330_v28 }
  0x33   : > { %333 = vst [vmem:[%s2055_s29 + $0xe8] sm:$0xff] %v332_v29  ;;  %v334_v30 = vld [vmem:[%s2050_s28 + $0x3c0] sm:$0xff] }
  0x34   : > { %v336_v31 = vld [vmem:[%s2050_s28 + $0x3e0] sm:$0xff]  ;;  %335 = vst [vmem:[%s2055_s29 + $0xf0] sm:$0xff] %v334_v30 }
  0x35   : > { %337 = vst [vmem:[%s2055_s29 + $0xf8] sm:$0xff] %v336_v31 }
  0x36 PF: > { %p1643_p8 = scmp.ge.s32.totalorder %s1980_s16, 1  ;;  %p350_p9 = scmp.lt.s32.totalorder %s1980_s16, 5 }
  0x38   : > { %p351_p10 = pnand %p1643_p8, %p350_p9 }
  0x39   : > { %s357_s30 = sand.u32 (!%p351_p10), 1, %s1964_s12   ;;  %v1856_v32 = vld [vmem:[%s2575_s0 + $0x4] ss:$8 sps:$4 sm:$0xff] (!%p351_p10)   ;;  %v1854_v2 = vld [vmem:[%s2575_s0] ss:$8 sps:$4 sm:$0xff] (!%p351_p10)   ;;  %s1646_s28 = sshll.u32 (!%p351_p10), %s1972_s14, 1  ;;  %v984_v16 = vlaneseq (!%p351_p10) }
  0x3a   : > { %354 = sbr.rel (%p351_p10) target bundleno = 446 (0x1be), region = 66  ;;  %s1644_s4 = sshll.u32 (!%p351_p10), %s357_s30, 8  ;;  %v1859_v33 = vld [vmem:[%s2575_s0 + $0x44] ss:$8 sps:$4 sm:$0xff] (!%p351_p10)   ;;  %802 = vmatprep.mubr.bf16.mxu0 (!%p351_p10), %v1856_v32  ;;  %v1857_v3 = vld [vmem:[%s2575_s0 + $0x40] ss:$8 sps:$4 sm:$0xff] (!%p351_p10)  }
  0x3b   : > { %s2129_s9 = scalar_lea.vmem (!%p351_p10), [#allocation3], %s1644_s4  ;;  %842 = vmatprep.mubr.bf16.mxu1 (!%p351_p10), %v1859_v33  ;;  %v1860_v4 = vld [vmem:[%s2575_s0 + $0x14] ss:$8 sps:$4 sm:$0xff] (!%p351_p10)   ;;  %v1864_v6 = vld [vmem:[%s2575_s0 + $0x10] ss:$8 sps:$4 sm:$0xff] (!%p351_p10)   ;;  %p408_p11 = scmp.lt.s32.totalorder (!%p351_p10), %s1646_s28, 7 }
  0x3c   : > { %v1806_v34 = vld [vmem:[%s2129_s9 + $0x4] ss:$8 sps:$4 sm:$0xff] (!%p351_p10)   ;;  %v1808_v35 = vld [vmem:[%s2129_s9] ss:$8 sps:$4 sm:$0xff] (!%p351_p10)   ;;  %v1809_v36 = vld [vmem:[%s2129_s9 + $0x14] ss:$8 sps:$4 sm:$0xff] (!%p351_p10)  }
  0x3d   : > { %770 = vmatprep.subr.bf16.mxu0 (!%p351_p10), %v1806_v34  ;;  %1734 = vmatprep.subr.bf16.mxu1 (!%p351_p10), %v1806_v34  ;;  %v1811_v37 = vld [vmem:[%s2129_s9 + $0x10] ss:$8 sps:$4 sm:$0xff] (!%p351_p10)   ;;  %v1812_v38 = vld [vmem:[%s2129_s9 + $0x24] ss:$8 sps:$4 sm:$0xff] (!%p351_p10)   ;;  %v1814_v39 = vld [vmem:[%s2129_s9 + $0x20] ss:$8 sps:$4 sm:$0xff] (!%p351_p10)  }
  0x3e   : > { %771 = vmatpush1.bf16.msra.mxu0 (!%p351_p10), %v1808_v35  ;;  %1750 = vmatpush1.bf16.msra.mxu1 (!%p351_p10), %v1808_v35  ;;  %v1815_v40 = vld [vmem:[%s2129_s9 + $0x34] ss:$8 sps:$4 sm:$0xff] (!%p351_p10)   ;;  %v1817_v41 = vld [vmem:[%s2129_s9 + $0x30] ss:$8 sps:$4 sm:$0xff] (!%p351_p10)   ;;  %v1818_v42 = vld [vmem:[%s2129_s9 + $0x44] ss:$8 sps:$4 sm:$0xff] (!%p351_p10)  }
  0x3f   : > { %772 = vmatprep.subr.bf16.mxu0 (!%p351_p10), %v1809_v36  ;;  %1735 = vmatprep.subr.bf16.mxu1 (!%p351_p10), %v1809_v36  ;;  %v1820_v43 = vld [vmem:[%s2129_s9 + $0x40] ss:$8 sps:$4 sm:$0xff] (!%p351_p10)   ;;  %v1821_v44 = vld [vmem:[%s2129_s9 + $0x54] ss:$8 sps:$4 sm:$0xff] (!%p351_p10)   ;;  %v1823_v45 = vld [vmem:[%s2129_s9 + $0x50] ss:$8 sps:$4 sm:$0xff] (!%p351_p10)  }
  0x40   : > { %v1824_v46 = vld [vmem:[%s2129_s9 + $0x64] ss:$8 sps:$4 sm:$0xff] (!%p351_p10)   ;;  %v1826_v47 = vld [vmem:[%s2129_s9 + $0x60] ss:$8 sps:$4 sm:$0xff] (!%p351_p10)   ;;  %v1827_v48 = vld [vmem:[%s2129_s9 + $0x74] ss:$8 sps:$4 sm:$0xff] (!%p351_p10)  }
  0x41   : > { %v1829_v49 = vld [vmem:[%s2129_s9 + $0x70] ss:$8 sps:$4 sm:$0xff]   ;;  %v1830_v50 = vld [vmem:[%s2129_s9 + $0x84] ss:$8 sps:$4 sm:$0xff]   ;;  %v1832_v51 = vld [vmem:[%s2129_s9 + $0x80] ss:$8 sps:$4 sm:$0xff]  }
  0x42   : > { %773 = vmatpush1.bf16.msra.mxu0 %v1811_v37  ;;  %1751 = vmatpush1.bf16.msra.mxu1 %v1811_v37  ;;  %v1833_v52 = vld [vmem:[%s2129_s9 + $0x94] ss:$8 sps:$4 sm:$0xff]   ;;  %v1835_v53 = vld [vmem:[%s2129_s9 + $0x90] ss:$8 sps:$4 sm:$0xff]   ;;  %v1836_v54 = vld [vmem:[%s2129_s9 + $0xa4] ss:$8 sps:$4 sm:$0xff]  }
  0x43   : > { %774 = vmatprep.subr.bf16.mxu0 %v1812_v38  ;;  %1736 = vmatprep.subr.bf16.mxu1 %v1812_v38  ;;  %v1838_v55 = vld [vmem:[%s2129_s9 + $0xa0] ss:$8 sps:$4 sm:$0xff]   ;;  %v1839_v56 = vld [vmem:[%s2129_s9 + $0xb4] ss:$8 sps:$4 sm:$0xff]   ;;  %v1841_v57 = vld [vmem:[%s2129_s9 + $0xb0] ss:$8 sps:$4 sm:$0xff]  }
  0x44   : > { %v1842_v58 = vld [vmem:[%s2129_s9 + $0xc4] ss:$8 sps:$4 sm:$0xff]   ;;  %v1844_v59 = vld [vmem:[%s2129_s9 + $0xc0] ss:$8 sps:$4 sm:$0xff]   ;;  %v1845_v60 = vld [vmem:[%s2129_s9 + $0xd4] ss:$8 sps:$4 sm:$0xff]  }
  0x45   : > { %v1847_v61 = vld [vmem:[%s2129_s9 + $0xd0] ss:$8 sps:$4 sm:$0xff]   ;;  %v1848_v62 = vld [vmem:[%s2129_s9 + $0xe4] ss:$8 sps:$4 sm:$0xff]   ;;  %v1850_v63 = vld [vmem:[%s2129_s9 + $0xe0] ss:$8 sps:$4 sm:$0xff]  }
  0x46   : > { %775 = vmatpush1.bf16.msra.mxu0 %v1814_v39  ;;  %1752 = vmatpush1.bf16.msra.mxu1 %v1814_v39  ;;  %v1851_v0 = vld [vmem:[%s2129_s9 + $0xf4] ss:$8 sps:$4 sm:$0xff]   ;;  %v1853_v1 = vld [vmem:[%s2129_s9 + $0xf0] ss:$8 sps:$4 sm:$0xff]   ;;  %v1866_v8 = vld [vmem:[%s2575_s0 + $0x24] ss:$8 sps:$4 sm:$0xff]  }
  0x47   : > { %776 = vmatprep.subr.bf16.mxu0 %v1815_v40  ;;  %1737 = vmatprep.subr.bf16.mxu1 %v1815_v40  ;;  %v1862_v5 = vld [vmem:[%s2575_s0 + $0x54] ss:$8 sps:$4 sm:$0xff]   ;;  %v1865_v7 = vld [vmem:[%s2575_s0 + $0x50] ss:$8 sps:$4 sm:$0xff]   ;;  %v1868_v9 = vld [vmem:[%s2575_s0 + $0x64] ss:$8 sps:$4 sm:$0xff]  }
  0x48   : > { %v1870_v10 = vld [vmem:[%s2575_s0 + $0x20] ss:$8 sps:$4 sm:$0xff]   ;;  %v1872_v12 = vld [vmem:[%s2575_s0 + $0x34] ss:$8 sps:$4 sm:$0xff]   ;;  %v1876_v14 = vld [vmem:[%s2575_s0 + $0x30] ss:$8 sps:$4 sm:$0xff]  }
  0x49   : > { %v1871_v11 = vld [vmem:[%s2575_s0 + $0x60] ss:$8 sps:$4 sm:$0xff]   ;;  %v1874_v13 = vld [vmem:[%s2575_s0 + $0x74] ss:$8 sps:$4 sm:$0xff]   ;;  %v1877_v15 = vld [vmem:[%s2575_s0 + $0x70] ss:$8 sps:$4 sm:$0xff]  }
  0x4a   : > { %777 = vmatpush1.bf16.msra.mxu0 %v1817_v41  ;;  %1753 = vmatpush1.bf16.msra.mxu1 %v1817_v41  ;;  %s2587_s28 = smov (!%p408_p11, %s1646_s28), 7  ;;  %v985_v17 = vshrl.u32 %v984_v16, 7  ;;  %s2329_s6 = sshll.u32 %s357_s30, 7 }
  0x4b   : > { %778 = vmatprep.subr.bf16.mxu0 %v1818_v42  ;;  %1738 = vmatprep.subr.bf16.mxu1 %v1818_v42  ;;  %s410_s5 = scalar_lea.vmem %s2577_s2, %s2587_s28  ;;  %s2350_s12 = scalar_lea.vmem [#allocation4], %s2329_s6 }
  0x4c   : > { %v986_v18 = vsub.s32 0, %v985_v17  ;;  %v982_v19 = vld [vmem:[%s410_s5] sm:$0x3]  ;;  %v990_v20 = vsub.s32 1, %v985_v17  ;;  %s1733_s30 = sshll.u32 (%p2037_p6), %s1972_s14, 3 }
  0x4d   : > { %s1438_s9 = scalar_lea.vmem (%p2037_p6), %s2578_s3, %s1733_s30 }
  0x4e   : > { %779 = vmatpush1.bf16.msra.mxu0 %v1820_v43  ;;  %1754 = vmatpush1.bf16.msra.mxu1 %v1820_v43  ;;  %v2209_v21 = vrot.slane %v982_v19, %v986_v18  ;;  %v2211_v22 = vrot.slane %v982_v19, %v990_v20 }
  0x4f   : > { %780 = vmatprep.subr.bf16.mxu0 %v1821_v44  ;;  %1739 = vmatprep.subr.bf16.mxu1 %v1821_v44 }
  0x52   : > { %781 = vmatpush1.bf16.msra.mxu0 %v1823_v45  ;;  %1755 = vmatpush1.bf16.msra.mxu1 %v1823_v45 }
  0x53   : > { %782 = vmatprep.subr.bf16.mxu0 %v1824_v46  ;;  %1740 = vmatprep.subr.bf16.mxu1 %v1824_v46 }
  0x56   : > { %783 = vmatpush1.bf16.msra.mxu0 %v1826_v47  ;;  %1756 = vmatpush1.bf16.msra.mxu1 %v1826_v47 }
  0x57   : > { %784 = vmatprep.subr.bf16.mxu0 %v1827_v48  ;;  %1741 = vmatprep.subr.bf16.mxu1 %v1827_v48 }
  0x5a   : > { %785 = vmatpush1.bf16.msra.mxu0 %v1829_v49  ;;  %1757 = vmatpush1.bf16.msra.mxu1 %v1829_v49 }
  0x5b   : > { %786 = vmatprep.subr.bf16.mxu0 %v1830_v50  ;;  %1742 = vmatprep.subr.bf16.mxu1 %v1830_v50 }
  0x5e   : > { %787 = vmatpush1.bf16.msra.mxu0 %v1832_v51  ;;  %1758 = vmatpush1.bf16.msra.mxu1 %v1832_v51 }
  0x5f   : > { %788 = vmatprep.subr.bf16.mxu0 %v1833_v52  ;;  %1743 = vmatprep.subr.bf16.mxu1 %v1833_v52 }
  0x62   : > { %789 = vmatpush1.bf16.msra.mxu0 %v1835_v53  ;;  %1759 = vmatpush1.bf16.msra.mxu1 %v1835_v53 }
  0x63   : > { %790 = vmatprep.subr.bf16.mxu0 %v1836_v54  ;;  %1744 = vmatprep.subr.bf16.mxu1 %v1836_v54 }
  0x66   : > { %791 = vmatpush1.bf16.msra.mxu0 %v1838_v55  ;;  %1760 = vmatpush1.bf16.msra.mxu1 %v1838_v55 }
  0x67   : > { %792 = vmatprep.subr.bf16.mxu0 %v1839_v56  ;;  %1745 = vmatprep.subr.bf16.mxu1 %v1839_v56 }
  0x6a   : > { %793 = vmatpush1.bf16.msra.mxu0 %v1841_v57  ;;  %1761 = vmatpush1.bf16.msra.mxu1 %v1841_v57 }
  0x6b   : > { %794 = vmatprep.subr.bf16.mxu0 %v1842_v58  ;;  %1746 = vmatprep.subr.bf16.mxu1 %v1842_v58 }
  0x6e   : > { %795 = vmatpush1.bf16.msra.mxu0 %v1844_v59  ;;  %1762 = vmatpush1.bf16.msra.mxu1 %v1844_v59 }
  0x6f   : > { %796 = vmatprep.subr.bf16.mxu0 %v1845_v60  ;;  %1747 = vmatprep.subr.bf16.mxu1 %v1845_v60 }
  0x72   : > { %797 = vmatpush1.bf16.msra.mxu0 %v1847_v61  ;;  %1763 = vmatpush1.bf16.msra.mxu1 %v1847_v61 }
  0x73   : > { %798 = vmatprep.subr.bf16.mxu0 %v1848_v62  ;;  %1748 = vmatprep.subr.bf16.mxu1 %v1848_v62 }
  0x76   : > { %799 = vmatpush1.bf16.msra.mxu0 %v1850_v63  ;;  %1764 = vmatpush1.bf16.msra.mxu1 %v1850_v63 }
  0x77   : > { %800 = vmatprep.subr.bf16.mxu0 %v1851_v0  ;;  %1749 = vmatprep.subr.bf16.mxu1 %v1851_v0 }
  0x7a   : > { %801 = vmatpush1.bf16.msra.mxu0 %v1853_v1  ;;  %1765 = vmatpush1.bf16.msra.mxu1 %v1853_v1 }
  0x7d   : > { %803 = vmatmul.mubr.bf16.vlgmr.msra.gmra.mrb[0].mxu0 %v1854_v2  ;;  %843 = vmatmul.mubr.bf16.vlgmr.msra.gmra.mrb[0].mxu1 %v1857_v3 }
  0x7e   : > { %812 = vmatprep.mubr.bf16.mxu0 %v1860_v4  ;;  %852 = vmatprep.mubr.bf16.mxu1 %v1862_v5 }
  0x85   : > { %813 = vmatmul.mubr.bf16.gmra.mrb[4].mxu0 %v1864_v6  ;;  %853 = vmatmul.mubr.bf16.gmra.mrb[4].mxu1 %v1865_v7 }
  0x86   : > { %822 = vmatprep.mubr.bf16.mxu0 %v1866_v8  ;;  %862 = vmatprep.mubr.bf16.mxu1 %v1868_v9 }
  0x8d   : > { %823 = vmatmul.mubr.bf16.gmra.mrb[8].mxu0 %v1870_v10  ;;  %863 = vmatmul.mubr.bf16.gmra.mrb[8].mxu1 %v1871_v11 }
  0x8e   : > { %832 = vmatprep.mubr.bf16.mxu0 %v1872_v12  ;;  %872 = vmatprep.mubr.bf16.mxu1 %v1874_v13 }
  0x95   : > { %833 = vmatmul.mubr.bf16.gmra.mrb[12].mxu0 %v1876_v14  ;;  %873 = vmatmul.mubr.bf16.gmra.mrb[12].mxu1 %v1877_v15 }
 0x150   : > { %v804_v23 = vpop.f32.mrb[0].mxu0  ;;  %v844_v24 = vpop.f32.mrb[0].mxu1 }
 0x151   : > { %v994_v25 = vadd.f32 %v2209_v21, %v804_v23  ;;  %v1010_v26 = vadd.f32 %v2209_v21, %v844_v24  ;;  %v806_v27 = vpop.f32.mrb[1].mxu0  ;;  %v846_v28 = vpop.f32.mrb[1].mxu1 }
 0x152   : > { %v2216_v29 = vadd.f32 %v2211_v22, %v806_v27  ;;  %v2219_v30 = vadd.f32 %v2211_v22, %v846_v28  ;;  %v808_v31 = vpop.f32.mrb[2].mxu0  ;;  %v848_v32 = vpop.f32.mrb[2].mxu1 }
 0x153   : > { %v1058_v33 = vmul.f32 %v994_v25, %v994_v25  ;;  %v1074_v34 = vmul.f32 %v1010_v26, %v1010_v26  ;;  %v810_v35 = vpop.f32.mrb[3].mxu0  ;;  %v850_v36 = vpop.f32.mrb[3].mxu1  ;;  %v2226_v41 = vadd.f32 %v2209_v21, %v808_v31  ;;  %v2229_v42 = vadd.f32 %v2209_v21, %v848_v32 }
 0x154   : > { %v1059_v37 = vmul.f32 %v2216_v29, %v2216_v29  ;;  %v1075_v38 = vmul.f32 %v2219_v30, %v2219_v30  ;;  %v2234_v45 = vadd.f32 %v2211_v22, %v810_v35  ;;  %v2239_v49 = vadd.f32 %v2211_v22, %v850_v36 }
 0x155   : > { %v1090_v39 = vmul.f32 %v1058_v33, %v994_v25  ;;  %v1106_v40 = vmul.f32 %v1074_v34, %v1010_v26  ;;  %v1060_v48 = vmul.f32 %v2226_v41, %v2226_v41  ;;  %v1076_v52 = vmul.f32 %v2229_v42, %v2229_v42 }
 0x156   : > { %v1091_v43 = vmul.f32 %v1059_v37, %v2216_v29  ;;  %v1107_v44 = vmul.f32 %v1075_v38, %v2219_v30  ;;  %v1061_v62 = vmul.f32 %v2234_v45, %v2234_v45  ;;  %v1077_v4 = vmul.f32 %v2239_v49, %v2239_v49 }
 0x157   : > { %v1122_v46 = vmul.f32 0.044715, %v1090_v39  ;;  %v1138_v47 = vmul.f32 0.044715, %v1106_v40  ;;  %v1092_v56 = vmul.f32 %v1060_v48, %v2226_v41  ;;  %v1108_v61 = vmul.f32 %v1076_v52, %v2229_v42 }
 0x158   : > { %v1123_v50 = vmul.f32 0.044715, %v1091_v43  ;;  %v1139_v51 = vmul.f32 0.044715, %v1107_v44  ;;  %v814_v53 = vpop.f32.mrb[4].mxu0  ;;  %v854_v57 = vpop.f32.mrb[4].mxu1  ;;  %v1093_v8 = vmul.f32 %v1061_v62, %v2234_v45  ;;  %v1109_v11 = vmul.f32 %v1077_v4, %v2239_v49 }
 0x159   : > { %v1154_v54 = vadd.f32 %v1122_v46, %v994_v25  ;;  %v1170_v55 = vadd.f32 %v1138_v47, %v1010_v26  ;;  %v816_v58 = vpop.f32.mrb[5].mxu0  ;;  %v856_v63 = vpop.f32.mrb[5].mxu1  ;;  %v1124_v3 = vmul.f32 0.044715, %v1092_v56  ;;  %v1140_v7 = vmul.f32 0.044715, %v1108_v61 }
 0x15a   : > { %v1155_v59 = vadd.f32 %v1123_v50, %v2216_v29  ;;  %v1171_v60 = vadd.f32 %v1139_v51, %v2219_v30  ;;  %v818_v0 = vpop.f32.mrb[6].mxu0  ;;  %v2252_v9 = vmul.f32 0.5, %v994_v25  ;;  %v858_v12 = vpop.f32.mrb[6].mxu1  ;;  %v1125_v15 = vmul.f32 0.044715, %v1093_v8 }
 0x15b   : > { %v1186_v1 = vmul.f32 0.7978846, %v1154_v54  ;;  %v1202_v2 = vmul.f32 0.7978846, %v1170_v55  ;;  %v1156_v10 = vadd.f32 %v1124_v3, %v2226_v41  ;;  %v820_v13 = vpop.f32.mrb[7].mxu0  ;;  %v1172_v14 = vadd.f32 %v1140_v7, %v2229_v42  ;;  %v2260_v17 = vpop.f32.mrb[7].mxu1 }
 0x15c   : > { %v1187_v5 = vmul.f32 0.7978846, %v1155_v59  ;;  %v1203_v6 = vmul.f32 0.7978846, %v1171_v60  ;;  %v2258_v16 = vadd.f32 %v2209_v21, %v814_v53  ;;  %v1141_v19 = vmul.f32 0.044715, %v1109_v11 }
 0x15d   : > { %1878 = vtanh.f32 %v1186_v1  ;;  %v1188_v18 = vmul.f32 0.7978846, %v1156_v10  ;;  %v2263_v20 = vadd.f32 %v2209_v21, %v854_v57  ;;  %v1042_v23 = vmul.f32 0.5, %v1010_v26 }
 0x15e   : > { %1880 = vtanh.f32 %v1202_v2  ;;  %v1204_v24 = vmul.f32 0.7978846, %v1172_v14  ;;  %v1157_v25 = vadd.f32 %v1125_v15, %v2234_v45  ;;  %v2271_v31 = vmul.f32 0.5, %v2216_v29 }
 0x15f   : > { %1882 = vtanh.f32 %v1187_v5  ;;  %v1173_v32 = vadd.f32 %v1141_v19, %v2239_v49  ;;  %v1062_v33 = vmul.f32 %v2258_v16, %v2258_v16  ;;  %v1078_v36 = vmul.f32 %v2263_v20, %v2263_v20 }
 0x160   : > { %1884 = vtanh.f32 %v1203_v6  ;;  %v2266_v27 = vpop.f32.mrb[8].mxu0  ;;  %v2268_v28 = vpop.f32.mrb[8].mxu1  ;;  %v1189_v35 = vmul.f32 0.7978846, %v1157_v25  ;;  %v2283_v37 = vadd.f32 %v2211_v22, %v816_v58  ;;  %v2291_v43 = vadd.f32 %v2211_v22, %v856_v63 }
 0x161   : > { %1886 = vtanh.f32 %v1188_v18  ;;  %v2276_v34 = vpop.f32.mrb[9].mxu0  ;;  %v2278_v26 = vpop.f32.mrb[9].mxu1  ;;  %v1205_v39 = vmul.f32 0.7978846, %v1173_v32  ;;  %v1094_v40 = vmul.f32 %v1062_v33, %v2258_v16  ;;  %v2294_v44 = vadd.f32 %v2209_v21, %v818_v0 }
 0x162   : > { %1888 = vtanh.f32 %v1204_v24  ;;  %v2285_v29 = vpop.f32.mrb[10].mxu0  ;;  %v2287_v38 = vpop.f32.mrb[10].mxu1  ;;  %v1043_v48 = vmul.f32 0.5, %v2219_v30  ;;  %v1110_v50 = vmul.f32 %v1078_v36, %v2263_v20  ;;  %v1063_v51 = vmul.f32 %v2283_v37, %v2283_v37 }
 0x163   : > { %v2296_v46 = vpop.f32.mrb[11].mxu0  ;;  %v2298_v47 = vpop.f32.mrb[11].mxu1  ;;  %1890 = vtanh.f32 %v1189_v35  ;;  %v1028_v52 = vmul.f32 0.5, %v2226_v41  ;;  %v1126_v53 = vmul.f32 0.044715, %v1094_v40  ;;  %v1079_v54 = vmul.f32 %v2291_v43, %v2291_v43 }
 0x164   : > { %1892 = vtanh.f32 %v1205_v39  ;;  %v1044_v55 = vmul.f32 0.5, %v2229_v42  ;;  %v1142_v56 = vmul.f32 0.044715, %v1110_v50  ;;  %v1095_v57 = vmul.f32 %v1063_v51, %v2283_v37 }
 0x165   : > { %v1064_v30 = vmul.f32 %v2294_v44, %v2294_v44  ;;  %v1029_v59 = vmul.f32 0.5, %v2234_v45  ;;  %v1158_v60 = vadd.f32 %v1126_v53, %v2258_v16  ;;  %v1111_v41 = vmul.f32 %v1079_v54, %v2291_v43 }
 0x166   : > { %v2315_v61 = vadd.f32 %v2209_v21, %v858_v12  ;;  %v1174_v42 = vadd.f32 %v1142_v56, %v2263_v20  ;;  %v1127_v0 = vmul.f32 0.044715, %v1095_v57  ;;  %v2319_v1 = vadd.f32 %v2211_v22, %v820_v13 }
 0x167   : > { %v1879_v58 = vpop.eup %1878  ;;  %v1190_v5 = vmul.f32 0.7978846, %v1158_v60  ;;  %v1143_v6 = vmul.f32 0.044715, %v1111_v41  ;;  %v1096_v7 = vmul.f32 %v1064_v30, %v2294_v44  ;;  %v1045_v30 = vmul.f32 0.5, %v2239_v49 }
 0x168   : > { %v1881_v62 = vpop.eup %1880  ;;  %v1250_v63 = vadd.f32 1.0, %v1879_v58  ;;  %v2321_v2 = vpop.f32.mrb[12].mxu0  ;;  %v1206_v12 = vmul.f32 0.7978846, %v1174_v42  ;;  %v1159_v13 = vadd.f32 %v1127_v0, %v2283_v37 }
 0x169   : > { %v2323_v3 = vpop.f32.mrb[12].mxu1  ;;  %v1883_v45 = vpop.eup %1882  ;;  %v1266_v4 = vadd.f32 1.0, %v1881_v62  ;;  %1894 = vtanh.f32 %v1190_v5  ;;  %v1175_v25 = vadd.f32 %v1143_v6, %v2291_v43  ;;  %v1128_v54 = vmul.f32 0.044715, %v1096_v7 }
 0x16a   : > { %v1885_v8 = vpop.eup %1884  ;;  %v1282_v10 = vmul.f32 %v1250_v63, %v2252_v9  ;;  %v1251_v11 = vadd.f32 1.0, %v1883_v45  ;;  %v2332_v14 = vpop.f32.mrb[13].mxu0  ;;  %1896 = vtanh.f32 %v1206_v12  ;;  %v1191_v39 = vmul.f32 0.7978846, %v1159_v13 }
 0x16b   : > { %v2334_v15 = vpop.f32.mrb[13].mxu1  ;;  %v1887_v18 = vpop.eup %1886  ;;  %v1298_v19 = vmul.f32 %v1266_v4, %v1042_v23  ;;  %v1267_v24 = vadd.f32 1.0, %v1885_v8  ;;  %v1207_v53 = vmul.f32 0.7978846, %v1175_v25  ;;  %v1160_v42 = vadd.f32 %v1128_v54, %v2294_v44 }
 0x16c   : > { %v2337_v32 = vpop.f32.mrb[14].mxu0  ;;  %v2339_v9 = vpop.f32.mrb[14].mxu1  ;;  %v1283_v35 = vmul.f32 %v1251_v11, %v2271_v31  ;;  %v1252_v36 = vadd.f32 1.0, %v1887_v18  ;;  %1898 = vtanh.f32 %v1191_v39  ;;  %v1080_v31 = vmul.f32 %v2315_v61, %v2315_v61 }
 0x16d   : > { %v1889_v33 = vpop.eup %1888  ;;  %v2342_v40 = vpop.f32.mrb[15].mxu0  ;;  %v1299_v23 = vmul.f32 %v1267_v24, %v1043_v48  ;;  %1900 = vtanh.f32 %v1207_v53  ;;  %v1065_v45 = vmul.f32 %v2319_v1, %v2319_v1  ;;  %v2364_v4 = vadd.f32 %v2209_v21, %v2266_v27 }
 0x16e   : > { %v2344_v50 = vpop.f32.mrb[15].mxu1  ;;  %v1268_v51 = vadd.f32 1.0, %v1889_v33  ;;  %v1891_v56 = vpop.eup %1890  ;;  %v1717_v57 = vpack.c.bf16 %v1283_v35, %v1282_v10  ;;  %v1284_v41 = vmul.f32 %v1252_v36, %v1028_v52  ;;  %v1112_v49 = vmul.f32 %v1080_v31, %v2315_v61 }
 0x16f   : > { %v1893_v58 = vpop.eup %1892  ;;  %v1725_v60 = vpack.c.bf16 %v1299_v23, %v1298_v19  ;;  %v1253_v62 = vadd.f32 1.0, %v1891_v56  ;;  %v2360_v52 = vadd.f32 %v2211_v22, %v2260_v17  ;;  %v1192_v5 = vmul.f32 0.7978846, %v1160_v42 }
 0x170   : > { %1410 = vst [vmem:[%s2350_s12] sm:$0xff] %v1717_v57  ;;  %v1300_v48 = vmul.f32 %v1268_v51, %v1044_v55  ;;  %v1269_v63 = vadd.f32 1.0, %v1893_v58  ;;  %v1144_v6 = vmul.f32 0.044715, %v1112_v49  ;;  %v2368_v7 = vadd.f32 %v2209_v21, %v2268_v28 }
 0x171   : > { %1418 = vst [vmem:[%s2350_s12 + $0x40] sm:$0xff] %v1725_v60  ;;  %v1285_v0 = vmul.f32 %v1253_v62, %v1029_v59  ;;  %v1030_v8 = vmul.f32 0.5, %v2258_v16  ;;  %v1097_v10 = vmul.f32 %v1065_v45, %v2319_v1  ;;  %v1081_v17 = vmul.f32 %v2360_v52, %v2360_v52 }
 0x172   : > { %v1301_v55 = vmul.f32 %v1269_v63, %v1045_v30  ;;  %v1046_v27 = vmul.f32 0.5, %v2263_v20  ;;  %1902 = vtanh.f32 %v1192_v5  ;;  %v1176_v12 = vadd.f32 %v1144_v6, %v2315_v61 }
 0x173   : > { %v1718_v59 = vpack.c.bf16 %v1285_v0, %v1284_v41  ;;  %v1895_v13 = vpop.eup %1894  ;;  %v1031_v28 = vmul.f32 0.5, %v2283_v37  ;;  %v1129_v18 = vmul.f32 0.044715, %v1097_v10  ;;  %v1113_v19 = vmul.f32 %v1081_v17, %v2360_v52 }
 0x174   : > { %v1726_v11 = vpack.c.bf16 %v1301_v55, %v1300_v48  ;;  %v1066_v16 = vmul.f32 %v2364_v4, %v2364_v4  ;;  %v1897_v24 = vpop.eup %1896  ;;  %v1254_v25 = vadd.f32 1.0, %v1895_v13  ;;  %v1208_v33 = vmul.f32 0.7978846, %v1176_v12 }
 0x175   : > { %1411 = vst [vmem:[%s2350_s12 + $0x8] sm:$0xff] %v1718_v59  ;;  %v1082_v20 = vmul.f32 %v2368_v7, %v2368_v7  ;;  %v2386_v35 = vadd.f32 %v2211_v22, %v2276_v34  ;;  %v1270_v36 = vadd.f32 1.0, %v1897_v24  ;;  %v1161_v37 = vadd.f32 %v1129_v18, %v2319_v1 }
 0x176   : > { %1419 = vst [vmem:[%s2350_s12 + $0x48] sm:$0xff] %v1726_v11  ;;  %v1145_v39 = vmul.f32 0.044715, %v1113_v19  ;;  %v1098_v23 = vmul.f32 %v1066_v16, %v2364_v4  ;;  %v1899_v51 = vpop.eup %1898  ;;  %v1286_v53 = vmul.f32 %v1254_v25, %v1030_v8  ;;  %v1047_v54 = vmul.f32 0.5, %v2291_v43 }
 0x177   : > { %1904 = vtanh.f32 %v1208_v33  ;;  %v1114_v56 = vmul.f32 %v1082_v20, %v2368_v7  ;;  %v1901_v57 = vpop.eup %1900  ;;  %v1302_v30 = vmul.f32 %v1270_v36, %v1046_v27  ;;  %v1255_v31 = vadd.f32 1.0, %v1899_v51 }
 0x178   : > { %v1193_v58 = vmul.f32 0.7978846, %v1161_v37  ;;  %v1177_v34 = vadd.f32 %v1145_v39, %v2360_v52  ;;  %v1271_v60 = vadd.f32 1.0, %v1901_v57  ;;  %v1130_v41 = vmul.f32 0.044715, %v1098_v23 }
 0x179   : > { %v1146_v62 = vmul.f32 0.044715, %v1114_v56  ;;  %v1067_v48 = vmul.f32 %v2386_v35, %v2386_v35  ;;  %v1287_v63 = vmul.f32 %v1255_v31, %v1031_v28  ;;  %v2397_v43 = vadd.f32 %v2211_v22, %v2278_v26 }
 0x17a   : > { %1906 = vtanh.f32 %v1193_v58  ;;  %v1209_v42 = vmul.f32 0.7978846, %v1177_v34  ;;  %v1303_v49 = vmul.f32 %v1271_v60, %v1047_v54  ;;  %v1162_v0 = vadd.f32 %v1130_v41, %v2364_v4 }
 0x17b   : > { %v1178_v45 = vadd.f32 %v1146_v62, %v2368_v7  ;;  %v1099_v55 = vmul.f32 %v1067_v48, %v2386_v35  ;;  %v1719_v5 = vpack.c.bf16 %v1287_v63, %v1286_v53  ;;  %v1032_v6 = vmul.f32 0.5, %v2294_v44 }
 0x17c   : > { %1908 = vtanh.f32 %v1209_v42  ;;  %v1083_v59 = vmul.f32 %v2397_v43, %v2397_v43  ;;  %v1903_v8 = vpop.eup %1902  ;;  %v1727_v10 = vpack.c.bf16 %v1303_v49, %v1302_v30  ;;  %v1194_v17 = vmul.f32 0.7978846, %v1162_v0 }
 0x17d   : > { %v1210_v26 = vmul.f32 0.7978846, %v1178_v45  ;;  %v1131_v11 = vmul.f32 0.044715, %v1099_v55  ;;  %1412 = vst [vmem:[%s2350_s12 + $0x10] sm:$0xff] %v1719_v5  ;;  %v1048_v27 = vmul.f32 0.5, %v2315_v61  ;;  %v2410_v13 = vadd.f32 %v2209_v21, %v2285_v29 }
 0x17e   : > { %v1115_v12 = vmul.f32 %v1083_v59, %v2397_v43  ;;  %v2414_v44 = vadd.f32 %v2209_v21, %v2287_v38  ;;  %1420 = vst [vmem:[%s2350_s12 + $0x50] sm:$0xff] %v1727_v10  ;;  %v1033_v28 = vmul.f32 0.5, %v2319_v1  ;;  %1910 = vtanh.f32 %v1194_v17 }
 0x17f   : > { %v1163_v18 = vadd.f32 %v1131_v11, %v2386_v35  ;;  %v2421_v19 = vadd.f32 %v2211_v22, %v2296_v46  ;;  %v1256_v61 = vadd.f32 1.0, %v1903_v8  ;;  %1912 = vtanh.f32 %v1210_v26 }
 0x180   : > { %v1147_v16 = vmul.f32 0.044715, %v1115_v12  ;;  %v2425_v29 = vadd.f32 %v2211_v22, %v2298_v47  ;;  %v1049_v38 = vmul.f32 0.5, %v2360_v52  ;;  %v1068_v1 = vmul.f32 %v2410_v13, %v2410_v13 }
 0x181   : > { %v1905_v24 = vpop.eup %1904  ;;  %v1195_v25 = vmul.f32 0.7978846, %v1163_v18  ;;  %v1084_v33 = vmul.f32 %v2414_v44, %v2414_v44  ;;  %v1034_v46 = vmul.f32 0.5, %v2364_v4  ;;  %v1069_v37 = vmul.f32 %v2421_v19, %v2421_v19 }
 0x182   : > { %v1272_v20 = vadd.f32 1.0, %v1905_v24  ;;  %v1179_v36 = vadd.f32 %v1147_v16, %v2397_v43  ;;  %v2437_v47 = vmul.f32 0.5, %v2368_v7  ;;  %v1100_v52 = vmul.f32 %v1068_v1, %v2410_v13 }
 0x183   : > { %1914 = vtanh.f32 %v1195_v25  ;;  %v1116_v39 = vmul.f32 %v1084_v33, %v2414_v44  ;;  %v1288_v51 = vmul.f32 %v1256_v61, %v1032_v6  ;;  %v1101_v54 = vmul.f32 %v1069_v37, %v2421_v19 }
 0x184   : > { %v1907_v23 = vpop.eup %1906  ;;  %v1211_v53 = vmul.f32 0.7978846, %v1179_v36  ;;  %v1085_v4 = vmul.f32 %v2425_v29, %v2425_v29  ;;  %v1132_v57 = vmul.f32 0.044715, %v1100_v52  ;;  %v2446_v7 = vadd.f32 %v2209_v21, %v2321_v2 }
 0x185   : > { %v1257_v56 = vadd.f32 1.0, %v1907_v23  ;;  %v1148_v30 = vmul.f32 0.044715, %v1116_v39  ;;  %v1304_v58 = vmul.f32 %v1272_v20, %v1048_v27  ;;  %v1133_v34 = vmul.f32 0.044715, %v1101_v54 }
 0x186   : > { %v1909_v31 = vpop.eup %1908  ;;  %1916 = vtanh.f32 %v1211_v53  ;;  %v1117_v60 = vmul.f32 %v1085_v4, %v2425_v29  ;;  %v1164_v48 = vadd.f32 %v1132_v57, %v2410_v13  ;;  %v1070_v2 = vmul.f32 %v2446_v7, %v2446_v7 }
 0x187   : > { %v1289_v41 = vmul.f32 %v1257_v56, %v1033_v28  ;;  %v1273_v62 = vadd.f32 1.0, %v1909_v31  ;;  %v1180_v63 = vadd.f32 %v1148_v30, %v2414_v44  ;;  %v1165_v42 = vadd.f32 %v1133_v34, %v2421_v19 }
 0x188   : > { %v1149_v49 = vmul.f32 0.044715, %v1117_v60  ;;  %v2456_v0 = vadd.f32 %v2209_v21, %v2323_v3  ;;  %v1911_v45 = vpop.eup %1910  ;;  %v1196_v6 = vmul.f32 0.7978846, %v1164_v48  ;;  %v1102_v11 = vmul.f32 %v1070_v2, %v2446_v7 }
 0x189   : > { %v1720_v55 = vpack.c.bf16 %v1289_v41, %v1288_v51  ;;  %v1305_v5 = vmul.f32 %v1273_v62, %v1049_v38  ;;  %v1212_v59 = vmul.f32 0.7978846, %v1180_v63  ;;  %v1913_v8 = vpop.eup %1912  ;;  %v1258_v10 = vadd.f32 1.0, %v1911_v45 }
 0x18a   : > { %v1197_v17 = vmul.f32 0.7978846, %v1165_v42  ;;  %v1181_v26 = vadd.f32 %v1149_v49, %v2425_v29  ;;  %v1035_v12 = vmul.f32 0.5, %v2386_v35  ;;  %v1051_v3 = vmul.f32 0.5, %v2397_v43 }
 0x18b   : > { %1413 = vst [vmem:[%s2350_s12 + $0x18] sm:$0xff] %v1720_v55  ;;  %v1728_v27 = vpack.c.bf16 %v1305_v5, %v1304_v58  ;;  %1918 = vtanh.f32 %v1196_v6  ;;  %v1274_v28 = vadd.f32 1.0, %v1913_v8  ;;  %v1134_v61 = vmul.f32 0.044715, %v1102_v11 }
 0x18c   : > { %1920 = vtanh.f32 %v1212_v59  ;;  %v1213_v18 = vmul.f32 0.7978846, %v1181_v26  ;;  %v1290_v24 = vmul.f32 %v1258_v10, %v1034_v46  ;;  %v1086_v38 = vmul.f32 %v2456_v0, %v2456_v0 }
 0x18d   : > { %v1915_v16 = vpop.eup %1914  ;;  %1421 = vst [vmem:[%s2350_s12 + $0x58] sm:$0xff] %v1728_v27  ;;  %1922 = vtanh.f32 %v1197_v17  ;;  %v2468_v25 = vadd.f32 %v2211_v22, %v2332_v14  ;;  %v1166_v35 = vadd.f32 %v1134_v61, %v2446_v7  ;;  %v2473_v43 = vadd.f32 %v2211_v22, %v2334_v15 }
 0x18e   : > { %v1259_v1 = vadd.f32 1.0, %v1915_v16  ;;  %1924 = vtanh.f32 %v1213_v18  ;;  %v1036_v33 = vmul.f32 0.5, %v2410_v13  ;;  %v1118_v20 = vmul.f32 %v1086_v38, %v2456_v0 }
 0x18f   : > { %v1071_v46 = vmul.f32 %v2468_v25, %v2468_v25  ;;  %v2481_v36 = vadd.f32 %v2209_v21, %v2337_v32  ;;  %v1052_v52 = vmul.f32 0.5, %v2414_v44  ;;  %v1198_v39 = vmul.f32 0.7978846, %v1166_v35 }
 0x190   : > { %v1917_v14 = vpop.eup %1916  ;;  %v1291_v37 = vmul.f32 %v1259_v1, %v1035_v12  ;;  %v1087_v15 = vmul.f32 %v2473_v43, %v2473_v43  ;;  %v1306_v13 = vmul.f32 %v1274_v28, %v2437_v47  ;;  %v1150_v51 = vmul.f32 0.044715, %v1118_v20 }
 0x191   : > { %v1275_v23 = vadd.f32 1.0, %v1917_v14  ;;  %v1103_v53 = vmul.f32 %v1071_v46, %v2468_v25  ;;  %1926 = vtanh.f32 %v1198_v39  ;;  %v1072_v4 = vmul.f32 %v2481_v36, %v2481_v36 }
 0x192   : > { %v1721_v54 = vpack.c.bf16 %v1291_v37, %v1290_v24  ;;  %v1119_v32 = vmul.f32 %v1087_v15, %v2473_v43  ;;  %v1182_v44 = vadd.f32 %v1150_v51, %v2456_v0  ;;  %v2494_v30 = vadd.f32 %v2209_v21, %v2339_v9 }
 0x193   : > { %v1307_v56 = vmul.f32 %v1275_v23, %v1051_v3  ;;  %v1135_v57 = vmul.f32 0.044715, %v1103_v53  ;;  %v1037_v47 = vmul.f32 0.5, %v2421_v19  ;;  %v1053_v31 = vmul.f32 0.5, %v2425_v29 }
 0x194   : > { %1414 = vst [vmem:[%s2350_s12 + $0x20] sm:$0xff] %v1721_v54  ;;  %v1151_v58 = vmul.f32 0.044715, %v1119_v32  ;;  %v1104_v34 = vmul.f32 %v1072_v4, %v2481_v36  ;;  %v1214_v62 = vmul.f32 0.7978846, %v1182_v44  ;;  %v2503_v63 = vadd.f32 %v2211_v22, %v2342_v40 }
 0x195   : > { %v1919_v60 = vpop.eup %1918  ;;  %v1729_v41 = vpack.c.bf16 %v1307_v56, %v1306_v13  ;;  %v1167_v48 = vadd.f32 %v1135_v57, %v2468_v25  ;;  %v1088_v19 = vmul.f32 %v2494_v30, %v2494_v30  ;;  %v2511_v55 = vadd.f32 %v2211_v22, %v2344_v50 }
 0x196   : > { %v1921_v21 = vpop.eup %1920  ;;  %v1260_v9 = vadd.f32 1.0, %v1919_v60  ;;  %v1183_v42 = vadd.f32 %v1151_v58, %v2473_v43  ;;  %v1136_v49 = vmul.f32 0.044715, %v1104_v34  ;;  %1928 = vtanh.f32 %v1214_v62 }
 0x197   : > { %v1923_v29 = vpop.eup %1922  ;;  %1422 = vst [vmem:[%s2350_s12 + $0x60] sm:$0xff] %v1729_v41  ;;  %v1276_v2 = vadd.f32 1.0, %v1921_v21  ;;  %v1199_v45 = vmul.f32 0.7978846, %v1167_v48  ;;  %v1120_v26 = vmul.f32 %v1088_v19, %v2494_v30  ;;  %v1073_v22 = vmul.f32 %v2503_v63, %v2503_v63 }
 0x198   : > { %v1925_v5 = vpop.eup %1924  ;;  %v1292_v40 = vmul.f32 %v1260_v9, %v1036_v33  ;;  %v1261_v6 = vadd.f32 1.0, %v1923_v29  ;;  %v1215_v59 = vmul.f32 0.7978846, %v1183_v42  ;;  %v1168_v8 = vadd.f32 %v1136_v49, %v2481_v36 }
 0x199   : > { %v1308_v10 = vmul.f32 %v1276_v2, %v1052_v52  ;;  %v1277_v17 = vadd.f32 1.0, %v1925_v5  ;;  %1930 = vtanh.f32 %v1199_v45  ;;  %v1152_v12 = vmul.f32 0.044715, %v1120_v26  ;;  %v1514_v26 = vld [vmem:[%s2350_s12 + $0x48] sm:$0xff] (%p2037_p6) }
 0x19a   : > { %v1293_v11 = vmul.f32 %v1261_v6, %v1037_v47  ;;  %1932 = vtanh.f32 %v1215_v59  ;;  %v1200_v27 = vmul.f32 0.7978846, %v1168_v8  ;;  %v1089_v3 = vmul.f32 %v2511_v55, %v2511_v55  ;;  %1515 = vst [vmem:[%s1438_s9 + $0x120] sm:$0xff] (%p2037_p6), %v1514_v26 }
 0x19b   : > { %v1309_v50 = vmul.f32 %v1277_v17, %v1053_v31  ;;  %v1927_v28 = vpop.eup %1926  ;;  %v1105_v61 = vmul.f32 %v1073_v22, %v2503_v63  ;;  %v1184_v24 = vadd.f32 %v1152_v12, %v2494_v30  ;;  %v1038_v52 = vmul.f32 0.5, %v2446_v7  ;;  %v1504_v6 = vld [vmem:[%s2350_s12 + $0x20] sm:$0xff] (%p2037_p6) }
 0x19c   : > { %v1722_v18 = vpack.c.bf16 %v1293_v11, %v1292_v40  ;;  %v1121_v38 = vmul.f32 %v1089_v3, %v2511_v55  ;;  %1934 = vtanh.f32 %v1200_v27  ;;  %v1262_v20 = vadd.f32 1.0, %v1927_v28  ;;  %1505 = vst [vmem:[%s1438_s9 + $0x80] sm:$0xff] (%p2037_p6), %v1504_v6  ;;  %v1512_v17 = vld [vmem:[%s2350_s12 + $0x40] sm:$0xff] (%p2037_p6)  ;;  %v1516_v11 = vld [vmem:[%s2350_s12 + $0x50] sm:$0xff] (%p2037_p6)  ;;  %v1518_v27 = vld [vmem:[%s2350_s12 + $0x58] sm:$0xff] (%p2037_p6) }
 0x19d   : > { %v1730_v16 = vpack.c.bf16 %v1309_v50, %v1308_v10  ;;  %v1137_v1 = vmul.f32 0.044715, %v1105_v61  ;;  %v1216_v35 = vmul.f32 0.7978846, %v1184_v24  ;;  %v1054_v23 = vmul.f32 0.5, %v2456_v0  ;;  %1513 = vst [vmem:[%s1438_s9 + $0x100] sm:$0xff] (%p2037_p6), %v1512_v17 }
 0x19e   : > { %1415 = vst [vmem:[%s2350_s12 + $0x28] sm:$0xff] %v1722_v18  ;;  %v1153_v33 = vmul.f32 0.044715, %v1121_v38  ;;  %v1294_v54 = vmul.f32 %v1262_v20, %v1038_v52  ;;  %v1039_v32 = vmul.f32 0.5, %v2468_v25  ;;  %v1055_v44 = vmul.f32 0.5, %v2473_v43  ;;  %1517 = vst [vmem:[%s1438_s9 + $0x140] sm:$0xff] (%p2037_p6), %v1516_v11 }
 0x19f   : > { %1423 = vst [vmem:[%s2350_s12 + $0x68] sm:$0xff] %v1730_v16  ;;  %v1169_v46 = vadd.f32 %v1137_v1, %v2503_v63  ;;  %1936 = vtanh.f32 %v1216_v35  ;;  %v1040_v25 = vmul.f32 0.5, %v2481_v36  ;;  %v1056_v48 = vmul.f32 0.5, %v2494_v30  ;;  %v1496_v36 = vld [vmem:[%s2350_s12] sm:$0xff] (%p2037_p6)  ;;  %v1498_v30 = vld [vmem:[%s2350_s12 + $0x8] sm:$0xff] (%p2037_p6)  ;;  %1519 = vst [vmem:[%s1438_s9 + $0x160] sm:$0xff] (%p2037_p6), %v1518_v27 }
 0x1a0   : > { %v1929_v14 = vpop.eup %1928  ;;  %v1185_v37 = vadd.f32 %v1153_v33, %v2511_v55  ;;  %v1041_v9 = vmul.f32 0.5, %v2503_v63  ;;  %v1057_v19 = vmul.f32 0.5, %v2511_v55  ;;  %v1500_v63 = vld [vmem:[%s2350_s12 + $0x10] sm:$0xff] (%p2037_p6)  ;;  %v1502_v55 = vld [vmem:[%s2350_s12 + $0x18] sm:$0xff] (%p2037_p6)  ;;  %1497 = vst [vmem:[%s1438_s9] sm:$0xff] (%p2037_p6), %v1496_v36  ;;  %1499 = vst [vmem:[%s1438_s9 + $0x20] sm:$0xff] (%p2037_p6), %v1498_v30 }
 0x1a1   : > { %v1278_v39 = vadd.f32 1.0, %v1929_v14  ;;  %v1201_v15 = vmul.f32 0.7978846, %v1169_v46  ;;  %1501 = vst [vmem:[%s1438_s9 + $0x40] sm:$0xff] (%p2037_p6), %v1500_v63  ;;  %1503 = vst [vmem:[%s1438_s9 + $0x60] sm:$0xff] (%p2037_p6), %v1502_v55  ;;  %v1520_v22 = vld [vmem:[%s2350_s12 + $0x60] sm:$0xff] (%p2037_p6) }
 0x1a2   : > { %v1217_v51 = vmul.f32 0.7978846, %v1185_v37  ;;  %1521 = vst [vmem:[%s1438_s9 + $0x180] sm:$0xff] (%p2037_p6), %v1520_v22 }
 0x1a3   : > { %v1931_v13 = vpop.eup %1930  ;;  %1938 = vtanh.f32 %v1201_v15  ;;  %v1310_v56 = vmul.f32 %v1278_v39, %v1054_v23 }
 0x1a4   : > { %v1933_v53 = vpop.eup %1932  ;;  %v1263_v4 = vadd.f32 1.0, %v1931_v13  ;;  %1940 = vtanh.f32 %v1217_v51 }
 0x1a5   : > { %v1279_v57 = vadd.f32 1.0, %v1933_v53  ;;  %v1506_v59 = vld [vmem:[%s2350_s12 + $0x28] sm:$0xff] (%p2037_p6) }
 0x1a6   : > { %v1295_v7 = vmul.f32 %v1263_v4, %v1039_v32  ;;  %v1935_v31 = vpop.eup %1934  ;;  %1507 = vst [vmem:[%s1438_s9 + $0xa0] sm:$0xff] (%p2037_p6), %v1506_v59  ;;  %v1522_v50 = vld [vmem:[%s2350_s12 + $0x68] sm:$0xff] (%p2037_p6) }
 0x1a7   : > { %v1311_v47 = vmul.f32 %v1279_v57, %v1055_v44  ;;  %v1264_v60 = vadd.f32 1.0, %v1935_v31  ;;  %1523 = vst [vmem:[%s1438_s9 + $0x1a0] sm:$0xff] (%p2037_p6), %v1522_v50 }
 0x1a8   : > { %v1723_v58 = vpack.c.bf16 %v1295_v7, %v1294_v54 }
 0x1a9   : > { %v1731_v34 = vpack.c.bf16 %v1311_v47, %v1310_v56  ;;  %v1937_v0 = vpop.eup %1936  ;;  %v1296_v21 = vmul.f32 %v1264_v60, %v1040_v25 }
 0x1aa   : > { %1416 = vst [vmem:[%s2350_s12 + $0x30] sm:$0xff] %v1723_v58  ;;  %v1280_v41 = vadd.f32 1.0, %v1937_v0 }
 0x1ab   : > { %1424 = vst [vmem:[%s2350_s12 + $0x70] sm:$0xff] %v1731_v34 }
 0x1ac   : > { %v1312_v49 = vmul.f32 %v1280_v41, %v1056_v48 }
 0x1ad   : > { %v1939_v62 = vpop.eup %1938 }
 0x1ae   : > { %v1941_v43 = vpop.eup %1940  ;;  %v1265_v42 = vadd.f32 1.0, %v1939_v62 }
 0x1af   : > { %v1281_v29 = vadd.f32 1.0, %v1941_v43  ;;  %1432 = sbr.rel (!%p2037_p6) target bundleno = 446 (0x1be), region = 82 }
 0x1b0   : > { %v1297_v2 = vmul.f32 %v1265_v42, %v1041_v9 }
 0x1b1   : > { %v1313_v45 = vmul.f32 %v1281_v29, %v1057_v19  ;;  %v1508_v8 = vld [vmem:[%s2350_s12 + $0x30] sm:$0xff] (%p2037_p6) }
 0x1b2   : > { %v1724_v5 = vpack.c.bf16 %v1297_v2, %v1296_v21  ;;  %1509 = vst [vmem:[%s1438_s9 + $0xc0] sm:$0xff] (%p2037_p6), %v1508_v8  ;;  %v1524_v12 = vld [vmem:[%s2350_s12 + $0x70] sm:$0xff] (%p2037_p6) }
 0x1b3   : > { %v1732_v40 = vpack.c.bf16 %v1313_v45, %v1312_v49  ;;  %1525 = vst [vmem:[%s1438_s9 + $0x1c0] sm:$0xff] (%p2037_p6), %v1524_v12 }
 0x1b4   : > { %1417 = vst [vmem:[%s2350_s12 + $0x38] sm:$0xff] %v1724_v5 }
 0x1b5   : > { %1425 = vst [vmem:[%s2350_s12 + $0x78] sm:$0xff] %v1732_v40 }
 0x1bb   : > { %v1510_v10 = vld [vmem:[%s2350_s12 + $0x38] sm:$0xff] }
 0x1bc   : > { %1511 = vst [vmem:[%s1438_s9 + $0xe0] sm:$0xff] %v1510_v10  ;;  %v1526_v3 = vld [vmem:[%s2350_s12 + $0x78] sm:$0xff] }
 0x1bd   : > { %1527 = vst [vmem:[%s1438_s9 + $0x1e0] sm:$0xff] %v1526_v3 }
 0x1be PF: > { %s13_s16 = sadd.s32 1, %s1980_s16   ;;  %s2580_s12 = smov %s1968_s13 }
 0x1bf   : > { %p10_p12 = scmp.ge.s32.totalorder %s13_s16, 6   ;;  %s2581_s13 = smov %s2042_s22 }
 0x1c0   : > { %s2582_s14 = smov %s1976_s15  ;;  %s2583_s15 = smov %s2585_s17 }
 0x1c1   :  { %12 = sbr.rel (!%p10_p12) target bundleno = 3 (0x3), region = 157 }

// kernel: santacoder_forward.29
= control target key start
LH: loop header
LB: loop body
LE: loop exit
PB: predicated region body
PF: predicated region fallthrough
CT: control target
= control target key end

     0   :  { %11 = vsyncpa [#allocation3], 0  ;;  %s1296_s0 = inlined_call_operand.vmem [shape: f32[128,256], index: 0, kind: input, shape index: {}]   ;;  %s1297_s1 = inlined_call_operand.vmem [shape: f32[128,256], index: 1, kind: input, shape index: {}]   ;;  %s1298_s2 = inlined_call_operand.vmem [shape: f32[1,256], index: 2, kind: input, shape index: {}]   ;;  %s1299_s3 = inlined_call_operand.vmem [shape: f32[1,256], index: 3, kind: input, shape index: {}]   ;;  %s1300_s4 = inlined_call_operand.hbm [shape: f32[128,256], index: 4, kind: output, shape index: {0}]   ;;  %s1301_s5 = inlined_call_operand.hbm [shape: f32[128,256], index: 5, kind: output, shape index: {1}]  }
   0x1   :  { %v21_v0 = vld [vmem:[%s1296_s0] sm:$0xff]  ;;  %v22_v1 = vld [vmem:[%s1296_s0 + $0x8] sm:$0xff]  ;;  %v23_v10 = vld [vmem:[%s1296_s0 + $0x10] sm:$0xff] }
   0x2   :  { %v53_v2 = vld [vmem:[%s1297_s1] sm:$0xff]  ;;  %v54_v3 = vld [vmem:[%s1297_s1 + $0x8] sm:$0xff]  ;;  %v24_v13 = vld [vmem:[%s1296_s0 + $0x18] sm:$0xff] }
   0x3   :  { %v688_v4 = vadd.f32 %v53_v2, %v21_v0  ;;  %v25_v5 = vld [vmem:[%s1296_s0 + $0x20] sm:$0xff]  ;;  %v26_v6 = vld [vmem:[%s1296_s0 + $0x28] sm:$0xff]  ;;  %v696_v7 = vadd.f32 %v54_v3, %v22_v1  ;;  %v55_v14 = vld [vmem:[%s1297_s1 + $0x10] sm:$0xff] }
   0x4   :  { %v57_v8 = vld [vmem:[%s1297_s1 + $0x20] sm:$0xff]  ;;  %v58_v9 = vld [vmem:[%s1297_s1 + $0x28] sm:$0xff]  ;;  %v56_v15 = vld [vmem:[%s1297_s1 + $0x18] sm:$0xff]  ;;  %v724_v17 = vadd.f32 %v55_v14, %v23_v10 }
   0x5   :  { %494 = vst [vmem:[#allocation4] sm:$0xff] %v688_v4  ;;  %v708_v11 = vadd.f32 %v57_v8, %v25_v5  ;;  %v710_v12 = vadd.f32 %v58_v9, %v26_v6  ;;  %v117_v16 = vadd.f32 %v696_v7, %v688_v4  ;;  %495 = vst [vmem:[#allocation4 + $0x8] sm:$0xff] %v696_v7  ;;  %v27_v19 = vld [vmem:[%s1296_s0 + $0x30] sm:$0xff]  ;;  %v28_v20 = vld [vmem:[%s1296_s0 + $0x38] sm:$0xff] }
   0x6   :  { %v726_v18 = vadd.f32 %v56_v15, %v24_v13  ;;  %v59_v21 = vld [vmem:[%s1297_s1 + $0x30] sm:$0xff]  ;;  %v60_v23 = vld [vmem:[%s1297_s1 + $0x38] sm:$0xff]  ;;  %v29_v25 = vld [vmem:[%s1296_s0 + $0x40] sm:$0xff]  ;;  %496 = vst [vmem:[#allocation4 + $0x10] sm:$0xff] %v724_v17 }
   0x7   :  { %v123_v22 = vadd.f32 %v710_v12, %v708_v11  ;;  %498 = vst [vmem:[#allocation4 + $0x20] sm:$0xff] %v708_v11  ;;  %499 = vst [vmem:[#allocation4 + $0x28] sm:$0xff] %v710_v12  ;;  %v744_v24 = vadd.f32 %v59_v21, %v27_v19  ;;  %v30_v26 = vld [vmem:[%s1296_s0 + $0x48] sm:$0xff]  ;;  %118 = vadd.xlane.f32.xlu0 %v117_v16  ;;  %v756_v28 = vadd.f32 %v60_v23, %v28_v20  ;;  %v61_v29 = vld [vmem:[%s1297_s1 + $0x40] sm:$0xff] }
   0x8   :  { %v120_v27 = vadd.f32 %v726_v18, %v724_v17  ;;  %497 = vst [vmem:[#allocation4 + $0x18] sm:$0xff] %v726_v18  ;;  %v62_v30 = vld [vmem:[%s1297_s1 + $0x48] sm:$0xff]  ;;  %v31_v31 = vld [vmem:[%s1296_s0 + $0x50] sm:$0xff]  ;;  %v768_v32 = vadd.f32 %v61_v29, %v29_v25  ;;  %v32_v34 = vld [vmem:[%s1296_s0 + $0x58] sm:$0xff] }
   0x9   :  { %124 = vadd.xlane.f32.xlu1 %v123_v22  ;;  %500 = vst [vmem:[#allocation4 + $0x30] sm:$0xff] %v744_v24  ;;  %v770_v33 = vadd.f32 %v62_v30, %v30_v26  ;;  %v63_v35 = vld [vmem:[%s1297_s1 + $0x50] sm:$0xff]  ;;  %v64_v36 = vld [vmem:[%s1297_s1 + $0x58] sm:$0xff]  ;;  %v126_v37 = vadd.f32 %v756_v28, %v744_v24  ;;  %501 = vst [vmem:[#allocation4 + $0x38] sm:$0xff] %v756_v28 }
   0xa   :  { %v784_v38 = vadd.f32 %v63_v35, %v31_v31  ;;  %v786_v39 = vadd.f32 %v64_v36, %v32_v34  ;;  %v33_v40 = vld [vmem:[%s1296_s0 + $0x60] sm:$0xff]  ;;  %v34_v41 = vld [vmem:[%s1296_s0 + $0x68] sm:$0xff]  ;;  %502 = vst [vmem:[#allocation4 + $0x40] sm:$0xff] %v768_v32  ;;  %v35_v45 = vld [vmem:[%s1296_s0 + $0x70] sm:$0xff] }
   0xb   :  { %v65_v42 = vld [vmem:[%s1297_s1 + $0x60] sm:$0xff]  ;;  %503 = vst [vmem:[#allocation4 + $0x48] sm:$0xff] %v770_v33  ;;  %v66_v43 = vld [vmem:[%s1297_s1 + $0x68] sm:$0xff]  ;;  %v36_v46 = vld [vmem:[%s1296_s0 + $0x78] sm:$0xff]  ;;  %121 = vadd.xlane.f32.xlu0 %v120_v27  ;;  %v129_v47 = vadd.f32 %v770_v33, %v768_v32 }
   0xc   :  { %v802_v44 = vadd.f32 %v65_v42, %v33_v40  ;;  %504 = vst [vmem:[#allocation4 + $0x50] sm:$0xff] %v784_v38  ;;  %505 = vst [vmem:[#allocation4 + $0x58] sm:$0xff] %v786_v39  ;;  %v814_v48 = vadd.f32 %v66_v43, %v34_v41  ;;  %v67_v49 = vld [vmem:[%s1297_s1 + $0x70] sm:$0xff]  ;;  %v68_v50 = vld [vmem:[%s1297_s1 + $0x78] sm:$0xff]  ;;  %v132_v52 = vadd.f32 %v786_v39, %v784_v38 }
   0xd   :  { %v37_v51 = vld [vmem:[%s1296_s0 + $0x80] sm:$0xff]  ;;  %127 = vadd.xlane.f32.xlu1 %v126_v37  ;;  %v828_v53 = vadd.f32 %v67_v49, %v35_v45  ;;  %v830_v54 = vadd.f32 %v68_v50, %v36_v46  ;;  %v38_v55 = vld [vmem:[%s1296_s0 + $0x88] sm:$0xff]  ;;  %v39_v60 = vld [vmem:[%s1296_s0 + $0x90] sm:$0xff] }
   0xe   :  { %506 = vst [vmem:[#allocation4 + $0x60] sm:$0xff] %v802_v44  ;;  %v69_v56 = vld [vmem:[%s1297_s1 + $0x80] sm:$0xff]  ;;  %v70_v57 = vld [vmem:[%s1297_s1 + $0x88] sm:$0xff]  ;;  %507 = vst [vmem:[#allocation4 + $0x68] sm:$0xff] %v814_v48  ;;  %v135_v3 = vadd.f32 %v814_v48, %v802_v44 }
   0xf   :  { %v842_v58 = vadd.f32 %v69_v56, %v37_v51  ;;  %v844_v59 = vadd.f32 %v70_v57, %v38_v55  ;;  %v40_v61 = vld [vmem:[%s1296_s0 + $0x98] sm:$0xff]  ;;  %v71_v62 = vld [vmem:[%s1297_s1 + $0x90] sm:$0xff]  ;;  %508 = vst [vmem:[#allocation4 + $0x70] sm:$0xff] %v828_v53  ;;  %509 = vst [vmem:[#allocation4 + $0x78] sm:$0xff] %v830_v54  ;;  %130 = vadd.xlane.f32.xlu0 %v129_v47  ;;  %v138_v10 = vadd.f32 %v830_v54, %v828_v53 }
  0x10   :  { %v72_v63 = vld [vmem:[%s1297_s1 + $0x98] sm:$0xff]  ;;  %v860_v0 = vadd.f32 %v71_v62, %v39_v60  ;;  %v41_v1 = vld [vmem:[%s1296_s0 + $0xa0] sm:$0xff]  ;;  %v42_v2 = vld [vmem:[%s1296_s0 + $0xa8] sm:$0xff] }
  0x11   :  { %510 = vst [vmem:[#allocation4 + $0x80] sm:$0xff] %v842_v58  ;;  %511 = vst [vmem:[#allocation4 + $0x88] sm:$0xff] %v844_v59  ;;  %v872_v5 = vadd.f32 %v72_v63, %v40_v61  ;;  %v73_v6 = vld [vmem:[%s1297_s1 + $0xa0] sm:$0xff]  ;;  %v74_v8 = vld [vmem:[%s1297_s1 + $0xa8] sm:$0xff]  ;;  %133 = vadd.xlane.f32.xlu1 %v132_v52  ;;  %v141_v31 = vadd.f32 %v844_v59, %v842_v58 }
  0x12   :  { %v43_v9 = vld [vmem:[%s1296_s0 + $0xb0] sm:$0xff]  ;;  %512 = vst [vmem:[#allocation4 + $0x90] sm:$0xff] %v860_v0  ;;  %v886_v13 = vadd.f32 %v73_v6, %v41_v1  ;;  %v888_v14 = vadd.f32 %v74_v8, %v42_v2  ;;  %v44_v15 = vld [vmem:[%s1296_s0 + $0xb8] sm:$0xff]  ;;  %v45_v22 = vld [vmem:[%s1296_s0 + $0xc0] sm:$0xff] }
  0x13   :  { %v75_v16 = vld [vmem:[%s1297_s1 + $0xb0] sm:$0xff]  ;;  %v76_v19 = vld [vmem:[%s1297_s1 + $0xb8] sm:$0xff]  ;;  %513 = vst [vmem:[#allocation4 + $0x98] sm:$0xff] %v872_v5  ;;  %v46_v23 = vld [vmem:[%s1296_s0 + $0xc8] sm:$0xff]  ;;  %136 = vadd.xlane.f32.xlu0 %v135_v3  ;;  %v144_v40 = vadd.f32 %v872_v5, %v860_v0 }
  0x14   :  { %v900_v20 = vadd.f32 %v75_v16, %v43_v9  ;;  %v902_v21 = vadd.f32 %v76_v19, %v44_v15  ;;  %v77_v25 = vld [vmem:[%s1297_s1 + $0xc0] sm:$0xff]  ;;  %514 = vst [vmem:[#allocation4 + $0xa0] sm:$0xff] %v886_v13  ;;  %515 = vst [vmem:[#allocation4 + $0xa8] sm:$0xff] %v888_v14  ;;  %v78_v26 = vld [vmem:[%s1297_s1 + $0xc8] sm:$0xff] }
  0x15   :  { %v918_v27 = vadd.f32 %v77_v25, %v45_v22  ;;  %v47_v29 = vld [vmem:[%s1296_s0 + $0xd0] sm:$0xff]  ;;  %v48_v30 = vld [vmem:[%s1296_s0 + $0xd8] sm:$0xff]  ;;  %v930_v34 = vadd.f32 %v78_v26, %v46_v23  ;;  %v49_v37 = vld [vmem:[%s1296_s0 + $0xe0] sm:$0xff]  ;;  %139 = vadd.xlane.f32.xlu1 %v138_v10 }
  0x16   :  { %516 = vst [vmem:[#allocation4 + $0xb0] sm:$0xff] %v900_v20  ;;  %517 = vst [vmem:[#allocation4 + $0xb8] sm:$0xff] %v902_v21  ;;  %v79_v35 = vld [vmem:[%s1297_s1 + $0xd0] sm:$0xff]  ;;  %v80_v36 = vld [vmem:[%s1297_s1 + $0xd8] sm:$0xff] }
  0x17   :  { %518 = vst [vmem:[#allocation4 + $0xc0] sm:$0xff] %v918_v27  ;;  %v944_v41 = vadd.f32 %v79_v35, %v47_v29  ;;  %v946_v42 = vadd.f32 %v80_v36, %v48_v30  ;;  %v50_v43 = vld [vmem:[%s1296_s0 + $0xe8] sm:$0xff]  ;;  %v81_v45 = vld [vmem:[%s1297_s1 + $0xe0] sm:$0xff]  ;;  %519 = vst [vmem:[#allocation4 + $0xc8] sm:$0xff] %v930_v34 }
  0x18   :  { %v82_v46 = vld [vmem:[%s1297_s1 + $0xe8] sm:$0xff]  ;;  %v958_v47 = vadd.f32 %v81_v45, %v49_v37  ;;  %v51_v50 = vld [vmem:[%s1296_s0 + $0xf0] sm:$0xff]  ;;  %v52_v51 = vld [vmem:[%s1296_s0 + $0xf8] sm:$0xff] }
  0x19   :  { %v960_v49 = vadd.f32 %v82_v46, %v50_v43  ;;  %v83_v52 = vld [vmem:[%s1297_s1 + $0xf0] sm:$0xff]  ;;  %520 = vst [vmem:[#allocation4 + $0xd0] sm:$0xff] %v944_v41  ;;  %521 = vst [vmem:[#allocation4 + $0xd8] sm:$0xff] %v946_v42  ;;  %v84_v55 = vld [vmem:[%s1297_s1 + $0xf8] sm:$0xff] }
  0x1a   :  { %v976_v56 = vadd.f32 %v83_v52, %v51_v50 }
  0x1b   :  { %12 = vsyncpa [#allocation5], 0  ;;  %142 = vadd.xlane.f32.xlu0 %v141_v31  ;;  %v147_v57 = vadd.f32 %v888_v14, %v886_v13  ;;  %522 = vst [vmem:[#allocation4 + $0xe0] sm:$0xff] %v958_v47  ;;  %v982_v60 = vadd.f32 %v84_v55, %v52_v51  ;;  %145 = vadd.xlane.f32.xlu1 %v144_v40  ;;  %s642_s0 = smov [#allocation4]  }
  0x1c   :  { %523 = vst [vmem:[#allocation4 + $0xe8] sm:$0xff] %v960_v49  ;;  %v150_v61 = vadd.f32 %v902_v21, %v900_v20  ;;  %524 = vst [vmem:[#allocation4 + $0xf0] sm:$0xff] %v976_v56  ;;  %v153_v62 = vadd.f32 %v930_v34, %v918_v27  ;;  %v156_v63 = vadd.f32 %v946_v42, %v944_v41  ;;  %s543_s1 = sshll.u32 %s642_s0, 4  ;;  %s544_s1 = int_to_ptr.vmem [resolvable:$true] %s543_s1 }
  0x1d   :  { %525 = vst [vmem:[#allocation4 + $0xf8] sm:$0xff] %v982_v60  ;;  %v159_v1 = vadd.f32 %v960_v49, %v958_v47  ;;  %v162_v2 = vadd.f32 %v982_v60, %v976_v56  ;;  %s594_s21 = scalar_lea.vmem %s544_s1, 4096  ;;  %p599_p1 = scmp.lt.s32.totalorder %s544_s1, %s544_s1 }
  0x1e   :  { %p595_p0 = scmp.ne.s32.totalorder %s544_s1, %s594_s21  ;;  %p600_p2 = scmp.lt.s32.totalorder %s594_s21, %s594_s21 }
  0x1f   :  { %148 = vadd.xlane.f32.xlu0 %v147_v57  ;;  %151 = vadd.xlane.f32.xlu1 %v150_v61 }
  0x20   :  { %p601_p3 = por %p600_p2, %p599_p1 }
  0x22   :  { %p602_p4 = pnand %p601_p3, %p595_p0 }
  0x23   :  { %154 = vadd.xlane.f32.xlu0 %v153_v62  ;;  %157 = vadd.xlane.f32.xlu1 %v156_v63 }
  0x27   :  { %160 = vadd.xlane.f32.xlu0 %v159_v1  ;;  %163 = vadd.xlane.f32.xlu1 %v162_v2 }
  0x94   :  { %v119_v3 = vpop.xlane.xlu0 %118 }
  0x95   :  { %v166_v6 = vmul.f32 0.00390625, %v119_v3 }
  0x96   :  { %v125_v8 = vpop.xlane.xlu1 %124 }
  0x97   :  { %v168_v9 = vmul.f32 0.00390625, %v125_v8  ;;  %v997_v10 = vsub.f32 %v688_v4, %v166_v6  ;;  %v1000_v15 = vsub.f32 %v696_v7, %v166_v6 }
  0x98   :  { %v122_v22 = vpop.xlane.xlu0 %121 }
  0x99   :  { %v1003_v16 = vsub.f32 %v708_v11, %v168_v9  ;;  %v1006_v19 = vsub.f32 %v710_v12, %v168_v9  ;;  %v167_v23 = vmul.f32 0.00390625, %v122_v22  ;;  %v214_v26 = vmul.f32 %v997_v10, %v997_v10 }
  0x9a   :  { %v128_v25 = vpop.xlane.xlu1 %127  ;;  %v215_v29 = vmul.f32 %v1000_v15, %v1000_v15 }
  0x9b   :  { %v169_v4 = vmul.f32 0.00390625, %v128_v25  ;;  %v218_v7 = vmul.f32 %v1003_v16, %v1003_v16  ;;  %v219_v11 = vmul.f32 %v1006_v19, %v1006_v19  ;;  %v1017_v30 = vsub.f32 %v724_v17, %v167_v23 }
  0x9c   :  { %v1020_v12 = vsub.f32 %v726_v18, %v167_v23  ;;  %v246_v31 = vadd.f32 %v215_v29, %v214_v26  ;;  %v131_v37 = vpop.xlane.xlu0 %130 }
  0x9d   :  { %v1023_v35 = vsub.f32 %v744_v24, %v169_v4  ;;  %v1026_v36 = vsub.f32 %v756_v28, %v169_v4  ;;  %v170_v40 = vmul.f32 0.00390625, %v131_v37  ;;  %v252_v45 = vadd.f32 %v219_v11, %v218_v7 }
  0x9e   :  { %247 = vadd.xlane.f32.xlu0 %v246_v31  ;;  %v134_v43 = vpop.xlane.xlu1 %133  ;;  %v216_v46 = vmul.f32 %v1017_v30, %v1017_v30  ;;  %v217_v17 = vmul.f32 %v1020_v12, %v1020_v12 }
  0x9f   :  { %v171_v18 = vmul.f32 0.00390625, %v134_v43  ;;  %v220_v50 = vmul.f32 %v1023_v35, %v1023_v35  ;;  %v221_v24 = vmul.f32 %v1026_v36, %v1026_v36  ;;  %v1037_v28 = vsub.f32 %v768_v32, %v170_v40 }
  0xa0   :  { %v1040_v51 = vsub.f32 %v770_v33, %v170_v40  ;;  %v249_v52 = vadd.f32 %v217_v17, %v216_v46  ;;  %v137_v61 = vpop.xlane.xlu0 %136 }
  0xa1   :  { %v1043_v55 = vsub.f32 %v784_v38, %v171_v18  ;;  %v1046_v57 = vsub.f32 %v786_v39, %v171_v18  ;;  %v172_v62 = vmul.f32 0.00390625, %v137_v61  ;;  %v255_v1 = vadd.f32 %v221_v24, %v220_v50 }
  0xa2   :  { %253 = vadd.xlane.f32.xlu0 %v252_v45  ;;  %250 = vadd.xlane.f32.xlu1 %v249_v52  ;;  %v140_v63 = vpop.xlane.xlu1 %139  ;;  %v222_v32 = vmul.f32 %v1037_v28, %v1037_v28  ;;  %v223_v33 = vmul.f32 %v1040_v51, %v1040_v51 }
  0xa3   :  { %v173_v2 = vmul.f32 0.00390625, %v140_v63  ;;  %v224_v38 = vmul.f32 %v1043_v55, %v1043_v55  ;;  %v225_v39 = vmul.f32 %v1046_v57, %v1046_v57  ;;  %v1057_v3 = vsub.f32 %v802_v44, %v172_v62 }
  0xa4   :  { %v1060_v6 = vsub.f32 %v814_v48, %v172_v62  ;;  %v258_v8 = vadd.f32 %v223_v33, %v222_v32 }
  0xa5   :  { %v1063_v9 = vsub.f32 %v828_v53, %v173_v2  ;;  %v1066_v22 = vsub.f32 %v830_v54, %v173_v2  ;;  %v261_v29 = vadd.f32 %v225_v39, %v224_v38  ;;  %v226_v44 = vmul.f32 %v1057_v3, %v1057_v3 }
  0xa6   :  { %256 = vadd.xlane.f32.xlu1 %v255_v1  ;;  %259 = vadd.xlane.f32.xlu0 %v258_v8  ;;  %v227_v48 = vmul.f32 %v1060_v6, %v1060_v6 }
  0xa7   :  { %v228_v53 = vmul.f32 %v1063_v9, %v1063_v9  ;;  %v229_v54 = vmul.f32 %v1066_v22, %v1066_v22 }
  0xa8   :  { %v143_v23 = vpop.xlane.xlu0 %142  ;;  %v146_v26 = vpop.xlane.xlu1 %145  ;;  %v264_v31 = vadd.f32 %v227_v48, %v226_v44 }
  0xa9   :  { %v174_v25 = vmul.f32 0.00390625, %v143_v23  ;;  %v175_v4 = vmul.f32 0.00390625, %v146_v26  ;;  %v267_v17 = vadd.f32 %v229_v54, %v228_v53 }
  0xaa   :  { %262 = vadd.xlane.f32.xlu1 %v261_v29  ;;  %265 = vadd.xlane.f32.xlu0 %v264_v31 }
  0xab   :  { %v1077_v7 = vsub.f32 %v842_v58, %v174_v25  ;;  %v1080_v11 = vsub.f32 %v844_v59, %v174_v25  ;;  %v1083_v37 = vsub.f32 %v860_v0, %v175_v4  ;;  %v1086_v40 = vsub.f32 %v872_v5, %v175_v4 }
  0xac   :  { %v149_v43 = vpop.xlane.xlu0 %148  ;;  %v152_v46 = vpop.xlane.xlu1 %151 }
  0xad   :  { %v176_v45 = vmul.f32 0.00390625, %v149_v43  ;;  %v230_v58 = vmul.f32 %v1077_v7, %v1077_v7  ;;  %v231_v59 = vmul.f32 %v1080_v11, %v1080_v11  ;;  %v177_v18 = vmul.f32 0.00390625, %v152_v46 }
  0xae   :  { %v232_v0 = vmul.f32 %v1083_v37, %v1083_v37  ;;  %v233_v5 = vmul.f32 %v1086_v40, %v1086_v40  ;;  %268 = vadd.xlane.f32.xlu1 %v267_v17 }
  0xaf   :  { %v1097_v50 = vsub.f32 %v886_v13, %v176_v45  ;;  %v1100_v24 = vsub.f32 %v888_v14, %v176_v45  ;;  %v270_v52 = vadd.f32 %v231_v59, %v230_v58  ;;  %v1103_v61 = vsub.f32 %v900_v20, %v177_v18 }
  0xb0   :  { %v1106_v62 = vsub.f32 %v902_v21, %v177_v18  ;;  %v155_v63 = vpop.xlane.xlu0 %154  ;;  %v158_v32 = vpop.xlane.xlu1 %157  ;;  %v273_v33 = vadd.f32 %v233_v5, %v232_v0 }
  0xb1   :  { %v178_v1 = vmul.f32 0.00390625, %v155_v63  ;;  %271 = vadd.xlane.f32.xlu0 %v270_v52  ;;  %v234_v13 = vmul.f32 %v1097_v50, %v1097_v50  ;;  %v235_v14 = vmul.f32 %v1100_v24, %v1100_v24  ;;  %v179_v2 = vmul.f32 0.00390625, %v158_v32 }
  0xb2   :  { %v236_v20 = vmul.f32 %v1103_v61, %v1103_v61  ;;  %v237_v21 = vmul.f32 %v1106_v62, %v1106_v62  ;;  %274 = vadd.xlane.f32.xlu1 %v273_v33 }
  0xb3   :  { %v1117_v38 = vsub.f32 %v918_v27, %v178_v1  ;;  %v1120_v39 = vsub.f32 %v930_v34, %v178_v1  ;;  %v276_v8 = vadd.f32 %v235_v14, %v234_v13  ;;  %v1123_v23 = vsub.f32 %v944_v41, %v179_v2 }
  0xb4   :  { %v1126_v25 = vsub.f32 %v946_v42, %v179_v2  ;;  %v161_v26 = vpop.xlane.xlu0 %160  ;;  %v164_v44 = vpop.xlane.xlu1 %163  ;;  %v279_v48 = vadd.f32 %v237_v21, %v236_v20 }
  0xb5   :  { %v180_v29 = vmul.f32 0.00390625, %v161_v26  ;;  %277 = vadd.xlane.f32.xlu0 %v276_v8  ;;  %v238_v27 = vmul.f32 %v1117_v38, %v1117_v38  ;;  %v239_v34 = vmul.f32 %v1120_v39, %v1120_v39  ;;  %v181_v4 = vmul.f32 0.00390625, %v164_v44 }
  0xb6   :  { %v240_v41 = vmul.f32 %v1123_v23, %v1123_v23  ;;  %v241_v42 = vmul.f32 %v1126_v25, %v1126_v25  ;;  %280 = vadd.xlane.f32.xlu1 %v279_v48 }
  0xb7   :  { %v1137_v53 = vsub.f32 %v958_v47, %v180_v29  ;;  %v1140_v54 = vsub.f32 %v960_v49, %v180_v29  ;;  %v282_v31 = vadd.f32 %v239_v34, %v238_v27  ;;  %v1143_v43 = vsub.f32 %v976_v56, %v181_v4 }
  0xb8   :  { %v1146_v45 = vsub.f32 %v982_v60, %v181_v4  ;;  %v285_v46 = vadd.f32 %v241_v42, %v240_v41 }
  0xb9   :  { %283 = vadd.xlane.f32.xlu0 %v282_v31  ;;  %v242_v17 = vmul.f32 %v1137_v53, %v1137_v53  ;;  %v243_v47 = vmul.f32 %v1140_v54, %v1140_v54  ;;  %v244_v49 = vmul.f32 %v1143_v43, %v1143_v43 }
  0xba   :  { %v245_v58 = vmul.f32 %v1146_v45, %v1146_v45  ;;  %286 = vadd.xlane.f32.xlu1 %v285_v46 }
  0xbb   :  { %v288_v56 = vadd.f32 %v243_v47, %v242_v17 }
  0xbc   :  { %v291_v60 = vadd.f32 %v245_v58, %v244_v49 }
  0xbd   :  { %289 = vadd.xlane.f32.xlu0 %v288_v56 }
  0xbe   :  { %292 = vadd.xlane.f32.xlu1 %v291_v60 }
  0xbf   :  { %605 = shalt.err (!%p602_p4)
}
  0xc0   :  { %s606_s24 = scalar_lea.hbm %s1301_s5, 4096 }
  0xc1   :  { %p607_p5 = scmp.ne.s32.totalorder %s1301_s5, %s606_s24  ;;  %p610_p6 = scmp.lt.u32.totalorder %s606_s24, %s1301_s5 }
  0xc3   :  { %p612_p7 = pnand %p610_p6, %p607_p5 }
  0xc5   :  { %615 = shalt.err (!%p612_p7)
}
  0xc6   :  { %s643_s29 = smov 256   ;;  %s644_s30 = smov 16   ;;  %v376_v0 = vlaneseq  ;;  %v374_v44 = vld [vmem:[%s1298_s2] sm:$0x3] }
  0xc7   :  { %549 = dma.vmem_to_hbm [thread:$0]  %s544_s1, 4096, %s1301_s5, [#allocation5], %s643_s29, %s643_s29, %s644_s30  }
  0xc8   :  { %v377_v33 = vshrl.u32 %v376_v0, 7  ;;  %v418_v41 = vld [vmem:[%s1299_s3] sm:$0x3]  ;;  %s645_s2 = smov [#allocation2]  }
  0xc9   :  { %s531_s3 = sshll.u32 %s645_s2, 4  ;;  %s532_s3 = int_to_ptr.vmem [resolvable:$true] %s531_s3 }
  0xca   :  { %v378_v26 = vsub.s32 0, %v377_v33  ;;  %v382_v29 = vsub.s32 1, %v377_v33  ;;  %s616_s11 = scalar_lea.vmem %s532_s3, 4096  ;;  %p621_p9 = scmp.lt.s32.totalorder %s532_s3, %s532_s3 }
  0xcb   :  { %p617_p8 = scmp.ne.s32.totalorder %s532_s3, %s616_s11  ;;  %p622_p10 = scmp.lt.s32.totalorder %s616_s11, %s616_s11 }
  0xcc   :  { %v1177_v46 = vrot.slane %v374_v44, %v378_v26  ;;  %v1179_v17 = vrot.slane %v374_v44, %v382_v29  ;;  %v1181_v56 = vrot.slane %v418_v41, %v378_v26  ;;  %v1183_v60 = vrot.slane %v418_v41, %v382_v29 }
  0xcd   :  { %p623_p11 = por %p622_p10, %p621_p9 }
  0xcf   :  { %p624_p12 = pnand %p623_p11, %p617_p8 }
 0x12b   :  { %v248_v59 = vpop.xlane.xlu0 %247 }
 0x12c   :  { %v294_v18 = vmul.f32 0.00390625, %v248_v59 }
 0x12e   :  { %v310_v5 = vadd.f32 1e-05, %v294_v18 }
 0x12f   :  { %v251_v52 = vpop.xlane.xlu1 %250  ;;  %v254_v63 = vpop.xlane.xlu0 %253 }
 0x130   :  { %562 = vrsqrt.f32 %v310_v5  ;;  %v295_v1 = vmul.f32 0.00390625, %v251_v52  ;;  %v296_v32 = vmul.f32 0.00390625, %v254_v63 }
 0x132   :  { %v311_v13 = vadd.f32 1e-05, %v295_v1  ;;  %v312_v14 = vadd.f32 1e-05, %v296_v32 }
 0x133   :  { %v257_v2 = vpop.xlane.xlu1 %256  ;;  %v260_v20 = vpop.xlane.xlu0 %259 }
 0x134   :  { %564 = vrsqrt.f32 %v311_v13  ;;  %v297_v21 = vmul.f32 0.00390625, %v257_v2  ;;  %v298_v8 = vmul.f32 0.00390625, %v260_v20 }
 0x135   :  { %566 = vrsqrt.f32 %v312_v14 }
 0x136   :  { %v313_v48 = vadd.f32 1e-05, %v297_v21  ;;  %v314_v27 = vadd.f32 1e-05, %v298_v8 }
 0x137   :  { %v263_v34 = vpop.xlane.xlu1 %262  ;;  %v266_v4 = vpop.xlane.xlu0 %265 }
 0x138   :  { %568 = vrsqrt.f32 %v313_v48  ;;  %v299_v42 = vmul.f32 0.00390625, %v263_v34  ;;  %v300_v31 = vmul.f32 0.00390625, %v266_v4 }
 0x139   :  { %570 = vrsqrt.f32 %v314_v27 }
 0x13a   :  { %v563_v47 = vpop.eup %562  ;;  %v315_v49 = vadd.f32 1e-05, %v299_v42  ;;  %v316_v58 = vadd.f32 1e-05, %v300_v31 }
 0x13b   :  { %v342_v59 = vmul.f32 %v563_v47, %v997_v10  ;;  %v343_v18 = vmul.f32 %v563_v47, %v1000_v15  ;;  %v269_v0 = vpop.xlane.xlu1 %268 }
 0x13c   :  { %572 = vrsqrt.f32 %v315_v49  ;;  %v301_v52 = vmul.f32 0.00390625, %v269_v0 }
 0x13d   :  { %v386_v1 = vmul.f32 %v1177_v46, %v342_v59  ;;  %v387_v32 = vmul.f32 %v1179_v17, %v343_v18  ;;  %574 = vrsqrt.f32 %v316_v58 }
 0x13e   :  { %v272_v5 = vpop.xlane.xlu0 %271  ;;  %v565_v33 = vpop.eup %564  ;;  %v317_v13 = vadd.f32 1e-05, %v301_v52 }
 0x13f   :  { %v302_v63 = vmul.f32 0.00390625, %v272_v5  ;;  %v567_v2 = vpop.eup %566  ;;  %v430_v20 = vadd.f32 %v1181_v56, %v386_v1  ;;  %v431_v10 = vadd.f32 %v1183_v60, %v387_v32  ;;  %v344_v15 = vmul.f32 %v565_v33, %v1017_v30  ;;  %v275_v8 = vpop.xlane.xlu1 %274 }
 0x140   :  { %v345_v21 = vmul.f32 %v565_v33, %v1020_v12  ;;  %v346_v29 = vmul.f32 %v567_v2, %v1003_v16  ;;  %v347_v44 = vmul.f32 %v567_v2, %v1006_v19  ;;  %576 = vrsqrt.f32 %v317_v13 }
 0x141   :  { %v318_v14 = vadd.f32 1e-05, %v302_v63  ;;  %v303_v48 = vmul.f32 0.00390625, %v275_v8  ;;  %462 = vst [vmem:[#allocation2] sm:$0xff] %v430_v20  ;;  %463 = vst [vmem:[#allocation2 + $0x8] sm:$0xff] %v431_v10  ;;  %v388_v27 = vmul.f32 %v1177_v46, %v344_v15 }
 0x142   :  { %v278_v26 = vpop.xlane.xlu0 %277  ;;  %v389_v34 = vmul.f32 %v1179_v17, %v345_v21  ;;  %v569_v41 = vpop.eup %568  ;;  %v390_v30 = vmul.f32 %v1177_v46, %v346_v29  ;;  %v391_v12 = vmul.f32 %v1179_v17, %v347_v44 }
 0x143   :  { %578 = vrsqrt.f32 %v318_v14  ;;  %v304_v4 = vmul.f32 0.00390625, %v278_v26  ;;  %v319_v42 = vadd.f32 1e-05, %v303_v48  ;;  %v571_v31 = vpop.eup %570  ;;  %v432_v16 = vadd.f32 %v1181_v56, %v388_v27  ;;  %v281_v58 = vpop.xlane.xlu1 %280 }
 0x144   :  { %v433_v19 = vadd.f32 %v1183_v60, %v389_v34  ;;  %v348_v47 = vmul.f32 %v569_v41, %v1023_v35  ;;  %v349_v49 = vmul.f32 %v569_v41, %v1026_v36  ;;  %v434_v18 = vadd.f32 %v1181_v56, %v390_v30 }
 0x145   :  { %v435_v0 = vadd.f32 %v1183_v60, %v391_v12  ;;  %v350_v5 = vmul.f32 %v571_v31, %v1037_v28  ;;  %v351_v52 = vmul.f32 %v571_v31, %v1040_v51  ;;  %464 = vst [vmem:[#allocation2 + $0x10] sm:$0xff] %v432_v16  ;;  %580 = vrsqrt.f32 %v319_v42 }
 0x146   :  { %v284_v59 = vpop.xlane.xlu0 %283  ;;  %465 = vst [vmem:[#allocation2 + $0x18] sm:$0xff] %v433_v19  ;;  %v392_v63 = vmul.f32 %v1177_v46, %v348_v47  ;;  %v393_v1 = vmul.f32 %v1179_v17, %v349_v49  ;;  %v320_v35 = vadd.f32 1e-05, %v304_v4  ;;  %v573_v32 = vpop.eup %572  ;;  %466 = vst [vmem:[#allocation2 + $0x20] sm:$0xff] %v434_v18  ;;  %v305_v13 = vmul.f32 0.00390625, %v281_v58 }
 0x147   :  { %467 = vst [vmem:[#allocation2 + $0x28] sm:$0xff] %v435_v0  ;;  %v394_v36 = vmul.f32 %v1177_v46, %v350_v5  ;;  %v395_v33 = vmul.f32 %v1179_v17, %v351_v52  ;;  %v306_v14 = vmul.f32 0.00390625, %v284_v59  ;;  %v575_v28 = vpop.eup %574  ;;  %v352_v20 = vmul.f32 %v573_v32, %v1043_v55  ;;  %v287_v15 = vpop.xlane.xlu1 %286 }
 0x148   :  { %v436_v51 = vadd.f32 %v1181_v56, %v392_v63  ;;  %v437_v2 = vadd.f32 %v1183_v60, %v393_v1  ;;  %v353_v10 = vmul.f32 %v573_v32, %v1046_v57  ;;  %v354_v26 = vmul.f32 %v575_v28, %v1057_v3 }
 0x149   :  { %v438_v21 = vadd.f32 %v1181_v56, %v394_v36  ;;  %v439_v8 = vadd.f32 %v1183_v60, %v395_v33  ;;  %v355_v29 = vmul.f32 %v575_v28, %v1060_v6  ;;  %v396_v44 = vmul.f32 %v1177_v46, %v352_v20 }
 0x14a   :  { %468 = vst [vmem:[#allocation2 + $0x30] sm:$0xff] %v436_v51  ;;  %469 = vst [vmem:[#allocation2 + $0x38] sm:$0xff] %v437_v2  ;;  %v397_v48 = vmul.f32 %v1179_v17, %v353_v10  ;;  %582 = vrsqrt.f32 %v320_v35  ;;  %v321_v27 = vadd.f32 1e-05, %v305_v13  ;;  %v577_v55 = vpop.eup %576  ;;  %v398_v57 = vmul.f32 %v1177_v46, %v354_v26  ;;  %v290_v31 = vpop.xlane.xlu0 %289 }
 0x14b   :  { %470 = vst [vmem:[#allocation2 + $0x40] sm:$0xff] %v438_v21  ;;  %471 = vst [vmem:[#allocation2 + $0x48] sm:$0xff] %v439_v8  ;;  %v399_v34 = vmul.f32 %v1179_v17, %v355_v29  ;;  %v322_v4 = vadd.f32 1e-05, %v306_v14  ;;  %v307_v41 = vmul.f32 0.00390625, %v287_v15  ;;  %v440_v6 = vadd.f32 %v1181_v56, %v396_v44  ;;  %v293_v58 = vpop.xlane.xlu1 %292 }
 0x14c   :  { %v441_v30 = vadd.f32 %v1183_v60, %v397_v48  ;;  %v356_v12 = vmul.f32 %v577_v55, %v1063_v9  ;;  %v357_v42 = vmul.f32 %v577_v55, %v1066_v22  ;;  %v442_v16 = vadd.f32 %v1181_v56, %v398_v57 }
 0x14d   :  { %v579_v3 = vpop.eup %578  ;;  %v443_v19 = vadd.f32 %v1183_v60, %v399_v34  ;;  %472 = vst [vmem:[#allocation2 + $0x50] sm:$0xff] %v440_v6  ;;  %584 = vrsqrt.f32 %v321_v27  ;;  %v323_v9 = vadd.f32 1e-05, %v307_v41  ;;  %v308_v5 = vmul.f32 0.00390625, %v290_v31 }
 0x14e   :  { %v358_v47 = vmul.f32 %v579_v3, %v1077_v7  ;;  %v359_v49 = vmul.f32 %v579_v3, %v1080_v11  ;;  %473 = vst [vmem:[#allocation2 + $0x58] sm:$0xff] %v441_v30  ;;  %v400_v59 = vmul.f32 %v1177_v46, %v356_v12  ;;  %v401_v18 = vmul.f32 %v1179_v17, %v357_v42 }
 0x14f   :  { %474 = vst [vmem:[#allocation2 + $0x60] sm:$0xff] %v442_v16  ;;  %475 = vst [vmem:[#allocation2 + $0x68] sm:$0xff] %v443_v19  ;;  %586 = vrsqrt.f32 %v322_v4  ;;  %v581_v7 = vpop.eup %580  ;;  %v309_v63 = vmul.f32 0.00390625, %v293_v58  ;;  %v324_v33 = vadd.f32 1e-05, %v308_v5 }
 0x150   :  { %v402_v22 = vmul.f32 %v1177_v46, %v358_v47  ;;  %v403_v0 = vmul.f32 %v1179_v17, %v359_v49  ;;  %v444_v11 = vadd.f32 %v1181_v56, %v400_v59  ;;  %v445_v52 = vadd.f32 %v1183_v60, %v401_v18 }
 0x151   :  { %588 = vrsqrt.f32 %v323_v9  ;;  %v360_v32 = vmul.f32 %v581_v7, %v1083_v37  ;;  %v361_v36 = vmul.f32 %v581_v7, %v1086_v40  ;;  %v325_v13 = vadd.f32 1e-05, %v309_v63 }
 0x152   :  { %v446_v1 = vadd.f32 %v1181_v56, %v402_v22  ;;  %v447_v35 = vadd.f32 %v1183_v60, %v403_v0  ;;  %476 = vst [vmem:[#allocation2 + $0x70] sm:$0xff] %v444_v11  ;;  %477 = vst [vmem:[#allocation2 + $0x78] sm:$0xff] %v445_v52  ;;  %590 = vrsqrt.f32 %v324_v33 }
 0x153   :  { %v404_v14 = vmul.f32 %v1177_v46, %v360_v32  ;;  %v405_v28 = vmul.f32 %v1179_v17, %v361_v36  ;;  %592 = vrsqrt.f32 %v325_v13 }
 0x154   :  { %478 = vst [vmem:[#allocation2 + $0x80] sm:$0xff] %v446_v1  ;;  %479 = vst [vmem:[#allocation2 + $0x88] sm:$0xff] %v447_v35  ;;  %v583_v51 = vpop.eup %582 }
 0x155   :  { %v448_v2 = vadd.f32 %v1181_v56, %v404_v14  ;;  %v449_v20 = vadd.f32 %v1183_v60, %v405_v28  ;;  %v362_v37 = vmul.f32 %v583_v51, %v1097_v50  ;;  %v363_v40 = vmul.f32 %v583_v51, %v1100_v24 }
 0x157   :  { %480 = vst [vmem:[#allocation2 + $0x90] sm:$0xff] %v448_v2  ;;  %481 = vst [vmem:[#allocation2 + $0x98] sm:$0xff] %v449_v20  ;;  %v406_v10 = vmul.f32 %v1177_v46, %v362_v37  ;;  %v407_v15 = vmul.f32 %v1179_v17, %v363_v40  ;;  %v585_v21 = vpop.eup %584 }
 0x158   :  { %v364_v44 = vmul.f32 %v585_v21, %v1103_v61  ;;  %v365_v48 = vmul.f32 %v585_v21, %v1106_v62 }
 0x159   :  { %v587_v8 = vpop.eup %586  ;;  %v450_v26 = vadd.f32 %v1181_v56, %v406_v10  ;;  %v451_v29 = vadd.f32 %v1183_v60, %v407_v15 }
 0x15a   :  { %v366_v24 = vmul.f32 %v587_v8, %v1117_v38  ;;  %v367_v27 = vmul.f32 %v587_v8, %v1120_v39  ;;  %v408_v55 = vmul.f32 %v1177_v46, %v364_v44  ;;  %v409_v57 = vmul.f32 %v1179_v17, %v365_v48 }
 0x15b   :  { %v589_v50 = vpop.eup %588  ;;  %482 = vst [vmem:[#allocation2 + $0xa0] sm:$0xff] %v450_v26  ;;  %483 = vst [vmem:[#allocation2 + $0xa8] sm:$0xff] %v451_v29 }
 0x15c   :  { %v368_v34 = vmul.f32 %v589_v50, %v1123_v23  ;;  %v369_v4 = vmul.f32 %v589_v50, %v1126_v25  ;;  %v410_v41 = vmul.f32 %v1177_v46, %v366_v24  ;;  %v411_v61 = vmul.f32 %v1179_v17, %v367_v27  ;;  %v591_v6 = vpop.eup %590 }
 0x15d   :  { %v452_v62 = vadd.f32 %v1181_v56, %v408_v55  ;;  %v453_v38 = vadd.f32 %v1183_v60, %v409_v57  ;;  %v370_v42 = vmul.f32 %v591_v6, %v1137_v53  ;;  %v371_v31 = vmul.f32 %v591_v6, %v1140_v54  ;;  %v593_v16 = vpop.eup %592 }
 0x15e   :  { %v412_v39 = vmul.f32 %v1177_v46, %v368_v34  ;;  %v413_v3 = vmul.f32 %v1179_v17, %v369_v4  ;;  %v454_v30 = vadd.f32 %v1181_v56, %v410_v41  ;;  %v455_v12 = vadd.f32 %v1183_v60, %v411_v61 }
 0x15f   :  { %484 = vst [vmem:[#allocation2 + $0xb0] sm:$0xff] %v452_v62  ;;  %485 = vst [vmem:[#allocation2 + $0xb8] sm:$0xff] %v453_v38  ;;  %v414_v19 = vmul.f32 %v1177_v46, %v370_v42  ;;  %v415_v47 = vmul.f32 %v1179_v17, %v371_v31  ;;  %v372_v49 = vmul.f32 %v593_v16, %v1143_v43 }
 0x160   :  { %v456_v23 = vadd.f32 %v1181_v56, %v412_v39  ;;  %v457_v25 = vadd.f32 %v1183_v60, %v413_v3  ;;  %486 = vst [vmem:[#allocation2 + $0xc0] sm:$0xff] %v454_v30  ;;  %487 = vst [vmem:[#allocation2 + $0xc8] sm:$0xff] %v455_v12  ;;  %v373_v58 = vmul.f32 %v593_v16, %v1146_v45 }
 0x161   :  { %v458_v59 = vadd.f32 %v1181_v56, %v414_v19  ;;  %v459_v53 = vadd.f32 %v1183_v60, %v415_v47  ;;  %v416_v54 = vmul.f32 %v1177_v46, %v372_v49 }
 0x162   :  { %488 = vst [vmem:[#allocation2 + $0xd0] sm:$0xff] %v456_v23  ;;  %489 = vst [vmem:[#allocation2 + $0xd8] sm:$0xff] %v457_v25  ;;  %v417_v18 = vmul.f32 %v1179_v17, %v373_v58 }
 0x163   :  { %490 = vst [vmem:[#allocation2 + $0xe0] sm:$0xff] %v458_v59  ;;  %491 = vst [vmem:[#allocation2 + $0xe8] sm:$0xff] %v459_v53  ;;  %v460_v9 = vadd.f32 %v1181_v56, %v416_v54 }
 0x164   :  { %v461_v22 = vadd.f32 %v1183_v60, %v417_v18 }
 0x165   :  { %492 = vst [vmem:[#allocation2 + $0xf0] sm:$0xff] %v460_v9 }
 0x166   :  { %493 = vst [vmem:[#allocation2 + $0xf8] sm:$0xff] %v461_v22 }
 0x167   :  { %627 = shalt.err (!%p624_p12)
}
 0x168   :  { %s628_s14 = scalar_lea.hbm %s1300_s4, 4096 }
 0x169   :  { %p629_p13 = scmp.ne.s32.totalorder %s1300_s4, %s628_s14  ;;  %p632_p0 = scmp.lt.u32.totalorder %s628_s14, %s1300_s4 }
 0x16b   :  { %p634_p1 = pnand %p632_p0, %p629_p13 }
 0x16d   :  { %637 = shalt.err (!%p634_p1)
}
 0x16e   :  { %537 = dma.vmem_to_hbm [thread:$0]  %s532_s3, 4096, %s1300_s4, [#allocation3], %s643_s29, %s643_s29, %s644_s30  }
 0x16f   :  { %638 = dma.done.wait [#allocation3], 4096  }
 0x170   :  { %639 = vsyncadd [#allocation3], 4294963200 }
 0x171   :  { %640 = dma.done.wait [#allocation5], 4096  }
 0x172   :  { %641 = vsyncadd [#allocation5], 4294963200 }
 0x173   :  { %556 = vsyncpa [#allocation3], 1 }
 0x174   :  { %557 = vsyncpa [#allocation5], 1 }

// kernel: santacoder_forward.21
= control target key start
LH: loop header
LB: loop body
LE: loop exit
PB: predicated region body
PF: predicated region fallthrough
CT: control target
= control target key end

     0   :  { %s1916_s12 = smov 0   ;;  %s1918_s13 = smov 0   ;;  %s2286_s0 = inlined_call_operand.vmem [shape: bf16[128,1024], index: 0, kind: input, shape index: {}]   ;;  %s2287_s1 = inlined_call_operand.vmem [shape: bf16[1024,256], index: 1, kind: input, shape index: {}]   ;;  %s2288_s2 = inlined_call_operand.vmem [shape: f32[1,256], index: 2, kind: input, shape index: {}]   ;;  %s2289_s3 = inlined_call_operand.vmem [shape: f32[128,256], index: 3, kind: output, shape index: {}]  }
   0x1   :  { %s1920_s14 = smov 0   ;;  %s1922_s15 = smov 0  }
   0x2   :  { %s1924_s16 = smov 0  }
   0x3 LB: > { %s25_s17 = sadd.s32 1, %s1889_s15  ;;  %p48_p1 = scmp.ne.s32.totalorder %s1881_s13, %s1877_s12  ;;  %s1893_s16 = sphi %s1924_s16, %s13_s16   ;;  %s1889_s15 = sphi %s1922_s15, %s2293_s15   ;;  %s1885_s14 = sphi %s1920_s14, %s2292_s14   ;;  %s1881_s13 = sphi %s1918_s13, %s2291_s13   ;;  %s1877_s12 = sphi %s1916_s12, %s2290_s12  }
   0x4   : > { %p26_p0 = scmp.ge.s32.totalorder %s25_s17, 2  ;;  %p49_p2 = scmp.eq.s32.totalorder %s1893_s16, 0 }
   0x5   : > { %s41_s19 = sadd.s32 1, %s1881_s13  ;;  %p1525_p5 = scmp.ge.s32.totalorder %s1893_s16, 2 }
   0x6   : > { %s2295_s17 = smov (%p26_p0, %s25_s17), 0  ;;  %p50_p3 = por %p49_p2, %p48_p1 }
   0x7   : > { %s37_s18 = ssub.s32 %s1889_s15, %s2295_s17  ;;  %164 = sbr.rel (%p1525_p5) target bundleno = 34 (0x22), region = 20 }
   0x8   : > { %p39_p4 = scmp.eq.s32.totalorder %s37_s18, 0 }
   0xa   : > { %s1951_s20 = scalar_select %p39_p4, %s1881_s13, %s41_s19  }
   0xe   : > { %167 = sbr.rel (!%p50_p3) target bundleno = 34 (0x22), region = 24  ;;  %s169_s21 = sand.u32 (%p50_p3), 1, %s1881_s13  }
   0xf   : > { %s1636_s22 = sshll.u32 (%p50_p3), %s1889_s15, 4  ;;  %s1526_s23 = sshll.u32 (%p50_p3), %s169_s21, 8 }
  0x10   : > { %s1959_s26 = scalar_lea.vmem (%p50_p3), %s2286_s0, %s1636_s22  ;;  %s1964_s27 = scalar_lea.vmem (%p50_p3), [#allocation3], %s1526_s23 }
  0x11   : > { %v190_v0 = vld [vmem:[%s1959_s26] sm:$0xff] (%p50_p3)  ;;  %v192_v1 = vld [vmem:[%s1959_s26 + $0x8] sm:$0xff] (%p50_p3) }
  0x12   : > { %v194_v2 = vld [vmem:[%s1959_s26 + $0x20] sm:$0xff] (%p50_p3)  ;;  %191 = vst [vmem:[%s1964_s27] sm:$0xff] (%p50_p3), %v190_v0  ;;  %193 = vst [vmem:[%s1964_s27 + $0x8] sm:$0xff] (%p50_p3), %v192_v1  ;;  %v196_v3 = vld [vmem:[%s1959_s26 + $0x28] sm:$0xff] (%p50_p3) }
  0x13   : > { %195 = vst [vmem:[%s1964_s27 + $0x10] sm:$0xff] (%p50_p3), %v194_v2  ;;  %v198_v4 = vld [vmem:[%s1959_s26 + $0x40] sm:$0xff] (%p50_p3)  ;;  %v200_v5 = vld [vmem:[%s1959_s26 + $0x48] sm:$0xff] (%p50_p3)  ;;  %197 = vst [vmem:[%s1964_s27 + $0x18] sm:$0xff] (%p50_p3), %v196_v3 }
  0x14   : > { %199 = vst [vmem:[%s1964_s27 + $0x20] sm:$0xff] (%p50_p3), %v198_v4  ;;  %201 = vst [vmem:[%s1964_s27 + $0x28] sm:$0xff] (%p50_p3), %v200_v5  ;;  %v202_v6 = vld [vmem:[%s1959_s26 + $0x60] sm:$0xff] (%p50_p3)  ;;  %v204_v7 = vld [vmem:[%s1959_s26 + $0x68] sm:$0xff] (%p50_p3) }
  0x15   : > { %v206_v8 = vld [vmem:[%s1959_s26 + $0x80] sm:$0xff]  ;;  %203 = vst [vmem:[%s1964_s27 + $0x30] sm:$0xff] %v202_v6  ;;  %205 = vst [vmem:[%s1964_s27 + $0x38] sm:$0xff] %v204_v7  ;;  %v208_v9 = vld [vmem:[%s1959_s26 + $0x88] sm:$0xff] }
  0x16   : > { %207 = vst [vmem:[%s1964_s27 + $0x40] sm:$0xff] %v206_v8  ;;  %v210_v10 = vld [vmem:[%s1959_s26 + $0xa0] sm:$0xff]  ;;  %v212_v11 = vld [vmem:[%s1959_s26 + $0xa8] sm:$0xff]  ;;  %209 = vst [vmem:[%s1964_s27 + $0x48] sm:$0xff] %v208_v9 }
  0x17   : > { %211 = vst [vmem:[%s1964_s27 + $0x50] sm:$0xff] %v210_v10  ;;  %213 = vst [vmem:[%s1964_s27 + $0x58] sm:$0xff] %v212_v11  ;;  %v214_v12 = vld [vmem:[%s1959_s26 + $0xc0] sm:$0xff]  ;;  %v216_v13 = vld [vmem:[%s1959_s26 + $0xc8] sm:$0xff] }
  0x18   : > { %v218_v14 = vld [vmem:[%s1959_s26 + $0xe0] sm:$0xff]  ;;  %215 = vst [vmem:[%s1964_s27 + $0x60] sm:$0xff] %v214_v12  ;;  %217 = vst [vmem:[%s1964_s27 + $0x68] sm:$0xff] %v216_v13  ;;  %v220_v15 = vld [vmem:[%s1959_s26 + $0xe8] sm:$0xff] }
  0x19   : > { %219 = vst [vmem:[%s1964_s27 + $0x70] sm:$0xff] %v218_v14  ;;  %v222_v16 = vld [vmem:[%s1959_s26 + $0x100] sm:$0xff]  ;;  %v224_v17 = vld [vmem:[%s1959_s26 + $0x108] sm:$0xff]  ;;  %221 = vst [vmem:[%s1964_s27 + $0x78] sm:$0xff] %v220_v15 }
  0x1a   : > { %223 = vst [vmem:[%s1964_s27 + $0x80] sm:$0xff] %v222_v16  ;;  %225 = vst [vmem:[%s1964_s27 + $0x88] sm:$0xff] %v224_v17  ;;  %v226_v18 = vld [vmem:[%s1959_s26 + $0x120] sm:$0xff]  ;;  %v228_v19 = vld [vmem:[%s1959_s26 + $0x128] sm:$0xff] }
  0x1b   : > { %v230_v20 = vld [vmem:[%s1959_s26 + $0x140] sm:$0xff]  ;;  %227 = vst [vmem:[%s1964_s27 + $0x90] sm:$0xff] %v226_v18  ;;  %229 = vst [vmem:[%s1964_s27 + $0x98] sm:$0xff] %v228_v19  ;;  %v232_v21 = vld [vmem:[%s1959_s26 + $0x148] sm:$0xff] }
  0x1c   : > { %231 = vst [vmem:[%s1964_s27 + $0xa0] sm:$0xff] %v230_v20  ;;  %v234_v22 = vld [vmem:[%s1959_s26 + $0x160] sm:$0xff]  ;;  %v236_v23 = vld [vmem:[%s1959_s26 + $0x168] sm:$0xff]  ;;  %233 = vst [vmem:[%s1964_s27 + $0xa8] sm:$0xff] %v232_v21 }
  0x1d   : > { %235 = vst [vmem:[%s1964_s27 + $0xb0] sm:$0xff] %v234_v22  ;;  %237 = vst [vmem:[%s1964_s27 + $0xb8] sm:$0xff] %v236_v23  ;;  %v238_v24 = vld [vmem:[%s1959_s26 + $0x180] sm:$0xff]  ;;  %v240_v25 = vld [vmem:[%s1959_s26 + $0x188] sm:$0xff] }
  0x1e   : > { %v242_v26 = vld [vmem:[%s1959_s26 + $0x1a0] sm:$0xff]  ;;  %239 = vst [vmem:[%s1964_s27 + $0xc0] sm:$0xff] %v238_v24  ;;  %241 = vst [vmem:[%s1964_s27 + $0xc8] sm:$0xff] %v240_v25  ;;  %v244_v27 = vld [vmem:[%s1959_s26 + $0x1a8] sm:$0xff] }
  0x1f   : > { %243 = vst [vmem:[%s1964_s27 + $0xd0] sm:$0xff] %v242_v26  ;;  %v246_v28 = vld [vmem:[%s1959_s26 + $0x1c0] sm:$0xff]  ;;  %v248_v29 = vld [vmem:[%s1959_s26 + $0x1c8] sm:$0xff]  ;;  %245 = vst [vmem:[%s1964_s27 + $0xd8] sm:$0xff] %v244_v27 }
  0x20   : > { %247 = vst [vmem:[%s1964_s27 + $0xe0] sm:$0xff] %v246_v28  ;;  %249 = vst [vmem:[%s1964_s27 + $0xe8] sm:$0xff] %v248_v29  ;;  %v250_v30 = vld [vmem:[%s1959_s26 + $0x1e0] sm:$0xff]  ;;  %v252_v31 = vld [vmem:[%s1959_s26 + $0x1e8] sm:$0xff] }
  0x21   : > { %251 = vst [vmem:[%s1964_s27 + $0xf0] sm:$0xff] %v250_v30  ;;  %253 = vst [vmem:[%s1964_s27 + $0xf8] sm:$0xff] %v252_v31 }
  0x22 PF: > { %p1529_p6 = scmp.ge.s32.totalorder %s1893_s16, 1  ;;  %p273_p7 = scmp.lt.s32.totalorder %s1893_s16, 3 }
  0x24   : > { %p274_p8 = pnand %p1529_p6, %p273_p7 }
  0x25   : > { %s280_s28 = sand.u32 (!%p274_p8), 1, %s1877_s12   ;;  %s1531_s29 = sshll.u32 (!%p274_p8), %s1885_s14, 6 }
  0x26   : > { %277 = sbr.rel (%p274_p8) target bundleno = 415 (0x19f), region = 51  ;;  %s1530_s30 = sshll.u32 (!%p274_p8), %s280_s28, 8 }
  0x27   : > { %p326_p9 = scmp.lt.s32.totalorder (!%p274_p8), %s1531_s29, 127  ;;  %s2036_s8 = scalar_lea.vmem (!%p274_p8), [#allocation3], %s1530_s30 }
  0x28   : > { %p1534_p10 = scmp.ne.s32.totalorder (!%p274_p8), %s1885_s14, 0 }
  0x2d   : > { %s2297_s29 = smov (!%p326_p9, %s1531_s29), 127  ;;  %356 = sbr.rel (%p1534_p10) target bundleno = 63 (0x3f), region = 59 }
  0x2e   : > { %s1637_s4 = sshll.u32 %s2297_s29, 3  ;;  %v1895_v32 = vmov (!%p1534_p10), 0.0  }
  0x2f   : > { %s2034_s7 = scalar_lea.vmem %s2287_s1, %s1637_s4  ;;  %357 = vst [vmem:[#allocation2] sm:$0xff] (!%p1534_p10), %v1895_v32  ;;  %358 = vst [vmem:[#allocation2 + $0x8] sm:$0xff] (!%p1534_p10), %v1895_v32 }
  0x30   : > { %359 = vst [vmem:[#allocation2 + $0x10] sm:$0xff] (!%p1534_p10), %v1895_v32  ;;  %360 = vst [vmem:[#allocation2 + $0x18] sm:$0xff] (!%p1534_p10), %v1895_v32 }
  0x31   : > { %361 = vst [vmem:[#allocation2 + $0x20] sm:$0xff] (!%p1534_p10), %v1895_v32  ;;  %362 = vst [vmem:[#allocation2 + $0x28] sm:$0xff] (!%p1534_p10), %v1895_v32 }
  0x32   : > { %363 = vst [vmem:[#allocation2 + $0x30] sm:$0xff] (!%p1534_p10), %v1895_v32  ;;  %364 = vst [vmem:[#allocation2 + $0x38] sm:$0xff] (!%p1534_p10), %v1895_v32 }
  0x33   : > { %365 = vst [vmem:[#allocation2 + $0x40] sm:$0xff] (!%p1534_p10), %v1895_v32  ;;  %366 = vst [vmem:[#allocation2 + $0x48] sm:$0xff] (!%p1534_p10), %v1895_v32 }
  0x34   : > { %367 = vst [vmem:[#allocation2 + $0x50] sm:$0xff] %v1895_v32  ;;  %368 = vst [vmem:[#allocation2 + $0x58] sm:$0xff] %v1895_v32 }
  0x35   : > { %369 = vst [vmem:[#allocation2 + $0x60] sm:$0xff] %v1895_v32  ;;  %370 = vst [vmem:[#allocation2 + $0x68] sm:$0xff] %v1895_v32 }
  0x36   : > { %371 = vst [vmem:[#allocation2 + $0x70] sm:$0xff] %v1895_v32  ;;  %372 = vst [vmem:[#allocation2 + $0x78] sm:$0xff] %v1895_v32 }
  0x37   : > { %373 = vst [vmem:[#allocation2 + $0x80] sm:$0xff] %v1895_v32  ;;  %374 = vst [vmem:[#allocation2 + $0x88] sm:$0xff] %v1895_v32 }
  0x38   : > { %375 = vst [vmem:[#allocation2 + $0x90] sm:$0xff] %v1895_v32  ;;  %376 = vst [vmem:[#allocation2 + $0x98] sm:$0xff] %v1895_v32 }
  0x39   : > { %377 = vst [vmem:[#allocation2 + $0xa0] sm:$0xff] %v1895_v32  ;;  %378 = vst [vmem:[#allocation2 + $0xa8] sm:$0xff] %v1895_v32 }
  0x3a   : > { %379 = vst [vmem:[#allocation2 + $0xb0] sm:$0xff] %v1895_v32  ;;  %380 = vst [vmem:[#allocation2 + $0xb8] sm:$0xff] %v1895_v32 }
  0x3b   : > { %381 = vst [vmem:[#allocation2 + $0xc0] sm:$0xff] %v1895_v32  ;;  %382 = vst [vmem:[#allocation2 + $0xc8] sm:$0xff] %v1895_v32 }
  0x3c   : > { %383 = vst [vmem:[#allocation2 + $0xd0] sm:$0xff] %v1895_v32  ;;  %384 = vst [vmem:[#allocation2 + $0xd8] sm:$0xff] %v1895_v32 }
  0x3d   : > { %385 = vst [vmem:[#allocation2 + $0xe0] sm:$0xff] %v1895_v32  ;;  %386 = vst [vmem:[#allocation2 + $0xe8] sm:$0xff] %v1895_v32 }
  0x3e   : > { %387 = vst [vmem:[#allocation2 + $0xf0] sm:$0xff] %v1895_v32  ;;  %388 = vst [vmem:[#allocation2 + $0xf8] sm:$0xff] %v1895_v32 }
  0x3f PF: > { %v1711_v33 = vld [vmem:[%s2034_s7 + $0x4] ss:$8 sps:$4 sm:$0xff]   ;;  %v1715_v35 = vld [vmem:[%s2034_s7] ss:$8 sps:$4 sm:$0xff]   ;;  %v1717_v37 = vld [vmem:[%s2034_s7 + $0x14] ss:$8 sps:$4 sm:$0xff]  }
  0x40   : > { %v1713_v34 = vld [vmem:[%s2034_s7 + $0x104] ss:$8 sps:$4 sm:$0xff]   ;;  %997 = vmatprep.subr.bf16.mxu1 %v1711_v33  ;;  %v1716_v36 = vld [vmem:[%s2034_s7 + $0x100] ss:$8 sps:$4 sm:$0xff]   ;;  %v1719_v38 = vld [vmem:[%s2034_s7 + $0x114] ss:$8 sps:$4 sm:$0xff]  }
  0x41   : > { %1110 = vmatprep.subr.bf16.mxu0 %v1713_v34  ;;  %998 = vmatpush1.bf16.msra.mxu1 %v1715_v35  ;;  %v1721_v39 = vld [vmem:[%s2034_s7 + $0x10] ss:$8 sps:$4 sm:$0xff]   ;;  %v1723_v41 = vld [vmem:[%s2034_s7 + $0x24] ss:$8 sps:$4 sm:$0xff]   ;;  %v1727_v43 = vld [vmem:[%s2034_s7 + $0x20] ss:$8 sps:$4 sm:$0xff]  }
  0x42   : > { %1111 = vmatpush1.bf16.msra.mxu0 %v1716_v36  ;;  %999 = vmatprep.subr.bf16.mxu1 %v1717_v37  ;;  %v1722_v40 = vld [vmem:[%s2034_s7 + $0x110] ss:$8 sps:$4 sm:$0xff]   ;;  %v1725_v42 = vld [vmem:[%s2034_s7 + $0x124] ss:$8 sps:$4 sm:$0xff]   ;;  %v1728_v44 = vld [vmem:[%s2034_s7 + $0x120] ss:$8 sps:$4 sm:$0xff]  }
  0x43   : > { %1112 = vmatprep.subr.bf16.mxu0 %v1719_v38  ;;  %v1729_v45 = vld [vmem:[%s2034_s7 + $0x34] ss:$8 sps:$4 sm:$0xff]   ;;  %v1733_v47 = vld [vmem:[%s2034_s7 + $0x30] ss:$8 sps:$4 sm:$0xff]   ;;  %v1735_v49 = vld [vmem:[%s2034_s7 + $0x44] ss:$8 sps:$4 sm:$0xff]  }
  0x44   : > { %v1731_v46 = vld [vmem:[%s2034_s7 + $0x134] ss:$8 sps:$4 sm:$0xff]   ;;  %v1734_v48 = vld [vmem:[%s2034_s7 + $0x130] ss:$8 sps:$4 sm:$0xff]   ;;  %v1737_v50 = vld [vmem:[%s2034_s7 + $0x144] ss:$8 sps:$4 sm:$0xff]  }
  0x45   : > { %1000 = vmatpush1.bf16.msra.mxu1 %v1721_v39  ;;  %v1739_v51 = vld [vmem:[%s2034_s7 + $0x40] ss:$8 sps:$4 sm:$0xff]   ;;  %v1741_v53 = vld [vmem:[%s2034_s7 + $0x54] ss:$8 sps:$4 sm:$0xff]   ;;  %v1745_v55 = vld [vmem:[%s2034_s7 + $0x50] ss:$8 sps:$4 sm:$0xff]  }
  0x46   : > { %1113 = vmatpush1.bf16.msra.mxu0 %v1722_v40  ;;  %1001 = vmatprep.subr.bf16.mxu1 %v1723_v41  ;;  %v1740_v52 = vld [vmem:[%s2034_s7 + $0x140] ss:$8 sps:$4 sm:$0xff]   ;;  %v1743_v54 = vld [vmem:[%s2034_s7 + $0x154] ss:$8 sps:$4 sm:$0xff]   ;;  %v1746_v56 = vld [vmem:[%s2034_s7 + $0x150] ss:$8 sps:$4 sm:$0xff]  }
  0x47   : > { %1114 = vmatprep.subr.bf16.mxu0 %v1725_v42  ;;  %v1747_v57 = vld [vmem:[%s2034_s7 + $0x64] ss:$8 sps:$4 sm:$0xff]   ;;  %v1751_v59 = vld [vmem:[%s2034_s7 + $0x60] ss:$8 sps:$4 sm:$0xff]   ;;  %v1753_v61 = vld [vmem:[%s2034_s7 + $0x74] ss:$8 sps:$4 sm:$0xff]  }
  0x48   : > { %v1749_v58 = vld [vmem:[%s2034_s7 + $0x164] ss:$8 sps:$4 sm:$0xff]   ;;  %v1752_v60 = vld [vmem:[%s2034_s7 + $0x160] ss:$8 sps:$4 sm:$0xff]   ;;  %v1755_v62 = vld [vmem:[%s2034_s7 + $0x174] ss:$8 sps:$4 sm:$0xff]  }
  0x49   : > { %1002 = vmatpush1.bf16.msra.mxu1 %v1727_v43  ;;  %v1757_v63 = vld [vmem:[%s2034_s7 + $0x70] ss:$8 sps:$4 sm:$0xff]   ;;  %v1759_v1 = vld [vmem:[%s2034_s7 + $0x84] ss:$8 sps:$4 sm:$0xff]   ;;  %v1763_v3 = vld [vmem:[%s2034_s7 + $0x80] ss:$8 sps:$4 sm:$0xff]  }
  0x4a   : > { %1115 = vmatpush1.bf16.msra.mxu0 %v1728_v44  ;;  %1003 = vmatprep.subr.bf16.mxu1 %v1729_v45  ;;  %v1758_v0 = vld [vmem:[%s2034_s7 + $0x170] ss:$8 sps:$4 sm:$0xff]   ;;  %v1761_v2 = vld [vmem:[%s2034_s7 + $0x184] ss:$8 sps:$4 sm:$0xff]   ;;  %v1764_v4 = vld [vmem:[%s2034_s7 + $0x180] ss:$8 sps:$4 sm:$0xff]  }
  0x4b   : > { %1116 = vmatprep.subr.bf16.mxu0 %v1731_v46  ;;  %v1765_v5 = vld [vmem:[%s2034_s7 + $0x94] ss:$8 sps:$4 sm:$0xff]   ;;  %v1769_v7 = vld [vmem:[%s2034_s7 + $0x90] ss:$8 sps:$4 sm:$0xff]   ;;  %v1771_v9 = vld [vmem:[%s2034_s7 + $0xa4] ss:$8 sps:$4 sm:$0xff]  }
  0x4c   : > { %v1767_v6 = vld [vmem:[%s2034_s7 + $0x194] ss:$8 sps:$4 sm:$0xff]   ;;  %v1770_v8 = vld [vmem:[%s2034_s7 + $0x190] ss:$8 sps:$4 sm:$0xff]   ;;  %v1773_v10 = vld [vmem:[%s2034_s7 + $0x1a4] ss:$8 sps:$4 sm:$0xff]  }
  0x4d   : > { %1004 = vmatpush1.bf16.msra.mxu1 %v1733_v47  ;;  %v1775_v11 = vld [vmem:[%s2034_s7 + $0xa0] ss:$8 sps:$4 sm:$0xff]   ;;  %v1777_v13 = vld [vmem:[%s2034_s7 + $0xb4] ss:$8 sps:$4 sm:$0xff]   ;;  %v1781_v15 = vld [vmem:[%s2034_s7 + $0xb0] ss:$8 sps:$4 sm:$0xff]  }
  0x4e   : > { %1117 = vmatpush1.bf16.msra.mxu0 %v1734_v48  ;;  %1005 = vmatprep.subr.bf16.mxu1 %v1735_v49  ;;  %v1776_v12 = vld [vmem:[%s2034_s7 + $0x1a0] ss:$8 sps:$4 sm:$0xff]   ;;  %v1779_v14 = vld [vmem:[%s2034_s7 + $0x1b4] ss:$8 sps:$4 sm:$0xff]   ;;  %v1782_v16 = vld [vmem:[%s2034_s7 + $0x1b0] ss:$8 sps:$4 sm:$0xff]  }
  0x4f   : > { %1118 = vmatprep.subr.bf16.mxu0 %v1737_v50  ;;  %v1783_v17 = vld [vmem:[%s2034_s7 + $0xc4] ss:$8 sps:$4 sm:$0xff]   ;;  %v1787_v21 = vld [vmem:[%s2034_s7 + $0xc0] ss:$8 sps:$4 sm:$0xff]   ;;  %v1789_v23 = vld [vmem:[%s2034_s7 + $0xd4] ss:$8 sps:$4 sm:$0xff]  }
  0x50   : > { %v1809_v18 = vld [vmem:[%s2036_s8 + $0x4] ss:$16 sps:$4 sm:$0xff]   ;;  %v1812_v20 = vld [vmem:[%s2036_s8 + $0xc] ss:$16 sps:$4 sm:$0xff]   ;;  %v1788_v22 = vld [vmem:[%s2034_s7 + $0x1c0] ss:$8 sps:$4 sm:$0xff]  }
  0x51   : > { %1006 = vmatpush1.bf16.msra.mxu1 %v1739_v51  ;;  %v1785_v19 = vld [vmem:[%s2034_s7 + $0x1c4] ss:$8 sps:$4 sm:$0xff]   ;;  %1029 = vmatprep.mubr.bf16.mxu1 %v1809_v18  ;;  %v1791_v24 = vld [vmem:[%s2034_s7 + $0x1d4] ss:$8 sps:$4 sm:$0xff]   ;;  %v1793_v25 = vld [vmem:[%s2034_s7 + $0xd0] ss:$8 sps:$4 sm:$0xff]  }
  0x52   : > { %1119 = vmatpush1.bf16.msra.mxu0 %v1740_v52  ;;  %1007 = vmatprep.subr.bf16.mxu1 %v1741_v53  ;;  %v1794_v26 = vld [vmem:[%s2034_s7 + $0x1d0] ss:$8 sps:$4 sm:$0xff]   ;;  %v1795_v27 = vld [vmem:[%s2034_s7 + $0xe4] ss:$8 sps:$4 sm:$0xff]   ;;  %v1799_v29 = vld [vmem:[%s2034_s7 + $0xe0] ss:$8 sps:$4 sm:$0xff]  }
  0x53   : > { %1120 = vmatprep.subr.bf16.mxu0 %v1743_v54  ;;  %1142 = vmatprep.mubr.bf16.mxu0 %v1812_v20  ;;  %v1797_v28 = vld [vmem:[%s2034_s7 + $0x1e4] ss:$8 sps:$4 sm:$0xff]   ;;  %v1800_v30 = vld [vmem:[%s2034_s7 + $0x1e0] ss:$8 sps:$4 sm:$0xff]   ;;  %v1801_v31 = vld [vmem:[%s2034_s7 + $0xf4] ss:$8 sps:$4 sm:$0xff]  }
  0x54   : > { %v1803_v32 = vld [vmem:[%s2034_s7 + $0x1f4] ss:$8 sps:$4 sm:$0xff]   ;;  %v1805_v33 = vld [vmem:[%s2034_s7 + $0xf0] ss:$8 sps:$4 sm:$0xff]   ;;  %p1631_p11 = scmp.ne.s32.totalorder %s1885_s14, 1 }
  0x55   : > { %1008 = vmatpush1.bf16.msra.mxu1 %v1745_v55  ;;  %v1806_v34 = vld [vmem:[%s2034_s7 + $0x1f0] ss:$8 sps:$4 sm:$0xff]   ;;  %v1813_v37 = vld [vmem:[%s2036_s8 + $0x24] ss:$16 sps:$4 sm:$0xff]   ;;  %v1815_v38 = vld [vmem:[%s2036_s8 + $0x2c] ss:$16 sps:$4 sm:$0xff]  }
  0x56   : > { %1121 = vmatpush1.bf16.msra.mxu0 %v1746_v56  ;;  %1009 = vmatprep.subr.bf16.mxu1 %v1747_v57  ;;  %v1807_v35 = vld [vmem:[%s2036_s8] ss:$16 sps:$4 sm:$0xff]   ;;  %v1810_v36 = vld [vmem:[%s2036_s8 + $0x8] ss:$16 sps:$4 sm:$0xff]   ;;  %v1819_v41 = vld [vmem:[%s2036_s8 + $0x44] ss:$16 sps:$4 sm:$0xff]  }
  0x57   : > { %1122 = vmatprep.subr.bf16.mxu0 %v1749_v58  ;;  %v1817_v39 = vld [vmem:[%s2036_s8 + $0x20] ss:$16 sps:$4 sm:$0xff]   ;;  %v1818_v40 = vld [vmem:[%s2036_s8 + $0x28] ss:$16 sps:$4 sm:$0xff]   ;;  %v1821_v42 = vld [vmem:[%s2036_s8 + $0x4c] ss:$16 sps:$4 sm:$0xff]  }
  0x58   : > { %v1823_v43 = vld [vmem:[%s2036_s8 + $0x40] ss:$16 sps:$4 sm:$0xff]   ;;  %v1824_v44 = vld [vmem:[%s2036_s8 + $0x48] ss:$16 sps:$4 sm:$0xff]   ;;  %v1825_v45 = vld [vmem:[%s2036_s8 + $0x64] ss:$16 sps:$4 sm:$0xff]  }
  0x59   : > { %1010 = vmatpush1.bf16.msra.mxu1 %v1751_v59  ;;  %v1827_v46 = vld [vmem:[%s2036_s8 + $0x6c] ss:$16 sps:$4 sm:$0xff]   ;;  %v1829_v47 = vld [vmem:[%s2036_s8 + $0x60] ss:$16 sps:$4 sm:$0xff]   ;;  %v1830_v48 = vld [vmem:[%s2036_s8 + $0x68] ss:$16 sps:$4 sm:$0xff]  }
  0x5a   : > { %1123 = vmatpush1.bf16.msra.mxu0 %v1752_v60  ;;  %1011 = vmatprep.subr.bf16.mxu1 %v1753_v61  ;;  %v1831_v49 = vld [vmem:[%s2036_s8 + $0x84] ss:$16 sps:$4 sm:$0xff]   ;;  %v1833_v50 = vld [vmem:[%s2036_s8 + $0x8c] ss:$16 sps:$4 sm:$0xff]   ;;  %v1835_v51 = vld [vmem:[%s2036_s8 + $0x80] ss:$16 sps:$4 sm:$0xff]  }
  0x5b   : > { %1124 = vmatprep.subr.bf16.mxu0 %v1755_v62  ;;  %v1836_v52 = vld [vmem:[%s2036_s8 + $0x88] ss:$16 sps:$4 sm:$0xff]   ;;  %v1837_v53 = vld [vmem:[%s2036_s8 + $0xa4] ss:$16 sps:$4 sm:$0xff]   ;;  %v1839_v54 = vld [vmem:[%s2036_s8 + $0xac] ss:$16 sps:$4 sm:$0xff]  }
  0x5c   : > { %v1841_v55 = vld [vmem:[%s2036_s8 + $0xa0] ss:$16 sps:$4 sm:$0xff]   ;;  %v1842_v56 = vld [vmem:[%s2036_s8 + $0xa8] ss:$16 sps:$4 sm:$0xff]   ;;  %v1843_v57 = vld [vmem:[%s2036_s8 + $0xc4] ss:$16 sps:$4 sm:$0xff]  }
  0x5d   : > { %1012 = vmatpush1.bf16.msra.mxu1 %v1757_v63  ;;  %v1845_v58 = vld [vmem:[%s2036_s8 + $0xcc] ss:$16 sps:$4 sm:$0xff]   ;;  %v1847_v59 = vld [vmem:[%s2036_s8 + $0xc0] ss:$16 sps:$4 sm:$0xff]   ;;  %v1848_v60 = vld [vmem:[%s2036_s8 + $0xc8] ss:$16 sps:$4 sm:$0xff]  }
  0x5e   : > { %1125 = vmatpush1.bf16.msra.mxu0 %v1758_v0  ;;  %1013 = vmatprep.subr.bf16.mxu1 %v1759_v1  ;;  %v1849_v61 = vld [vmem:[%s2036_s8 + $0xe4] ss:$16 sps:$4 sm:$0xff]   ;;  %v1851_v62 = vld [vmem:[%s2036_s8 + $0xec] ss:$16 sps:$4 sm:$0xff]   ;;  %v1853_v63 = vld [vmem:[%s2036_s8 + $0xe0] ss:$16 sps:$4 sm:$0xff]  }
  0x5f   : > { %1126 = vmatprep.subr.bf16.mxu0 %v1761_v2  ;;  %v1854_v0 = vld [vmem:[%s2036_s8 + $0xe8] ss:$16 sps:$4 sm:$0xff]   ;;  %v389_v2 = vld [vmem:[#allocation2] sm:$0xff] }
  0x61   : > { %1014 = vmatpush1.bf16.msra.mxu1 %v1763_v3 }
  0x62   : > { %1127 = vmatpush1.bf16.msra.mxu0 %v1764_v4  ;;  %1015 = vmatprep.subr.bf16.mxu1 %v1765_v5 }
  0x63   : > { %1128 = vmatprep.subr.bf16.mxu0 %v1767_v6  ;;  %v390_v6 = vld [vmem:[#allocation2 + $0x8] sm:$0xff] }
  0x65   : > { %1016 = vmatpush1.bf16.msra.mxu1 %v1769_v7 }
  0x66   : > { %1129 = vmatpush1.bf16.msra.mxu0 %v1770_v8  ;;  %1017 = vmatprep.subr.bf16.mxu1 %v1771_v9 }
  0x67   : > { %1130 = vmatprep.subr.bf16.mxu0 %v1773_v10  ;;  %v391_v10 = vld [vmem:[#allocation2 + $0x10] sm:$0xff] }
  0x69   : > { %1018 = vmatpush1.bf16.msra.mxu1 %v1775_v11 }
  0x6a   : > { %1131 = vmatpush1.bf16.msra.mxu0 %v1776_v12  ;;  %1019 = vmatprep.subr.bf16.mxu1 %v1777_v13 }
  0x6b   : > { %1132 = vmatprep.subr.bf16.mxu0 %v1779_v14 }
  0x6d   : > { %1020 = vmatpush1.bf16.msra.mxu1 %v1781_v15  ;;  %v392_v15 = vld [vmem:[#allocation2 + $0x18] sm:$0xff] }
  0x6e   : > { %1133 = vmatpush1.bf16.msra.mxu0 %v1782_v16  ;;  %1021 = vmatprep.subr.bf16.mxu1 %v1783_v17 }
  0x6f   : > { %1134 = vmatprep.subr.bf16.mxu0 %v1785_v19 }
  0x71   : > { %1022 = vmatpush1.bf16.msra.mxu1 %v1787_v21 }
  0x72   : > { %1135 = vmatpush1.bf16.msra.mxu0 %v1788_v22  ;;  %1023 = vmatprep.subr.bf16.mxu1 %v1789_v23  ;;  %v393_v22 = vld [vmem:[#allocation2 + $0x20] sm:$0xff] }
  0x73   : > { %1136 = vmatprep.subr.bf16.mxu0 %v1791_v24 }
  0x75   : > { %1024 = vmatpush1.bf16.msra.mxu1 %v1793_v25 }
  0x76   : > { %1137 = vmatpush1.bf16.msra.mxu0 %v1794_v26  ;;  %1025 = vmatprep.subr.bf16.mxu1 %v1795_v27  ;;  %v394_v26 = vld [vmem:[#allocation2 + $0x28] sm:$0xff] }
  0x77   : > { %1138 = vmatprep.subr.bf16.mxu0 %v1797_v28 }
  0x79   : > { %1026 = vmatpush1.bf16.msra.mxu1 %v1799_v29 }
  0x7a   : > { %1139 = vmatpush1.bf16.msra.mxu0 %v1800_v30  ;;  %1027 = vmatprep.subr.bf16.mxu1 %v1801_v31  ;;  %v395_v30 = vld [vmem:[#allocation2 + $0x30] sm:$0xff] }
  0x7b   : > { %1140 = vmatprep.subr.bf16.mxu0 %v1803_v32 }
  0x7d   : > { %1028 = vmatpush1.bf16.msra.mxu1 %v1805_v33 }
  0x7e   : > { %1141 = vmatpush1.bf16.msra.mxu0 %v1806_v34 }
  0x80   : > { %1030 = vmatmul.mubr.bf16.vlgmr.msra.gmra.mrb[0].mxu1 %v1807_v35  ;;  %v396_v35 = vld [vmem:[#allocation2 + $0x38] sm:$0xff] }
  0x81   : > { %1143 = vmatmul.mubr.bf16.vlgmr.msra.gmra.mrb[0].mxu0 %v1810_v36  ;;  %1039 = vmatprep.mubr.bf16.mxu1 %v1813_v37 }
  0x82   : > { %1152 = vmatprep.mubr.bf16.mxu0 %v1815_v38 }
  0x88   : > { %1040 = vmatmul.mubr.bf16.gmra.mrb[4].mxu1 %v1817_v39 }
  0x89   : > { %1153 = vmatmul.mubr.bf16.gmra.mrb[4].mxu0 %v1818_v40  ;;  %1049 = vmatprep.mubr.bf16.mxu1 %v1819_v41 }
  0x8a   : > { %1162 = vmatprep.mubr.bf16.mxu0 %v1821_v42  ;;  %v397_v42 = vld [vmem:[#allocation2 + $0x40] sm:$0xff] }
  0x90   : > { %1050 = vmatmul.mubr.bf16.gmra.mrb[8].mxu1 %v1823_v43 }
  0x91   : > { %1163 = vmatmul.mubr.bf16.gmra.mrb[8].mxu0 %v1824_v44  ;;  %1059 = vmatprep.mubr.bf16.mxu1 %v1825_v45 }
  0x92   : > { %1172 = vmatprep.mubr.bf16.mxu0 %v1827_v46  ;;  %v398_v46 = vld [vmem:[#allocation2 + $0x48] sm:$0xff] }
  0x98   : > { %1060 = vmatmul.mubr.bf16.gmra.mrb[12].mxu1 %v1829_v47 }
  0x99   : > { %1173 = vmatmul.mubr.bf16.gmra.mrb[12].mxu0 %v1830_v48  ;;  %1069 = vmatprep.mubr.bf16.mxu1 %v1831_v49 }
  0x9a   : > { %1182 = vmatprep.mubr.bf16.mxu0 %v1833_v50  ;;  %v399_v50 = vld [vmem:[#allocation2 + $0x50] sm:$0xff] }
  0xa0   : > { %1070 = vmatmul.mubr.bf16.gmra.mrb[16].mxu1 %v1835_v51 }
  0xa1   : > { %1183 = vmatmul.mubr.bf16.gmra.mrb[16].mxu0 %v1836_v52  ;;  %1079 = vmatprep.mubr.bf16.mxu1 %v1837_v53 }
  0xa2   : > { %1192 = vmatprep.mubr.bf16.mxu0 %v1839_v54 }
  0xa8   : > { %1080 = vmatmul.mubr.bf16.gmra.mrb[20].mxu1 %v1841_v55  ;;  %v400_v55 = vld [vmem:[#allocation2 + $0x58] sm:$0xff] }
  0xa9   : > { %1193 = vmatmul.mubr.bf16.gmra.mrb[20].mxu0 %v1842_v56  ;;  %1089 = vmatprep.mubr.bf16.mxu1 %v1843_v57 }
  0xaa   : > { %1202 = vmatprep.mubr.bf16.mxu0 %v1845_v58 }
  0xb0   : > { %1090 = vmatmul.mubr.bf16.gmra.mrb[24].mxu1 %v1847_v59 }
  0xb1   : > { %1203 = vmatmul.mubr.bf16.gmra.mrb[24].mxu0 %v1848_v60  ;;  %1099 = vmatprep.mubr.bf16.mxu1 %v1849_v61 }
  0xb2   : > { %1212 = vmatprep.mubr.bf16.mxu0 %v1851_v62  ;;  %v401_v62 = vld [vmem:[#allocation2 + $0x60] sm:$0xff] }
  0xb8   : > { %1100 = vmatmul.mubr.bf16.gmra.mrb[28].mxu1 %v1853_v63 }
  0xb9   : > { %1213 = vmatmul.mubr.bf16.gmra.mrb[28].mxu0 %v1854_v0 }
 0x153   : > { %v1031_v1 = vpop.f32.mrb[0].mxu1 }
 0x154   : > { %v1144_v3 = vpop.f32.mrb[0].mxu0  ;;  %v1033_v5 = vpop.f32.mrb[1].mxu1 }
 0x155   : > { %v1145_v4 = vadd.f32 %v1144_v3, %v1031_v1  ;;  %v1146_v7 = vpop.f32.mrb[1].mxu0  ;;  %v1035_v9 = vpop.f32.mrb[2].mxu1 }
 0x156   : > { %v1147_v8 = vadd.f32 %v1146_v7, %v1033_v5  ;;  %v1148_v11 = vpop.f32.mrb[2].mxu0  ;;  %v1037_v14 = vpop.f32.mrb[3].mxu1 }
 0x157   : > { %v1223_v12 = vadd.f32 %v1145_v4, %v389_v2  ;;  %v1149_v13 = vadd.f32 %v1148_v11, %v1035_v9  ;;  %v1150_v16 = vpop.f32.mrb[3].mxu0  ;;  %v402_v2 = vld [vmem:[#allocation2 + $0x68] sm:$0xff]  ;;  %v404_v11 = vld [vmem:[#allocation2 + $0x78] sm:$0xff] }
 0x158   : > { %v1224_v17 = vadd.f32 %v1147_v8, %v390_v6  ;;  %v1151_v18 = vadd.f32 %v1150_v16, %v1037_v14  ;;  %v403_v6 = vld [vmem:[#allocation2 + $0x70] sm:$0xff] }
 0x159   : > { %1255 = vst [vmem:[#allocation2] sm:$0xff] %v1223_v12  ;;  %v1225_v19 = vadd.f32 %v1149_v13, %v391_v10 }
 0x15a   : > { %1256 = vst [vmem:[#allocation2 + $0x8] sm:$0xff] %v1224_v17  ;;  %v1226_v20 = vadd.f32 %v1151_v18, %v392_v15  ;;  %v405_v18 = vld [vmem:[#allocation2 + $0x80] sm:$0xff] }
 0x15b   : > { %1257 = vst [vmem:[#allocation2 + $0x10] sm:$0xff] %v1225_v19  ;;  %v1041_v21 = vpop.f32.mrb[4].mxu1 }
 0x15c   : > { %1258 = vst [vmem:[#allocation2 + $0x18] sm:$0xff] %v1226_v20  ;;  %v1154_v23 = vpop.f32.mrb[4].mxu0  ;;  %v1043_v25 = vpop.f32.mrb[5].mxu1 }
 0x15d   : > { %v1155_v24 = vadd.f32 %v1154_v23, %v1041_v21  ;;  %v1156_v27 = vpop.f32.mrb[5].mxu0  ;;  %v1045_v29 = vpop.f32.mrb[6].mxu1 }
 0x15e   : > { %v1157_v28 = vadd.f32 %v1156_v27, %v1043_v25  ;;  %v1158_v31 = vpop.f32.mrb[6].mxu0  ;;  %v1047_v34 = vpop.f32.mrb[7].mxu1 }
 0x15f   : > { %v1227_v32 = vadd.f32 %v1155_v24, %v393_v22  ;;  %v1159_v33 = vadd.f32 %v1158_v31, %v1045_v29  ;;  %v1160_v36 = vpop.f32.mrb[7].mxu0  ;;  %v406_v22 = vld [vmem:[#allocation2 + $0x88] sm:$0xff]  ;;  %v408_v31 = vld [vmem:[#allocation2 + $0x98] sm:$0xff] }
 0x160   : > { %v1228_v37 = vadd.f32 %v1157_v28, %v394_v26  ;;  %v1161_v38 = vadd.f32 %v1160_v36, %v1047_v34  ;;  %v407_v26 = vld [vmem:[#allocation2 + $0x90] sm:$0xff] }
 0x161   : > { %1259 = vst [vmem:[#allocation2 + $0x20] sm:$0xff] %v1227_v32  ;;  %v1229_v39 = vadd.f32 %v1159_v33, %v395_v30 }
 0x162   : > { %1260 = vst [vmem:[#allocation2 + $0x28] sm:$0xff] %v1228_v37  ;;  %v1230_v40 = vadd.f32 %v1161_v38, %v396_v35  ;;  %v409_v38 = vld [vmem:[#allocation2 + $0xa0] sm:$0xff] }
 0x163   : > { %1261 = vst [vmem:[#allocation2 + $0x30] sm:$0xff] %v1229_v39  ;;  %v1051_v41 = vpop.f32.mrb[8].mxu1 }
 0x164   : > { %1262 = vst [vmem:[#allocation2 + $0x38] sm:$0xff] %v1230_v40  ;;  %v1164_v43 = vpop.f32.mrb[8].mxu0  ;;  %v1053_v45 = vpop.f32.mrb[9].mxu1 }
 0x165   : > { %v1165_v44 = vadd.f32 %v1164_v43, %v1051_v41  ;;  %v1166_v47 = vpop.f32.mrb[9].mxu0  ;;  %v1055_v49 = vpop.f32.mrb[10].mxu1 }
 0x166   : > { %v1167_v48 = vadd.f32 %v1166_v47, %v1053_v45  ;;  %v1168_v51 = vpop.f32.mrb[10].mxu0  ;;  %v1057_v54 = vpop.f32.mrb[11].mxu1 }
 0x167   : > { %v1231_v52 = vadd.f32 %v1165_v44, %v397_v42  ;;  %v1169_v53 = vadd.f32 %v1168_v51, %v1055_v49  ;;  %v1170_v56 = vpop.f32.mrb[11].mxu0  ;;  %v410_v42 = vld [vmem:[#allocation2 + $0xa8] sm:$0xff]  ;;  %v412_v51 = vld [vmem:[#allocation2 + $0xb8] sm:$0xff] }
 0x168   : > { %v1232_v57 = vadd.f32 %v1167_v48, %v398_v46  ;;  %v1171_v58 = vadd.f32 %v1170_v56, %v1057_v54  ;;  %v411_v46 = vld [vmem:[#allocation2 + $0xb0] sm:$0xff] }
 0x169   : > { %1263 = vst [vmem:[#allocation2 + $0x40] sm:$0xff] %v1231_v52  ;;  %v1233_v59 = vadd.f32 %v1169_v53, %v399_v50 }
 0x16a   : > { %1264 = vst [vmem:[#allocation2 + $0x48] sm:$0xff] %v1232_v57  ;;  %v1234_v60 = vadd.f32 %v1171_v58, %v400_v55  ;;  %v413_v58 = vld [vmem:[#allocation2 + $0xc0] sm:$0xff] }
 0x16b   : > { %1265 = vst [vmem:[#allocation2 + $0x50] sm:$0xff] %v1233_v59  ;;  %v1061_v61 = vpop.f32.mrb[12].mxu1 }
 0x16c   : > { %1266 = vst [vmem:[#allocation2 + $0x58] sm:$0xff] %v1234_v60  ;;  %v1174_v63 = vpop.f32.mrb[12].mxu0  ;;  %v1063_v1 = vpop.f32.mrb[13].mxu1 }
 0x16d   : > { %v1175_v0 = vadd.f32 %v1174_v63, %v1061_v61  ;;  %v1176_v3 = vpop.f32.mrb[13].mxu0  ;;  %v1065_v5 = vpop.f32.mrb[14].mxu1 }
 0x16e   : > { %v1177_v4 = vadd.f32 %v1176_v3, %v1063_v1  ;;  %v1178_v7 = vpop.f32.mrb[14].mxu0  ;;  %v1067_v10 = vpop.f32.mrb[15].mxu1 }
 0x16f   : > { %v1235_v8 = vadd.f32 %v1175_v0, %v401_v62  ;;  %v1179_v9 = vadd.f32 %v1178_v7, %v1065_v5  ;;  %v1180_v12 = vpop.f32.mrb[15].mxu0  ;;  %v414_v62 = vld [vmem:[#allocation2 + $0xc8] sm:$0xff]  ;;  %v416_v7 = vld [vmem:[#allocation2 + $0xd8] sm:$0xff] }
 0x170   : > { %v1236_v13 = vadd.f32 %v1177_v4, %v402_v2  ;;  %v1181_v14 = vadd.f32 %v1180_v12, %v1067_v10  ;;  %v415_v2 = vld [vmem:[#allocation2 + $0xd0] sm:$0xff] }
 0x171   : > { %1267 = vst [vmem:[#allocation2 + $0x60] sm:$0xff] %v1235_v8  ;;  %v1237_v15 = vadd.f32 %v1179_v9, %v403_v6 }
 0x172   : > { %1268 = vst [vmem:[#allocation2 + $0x68] sm:$0xff] %v1236_v13  ;;  %v1238_v16 = vadd.f32 %v1181_v14, %v404_v11  ;;  %v417_v14 = vld [vmem:[#allocation2 + $0xe0] sm:$0xff] }
 0x173   : > { %1269 = vst [vmem:[#allocation2 + $0x70] sm:$0xff] %v1237_v15  ;;  %v1071_v17 = vpop.f32.mrb[16].mxu1 }
 0x174   : > { %1270 = vst [vmem:[#allocation2 + $0x78] sm:$0xff] %v1238_v16  ;;  %v1184_v19 = vpop.f32.mrb[16].mxu0  ;;  %v1073_v21 = vpop.f32.mrb[17].mxu1 }
 0x175   : > { %v1185_v20 = vadd.f32 %v1184_v19, %v1071_v17  ;;  %v1186_v23 = vpop.f32.mrb[17].mxu0  ;;  %v1075_v25 = vpop.f32.mrb[18].mxu1 }
 0x176   : > { %v1187_v24 = vadd.f32 %v1186_v23, %v1073_v21  ;;  %v1188_v27 = vpop.f32.mrb[18].mxu0  ;;  %v1077_v30 = vpop.f32.mrb[19].mxu1 }
 0x177   : > { %v1239_v28 = vadd.f32 %v1185_v20, %v405_v18  ;;  %v1189_v29 = vadd.f32 %v1188_v27, %v1075_v25  ;;  %v1190_v32 = vpop.f32.mrb[19].mxu0  ;;  %v418_v18 = vld [vmem:[#allocation2 + $0xe8] sm:$0xff]  ;;  %v420_v27 = vld [vmem:[#allocation2 + $0xf8] sm:$0xff] }
 0x178   : > { %v1240_v33 = vadd.f32 %v1187_v24, %v406_v22  ;;  %v1191_v34 = vadd.f32 %v1190_v32, %v1077_v30  ;;  %v419_v22 = vld [vmem:[#allocation2 + $0xf0] sm:$0xff] }
 0x179   : > { %1271 = vst [vmem:[#allocation2 + $0x80] sm:$0xff] %v1239_v28  ;;  %v1241_v35 = vadd.f32 %v1189_v29, %v407_v26 }
 0x17a   : > { %1272 = vst [vmem:[#allocation2 + $0x88] sm:$0xff] %v1240_v33  ;;  %v1242_v36 = vadd.f32 %v1191_v34, %v408_v31  ;;  %v1325_v33 = vlaneseq (!%p1631_p11)  ;;  %v1323_v34 = vld [vmem:[%s2288_s2] sm:$0x3] (!%p1631_p11) }
 0x17b   : > { %1273 = vst [vmem:[#allocation2 + $0x90] sm:$0xff] %v1241_v35  ;;  %v1081_v37 = vpop.f32.mrb[20].mxu1 }
 0x17c   : > { %1274 = vst [vmem:[#allocation2 + $0x98] sm:$0xff] %v1242_v36  ;;  %v1194_v39 = vpop.f32.mrb[20].mxu0  ;;  %v1083_v41 = vpop.f32.mrb[21].mxu1  ;;  %v1326_v35 = vshrl.u32 (!%p1631_p11), %v1325_v33, 7  ;;  %v1291_v36 = vld [vmem:[#allocation2] sm:$0xff] (!%p1631_p11) }
 0x17d   : > { %v1195_v40 = vadd.f32 %v1194_v39, %v1081_v37  ;;  %v1196_v43 = vpop.f32.mrb[21].mxu0  ;;  %v1085_v45 = vpop.f32.mrb[22].mxu1  ;;  %v1292_v37 = vld [vmem:[#allocation2 + $0x8] sm:$0xff] (!%p1631_p11)  ;;  %v1294_v39 = vld [vmem:[#allocation2 + $0x18] sm:$0xff] (!%p1631_p11) }
 0x17e   : > { %v1197_v44 = vadd.f32 %v1196_v43, %v1083_v41  ;;  %v1198_v47 = vpop.f32.mrb[22].mxu0  ;;  %v1087_v50 = vpop.f32.mrb[23].mxu1  ;;  %v1331_v41 = vsub.s32 (!%p1631_p11), 1, %v1326_v35  ;;  %v1296_v43 = vld [vmem:[#allocation2 + $0x28] sm:$0xff] (!%p1631_p11) }
 0x17f   : > { %v1243_v48 = vadd.f32 %v1195_v40, %v409_v38  ;;  %v1199_v49 = vadd.f32 %v1198_v47, %v1085_v45  ;;  %v1200_v52 = vpop.f32.mrb[23].mxu0  ;;  %v1293_v38 = vld [vmem:[#allocation2 + $0x10] sm:$0xff] (!%p1631_p11)  ;;  %v1327_v40 = vsub.s32 (!%p1631_p11), 0, %v1326_v35  ;;  %v1298_v45 = vld [vmem:[#allocation2 + $0x38] sm:$0xff] (!%p1631_p11)  ;;  %v1300_v47 = vld [vmem:[#allocation2 + $0x48] sm:$0xff] (!%p1631_p11) }
 0x180   : > { %v1244_v53 = vadd.f32 %v1197_v44, %v410_v42  ;;  %v1201_v54 = vadd.f32 %v1200_v52, %v1087_v50  ;;  %v1295_v42 = vld [vmem:[#allocation2 + $0x20] sm:$0xff] (!%p1631_p11)  ;;  %v1297_v44 = vld [vmem:[#allocation2 + $0x30] sm:$0xff] (!%p1631_p11)  ;;  %v2141_v50 = vrot.slane (!%p1631_p11), %v1323_v34, %v1331_v41 }
 0x181   : > { %1275 = vst [vmem:[#allocation2 + $0xa0] sm:$0xff] %v1243_v48  ;;  %v1245_v55 = vadd.f32 %v1199_v49, %v411_v46  ;;  %v1299_v46 = vld [vmem:[#allocation2 + $0x40] sm:$0xff] (!%p1631_p11)  ;;  %v1301_v48 = vld [vmem:[#allocation2 + $0x50] sm:$0xff] (!%p1631_p11)  ;;  %v2139_v49 = vrot.slane (!%p1631_p11), %v1323_v34, %v1327_v40 }
 0x182   : > { %1276 = vst [vmem:[#allocation2 + $0xa8] sm:$0xff] %v1244_v53  ;;  %v1246_v56 = vadd.f32 %v1201_v54, %v412_v51  ;;  %v1302_v51 = vld [vmem:[#allocation2 + $0x58] sm:$0xff] (!%p1631_p11)  ;;  %v1303_v52 = vld [vmem:[#allocation2 + $0x60] sm:$0xff] (!%p1631_p11)  ;;  %v1304_v53 = vld [vmem:[#allocation2 + $0x68] sm:$0xff] (!%p1631_p11) }
 0x183   : > { %1277 = vst [vmem:[#allocation2 + $0xb0] sm:$0xff] %v1245_v55  ;;  %v1091_v57 = vpop.f32.mrb[24].mxu1  ;;  %v1305_v54 = vld [vmem:[#allocation2 + $0x70] sm:$0xff] (!%p1631_p11)  ;;  %v1306_v55 = vld [vmem:[#allocation2 + $0x78] sm:$0xff] (!%p1631_p11) }
 0x184   : > { %1278 = vst [vmem:[#allocation2 + $0xb8] sm:$0xff] %v1246_v56  ;;  %v1204_v59 = vpop.f32.mrb[24].mxu0  ;;  %v1093_v61 = vpop.f32.mrb[25].mxu1  ;;  %v1307_v56 = vld [vmem:[#allocation2 + $0x80] sm:$0xff] (!%p1631_p11) }
 0x185   : > { %v1205_v60 = vadd.f32 %v1204_v59, %v1091_v57  ;;  %v1206_v63 = vpop.f32.mrb[25].mxu0  ;;  %v1095_v1 = vpop.f32.mrb[26].mxu1  ;;  %v1335_v57 = vadd.f32 (!%p1631_p11), %v2139_v49, %v1291_v36  ;;  %v1337_v59 = vadd.f32 (!%p1631_p11), %v2139_v49, %v1293_v38 }
 0x186   : > { %v1207_v0 = vadd.f32 %v1206_v63, %v1093_v61  ;;  %v1208_v3 = vpop.f32.mrb[26].mxu0  ;;  %v1097_v6 = vpop.f32.mrb[27].mxu1  ;;  %v1308_v61 = vld [vmem:[#allocation2 + $0x88] sm:$0xff] (!%p1631_p11)  ;;  %v1310_v63 = vld [vmem:[#allocation2 + $0x98] sm:$0xff] (!%p1631_p11) }
 0x187   : > { %v1247_v4 = vadd.f32 %v1205_v60, %v413_v58  ;;  %v1209_v5 = vadd.f32 %v1208_v3, %v1095_v1  ;;  %v1210_v8 = vpop.f32.mrb[27].mxu0  ;;  %v1336_v58 = vadd.f32 (!%p1631_p11), %v2141_v50, %v1292_v37  ;;  %v1338_v60 = vadd.f32 (!%p1631_p11), %v2141_v50, %v1294_v39  ;;  %1367 = vst [vmem:[%s2289_s3] sm:$0xff] (!%p1631_p11), %v1335_v57 }
 0x188   : > { %v1248_v9 = vadd.f32 %v1207_v0, %v414_v62  ;;  %v1211_v10 = vadd.f32 %v1210_v8, %v1097_v6  ;;  %v1309_v62 = vld [vmem:[#allocation2 + $0x90] sm:$0xff] (!%p1631_p11)  ;;  %v1339_v0 = vadd.f32 (!%p1631_p11), %v2139_v49, %v1295_v42  ;;  %v1340_v1 = vadd.f32 (!%p1631_p11), %v2141_v50, %v1296_v43  ;;  %1369 = vst [vmem:[%s2289_s3 + $0x10] sm:$0xff] (!%p1631_p11), %v1337_v59 }
 0x189   : > { %1279 = vst [vmem:[#allocation2 + $0xc0] sm:$0xff] %v1247_v4  ;;  %v1249_v11 = vadd.f32 %v1209_v5, %v415_v2  ;;  %v1341_v2 = vadd.f32 (!%p1631_p11), %v2139_v49, %v1297_v44  ;;  %v1342_v3 = vadd.f32 (!%p1631_p11), %v2141_v50, %v1298_v45  ;;  %v1311_v4 = vld [vmem:[#allocation2 + $0xa0] sm:$0xff] (!%p1631_p11)  ;;  %v1312_v5 = vld [vmem:[#allocation2 + $0xa8] sm:$0xff] (!%p1631_p11)  ;;  %1368 = vst [vmem:[%s2289_s3 + $0x8] sm:$0xff] (!%p1631_p11), %v1336_v58 }
 0x18a   : > { %1280 = vst [vmem:[#allocation2 + $0xc8] sm:$0xff] %v1248_v9  ;;  %v1250_v12 = vadd.f32 %v1211_v10, %v416_v7  ;;  %v1313_v6 = vld [vmem:[#allocation2 + $0xb0] sm:$0xff] (!%p1631_p11)  ;;  %1370 = vst [vmem:[%s2289_s3 + $0x18] sm:$0xff] (!%p1631_p11), %v1338_v60  ;;  %v1343_v7 = vadd.f32 (!%p1631_p11), %v2139_v49, %v1299_v46  ;;  %v1344_v8 = vadd.f32 (!%p1631_p11), %v2141_v50, %v1300_v47 }
 0x18b   : > { %1281 = vst [vmem:[#allocation2 + $0xd0] sm:$0xff] %v1249_v11  ;;  %v1101_v13 = vpop.f32.mrb[28].mxu1  ;;  %v1345_v9 = vadd.f32 (!%p1631_p11), %v2139_v49, %v1301_v48  ;;  %v1346_v10 = vadd.f32 (!%p1631_p11), %v2141_v50, %v1302_v51  ;;  %v1314_v11 = vld [vmem:[#allocation2 + $0xb8] sm:$0xff] (!%p1631_p11)  ;;  %1371 = vst [vmem:[%s2289_s3 + $0x20] sm:$0xff] (!%p1631_p11), %v1339_v0 }
 0x18c   : > { %1282 = vst [vmem:[#allocation2 + $0xd8] sm:$0xff] %v1250_v12  ;;  %v1214_v15 = vpop.f32.mrb[28].mxu0  ;;  %v1103_v17 = vpop.f32.mrb[29].mxu1  ;;  %1372 = vst [vmem:[%s2289_s3 + $0x28] sm:$0xff] (!%p1631_p11), %v1340_v1 }
 0x18d   : > { %v1215_v16 = vadd.f32 %v1214_v15, %v1101_v13  ;;  %v1216_v19 = vpop.f32.mrb[29].mxu0  ;;  %v1105_v21 = vpop.f32.mrb[30].mxu1  ;;  %1373 = vst [vmem:[%s2289_s3 + $0x30] sm:$0xff] (!%p1631_p11), %v1341_v2  ;;  %1374 = vst [vmem:[%s2289_s3 + $0x38] sm:$0xff] (!%p1631_p11), %v1342_v3  ;;  %v1348_v15 = vadd.f32 (!%p1631_p11), %v2141_v50, %v1304_v53 }
 0x18e   : > { %v1217_v20 = vadd.f32 %v1216_v19, %v1103_v17  ;;  %v1218_v23 = vpop.f32.mrb[30].mxu0  ;;  %v1107_v26 = vpop.f32.mrb[31].mxu1  ;;  %1290 = sbr.rel (%p1631_p11) target bundleno = 415 (0x19f), region = 63  ;;  %v1350_v17 = vadd.f32 (!%p1631_p11), %v2141_v50, %v1306_v55  ;;  %1375 = vst [vmem:[%s2289_s3 + $0x40] sm:$0xff] (!%p1631_p11), %v1343_v7  ;;  %1376 = vst [vmem:[%s2289_s3 + $0x48] sm:$0xff] (!%p1631_p11), %v1344_v8 }
 0x18f   : > { %v1251_v24 = vadd.f32 %v1215_v16, %v417_v14  ;;  %v1219_v25 = vadd.f32 %v1218_v23, %v1105_v21  ;;  %v1220_v28 = vpop.f32.mrb[31].mxu0  ;;  %v1347_v14 = vadd.f32 (!%p1631_p11), %v2139_v49, %v1303_v52  ;;  %v1349_v16 = vadd.f32 (!%p1631_p11), %v2139_v49, %v1305_v54  ;;  %1377 = vst [vmem:[%s2289_s3 + $0x50] sm:$0xff] (!%p1631_p11), %v1345_v9 }
 0x190   : > { %v1252_v29 = vadd.f32 %v1217_v20, %v418_v18  ;;  %v1221_v30 = vadd.f32 %v1220_v28, %v1107_v26  ;;  %v1315_v12 = vld [vmem:[#allocation2 + $0xc0] sm:$0xff] (!%p1631_p11)  ;;  %1378 = vst [vmem:[%s2289_s3 + $0x58] sm:$0xff] (!%p1631_p11), %v1346_v10  ;;  %v1351_v21 = vadd.f32 (!%p1631_p11), %v2139_v49, %v1307_v56  ;;  %v1353_v23 = vadd.f32 (!%p1631_p11), %v2139_v49, %v1309_v62 }
 0x191   : > { %1283 = vst [vmem:[#allocation2 + $0xe0] sm:$0xff] %v1251_v24  ;;  %v1253_v31 = vadd.f32 %v1219_v25, %v419_v22  ;;  %v1316_v13 = vld [vmem:[#allocation2 + $0xc8] sm:$0xff] (!%p1631_p11)  ;;  %v1352_v22 = vadd.f32 (!%p1631_p11), %v2141_v50, %v1308_v61  ;;  %v1354_v24 = vadd.f32 (!%p1631_p11), %v2141_v50, %v1310_v63  ;;  %1379 = vst [vmem:[%s2289_s3 + $0x60] sm:$0xff] (!%p1631_p11), %v1347_v14 }
 0x192   : > { %1284 = vst [vmem:[#allocation2 + $0xe8] sm:$0xff] %v1252_v29  ;;  %v1254_v32 = vadd.f32 %v1221_v30, %v420_v27  ;;  %v1317_v18 = vld [vmem:[#allocation2 + $0xd0] sm:$0xff] (!%p1631_p11)  ;;  %1380 = vst [vmem:[%s2289_s3 + $0x68] sm:$0xff] (!%p1631_p11), %v1348_v15  ;;  %v1355_v28 = vadd.f32 (!%p1631_p11), %v2139_v49, %v1311_v4  ;;  %v1356_v29 = vadd.f32 (!%p1631_p11), %v2141_v50, %v1312_v5 }
 0x193   : > { %1285 = vst [vmem:[#allocation2 + $0xf0] sm:$0xff] %v1253_v31  ;;  %v1318_v19 = vld [vmem:[#allocation2 + $0xd8] sm:$0xff] (!%p1631_p11)  ;;  %1381 = vst [vmem:[%s2289_s3 + $0x70] sm:$0xff] (!%p1631_p11), %v1349_v16  ;;  %v1357_v30 = vadd.f32 (!%p1631_p11), %v2139_v49, %v1313_v6  ;;  %v1358_v31 = vadd.f32 (!%p1631_p11), %v2141_v50, %v1314_v11  ;;  %v1360_v33 = vadd.f32 (!%p1631_p11), %v2141_v50, %v1316_v13 }
 0x194   : > { %1286 = vst [vmem:[#allocation2 + $0xf8] sm:$0xff] %v1254_v32  ;;  %1382 = vst [vmem:[%s2289_s3 + $0x78] sm:$0xff] (!%p1631_p11), %v1350_v17  ;;  %v1359_v32 = vadd.f32 (!%p1631_p11), %v2139_v49, %v1315_v12  ;;  %v1361_v34 = vadd.f32 (!%p1631_p11), %v2139_v49, %v1317_v18  ;;  %v1362_v35 = vadd.f32 (!%p1631_p11), %v2141_v50, %v1318_v19 }
 0x195   : > { %1383 = vst [vmem:[%s2289_s3 + $0x80] sm:$0xff] %v1351_v21  ;;  %1384 = vst [vmem:[%s2289_s3 + $0x88] sm:$0xff] %v1352_v22 }
 0x196   : > { %1385 = vst [vmem:[%s2289_s3 + $0x90] sm:$0xff] %v1353_v23  ;;  %1386 = vst [vmem:[%s2289_s3 + $0x98] sm:$0xff] %v1354_v24 }
 0x197   : > { %1387 = vst [vmem:[%s2289_s3 + $0xa0] sm:$0xff] %v1355_v28  ;;  %1388 = vst [vmem:[%s2289_s3 + $0xa8] sm:$0xff] %v1356_v29 }
 0x198   : > { %v1319_v20 = vld [vmem:[#allocation2 + $0xe0] sm:$0xff]  ;;  %1389 = vst [vmem:[%s2289_s3 + $0xb0] sm:$0xff] %v1357_v30  ;;  %1390 = vst [vmem:[%s2289_s3 + $0xb8] sm:$0xff] %v1358_v31 }
 0x199   : > { %v1320_v25 = vld [vmem:[#allocation2 + $0xe8] sm:$0xff]  ;;  %v1363_v36 = vadd.f32 %v2139_v49, %v1319_v20  ;;  %1391 = vst [vmem:[%s2289_s3 + $0xc0] sm:$0xff] %v1359_v32  ;;  %1392 = vst [vmem:[%s2289_s3 + $0xc8] sm:$0xff] %v1360_v33 }
 0x19a   : > { %v1321_v26 = vld [vmem:[#allocation2 + $0xf0] sm:$0xff]  ;;  %v1364_v37 = vadd.f32 %v2141_v50, %v1320_v25  ;;  %1393 = vst [vmem:[%s2289_s3 + $0xd0] sm:$0xff] %v1361_v34  ;;  %1394 = vst [vmem:[%s2289_s3 + $0xd8] sm:$0xff] %v1362_v35 }
 0x19b   : > { %v1322_v27 = vld [vmem:[#allocation2 + $0xf8] sm:$0xff]  ;;  %v1365_v38 = vadd.f32 %v2139_v49, %v1321_v26  ;;  %1395 = vst [vmem:[%s2289_s3 + $0xe0] sm:$0xff] %v1363_v36 }
 0x19c   : > { %v1366_v39 = vadd.f32 %v2141_v50, %v1322_v27  ;;  %1396 = vst [vmem:[%s2289_s3 + $0xe8] sm:$0xff] %v1364_v37 }
 0x19d   : > { %1397 = vst [vmem:[%s2289_s3 + $0xf0] sm:$0xff] %v1365_v38 }
 0x19e   : > { %1398 = vst [vmem:[%s2289_s3 + $0xf8] sm:$0xff] %v1366_v39 }
 0x19f PF: > { %s13_s16 = sadd.s32 1, %s1893_s16   ;;  %s2290_s12 = smov %s1881_s13 }
 0x1a0   : > { %p10_p12 = scmp.ge.s32.totalorder %s13_s16, 4   ;;  %s2291_s13 = smov %s1951_s20 }
 0x1a1   : > { %s2292_s14 = smov %s1889_s15  ;;  %s2293_s15 = smov %s2295_s17 }
 0x1a2   :  { %12 = sbr.rel (!%p10_p12) target bundleno = 3 (0x3), region = 104 }

</bundles_post_ra>
